<compile_context>
chip_gen: v7x
topology: tpu7x:2x2x1
jax: 0.10.0
libtpu: 0.0.40
codegen_flags: <defaults>
</compile_context>

<pallas_src>
import functools
import math

import jax
import jax.numpy as jnp
from jax.experimental import pallas as pl
from jax.experimental.pallas import tpu as pltpu


POINT_TILE_CAP = 2048            # max points per tile (multiple of 8)
CONV3_CHUNK = 256                # column chunk of the 128->1024 conv3 matmul
VMEM_LIMIT = 32 * 1024 * 1024    # safe scoped-VMEM limit on v5e / v6e / v7x


# ----------------------------------------------------------------------------
# Small helpers
# ----------------------------------------------------------------------------

def _round_up(v, m):
    return (v + m - 1) // m * m


def _tile_points(n, cap=POINT_TILE_CAP):
    """Point tile TN (multiple of 8, <= cap) and zero-padded point count."""
    tn = min(cap, _round_up(n, 8))
    return tn, _round_up(n, tn)


def _bf16(w):
    return w.astype(jnp.bfloat16)


def _const_spec(shape):
    """Full-array block that is resident across the whole grid."""
    ndim = len(shape)
    return pl.BlockSpec(shape, lambda b, n: (0,) * ndim)


# ----------------------------------------------------------------------------
# In-kernel building blocks
# ----------------------------------------------------------------------------

def _row_mask(n, tn, n_valid, n_padded):
    """(TN, 1) bool mask of real (non-padded) points, or None if no padding."""
    if n_valid == n_padded:
        return None
    row = jax.lax.broadcasted_iota(jnp.int32, (tn, 1), 0) + n * tn
    return row < n_valid


def _masked_chunk_max(h_bf16, w3_ref, b3_ref, acc_ref, valid, *, relu, chunk):
    """acc[1, C] = max(acc, max_rows(h @ W3_chunk [+ b3][, relu])) per column chunk.

    Chunking keeps the live f32 conv3 temp at (TN, chunk) instead of (TN, C).
    """
    cols = acc_ref.shape[-1]
    for c in range(0, cols, chunk):
        hc = jnp.dot(h_bf16, w3_ref[:, c:c + chunk],
                     preferred_element_type=jnp.float32)
        if b3_ref is not None:
            hc = hc + b3_ref[:, c:c + chunk]
        if relu:
            hc = jnp.maximum(hc, 0.0)
        if valid is not None:
            hc = jnp.where(valid, hc, -jnp.inf)        # exclude padded points
        acc_ref[:, c:c + chunk] = jnp.maximum(
            acc_ref[:, c:c + chunk], jnp.max(hc, axis=0, keepdims=True))


def _fc_head(pooled_f32, fw1, fb1, fw2, fb2, fw3, fb3):
    """fc1->fc2->fc3 on the (1, 1024) pooled vector; eye(k) is baked into fb3."""
    g = jnp.dot(pooled_f32.astype(jnp.bfloat16), fw1[...],
                preferred_element_type=jnp.float32) + fb1[...]
    g = jnp.maximum(g, 0.0)
    g = jnp.dot(g.astype(jnp.bfloat16), fw2[...],
                preferred_element_type=jnp.float32) + fb2[...]
    g = jnp.maximum(g, 0.0)
    g = jnp.dot(g.astype(jnp.bfloat16), fw3[...],
                preferred_element_type=jnp.float32) + fb3[...]
    return g


# ----------------------------------------------------------------------------
# Pallas kernels
# ----------------------------------------------------------------------------

def _tnet_pool_fc_kernel(x_ref, cw1, cb1, cw2, cb2, cw3, cb3,
                         fw1, fb1, fw2, fb2, fw3, fb3,
                         mat_ref, pool_acc,
                         *, n_valid, n_padded, tn, chunk):
    """Input-TNet: conv chain + masked max pool + FC head, one launch.

    Grid = (B, N/TN).  pool_acc is a resident (1, 1024) running max; the FC
    head runs only on the last point tile and writes the (1, k*k) matrix.
    """
    n = pl.program_id(1)

    @pl.when(n == 0)
    def _init():
        pool_acc[...] = jnp.full(pool_acc.shape, -jnp.inf, pool_acc.dtype)

    x = x_ref[...].astype(jnp.bfloat16)                               # (TN, k)
    h = jnp.dot(x, cw1[...], preferred_element_type=jnp.float32) + cb1[...]
    h = jnp.maximum(h, 0.0)
    h = jnp.dot(h.astype(jnp.bfloat16), cw2[...],
                preferred_element_type=jnp.float32) + cb2[...]
    h = jnp.maximum(h, 0.0).astype(jnp.bfloat16)                      # (TN, 128)

    valid = _row_mask(n, tn, n_valid, n_padded)
    _masked_chunk_max(h, cw3, cb3, pool_acc, valid, relu=True, chunk=chunk)

    @pl.when(n == pl.num_programs(1) - 1)
    def _finalize():
        mat_ref[...] = _fc_head(pool_acc[...], fw1, fb1, fw2, fb2,
                                fw3, fb3).astype(mat_ref.dtype)


def _feature_pool_fc_kernel(x_ref, rm_ref, tw1, tb1,
                            cw1, cb1, cw2, cb2, cw3, cb3,
                            fw1, fb1, fw2, fb2, fw3, fb3,
                            xb_ref, mat_ref, pool_acc, m_acc,
                            *, n_valid, n_padded, tn, chunk):
    """Fused transform_conv + feature-TNet conv chain + pool + FC head.

    xb = relu(x @ (rm3 @ W1) + b1) is computed in-kernel (folded per-batch
    matrix hoisted to scratch at n == 0), stored once as bf16, and consumed
    directly by the feature-TNet convs -- no extra launch or HBM read.
    """
    n = pl.program_id(1)

    @pl.when(n == 0)
    def _init():
        pool_acc[...] = jnp.full(pool_acc.shape, -jnp.inf, pool_acc.dtype)
        # Fold the per-batch input transform into trunk conv1 (f32, once per b).
        m_acc[...] = jnp.dot(rm_ref[...], tw1[...],
                             preferred_element_type=jnp.float32)      # (3, 64)

    x = x_ref[...].astype(jnp.bfloat16)                               # (TN, 3)
    xb = jnp.dot(x, m_acc[...].astype(jnp.bfloat16),
                 preferred_element_type=jnp.float32) + tb1[...]
    xb = jnp.maximum(xb, 0.0)                                         # (TN, 64) f32
    xb_ref[...] = xb.astype(xb_ref.dtype)                             # bf16 side output

    h = jnp.dot(xb.astype(jnp.bfloat16), cw1[...],
                preferred_element_type=jnp.float32) + cb1[...]
    h = jnp.maximum(h, 0.0)
    h = jnp.dot(h.astype(jnp.bfloat16), cw2[...],
                preferred_element_type=jnp.float32) + cb2[...]
    h = jnp.maximum(h, 0.0).astype(jnp.bfloat16)                      # (TN, 128)

    valid = _row_mask(n, tn, n_valid, n_padded)
    _masked_chunk_max(h, cw3, cb3, pool_acc, valid, relu=True, chunk=chunk)

    @pl.when(n == pl.num_programs(1) - 1)
    def _finalize():
        mat_ref[...] = _fc_head(pool_acc[...], fw1, fb1, fw2, fb2,
                                fw3, fb3).astype(mat_ref.dtype)


def _trunk_pool_kernel(xb_ref, rm_ref, w2, b2, w3, b3,
                       o_ref, m_acc,
                       *, n_valid, n_padded, tn, chunk):
    """relu(xb @ (rm64 @ W2) + b2) -> conv3 (no ReLU) -> running max + b3."""
    n = pl.program_id(1)

    @pl.when(n == 0)
    def _init():
        o_ref[...] = jnp.full(o_ref.shape, -jnp.inf, o_ref.dtype)
        m_acc[...] = jnp.dot(rm_ref[...], w2[...],
                             preferred_element_type=jnp.float32)      # (64, 128)

    h = jnp.dot(xb_ref[...].astype(jnp.bfloat16),
                m_acc[...].astype(jnp.bfloat16),
                preferred_element_type=jnp.float32) + b2[...]
    h = jnp.maximum(h, 0.0).astype(jnp.bfloat16)                      # (TN, 128)

    valid = _row_mask(n, tn, n_valid, n_padded)
    # conv3 has no ReLU, so its per-channel bias commutes with the max and is
    # added once to the pooled vector on the last tile.
    _masked_chunk_max(h, w3, None, o_ref, valid, relu=False, chunk=chunk)

    @pl.when(n == pl.num_programs(1) - 1)
    def _finalize():
        o_ref[...] = o_ref[...] + b3[...]


# ----------------------------------------------------------------------------
# pallas_call wrappers
# ----------------------------------------------------------------------------

def _tnet_fc_specs(kk):
    return [
        _const_spec((1024, 512)), _const_spec((1, 512)),
        _const_spec((512, 256)), _const_spec((1, 256)),
        _const_spec((256, kk)), _const_spec((1, kk)),
    ]


def tnet_input_transform(xpad, tp, *, n_valid, tn):
    """xpad: (B, Npad, 3) -> (B, 3, 3) input-transform matrices."""
    B, npad, k = xpad.shape
    kk = k * k
    kernel = functools.partial(_tnet_pool_fc_kernel, n_valid=n_valid,
                               n_padded=npad, tn=tn, chunk=CONV3_CHUNK)
    mat = pl.pallas_call(
        kernel,
        out_shape=jax.ShapeDtypeStruct((B, 1, kk), jnp.float32),
        grid=(B, npad // tn),
        in_specs=[
            pl.BlockSpec((None, tn, k), lambda b, n: (b, n, 0)),
            _const_spec((k, 64)), _const_spec((1, 64)),
            _const_spec((64, 128)), _const_spec((1, 128)),
            _const_spec((128, 1024)), _const_spec((1, 1024)),
        ] + _tnet_fc_specs(kk),
        out_specs=pl.BlockSpec((None, 1, kk), lambda b, n: (b, 0, 0)),
        scratch_shapes=[pltpu.VMEM((1, 1024), jnp.float32)],
        compiler_params=pltpu.CompilerParams(
            dimension_semantics=("parallel", "arbitrary"),
            vmem_limit_bytes=VMEM_LIMIT),
    )(xpad, tp["cw1"], tp["cb1"], tp["cw2"], tp["cb2"], tp["cw3"], tp["cb3"],
      tp["fw1"], tp["fb1"], tp["fw2"], tp["fb2"], tp["fw3"], tp["fb3"])
    return mat.reshape(B, k, k)


def feature_transform_fused(xpad, rm3, prep, *, n_valid, tn):
    """xpad: (B, Npad, 3), rm3: (B, 3, 3) ->
       xb (B, Npad, 64) bf16 = relu(x @ rm3 @ W1 + b1), matrix64x64 (B, 64, 64)."""
    B, npad, _ = xpad.shape
    t64 = prep["tnet64"]
    kernel = functools.partial(_feature_pool_fc_kernel, n_valid=n_valid,
                               n_padded=npad, tn=tn, chunk=CONV3_CHUNK)
    xb, mat = pl.pallas_call(
        kernel,
        out_shape=(jax.ShapeDtypeStruct((B, npad, 64), jnp.bfloat16),
                   jax.ShapeDtypeStruct((B, 1, 64 * 64), jnp.float32)),
        grid=(B, npad // tn),
        in_specs=[
            pl.BlockSpec((None, tn, 3), lambda b, n: (b, n, 0)),      # x
            pl.BlockSpec((None, 3, 3), lambda b, n: (b, 0, 0)),       # rm3
            _const_spec((3, 64)), _const_spec((1, 64)),               # trunk conv1 (f32 W)
            _const_spec((64, 64)), _const_spec((1, 64)),              # feat conv1
            _const_spec((64, 128)), _const_spec((1, 128)),            # feat conv2
            _const_spec((128, 1024)), _const_spec((1, 1024)),         # feat conv3
        ] + _tnet_fc_specs(64 * 64),
        out_specs=(pl.BlockSpec((None, tn, 64), lambda b, n: (b, n, 0)),
                   pl.BlockSpec((None, 1, 64 * 64), lambda b, n: (b, 0, 0))),
        scratch_shapes=[pltpu.VMEM((1, 1024), jnp.float32),
                        pltpu.VMEM((3, 64), jnp.float32)],
        compiler_params=pltpu.CompilerParams(
            dimension_semantics=("parallel", "arbitrary"),
            vmem_limit_bytes=VMEM_LIMIT),
    )(xpad, rm3, prep["tw1"], prep["tb1"],
      t64["cw1"], t64["cb1"], t64["cw2"], t64["cb2"], t64["cw3"], t64["cb3"],
      t64["fw1"], t64["fb1"], t64["fw2"], t64["fb2"], t64["fw3"], t64["fb3"])
    return xb, mat.reshape(B, 64, 64)


def trunk_pool(xb, rm64, prep, *, n_valid, tn):
    """xb: (B, Npad, 64) bf16, rm64: (B, 64, 64) ->
       (B, 1024) = max_n(relu(xb @ rm64 @ W2 + b2) @ W3 + b3)."""
    B, npad, _ = xb.shape
    kernel = functools.partial(_trunk_pool_kernel, n_valid=n_valid,
                               n_padded=npad, tn=tn, chunk=CONV3_CHUNK)
    out = pl.pallas_call(
        kernel,
        out_shape=jax.ShapeDtypeStruct((B, 1, 1024), jnp.float32),
        grid=(B, npad // tn),
        in_specs=[
            pl.BlockSpec((None, tn, 64), lambda b, n: (b, n, 0)),
            pl.BlockSpec((None, 64, 64), lambda b, n: (b, 0, 0)),
            _const_spec((64, 128)), _const_spec((1, 128)),            # conv2 (f32 W)
            _const_spec((128, 1024)), _const_spec((1, 1024)),         # conv3
        ],
        out_specs=pl.BlockSpec((None, 1, 1024), lambda b, n: (b, 0, 0)),
        scratch_shapes=[pltpu.VMEM((64, 128), jnp.float32)],
        compiler_params=pltpu.CompilerParams(
            dimension_semantics=("parallel", "arbitrary"),
            vmem_limit_bytes=VMEM_LIMIT),
    )(xb, rm64, prep["tw2"], prep["tb2"], prep["tw3"], prep["tb3"])
    return out.reshape(B, 1024)


# ----------------------------------------------------------------------------
# Parameters (deterministic, mimics PyTorch default init ranges)
# ----------------------------------------------------------------------------

def _init_layer(key, cin, cout):
    kw, kb = jax.random.split(key)
    bound = 1.0 / math.sqrt(cin)
    w = jax.random.uniform(kw, (cin, cout), jnp.float32, -bound, bound)
    b = jax.random.uniform(kb, (cout,), jnp.float32, -bound, bound)
    return w, b


def init_tnet_params(key, k):
    keys = jax.random.split(key, 6)
    return {
        "conv1": _init_layer(keys[0], k, 64),
        "conv2": _init_layer(keys[1], 64, 128),
        "conv3": _init_layer(keys[2], 128, 1024),
        "fc1": _init_layer(keys[3], 1024, 512),
        "fc2": _init_layer(keys[4], 512, 256),
        "fc3": _init_layer(keys[5], 256, k * k),
    }


def init_transform_params(key):
    keys = jax.random.split(key, 5)
    return {
        "input_transform": init_tnet_params(keys[0], 3),
        "feature_transform": init_tnet_params(keys[1], 64),
        "conv1": _init_layer(keys[2], 3, 64),
        "conv2": _init_layer(keys[3], 64, 128),
        "conv3": _init_layer(keys[4], 128, 1024),
    }


def _prepare_tnet(p, k):
    """bf16 weights, (1, C) f32 biases, eye(k) pre-folded into fc3's bias."""
    (cw1, cb1), (cw2, cb2), (cw3, cb3) = p["conv1"], p["conv2"], p["conv3"]
    (fw1, fb1), (fw2, fb2), (fw3, fb3) = p["fc1"], p["fc2"], p["fc3"]
    return {
        "cw1": _bf16(cw1), "cb1": cb1.reshape(1, -1),
        "cw2": _bf16(cw2), "cb2": cb2.reshape(1, -1),
        "cw3": _bf16(cw3), "cb3": cb3.reshape(1, -1),
        "fw1": _bf16(fw1), "fb1": fb1.reshape(1, -1),
        "fw2": _bf16(fw2), "fb2": fb2.reshape(1, -1),
        "fw3": _bf16(fw3),
        "fb3": (fb3 + jnp.eye(k, dtype=jnp.float32).reshape(-1)).reshape(1, -1),
    }


def prepare_params(params):
    """One-time packing done OUTSIDE the jitted forward: bf16 weight casts,
    (1, C) biases, eye folded into fc3.  Trunk conv1/conv2 weights stay f32
    because they feed the per-batch f32 fold m = rm @ W inside the kernels."""
    return {
        "tnet3": _prepare_tnet(params["input_transform"], 3),
        "tnet64": _prepare_tnet(params["feature_transform"], 64),
        "tw1": params["conv1"][0], "tb1": params["conv1"][1].reshape(1, -1),
        "tw2": params["conv2"][0], "tb2": params["conv2"][1].reshape(1, -1),
        "tw3": _bf16(params["conv3"][0]), "tb3": params["conv3"][1].reshape(1, -1),
    }


# ----------------------------------------------------------------------------
# Forward pass
# ----------------------------------------------------------------------------

def transform_forward(prep, x):
    """TransformBatchNB.forward (channels-last).
    x: (B, N, 3) -> (output (B, 1024), matrix3x3 (B, 3, 3), matrix64x64 (B, 64, 64))."""
    B, N, _ = x.shape
    tn, npad = _tile_points(N)
    xpad = x if npad == N else jnp.pad(x, ((0, 0), (0, npad - N), (0, 0)))

    matrix3x3 = tnet_input_transform(xpad, prep["tnet3"], n_valid=N, tn=tn)
    xb, matrix64x64 = feature_transform_fused(xpad, matrix3x3, prep,
                                              n_valid=N, tn=tn)
    output = trunk_pool(xb, matrix64x64, prep, n_valid=N, tn=tn)
    return output, matrix3x3, matrix64x64


# ----------------------------------------------------------------------------
# Main
# ----------------------------------------------------------------------------

if __name__ == "__main__":
    key = jax.random.PRNGKey(0)
    k_params, k_data = jax.random.split(key)

    B, N = 2, 16  # 2 point clouds of 16 points, 3 coords each (small demo)
    params = init_transform_params(k_params)
    prep = prepare_params(params)          # bf16 casts / eye fold done once here
    x = jax.random.normal(k_data, (B, N, 3), dtype=jnp.float32)

    fwd = jax.jit(transform_forward)
    output, matrix3x3, matrix64x64 = fwd(prep, x)
    jax.block_until_ready((output, matrix3x3, matrix64x64))

    assert output.shape == (B, 1024)
    assert matrix3x3.shape == (B, 3, 3)
    assert matrix64x64.shape == (B, 64, 64)
    assert bool(jnp.all(jnp.isfinite(output)))
    assert bool(jnp.all(jnp.isfinite(matrix3x3)))
    assert bool(jnp.all(jnp.isfinite(matrix64x64)))
    print("KERNEL_OK")
</pallas_src>

<mosaic_0001>
module attributes {stable_mosaic.version = 11 : i64} {
  func.func @_feature_pool_fc_kernel(%arg0: i32, %arg1: i32, %arg2: memref<1x16x3xf32, #tpu.memory_space<vmem>>, %arg3: memref<1x3x3xf32, #tpu.memory_space<vmem>>, %arg4: memref<3x64xf32, #tpu.memory_space<vmem>>, %arg5: memref<1x64xf32, #tpu.memory_space<vmem>>, %arg6: memref<64x64xbf16, #tpu.memory_space<vmem>>, %arg7: memref<1x64xf32, #tpu.memory_space<vmem>>, %arg8: memref<64x128xbf16, #tpu.memory_space<vmem>>, %arg9: memref<1x128xf32, #tpu.memory_space<vmem>>, %arg10: memref<128x1024xbf16, #tpu.memory_space<vmem>>, %arg11: memref<1x1024xf32, #tpu.memory_space<vmem>>, %arg12: memref<1024x512xbf16, #tpu.memory_space<vmem>>, %arg13: memref<1x512xf32, #tpu.memory_space<vmem>>, %arg14: memref<512x256xbf16, #tpu.memory_space<vmem>>, %arg15: memref<1x256xf32, #tpu.memory_space<vmem>>, %arg16: memref<256x4096xbf16, #tpu.memory_space<vmem>>, %arg17: memref<1x4096xf32, #tpu.memory_space<vmem>>, %arg18: memref<1x16x64xbf16, #tpu.memory_space<vmem>>, %arg19: memref<1x1x4096xf32, #tpu.memory_space<vmem>>, %arg20: memref<1x1024xf32, #tpu.memory_space<vmem>>, %arg21: memref<3x64xf32, #tpu.memory_space<vmem>>) attributes {dimension_semantics = [#tpu.dimension_semantics<parallel>, #tpu.dimension_semantics<arbitrary>], iteration_bounds = array<i64: 2, 1>, scalar_prefetch = 0 : i64, scratch_operands = 2 : i64, tpu.core_type = #tpu.core_type<tc>, window_params = [{transform_indices = @transform_0, window_bounds = array<i64: 1, 16, 3>}, {transform_indices = @transform_1, window_bounds = array<i64: 1, 3, 3>}, {pipeline_mode = #tpu.pipeline_mode<synchronous>, transform_indices = @transform_2, window_bounds = array<i64: 3, 64>}, {pipeline_mode = #tpu.pipeline_mode<synchronous>, transform_indices = @transform_3, window_bounds = array<i64: 1, 64>}, {pipeline_mode = #tpu.pipeline_mode<synchronous>, transform_indices = @transform_4, window_bounds = array<i64: 64, 64>}, {pipeline_mode = #tpu.pipeline_mode<synchronous>, transform_indices = @transform_5, window_bounds = array<i64: 1, 64>}, {pipeline_mode = #tpu.pipeline_mode<synchronous>, transform_indices = @transform_6, window_bounds = array<i64: 64, 128>}, {pipeline_mode = #tpu.pipeline_mode<synchronous>, transform_indices = @transform_7, window_bounds = array<i64: 1, 128>}, {pipeline_mode = #tpu.pipeline_mode<synchronous>, transform_indices = @transform_8, window_bounds = array<i64: 128, 1024>}, {pipeline_mode = #tpu.pipeline_mode<synchronous>, transform_indices = @transform_9, window_bounds = array<i64: 1, 1024>}, {pipeline_mode = #tpu.pipeline_mode<synchronous>, transform_indices = @transform_10, window_bounds = array<i64: 1024, 512>}, {pipeline_mode = #tpu.pipeline_mode<synchronous>, transform_indices = @transform_11, window_bounds = array<i64: 1, 512>}, {pipeline_mode = #tpu.pipeline_mode<synchronous>, transform_indices = @transform_12, window_bounds = array<i64: 512, 256>}, {pipeline_mode = #tpu.pipeline_mode<synchronous>, transform_indices = @transform_13, window_bounds = array<i64: 1, 256>}, {pipeline_mode = #tpu.pipeline_mode<synchronous>, transform_indices = @transform_14, window_bounds = array<i64: 256, 4096>}, {pipeline_mode = #tpu.pipeline_mode<synchronous>, transform_indices = @transform_15, window_bounds = array<i64: 1, 4096>}, {transform_indices = @transform_16, window_bounds = array<i64: 1, 16, 64>}, {transform_indices = @transform_17, window_bounds = array<i64: 1, 1, 4096>}]} {
    %c0_i32 = arith.constant 0 : i32
    %0 = arith.cmpi eq, %arg1, %c0_i32 : i32
    %1 = arith.extui %0 : i1 to i32
    %c0_i32_0 = arith.constant 0 : i32
    %2 = arith.cmpi ne, %1, %c0_i32_0 : i32
    scf.if %2 {
      %cst_66 = arith.constant 0xFF800000 : f32
      %86 = vector.broadcast %cst_66 : f32 to vector<1x1024xf32>
      %c0_67 = arith.constant 0 : index
      %c0_68 = arith.constant 0 : index
      %87 = vector.load %arg20[%c0_67, %c0_68] : memref<1x1024xf32, #tpu.memory_space<vmem>>, vector<1x1024xf32>
      tpu.vector_store %arg20[%c0_67, %c0_68], %86 {strides = array<i32>} : memref<1x1024xf32, #tpu.memory_space<vmem>>, vector<1x1024xf32>,
      %c0_69 = arith.constant 0 : index
      %c0_70 = arith.constant 0 : index
      %c0_71 = arith.constant 0 : index
      %88 = vector.load %arg3[%c0_69, %c0_70, %c0_71] : memref<1x3x3xf32, #tpu.memory_space<vmem>>, vector<1x3x3xf32>
      %89 = vector.shape_cast %88 : vector<1x3x3xf32> to vector<3x3xf32>
      %c0_72 = arith.constant 0 : index
      %c0_73 = arith.constant 0 : index
      %90 = vector.load %arg4[%c0_72, %c0_73] : memref<3x64xf32, #tpu.memory_space<vmem>>, vector<3x64xf32>
      %cst_74 = arith.constant dense<0.000000e+00> : vector<3x64xf32>
      %91 = tpu.matmul %89, %90, %cst_74 {dimension_numbers = #tpu.dot_dimension_numbers<[1], [0], [0], [1], [0, 0, 1, 1], [], []>} : vector<3x3xf32>, vector<3x64xf32>, vector<3x64xf32> -> vector<3x64xf32>
      %c0_75 = arith.constant 0 : index
      %c0_76 = arith.constant 0 : index
      %92 = vector.load %arg21[%c0_75, %c0_76] : memref<3x64xf32, #tpu.memory_space<vmem>>, vector<3x64xf32>
      tpu.vector_store %arg21[%c0_75, %c0_76], %91 {strides = array<i32>} : memref<3x64xf32, #tpu.memory_space<vmem>>, vector<3x64xf32>,
    } else {
    }
    %c0 = arith.constant 0 : index
    %c0_1 = arith.constant 0 : index
    %c0_2 = arith.constant 0 : index
    %3 = vector.load %arg2[%c0, %c0_1, %c0_2] : memref<1x16x3xf32, #tpu.memory_space<vmem>>, vector<1x16x3xf32>
    %4 = vector.shape_cast %3 : vector<1x16x3xf32> to vector<16x3xf32>
    %5 = arith.truncf %4 : vector<16x3xf32> to vector<16x3xbf16>
    %c0_3 = arith.constant 0 : index
    %c0_4 = arith.constant 0 : index
    %6 = vector.load %arg21[%c0_3, %c0_4] : memref<3x64xf32, #tpu.memory_space<vmem>>, vector<3x64xf32>
    %7 = arith.truncf %6 : vector<3x64xf32> to vector<3x64xbf16>
    %cst = arith.constant dense<0.000000e+00> : vector<16x64xf32>
    %8 = tpu.matmul %5, %7, %cst {dimension_numbers = #tpu.dot_dimension_numbers<[1], [0], [0], [1], [0, 0, 1, 1], [], []>} : vector<16x3xbf16>, vector<3x64xbf16>, vector<16x64xf32> -> vector<16x64xf32>
    %c0_5 = arith.constant 0 : index
    %c0_6 = arith.constant 0 : index
    %9 = vector.load %arg5[%c0_5, %c0_6] : memref<1x64xf32, #tpu.memory_space<vmem>>, vector<1x64xf32>
    %10 = vector.broadcast %9 : vector<1x64xf32> to vector<16x64xf32>
    %11 = arith.addf %8, %10 : vector<16x64xf32>
    %cst_7 = arith.constant 0.000000e+00 : f32
    %12 = vector.broadcast %cst_7 : f32 to vector<16x64xf32>
    %13 = arith.maximumf %11, %12 : vector<16x64xf32>
    %14 = arith.truncf %13 : vector<16x64xf32> to vector<16x64xbf16>
    %c0_8 = arith.constant 0 : index
    %c0_9 = arith.constant 0 : index
    %c0_10 = arith.constant 0 : index
    %15 = vector.load %arg18[%c0_8, %c0_9, %c0_10] : memref<1x16x64xbf16, #tpu.memory_space<vmem>>, vector<1x16x64xbf16>
    %16 = vector.shape_cast %15 : vector<1x16x64xbf16> to vector<16x64xbf16>
    %17 = vector.shape_cast %14 : vector<16x64xbf16> to vector<1x16x64xbf16>
    tpu.vector_store %arg18[%c0_8, %c0_9, %c0_10], %17 {strides = array<i32>} : memref<1x16x64xbf16, #tpu.memory_space<vmem>>, vector<1x16x64xbf16>,
    %18 = arith.truncf %13 : vector<16x64xf32> to vector<16x64xbf16>
    %c0_11 = arith.constant 0 : index
    %c0_12 = arith.constant 0 : index
    %19 = vector.load %arg6[%c0_11, %c0_12] : memref<64x64xbf16, #tpu.memory_space<vmem>>, vector<64x64xbf16>
    %cst_13 = arith.constant dense<0.000000e+00> : vector<16x64xf32>
    %20 = tpu.matmul %18, %19, %cst_13 {dimension_numbers = #tpu.dot_dimension_numbers<[1], [0], [0], [1], [0, 0, 1, 1], [], []>} : vector<16x64xbf16>, vector<64x64xbf16>, vector<16x64xf32> -> vector<16x64xf32>
    %c0_14 = arith.constant 0 : index
    %c0_15 = arith.constant 0 : index
    %21 = vector.load %arg7[%c0_14, %c0_15] : memref<1x64xf32, #tpu.memory_space<vmem>>, vector<1x64xf32>
    %22 = vector.broadcast %21 : vector<1x64xf32> to vector<16x64xf32>
    %23 = arith.addf %20, %22 : vector<16x64xf32>
    %cst_16 = arith.constant 0.000000e+00 : f32
    %24 = vector.broadcast %cst_16 : f32 to vector<16x64xf32>
    %25 = arith.maximumf %23, %24 : vector<16x64xf32>
    %26 = arith.truncf %25 : vector<16x64xf32> to vector<16x64xbf16>
    %c0_17 = arith.constant 0 : index
    %c0_18 = arith.constant 0 : index
    %27 = vector.load %arg8[%c0_17, %c0_18] : memref<64x128xbf16, #tpu.memory_space<vmem>>, vector<64x128xbf16>
    %cst_19 = arith.constant dense<0.000000e+00> : vector<16x128xf32>
    %28 = tpu.matmul %26, %27, %cst_19 {dimension_numbers = #tpu.dot_dimension_numbers<[1], [0], [0], [1], [0, 0, 1, 1], [], []>} : vector<16x64xbf16>, vector<64x128xbf16>, vector<16x128xf32> -> vector<16x128xf32>
    %c0_20 = arith.constant 0 : index
    %c0_21 = arith.constant 0 : index
    %29 = vector.load %arg9[%c0_20, %c0_21] : memref<1x128xf32, #tpu.memory_space<vmem>>, vector<1x128xf32>
    %30 = vector.broadcast %29 : vector<1x128xf32> to vector<16x128xf32>
    %31 = arith.addf %28, %30 : vector<16x128xf32>
    %cst_22 = arith.constant 0.000000e+00 : f32
    %32 = vector.broadcast %cst_22 : f32 to vector<16x128xf32>
    %33 = arith.maximumf %31, %32 : vector<16x128xf32>
    %34 = arith.truncf %33 : vector<16x128xf32> to vector<16x128xbf16>
    %c0_23 = arith.constant 0 : index
    %c0_24 = arith.constant 0 : index
    %35 = vector.load %arg10[%c0_23, %c0_24] : memref<128x1024xbf16, #tpu.memory_space<vmem>>, vector<128x256xbf16>
    %cst_25 = arith.constant dense<0.000000e+00> : vector<16x256xf32>
    %36 = tpu.matmul %34, %35, %cst_25 {dimension_numbers = #tpu.dot_dimension_numbers<[1], [0], [0], [1], [0, 0, 1, 1], [], []>} : vector<16x128xbf16>, vector<128x256xbf16>, vector<16x256xf32> -> vector<16x256xf32>
    %c0_26 = arith.constant 0 : index
    %c0_27 = arith.constant 0 : index
    %37 = vector.load %arg11[%c0_26, %c0_27] : memref<1x1024xf32, #tpu.memory_space<vmem>>, vector<1x256xf32>
    %38 = vector.broadcast %37 : vector<1x256xf32> to vector<16x256xf32>
    %39 = arith.addf %36, %38 : vector<16x256xf32>
    %cst_28 = arith.constant 0.000000e+00 : f32
    %40 = vector.broadcast %cst_28 : f32 to vector<16x256xf32>
    %41 = arith.maximumf %39, %40 : vector<16x256xf32>
    %c0_29 = arith.constant 0 : index
    %c0_30 = arith.constant 0 : index
    %42 = vector.load %arg20[%c0_29, %c0_30] : memref<1x1024xf32, #tpu.memory_space<vmem>>, vector<1x256xf32>
    %cst_31 = arith.constant dense<0xFF800000> : vector<256xf32>
    %43 = vector.multi_reduction <maximumf>, %41, %cst_31 [0] : vector<16x256xf32> to vector<256xf32>
    %44 = vector.shape_cast %43 : vector<256xf32> to vector<1x256xf32>
    %45 = arith.maximumf %42, %44 : vector<1x256xf32>
    %c0_32 = arith.constant 0 : index
    %c0_33 = arith.constant 0 : index
    %46 = vector.load %arg20[%c0_32, %c0_33] : memref<1x1024xf32, #tpu.memory_space<vmem>>, vector<1x256xf32>
    tpu.vector_store %arg20[%c0_32, %c0_33], %45 {strides = array<i32>} : memref<1x1024xf32, #tpu.memory_space<vmem>>, vector<1x256xf32>,
    %c0_34 = arith.constant 0 : index
    %c256 = arith.constant 256 : index
    %47 = vector.load %arg10[%c0_34, %c256] : memref<128x1024xbf16, #tpu.memory_space<vmem>>, vector<128x256xbf16>
    %cst_35 = arith.constant dense<0.000000e+00> : vector<16x256xf32>
    %48 = tpu.matmul %34, %47, %cst_35 {dimension_numbers = #tpu.dot_dimension_numbers<[1], [0], [0], [1], [0, 0, 1, 1], [], []>} : vector<16x128xbf16>, vector<128x256xbf16>, vector<16x256xf32> -> vector<16x256xf32>
    %c0_36 = arith.constant 0 : index
    %c256_37 = arith.constant 256 : index
    %49 = vector.load %arg11[%c0_36, %c256_37] : memref<1x1024xf32, #tpu.memory_space<vmem>>, vector<1x256xf32>
    %50 = vector.broadcast %49 : vector<1x256xf32> to vector<16x256xf32>
    %51 = arith.addf %48, %50 : vector<16x256xf32>
    %cst_38 = arith.constant 0.000000e+00 : f32
    %52 = vector.broadcast %cst_38 : f32 to vector<16x256xf32>
    %53 = arith.maximumf %51, %52 : vector<16x256xf32>
    %c0_39 = arith.constant 0 : index
    %c256_40 = arith.constant 256 : index
    %54 = vector.load %arg20[%c0_39, %c256_40] : memref<1x1024xf32, #tpu.memory_space<vmem>>, vector<1x256xf32>
    %cst_41 = arith.constant dense<0xFF800000> : vector<256xf32>
    %55 = vector.multi_reduction <maximumf>, %53, %cst_41 [0] : vector<16x256xf32> to vector<256xf32>
    %56 = vector.shape_cast %55 : vector<256xf32> to vector<1x256xf32>
    %57 = arith.maximumf %54, %56 : vector<1x256xf32>
    %c0_42 = arith.constant 0 : index
    %c256_43 = arith.constant 256 : index
    %58 = vector.load %arg20[%c0_42, %c256_43] : memref<1x1024xf32, #tpu.memory_space<vmem>>, vector<1x256xf32>
    tpu.vector_store %arg20[%c0_42, %c256_43], %57 {strides = array<i32>} : memref<1x1024xf32, #tpu.memory_space<vmem>>, vector<1x256xf32>,
    %c0_44 = arith.constant 0 : index
    %c512 = arith.constant 512 : index
    %59 = vector.load %arg10[%c0_44, %c512] : memref<128x1024xbf16, #tpu.memory_space<vmem>>, vector<128x256xbf16>
    %cst_45 = arith.constant dense<0.000000e+00> : vector<16x256xf32>
    %60 = tpu.matmul %34, %59, %cst_45 {dimension_numbers = #tpu.dot_dimension_numbers<[1], [0], [0], [1], [0, 0, 1, 1], [], []>} : vector<16x128xbf16>, vector<128x256xbf16>, vector<16x256xf32> -> vector<16x256xf32>
    %c0_46 = arith.constant 0 : index
    %c512_47 = arith.constant 512 : index
    %61 = vector.load %arg11[%c0_46, %c512_47] : memref<1x1024xf32, #tpu.memory_space<vmem>>, vector<1x256xf32>
    %62 = vector.broadcast %61 : vector<1x256xf32> to vector<16x256xf32>
    %63 = arith.addf %60, %62 : vector<16x256xf32>
    %cst_48 = arith.constant 0.000000e+00 : f32
    %64 = vector.broadcast %cst_48 : f32 to vector<16x256xf32>
    %65 = arith.maximumf %63, %64 : vector<16x256xf32>
    %c0_49 = arith.constant 0 : index
    %c512_50 = arith.constant 512 : index
    %66 = vector.load %arg20[%c0_49, %c512_50] : memref<1x1024xf32, #tpu.memory_space<vmem>>, vector<1x256xf32>
    %cst_51 = arith.constant dense<0xFF800000> : vector<256xf32>
    %67 = vector.multi_reduction <maximumf>, %65, %cst_51 [0] : vector<16x256xf32> to vector<256xf32>
    %68 = vector.shape_cast %67 : vector<256xf32> to vector<1x256xf32>
    %69 = arith.maximumf %66, %68 : vector<1x256xf32>
    %c0_52 = arith.constant 0 : index
    %c512_53 = arith.constant 512 : index
    %70 = vector.load %arg20[%c0_52, %c512_53] : memref<1x1024xf32, #tpu.memory_space<vmem>>, vector<1x256xf32>
    tpu.vector_store %arg20[%c0_52, %c512_53], %69 {strides = array<i32>} : memref<1x1024xf32, #tpu.memory_space<vmem>>, vector<1x256xf32>,
    %c0_54 = arith.constant 0 : index
    %c768 = arith.constant 768 : index
    %71 = vector.load %arg10[%c0_54, %c768] : memref<128x1024xbf16, #tpu.memory_space<vmem>>, vector<128x256xbf16>
    %cst_55 = arith.constant dense<0.000000e+00> : vector<16x256xf32>
    %72 = tpu.matmul %34, %71, %cst_55 {dimension_numbers = #tpu.dot_dimension_numbers<[1], [0], [0], [1], [0, 0, 1, 1], [], []>} : vector<16x128xbf16>, vector<128x256xbf16>, vector<16x256xf32> -> vector<16x256xf32>
    %c0_56 = arith.constant 0 : index
    %c768_57 = arith.constant 768 : index
    %73 = vector.load %arg11[%c0_56, %c768_57] : memref<1x1024xf32, #tpu.memory_space<vmem>>, vector<1x256xf32>
    %74 = vector.broadcast %73 : vector<1x256xf32> to vector<16x256xf32>
    %75 = arith.addf %72, %74 : vector<16x256xf32>
    %cst_58 = arith.constant 0.000000e+00 : f32
    %76 = vector.broadcast %cst_58 : f32 to vector<16x256xf32>
    %77 = arith.maximumf %75, %76 : vector<16x256xf32>
    %c0_59 = arith.constant 0 : index
    %c768_60 = arith.constant 768 : index
    %78 = vector.load %arg20[%c0_59, %c768_60] : memref<1x1024xf32, #tpu.memory_space<vmem>>, vector<1x256xf32>
    %cst_61 = arith.constant dense<0xFF800000> : vector<256xf32>
    %79 = vector.multi_reduction <maximumf>, %77, %cst_61 [0] : vector<16x256xf32> to vector<256xf32>
    %80 = vector.shape_cast %79 : vector<256xf32> to vector<1x256xf32>
    %81 = arith.maximumf %78, %80 : vector<1x256xf32>
    %c0_62 = arith.constant 0 : index
    %c768_63 = arith.constant 768 : index
    %82 = vector.load %arg20[%c0_62, %c768_63] : memref<1x1024xf32, #tpu.memory_space<vmem>>, vector<1x256xf32>
    tpu.vector_store %arg20[%c0_62, %c768_63], %81 {strides = array<i32>} : memref<1x1024xf32, #tpu.memory_space<vmem>>, vector<1x256xf32>,
    %c0_i32_64 = arith.constant 0 : i32
    %83 = arith.cmpi eq, %arg1, %c0_i32_64 : i32
    %84 = arith.extui %83 : i1 to i32
    %c0_i32_65 = arith.constant 0 : i32
    %85 = arith.cmpi ne, %84, %c0_i32_65 : i32
    scf.if %85 {
      %c0_66 = arith.constant 0 : index
      %c0_67 = arith.constant 0 : index
      %86 = vector.load %arg20[%c0_66, %c0_67] : memref<1x1024xf32, #tpu.memory_space<vmem>>, vector<1x1024xf32>
      %87 = arith.truncf %86 : vector<1x1024xf32> to vector<1x1024xbf16>
      %c0_68 = arith.constant 0 : index
      %c0_69 = arith.constant 0 : index
      %88 = vector.load %arg12[%c0_68, %c0_69] : memref<1024x512xbf16, #tpu.memory_space<vmem>>, vector<1024x512xbf16>
      %cst_70 = arith.constant dense<0.000000e+00> : vector<1x512xf32>
      %89 = tpu.matmul %87, %88, %cst_70 {dimension_numbers = #tpu.dot_dimension_numbers<[1], [0], [0], [1], [0, 0, 1, 1], [], []>} : vector<1x1024xbf16>, vector<1024x512xbf16>, vector<1x512xf32> -> vector<1x512xf32>
      %c0_71 = arith.constant 0 : index
      %c0_72 = arith.constant 0 : index
      %90 = vector.load %arg13[%c0_71, %c0_72] : memref<1x512xf32, #tpu.memory_space<vmem>>, vector<1x512xf32>
      %91 = arith.addf %89, %90 : vector<1x512xf32>
      %cst_73 = arith.constant 0.000000e+00 : f32
      %92 = vector.broadcast %cst_73 : f32 to vector<1x512xf32>
      %93 = arith.maximumf %91, %92 : vector<1x512xf32>
      %94 = arith.truncf %93 : vector<1x512xf32> to vector<1x512xbf16>
      %c0_74 = arith.constant 0 : index
      %c0_75 = arith.constant 0 : index
      %95 = vector.load %arg14[%c0_74, %c0_75] : memref<512x256xbf16, #tpu.memory_space<vmem>>, vector<512x256xbf16>
      %cst_76 = arith.constant dense<0.000000e+00> : vector<1x256xf32>
      %96 = tpu.matmul %94, %95, %cst_76 {dimension_numbers = #tpu.dot_dimension_numbers<[1], [0], [0], [1], [0, 0, 1, 1], [], []>} : vector<1x512xbf16>, vector<512x256xbf16>, vector<1x256xf32> -> vector<1x256xf32>
      %c0_77 = arith.constant 0 : index
      %c0_78 = arith.constant 0 : index
      %97 = vector.load %arg15[%c0_77, %c0_78] : memref<1x256xf32, #tpu.memory_space<vmem>>, vector<1x256xf32>
      %98 = arith.addf %96, %97 : vector<1x256xf32>
      %cst_79 = arith.constant 0.000000e+00 : f32
      %99 = vector.broadcast %cst_79 : f32 to vector<1x256xf32>
      %100 = arith.maximumf %98, %99 : vector<1x256xf32>
      %101 = arith.truncf %100 : vector<1x256xf32> to vector<1x256xbf16>
      %c0_80 = arith.constant 0 : index
      %c0_81 = arith.constant 0 : index
      %102 = vector.load %arg16[%c0_80, %c0_81] : memref<256x4096xbf16, #tpu.memory_space<vmem>>, vector<256x4096xbf16>
      %cst_82 = arith.constant dense<0.000000e+00> : vector<1x4096xf32>
      %103 = tpu.matmul %101, %102, %cst_82 {dimension_numbers = #tpu.dot_dimension_numbers<[1], [0], [0], [1], [0, 0, 1, 1], [], []>} : vector<1x256xbf16>, vector<256x4096xbf16>, vector<1x4096xf32> -> vector<1x4096xf32>
      %c0_83 = arith.constant 0 : index
      %c0_84 = arith.constant 0 : index
      %104 = vector.load %arg17[%c0_83, %c0_84] : memref<1x4096xf32, #tpu.memory_space<vmem>>, vector<1x4096xf32>
      %105 = arith.addf %103, %104 : vector<1x4096xf32>
      %c0_85 = arith.constant 0 : index
      %c0_86 = arith.constant 0 : index
      %c0_87 = arith.constant 0 : index
      %106 = vector.load %arg19[%c0_85, %c0_86, %c0_87] : memref<1x1x4096xf32, #tpu.memory_space<vmem>>, vector<1x1x4096xf32>
      %107 = vector.shape_cast %106 : vector<1x1x4096xf32> to vector<1x4096xf32>
      %108 = vector.shape_cast %105 : vector<1x4096xf32> to vector<1x1x4096xf32>
      tpu.vector_store %arg19[%c0_85, %c0_86, %c0_87], %108 {strides = array<i32>} : memref<1x1x4096xf32, #tpu.memory_space<vmem>>, vector<1x1x4096xf32>,
    } else {
    }
    return
  }
  func.func @transform_0(%arg0: i32, %arg1: i32) -> (i32, i32, i32) {
    %c0_i32 = arith.constant 0 : i32
    %c0_i32_0 = arith.constant 0 : i32
    return %arg0, %arg1, %c0_i32 : i32, i32, i32
  }
  func.func @transform_1(%arg0: i32, %arg1: i32) -> (i32, i32, i32) {
    %c0_i32 = arith.constant 0 : i32
    %c0_i32_0 = arith.constant 0 : i32
    %c0_i32_1 = arith.constant 0 : i32
    return %arg0, %c0_i32, %c0_i32_0 : i32, i32, i32
  }
  func.func @transform_2(%arg0: i32, %arg1: i32) -> (i32, i32) {
    %c0_i32 = arith.constant 0 : i32
    %c0_i32_0 = arith.constant 0 : i32
    %c0_i32_1 = arith.constant 0 : i32
    return %c0_i32, %c0_i32_0 : i32, i32
  }
  func.func @transform_3(%arg0: i32, %arg1: i32) -> (i32, i32) {
    %c0_i32 = arith.constant 0 : i32
    %c0_i32_0 = arith.constant 0 : i32
    %c0_i32_1 = arith.constant 0 : i32
    return %c0_i32, %c0_i32_0 : i32, i32
  }
  func.func @transform_4(%arg0: i32, %arg1: i32) -> (i32, i32) {
    %c0_i32 = arith.constant 0 : i32
    %c0_i32_0 = arith.constant 0 : i32
    %c0_i32_1 = arith.constant 0 : i32
    return %c0_i32, %c0_i32_0 : i32, i32
  }
  func.func @transform_5(%arg0: i32, %arg1: i32) -> (i32, i32) {
    %c0_i32 = arith.constant 0 : i32
    %c0_i32_0 = arith.constant 0 : i32
    %c0_i32_1 = arith.constant 0 : i32
    return %c0_i32, %c0_i32_0 : i32, i32
  }
  func.func @transform_6(%arg0: i32, %arg1: i32) -> (i32, i32) {
    %c0_i32 = arith.constant 0 : i32
    %c0_i32_0 = arith.constant 0 : i32
    %c0_i32_1 = arith.constant 0 : i32
    return %c0_i32, %c0_i32_0 : i32, i32
  }
  func.func @transform_7(%arg0: i32, %arg1: i32) -> (i32, i32) {
    %c0_i32 = arith.constant 0 : i32
    %c0_i32_0 = arith.constant 0 : i32
    %c0_i32_1 = arith.constant 0 : i32
    return %c0_i32, %c0_i32_0 : i32, i32
  }
  func.func @transform_8(%arg0: i32, %arg1: i32) -> (i32, i32) {
    %c0_i32 = arith.constant 0 : i32
    %c0_i32_0 = arith.constant 0 : i32
    %c0_i32_1 = arith.constant 0 : i32
    return %c0_i32, %c0_i32_0 : i32, i32
  }
  func.func @transform_9(%arg0: i32, %arg1: i32) -> (i32, i32) {
    %c0_i32 = arith.constant 0 : i32
    %c0_i32_0 = arith.constant 0 : i32
    %c0_i32_1 = arith.constant 0 : i32
    return %c0_i32, %c0_i32_0 : i32, i32
  }
  func.func @transform_10(%arg0: i32, %arg1: i32) -> (i32, i32) {
    %c0_i32 = arith.constant 0 : i32
    %c0_i32_0 = arith.constant 0 : i32
    %c0_i32_1 = arith.constant 0 : i32
    return %c0_i32, %c0_i32_0 : i32, i32
  }
  func.func @transform_11(%arg0: i32, %arg1: i32) -> (i32, i32) {
    %c0_i32 = arith.constant 0 : i32
    %c0_i32_0 = arith.constant 0 : i32
    %c0_i32_1 = arith.constant 0 : i32
    return %c0_i32, %c0_i32_0 : i32, i32
  }
  func.func @transform_12(%arg0: i32, %arg1: i32) -> (i32, i32) {
    %c0_i32 = arith.constant 0 : i32
    %c0_i32_0 = arith.constant 0 : i32
    %c0_i32_1 = arith.constant 0 : i32
    return %c0_i32, %c0_i32_0 : i32, i32
  }
  func.func @transform_13(%arg0: i32, %arg1: i32) -> (i32, i32) {
    %c0_i32 = arith.constant 0 : i32
    %c0_i32_0 = arith.constant 0 : i32
    %c0_i32_1 = arith.constant 0 : i32
    return %c0_i32, %c0_i32_0 : i32, i32
  }
  func.func @transform_14(%arg0: i32, %arg1: i32) -> (i32, i32) {
    %c0_i32 = arith.constant 0 : i32
    %c0_i32_0 = arith.constant 0 : i32
    %c0_i32_1 = arith.constant 0 : i32
    return %c0_i32, %c0_i32_0 : i32, i32
  }
  func.func @transform_15(%arg0: i32, %arg1: i32) -> (i32, i32) {
    %c0_i32 = arith.constant 0 : i32
    %c0_i32_0 = arith.constant 0 : i32
    %c0_i32_1 = arith.constant 0 : i32
    return %c0_i32, %c0_i32_0 : i32, i32
  }
  func.func @transform_16(%arg0: i32, %arg1: i32) -> (i32, i32, i32) {
    %c0_i32 = arith.constant 0 : i32
    %c0_i32_0 = arith.constant 0 : i32
    return %arg0, %arg1, %c0_i32 : i32, i32, i32
  }
  func.func @transform_17(%arg0: i32, %arg1: i32) -> (i32, i32, i32) {
    %c0_i32 = arith.constant 0 : i32
    %c0_i32_0 = arith.constant 0 : i32
    %c0_i32_1 = arith.constant 0 : i32
    return %arg0, %c0_i32, %c0_i32_0 : i32, i32, i32
  }
}

module attributes {stable_mosaic.version = 11 : i64} {
  func.func @_tnet_pool_fc_kernel(%arg0: i32, %arg1: i32, %arg2: memref<1x16x3xf32, #tpu.memory_space<vmem>>, %arg3: memref<3x64xbf16, #tpu.memory_space<vmem>>, %arg4: memref<1x64xf32, #tpu.memory_space<vmem>>, %arg5: memref<64x128xbf16, #tpu.memory_space<vmem>>, %arg6: memref<1x128xf32, #tpu.memory_space<vmem>>, %arg7: memref<128x1024xbf16, #tpu.memory_space<vmem>>, %arg8: memref<1x1024xf32, #tpu.memory_space<vmem>>, %arg9: memref<1024x512xbf16, #tpu.memory_space<vmem>>, %arg10: memref<1x512xf32, #tpu.memory_space<vmem>>, %arg11: memref<512x256xbf16, #tpu.memory_space<vmem>>, %arg12: memref<1x256xf32, #tpu.memory_space<vmem>>, %arg13: memref<256x9xbf16, #tpu.memory_space<vmem>>, %arg14: memref<1x9xf32, #tpu.memory_space<vmem>>, %arg15: memref<1x1x9xf32, #tpu.memory_space<vmem>>, %arg16: memref<1x1024xf32, #tpu.memory_space<vmem>>) attributes {dimension_semantics = [#tpu.dimension_semantics<parallel>, #tpu.dimension_semantics<arbitrary>], iteration_bounds = array<i64: 2, 1>, scalar_prefetch = 0 : i64, scratch_operands = 1 : i64, tpu.core_type = #tpu.core_type<tc>, window_params = [{transform_indices = @transform_0, window_bounds = array<i64: 1, 16, 3>}, {pipeline_mode = #tpu.pipeline_mode<synchronous>, transform_indices = @transform_1, window_bounds = array<i64: 3, 64>}, {pipeline_mode = #tpu.pipeline_mode<synchronous>, transform_indices = @transform_2, window_bounds = array<i64: 1, 64>}, {pipeline_mode = #tpu.pipeline_mode<synchronous>, transform_indices = @transform_3, window_bounds = array<i64: 64, 128>}, {pipeline_mode = #tpu.pipeline_mode<synchronous>, transform_indices = @transform_4, window_bounds = array<i64: 1, 128>}, {pipeline_mode = #tpu.pipeline_mode<synchronous>, transform_indices = @transform_5, window_bounds = array<i64: 128, 1024>}, {pipeline_mode = #tpu.pipeline_mode<synchronous>, transform_indices = @transform_6, window_bounds = array<i64: 1, 1024>}, {pipeline_mode = #tpu.pipeline_mode<synchronous>, transform_indices = @transform_7, window_bounds = array<i64: 1024, 512>}, {pipeline_mode = #tpu.pipeline_mode<synchronous>, transform_indices = @transform_8, window_bounds = array<i64: 1, 512>}, {pipeline_mode = #tpu.pipeline_mode<synchronous>, transform_indices = @transform_9, window_bounds = array<i64: 512, 256>}, {pipeline_mode = #tpu.pipeline_mode<synchronous>, transform_indices = @transform_10, window_bounds = array<i64: 1, 256>}, {pipeline_mode = #tpu.pipeline_mode<synchronous>, transform_indices = @transform_11, window_bounds = array<i64: 256, 9>}, {pipeline_mode = #tpu.pipeline_mode<synchronous>, transform_indices = @transform_12, window_bounds = array<i64: 1, 9>}, {transform_indices = @transform_13, window_bounds = array<i64: 1, 1, 9>}]} {
    %c0_i32 = arith.constant 0 : i32
    %0 = arith.cmpi eq, %arg1, %c0_i32 : i32
    %1 = arith.extui %0 : i1 to i32
    %c0_i32_0 = arith.constant 0 : i32
    %2 = arith.cmpi ne, %1, %c0_i32_0 : i32
    scf.if %2 {
      %cst_57 = arith.constant 0xFF800000 : f32
      %73 = vector.broadcast %cst_57 : f32 to vector<1x1024xf32>
      %c0_58 = arith.constant 0 : index
      %c0_59 = arith.constant 0 : index
      %74 = vector.load %arg16[%c0_58, %c0_59] : memref<1x1024xf32, #tpu.memory_space<vmem>>, vector<1x1024xf32>
      tpu.vector_store %arg16[%c0_58, %c0_59], %73 {strides = array<i32>} : memref<1x1024xf32, #tpu.memory_space<vmem>>, vector<1x1024xf32>,
    } else {
    }
    %c0 = arith.constant 0 : index
    %c0_1 = arith.constant 0 : index
    %c0_2 = arith.constant 0 : index
    %3 = vector.load %arg2[%c0, %c0_1, %c0_2] : memref<1x16x3xf32, #tpu.memory_space<vmem>>, vector<1x16x3xf32>
    %4 = vector.shape_cast %3 : vector<1x16x3xf32> to vector<16x3xf32>
    %5 = arith.truncf %4 : vector<16x3xf32> to vector<16x3xbf16>
    %c0_3 = arith.constant 0 : index
    %c0_4 = arith.constant 0 : index
    %6 = vector.load %arg3[%c0_3, %c0_4] : memref<3x64xbf16, #tpu.memory_space<vmem>>, vector<3x64xbf16>
    %cst = arith.constant dense<0.000000e+00> : vector<16x64xf32>
    %7 = tpu.matmul %5, %6, %cst {dimension_numbers = #tpu.dot_dimension_numbers<[1], [0], [0], [1], [0, 0, 1, 1], [], []>} : vector<16x3xbf16>, vector<3x64xbf16>, vector<16x64xf32> -> vector<16x64xf32>
    %c0_5 = arith.constant 0 : index
    %c0_6 = arith.constant 0 : index
    %8 = vector.load %arg4[%c0_5, %c0_6] : memref<1x64xf32, #tpu.memory_space<vmem>>, vector<1x64xf32>
    %9 = vector.broadcast %8 : vector<1x64xf32> to vector<16x64xf32>
    %10 = arith.addf %7, %9 : vector<16x64xf32>
    %cst_7 = arith.constant 0.000000e+00 : f32
    %11 = vector.broadcast %cst_7 : f32 to vector<16x64xf32>
    %12 = arith.maximumf %10, %11 : vector<16x64xf32>
    %13 = arith.truncf %12 : vector<16x64xf32> to vector<16x64xbf16>
    %c0_8 = arith.constant 0 : index
    %c0_9 = arith.constant 0 : index
    %14 = vector.load %arg5[%c0_8, %c0_9] : memref<64x128xbf16, #tpu.memory_space<vmem>>, vector<64x128xbf16>
    %cst_10 = arith.constant dense<0.000000e+00> : vector<16x128xf32>
    %15 = tpu.matmul %13, %14, %cst_10 {dimension_numbers = #tpu.dot_dimension_numbers<[1], [0], [0], [1], [0, 0, 1, 1], [], []>} : vector<16x64xbf16>, vector<64x128xbf16>, vector<16x128xf32> -> vector<16x128xf32>
    %c0_11 = arith.constant 0 : index
    %c0_12 = arith.constant 0 : index
    %16 = vector.load %arg6[%c0_11, %c0_12] : memref<1x128xf32, #tpu.memory_space<vmem>>, vector<1x128xf32>
    %17 = vector.broadcast %16 : vector<1x128xf32> to vector<16x128xf32>
    %18 = arith.addf %15, %17 : vector<16x128xf32>
    %cst_13 = arith.constant 0.000000e+00 : f32
    %19 = vector.broadcast %cst_13 : f32 to vector<16x128xf32>
    %20 = arith.maximumf %18, %19 : vector<16x128xf32>
    %21 = arith.truncf %20 : vector<16x128xf32> to vector<16x128xbf16>
    %c0_14 = arith.constant 0 : index
    %c0_15 = arith.constant 0 : index
    %22 = vector.load %arg7[%c0_14, %c0_15] : memref<128x1024xbf16, #tpu.memory_space<vmem>>, vector<128x256xbf16>
    %cst_16 = arith.constant dense<0.000000e+00> : vector<16x256xf32>
    %23 = tpu.matmul %21, %22, %cst_16 {dimension_numbers = #tpu.dot_dimension_numbers<[1], [0], [0], [1], [0, 0, 1, 1], [], []>} : vector<16x128xbf16>, vector<128x256xbf16>, vector<16x256xf32> -> vector<16x256xf32>
    %c0_17 = arith.constant 0 : index
    %c0_18 = arith.constant 0 : index
    %24 = vector.load %arg8[%c0_17, %c0_18] : memref<1x1024xf32, #tpu.memory_space<vmem>>, vector<1x256xf32>
    %25 = vector.broadcast %24 : vector<1x256xf32> to vector<16x256xf32>
    %26 = arith.addf %23, %25 : vector<16x256xf32>
    %cst_19 = arith.constant 0.000000e+00 : f32
    %27 = vector.broadcast %cst_19 : f32 to vector<16x256xf32>
    %28 = arith.maximumf %26, %27 : vector<16x256xf32>
    %c0_20 = arith.constant 0 : index
    %c0_21 = arith.constant 0 : index
    %29 = vector.load %arg16[%c0_20, %c0_21] : memref<1x1024xf32, #tpu.memory_space<vmem>>, vector<1x256xf32>
    %cst_22 = arith.constant dense<0xFF800000> : vector<256xf32>
    %30 = vector.multi_reduction <maximumf>, %28, %cst_22 [0] : vector<16x256xf32> to vector<256xf32>
    %31 = vector.shape_cast %30 : vector<256xf32> to vector<1x256xf32>
    %32 = arith.maximumf %29, %31 : vector<1x256xf32>
    %c0_23 = arith.constant 0 : index
    %c0_24 = arith.constant 0 : index
    %33 = vector.load %arg16[%c0_23, %c0_24] : memref<1x1024xf32, #tpu.memory_space<vmem>>, vector<1x256xf32>
    tpu.vector_store %arg16[%c0_23, %c0_24], %32 {strides = array<i32>} : memref<1x1024xf32, #tpu.memory_space<vmem>>, vector<1x256xf32>,
    %c0_25 = arith.constant 0 : index
    %c256 = arith.constant 256 : index
    %34 = vector.load %arg7[%c0_25, %c256] : memref<128x1024xbf16, #tpu.memory_space<vmem>>, vector<128x256xbf16>
    %cst_26 = arith.constant dense<0.000000e+00> : vector<16x256xf32>
    %35 = tpu.matmul %21, %34, %cst_26 {dimension_numbers = #tpu.dot_dimension_numbers<[1], [0], [0], [1], [0, 0, 1, 1], [], []>} : vector<16x128xbf16>, vector<128x256xbf16>, vector<16x256xf32> -> vector<16x256xf32>
    %c0_27 = arith.constant 0 : index
    %c256_28 = arith.constant 256 : index
    %36 = vector.load %arg8[%c0_27, %c256_28] : memref<1x1024xf32, #tpu.memory_space<vmem>>, vector<1x256xf32>
    %37 = vector.broadcast %36 : vector<1x256xf32> to vector<16x256xf32>
    %38 = arith.addf %35, %37 : vector<16x256xf32>
    %cst_29 = arith.constant 0.000000e+00 : f32
    %39 = vector.broadcast %cst_29 : f32 to vector<16x256xf32>
    %40 = arith.maximumf %38, %39 : vector<16x256xf32>
    %c0_30 = arith.constant 0 : index
    %c256_31 = arith.constant 256 : index
    %41 = vector.load %arg16[%c0_30, %c256_31] : memref<1x1024xf32, #tpu.memory_space<vmem>>, vector<1x256xf32>
    %cst_32 = arith.constant dense<0xFF800000> : vector<256xf32>
    %42 = vector.multi_reduction <maximumf>, %40, %cst_32 [0] : vector<16x256xf32> to vector<256xf32>
    %43 = vector.shape_cast %42 : vector<256xf32> to vector<1x256xf32>
    %44 = arith.maximumf %41, %43 : vector<1x256xf32>
    %c0_33 = arith.constant 0 : index
    %c256_34 = arith.constant 256 : index
    %45 = vector.load %arg16[%c0_33, %c256_34] : memref<1x1024xf32, #tpu.memory_space<vmem>>, vector<1x256xf32>
    tpu.vector_store %arg16[%c0_33, %c256_34], %44 {strides = array<i32>} : memref<1x1024xf32, #tpu.memory_space<vmem>>, vector<1x256xf32>,
    %c0_35 = arith.constant 0 : index
    %c512 = arith.constant 512 : index
    %46 = vector.load %arg7[%c0_35, %c512] : memref<128x1024xbf16, #tpu.memory_space<vmem>>, vector<128x256xbf16>
    %cst_36 = arith.constant dense<0.000000e+00> : vector<16x256xf32>
    %47 = tpu.matmul %21, %46, %cst_36 {dimension_numbers = #tpu.dot_dimension_numbers<[1], [0], [0], [1], [0, 0, 1, 1], [], []>} : vector<16x128xbf16>, vector<128x256xbf16>, vector<16x256xf32> -> vector<16x256xf32>
    %c0_37 = arith.constant 0 : index
    %c512_38 = arith.constant 512 : index
    %48 = vector.load %arg8[%c0_37, %c512_38] : memref<1x1024xf32, #tpu.memory_space<vmem>>, vector<1x256xf32>
    %49 = vector.broadcast %48 : vector<1x256xf32> to vector<16x256xf32>
    %50 = arith.addf %47, %49 : vector<16x256xf32>
    %cst_39 = arith.constant 0.000000e+00 : f32
    %51 = vector.broadcast %cst_39 : f32 to vector<16x256xf32>
    %52 = arith.maximumf %50, %51 : vector<16x256xf32>
    %c0_40 = arith.constant 0 : index
    %c512_41 = arith.constant 512 : index
    %53 = vector.load %arg16[%c0_40, %c512_41] : memref<1x1024xf32, #tpu.memory_space<vmem>>, vector<1x256xf32>
    %cst_42 = arith.constant dense<0xFF800000> : vector<256xf32>
    %54 = vector.multi_reduction <maximumf>, %52, %cst_42 [0] : vector<16x256xf32> to vector<256xf32>
    %55 = vector.shape_cast %54 : vector<256xf32> to vector<1x256xf32>
    %56 = arith.maximumf %53, %55 : vector<1x256xf32>
    %c0_43 = arith.constant 0 : index
    %c512_44 = arith.constant 512 : index
    %57 = vector.load %arg16[%c0_43, %c512_44] : memref<1x1024xf32, #tpu.memory_space<vmem>>, vector<1x256xf32>
    tpu.vector_store %arg16[%c0_43, %c512_44], %56 {strides = array<i32>} : memref<1x1024xf32, #tpu.memory_space<vmem>>, vector<1x256xf32>,
    %c0_45 = arith.constant 0 : index
    %c768 = arith.constant 768 : index
    %58 = vector.load %arg7[%c0_45, %c768] : memref<128x1024xbf16, #tpu.memory_space<vmem>>, vector<128x256xbf16>
    %cst_46 = arith.constant dense<0.000000e+00> : vector<16x256xf32>
    %59 = tpu.matmul %21, %58, %cst_46 {dimension_numbers = #tpu.dot_dimension_numbers<[1], [0], [0], [1], [0, 0, 1, 1], [], []>} : vector<16x128xbf16>, vector<128x256xbf16>, vector<16x256xf32> -> vector<16x256xf32>
    %c0_47 = arith.constant 0 : index
    %c768_48 = arith.constant 768 : index
    %60 = vector.load %arg8[%c0_47, %c768_48] : memref<1x1024xf32, #tpu.memory_space<vmem>>, vector<1x256xf32>
    %61 = vector.broadcast %60 : vector<1x256xf32> to vector<16x256xf32>
    %62 = arith.addf %59, %61 : vector<16x256xf32>
    %cst_49 = arith.constant 0.000000e+00 : f32
    %63 = vector.broadcast %cst_49 : f32 to vector<16x256xf32>
    %64 = arith.maximumf %62, %63 : vector<16x256xf32>
    %c0_50 = arith.constant 0 : index
    %c768_51 = arith.constant 768 : index
    %65 = vector.load %arg16[%c0_50, %c768_51] : memref<1x1024xf32, #tpu.memory_space<vmem>>, vector<1x256xf32>
    %cst_52 = arith.constant dense<0xFF800000> : vector<256xf32>
    %66 = vector.multi_reduction <maximumf>, %64, %cst_52 [0] : vector<16x256xf32> to vector<256xf32>
    %67 = vector.shape_cast %66 : vector<256xf32> to vector<1x256xf32>
    %68 = arith.maximumf %65, %67 : vector<1x256xf32>
    %c0_53 = arith.constant 0 : index
    %c768_54 = arith.constant 768 : index
    %69 = vector.load %arg16[%c0_53, %c768_54] : memref<1x1024xf32, #tpu.memory_space<vmem>>, vector<1x256xf32>
    tpu.vector_store %arg16[%c0_53, %c768_54], %68 {strides = array<i32>} : memref<1x1024xf32, #tpu.memory_space<vmem>>, vector<1x256xf32>,
    %c0_i32_55 = arith.constant 0 : i32
    %70 = arith.cmpi eq, %arg1, %c0_i32_55 : i32
    %71 = arith.extui %70 : i1 to i32
    %c0_i32_56 = arith.constant 0 : i32
    %72 = arith.cmpi ne, %71, %c0_i32_56 : i32
    scf.if %72 {
      %c0_57 = arith.constant 0 : index
      %c0_58 = arith.constant 0 : index
      %73 = vector.load %arg16[%c0_57, %c0_58] : memref<1x1024xf32, #tpu.memory_space<vmem>>, vector<1x1024xf32>
      %74 = arith.truncf %73 : vector<1x1024xf32> to vector<1x1024xbf16>
      %c0_59 = arith.constant 0 : index
      %c0_60 = arith.constant 0 : index
      %75 = vector.load %arg9[%c0_59, %c0_60] : memref<1024x512xbf16, #tpu.memory_space<vmem>>, vector<1024x512xbf16>
      %cst_61 = arith.constant dense<0.000000e+00> : vector<1x512xf32>
      %76 = tpu.matmul %74, %75, %cst_61 {dimension_numbers = #tpu.dot_dimension_numbers<[1], [0], [0], [1], [0, 0, 1, 1], [], []>} : vector<1x1024xbf16>, vector<1024x512xbf16>, vector<1x512xf32> -> vector<1x512xf32>
      %c0_62 = arith.constant 0 : index
      %c0_63 = arith.constant 0 : index
      %77 = vector.load %arg10[%c0_62, %c0_63] : memref<1x512xf32, #tpu.memory_space<vmem>>, vector<1x512xf32>
      %78 = arith.addf %76, %77 : vector<1x512xf32>
      %cst_64 = arith.constant 0.000000e+00 : f32
      %79 = vector.broadcast %cst_64 : f32 to vector<1x512xf32>
      %80 = arith.maximumf %78, %79 : vector<1x512xf32>
      %81 = arith.truncf %80 : vector<1x512xf32> to vector<1x512xbf16>
      %c0_65 = arith.constant 0 : index
      %c0_66 = arith.constant 0 : index
      %82 = vector.load %arg11[%c0_65, %c0_66] : memref<512x256xbf16, #tpu.memory_space<vmem>>, vector<512x256xbf16>
      %cst_67 = arith.constant dense<0.000000e+00> : vector<1x256xf32>
      %83 = tpu.matmul %81, %82, %cst_67 {dimension_numbers = #tpu.dot_dimension_numbers<[1], [0], [0], [1], [0, 0, 1, 1], [], []>} : vector<1x512xbf16>, vector<512x256xbf16>, vector<1x256xf32> -> vector<1x256xf32>
      %c0_68 = arith.constant 0 : index
      %c0_69 = arith.constant 0 : index
      %84 = vector.load %arg12[%c0_68, %c0_69] : memref<1x256xf32, #tpu.memory_space<vmem>>, vector<1x256xf32>
      %85 = arith.addf %83, %84 : vector<1x256xf32>
      %cst_70 = arith.constant 0.000000e+00 : f32
      %86 = vector.broadcast %cst_70 : f32 to vector<1x256xf32>
      %87 = arith.maximumf %85, %86 : vector<1x256xf32>
      %88 = arith.truncf %87 : vector<1x256xf32> to vector<1x256xbf16>
      %c0_71 = arith.constant 0 : index
      %c0_72 = arith.constant 0 : index
      %89 = vector.load %arg13[%c0_71, %c0_72] : memref<256x9xbf16, #tpu.memory_space<vmem>>, vector<256x9xbf16>
      %cst_73 = arith.constant dense<0.000000e+00> : vector<1x9xf32>
      %90 = tpu.matmul %88, %89, %cst_73 {dimension_numbers = #tpu.dot_dimension_numbers<[1], [0], [0], [1], [0, 0, 1, 1], [], []>} : vector<1x256xbf16>, vector<256x9xbf16>, vector<1x9xf32> -> vector<1x9xf32>
      %c0_74 = arith.constant 0 : index
      %c0_75 = arith.constant 0 : index
      %91 = vector.load %arg14[%c0_74, %c0_75] : memref<1x9xf32, #tpu.memory_space<vmem>>, vector<1x9xf32>
      %92 = arith.addf %90, %91 : vector<1x9xf32>
      %c0_76 = arith.constant 0 : index
      %c0_77 = arith.constant 0 : index
      %c0_78 = arith.constant 0 : index
      %93 = vector.load %arg15[%c0_76, %c0_77, %c0_78] : memref<1x1x9xf32, #tpu.memory_space<vmem>>, vector<1x1x9xf32>
      %94 = vector.shape_cast %93 : vector<1x1x9xf32> to vector<1x9xf32>
      %95 = vector.shape_cast %92 : vector<1x9xf32> to vector<1x1x9xf32>
      tpu.vector_store %arg15[%c0_76, %c0_77, %c0_78], %95 {strides = array<i32>} : memref<1x1x9xf32, #tpu.memory_space<vmem>>, vector<1x1x9xf32>,
    } else {
    }
    return
  }
  func.func @transform_0(%arg0: i32, %arg1: i32) -> (i32, i32, i32) {
    %c0_i32 = arith.constant 0 : i32
    %c0_i32_0 = arith.constant 0 : i32
    return %arg0, %arg1, %c0_i32 : i32, i32, i32
  }
  func.func @transform_1(%arg0: i32, %arg1: i32) -> (i32, i32) {
    %c0_i32 = arith.constant 0 : i32
    %c0_i32_0 = arith.constant 0 : i32
    %c0_i32_1 = arith.constant 0 : i32
    return %c0_i32, %c0_i32_0 : i32, i32
  }
  func.func @transform_2(%arg0: i32, %arg1: i32) -> (i32, i32) {
    %c0_i32 = arith.constant 0 : i32
    %c0_i32_0 = arith.constant 0 : i32
    %c0_i32_1 = arith.constant 0 : i32
    return %c0_i32, %c0_i32_0 : i32, i32
  }
  func.func @transform_3(%arg0: i32, %arg1: i32) -> (i32, i32) {
    %c0_i32 = arith.constant 0 : i32
    %c0_i32_0 = arith.constant 0 : i32
    %c0_i32_1 = arith.constant 0 : i32
    return %c0_i32, %c0_i32_0 : i32, i32
  }
  func.func @transform_4(%arg0: i32, %arg1: i32) -> (i32, i32) {
    %c0_i32 = arith.constant 0 : i32
    %c0_i32_0 = arith.constant 0 : i32
    %c0_i32_1 = arith.constant 0 : i32
    return %c0_i32, %c0_i32_0 : i32, i32
  }
  func.func @transform_5(%arg0: i32, %arg1: i32) -> (i32, i32) {
    %c0_i32 = arith.constant 0 : i32
    %c0_i32_0 = arith.constant 0 : i32
    %c0_i32_1 = arith.constant 0 : i32
    return %c0_i32, %c0_i32_0 : i32, i32
  }
  func.func @transform_6(%arg0: i32, %arg1: i32) -> (i32, i32) {
    %c0_i32 = arith.constant 0 : i32
    %c0_i32_0 = arith.constant 0 : i32
    %c0_i32_1 = arith.constant 0 : i32
    return %c0_i32, %c0_i32_0 : i32, i32
  }
  func.func @transform_7(%arg0: i32, %arg1: i32) -> (i32, i32) {
    %c0_i32 = arith.constant 0 : i32
    %c0_i32_0 = arith.constant 0 : i32
    %c0_i32_1 = arith.constant 0 : i32
    return %c0_i32, %c0_i32_0 : i32, i32
  }
  func.func @transform_8(%arg0: i32, %arg1: i32) -> (i32, i32) {
    %c0_i32 = arith.constant 0 : i32
    %c0_i32_0 = arith.constant 0 : i32
    %c0_i32_1 = arith.constant 0 : i32
    return %c0_i32, %c0_i32_0 : i32, i32
  }
  func.func @transform_9(%arg0: i32, %arg1: i32) -> (i32, i32) {
    %c0_i32 = arith.constant 0 : i32
    %c0_i32_0 = arith.constant 0 : i32
    %c0_i32_1 = arith.constant 0 : i32
    return %c0_i32, %c0_i32_0 : i32, i32
  }
  func.func @transform_10(%arg0: i32, %arg1: i32) -> (i32, i32) {
    %c0_i32 = arith.constant 0 : i32
    %c0_i32_0 = arith.constant 0 : i32
    %c0_i32_1 = arith.constant 0 : i32
    return %c0_i32, %c0_i32_0 : i32, i32
  }
  func.func @transform_11(%arg0: i32, %arg1: i32) -> (i32, i32) {
    %c0_i32 = arith.constant 0 : i32
    %c0_i32_0 = arith.constant 0 : i32
    %c0_i32_1 = arith.constant 0 : i32
    return %c0_i32, %c0_i32_0 : i32, i32
  }
  func.func @transform_12(%arg0: i32, %arg1: i32) -> (i32, i32) {
    %c0_i32 = arith.constant 0 : i32
    %c0_i32_0 = arith.constant 0 : i32
    %c0_i32_1 = arith.constant 0 : i32
    return %c0_i32, %c0_i32_0 : i32, i32
  }
  func.func @transform_13(%arg0: i32, %arg1: i32) -> (i32, i32, i32) {
    %c0_i32 = arith.constant 0 : i32
    %c0_i32_0 = arith.constant 0 : i32
    %c0_i32_1 = arith.constant 0 : i32
    return %arg0, %c0_i32, %c0_i32_0 : i32, i32, i32
  }
}

module attributes {stable_mosaic.version = 11 : i64} {
  func.func @_trunk_pool_kernel(%arg0: i32, %arg1: i32, %arg2: memref<1x16x64xbf16, #tpu.memory_space<vmem>>, %arg3: memref<1x64x64xf32, #tpu.memory_space<vmem>>, %arg4: memref<64x128xf32, #tpu.memory_space<vmem>>, %arg5: memref<1x128xf32, #tpu.memory_space<vmem>>, %arg6: memref<128x1024xbf16, #tpu.memory_space<vmem>>, %arg7: memref<1x1024xf32, #tpu.memory_space<vmem>>, %arg8: memref<1x1x1024xf32, #tpu.memory_space<vmem>>, %arg9: memref<64x128xf32, #tpu.memory_space<vmem>>) attributes {dimension_semantics = [#tpu.dimension_semantics<parallel>, #tpu.dimension_semantics<arbitrary>], iteration_bounds = array<i64: 2, 1>, scalar_prefetch = 0 : i64, scratch_operands = 1 : i64, tpu.core_type = #tpu.core_type<tc>, window_params = [{transform_indices = @transform_0, window_bounds = array<i64: 1, 16, 64>}, {transform_indices = @transform_1, window_bounds = array<i64: 1, 64, 64>}, {pipeline_mode = #tpu.pipeline_mode<synchronous>, transform_indices = @transform_2, window_bounds = array<i64: 64, 128>}, {pipeline_mode = #tpu.pipeline_mode<synchronous>, transform_indices = @transform_3, window_bounds = array<i64: 1, 128>}, {pipeline_mode = #tpu.pipeline_mode<synchronous>, transform_indices = @transform_4, window_bounds = array<i64: 128, 1024>}, {pipeline_mode = #tpu.pipeline_mode<synchronous>, transform_indices = @transform_5, window_bounds = array<i64: 1, 1024>}, {transform_indices = @transform_6, window_bounds = array<i64: 1, 1, 1024>}]} {
    %c0_i32 = arith.constant 0 : i32
    %0 = arith.cmpi eq, %arg1, %c0_i32 : i32
    %1 = arith.extui %0 : i1 to i32
    %c0_i32_0 = arith.constant 0 : i32
    %2 = arith.cmpi ne, %1, %c0_i32_0 : i32
    scf.if %2 {
      %cst_47 = arith.constant 0xFF800000 : f32
      %57 = vector.broadcast %cst_47 : f32 to vector<1x1024xf32>
      %c0_48 = arith.constant 0 : index
      %c0_49 = arith.constant 0 : index
      %c0_50 = arith.constant 0 : index
      %58 = vector.load %arg8[%c0_48, %c0_49, %c0_50] : memref<1x1x1024xf32, #tpu.memory_space<vmem>>, vector<1x1x1024xf32>
      %59 = vector.shape_cast %58 : vector<1x1x1024xf32> to vector<1x1024xf32>
      %60 = vector.shape_cast %57 : vector<1x1024xf32> to vector<1x1x1024xf32>
      tpu.vector_store %arg8[%c0_48, %c0_49, %c0_50], %60 {strides = array<i32>} : memref<1x1x1024xf32, #tpu.memory_space<vmem>>, vector<1x1x1024xf32>,
      %c0_51 = arith.constant 0 : index
      %c0_52 = arith.constant 0 : index
      %c0_53 = arith.constant 0 : index
      %61 = vector.load %arg3[%c0_51, %c0_52, %c0_53] : memref<1x64x64xf32, #tpu.memory_space<vmem>>, vector<1x64x64xf32>
      %62 = vector.shape_cast %61 : vector<1x64x64xf32> to vector<64x64xf32>
      %c0_54 = arith.constant 0 : index
      %c0_55 = arith.constant 0 : index
      %63 = vector.load %arg4[%c0_54, %c0_55] : memref<64x128xf32, #tpu.memory_space<vmem>>, vector<64x128xf32>
      %cst_56 = arith.constant dense<0.000000e+00> : vector<64x128xf32>
      %64 = tpu.matmul %62, %63, %cst_56 {dimension_numbers = #tpu.dot_dimension_numbers<[1], [0], [0], [1], [0, 0, 1, 1], [], []>} : vector<64x64xf32>, vector<64x128xf32>, vector<64x128xf32> -> vector<64x128xf32>
      %c0_57 = arith.constant 0 : index
      %c0_58 = arith.constant 0 : index
      %65 = vector.load %arg9[%c0_57, %c0_58] : memref<64x128xf32, #tpu.memory_space<vmem>>, vector<64x128xf32>
      tpu.vector_store %arg9[%c0_57, %c0_58], %64 {strides = array<i32>} : memref<64x128xf32, #tpu.memory_space<vmem>>, vector<64x128xf32>,
    } else {
    }
    %c0 = arith.constant 0 : index
    %c0_1 = arith.constant 0 : index
    %c0_2 = arith.constant 0 : index
    %3 = vector.load %arg2[%c0, %c0_1, %c0_2] : memref<1x16x64xbf16, #tpu.memory_space<vmem>>, vector<1x16x64xbf16>
    %4 = vector.shape_cast %3 : vector<1x16x64xbf16> to vector<16x64xbf16>
    %c0_3 = arith.constant 0 : index
    %c0_4 = arith.constant 0 : index
    %5 = vector.load %arg9[%c0_3, %c0_4] : memref<64x128xf32, #tpu.memory_space<vmem>>, vector<64x128xf32>
    %6 = arith.truncf %5 : vector<64x128xf32> to vector<64x128xbf16>
    %cst = arith.constant dense<0.000000e+00> : vector<16x128xf32>
    %7 = tpu.matmul %4, %6, %cst {dimension_numbers = #tpu.dot_dimension_numbers<[1], [0], [0], [1], [0, 0, 1, 1], [], []>} : vector<16x64xbf16>, vector<64x128xbf16>, vector<16x128xf32> -> vector<16x128xf32>
    %c0_5 = arith.constant 0 : index
    %c0_6 = arith.constant 0 : index
    %8 = vector.load %arg5[%c0_5, %c0_6] : memref<1x128xf32, #tpu.memory_space<vmem>>, vector<1x128xf32>
    %9 = vector.broadcast %8 : vector<1x128xf32> to vector<16x128xf32>
    %10 = arith.addf %7, %9 : vector<16x128xf32>
    %cst_7 = arith.constant 0.000000e+00 : f32
    %11 = vector.broadcast %cst_7 : f32 to vector<16x128xf32>
    %12 = arith.maximumf %10, %11 : vector<16x128xf32>
    %13 = arith.truncf %12 : vector<16x128xf32> to vector<16x128xbf16>
    %c0_8 = arith.constant 0 : index
    %c0_9 = arith.constant 0 : index
    %14 = vector.load %arg6[%c0_8, %c0_9] : memref<128x1024xbf16, #tpu.memory_space<vmem>>, vector<128x256xbf16>
    %cst_10 = arith.constant dense<0.000000e+00> : vector<16x256xf32>
    %15 = tpu.matmul %13, %14, %cst_10 {dimension_numbers = #tpu.dot_dimension_numbers<[1], [0], [0], [1], [0, 0, 1, 1], [], []>} : vector<16x128xbf16>, vector<128x256xbf16>, vector<16x256xf32> -> vector<16x256xf32>
    %c0_11 = arith.constant 0 : index
    %c0_12 = arith.constant 0 : index
    %c0_13 = arith.constant 0 : index
    %16 = vector.load %arg8[%c0_11, %c0_12, %c0_13] : memref<1x1x1024xf32, #tpu.memory_space<vmem>>, vector<1x1x256xf32>
    %17 = vector.shape_cast %16 : vector<1x1x256xf32> to vector<1x256xf32>
    %cst_14 = arith.constant dense<0xFF800000> : vector<256xf32>
    %18 = vector.multi_reduction <maximumf>, %15, %cst_14 [0] : vector<16x256xf32> to vector<256xf32>
    %19 = vector.shape_cast %18 : vector<256xf32> to vector<1x256xf32>
    %20 = arith.maximumf %17, %19 : vector<1x256xf32>
    %c0_15 = arith.constant 0 : index
    %c0_16 = arith.constant 0 : index
    %c0_17 = arith.constant 0 : index
    %21 = vector.load %arg8[%c0_15, %c0_16, %c0_17] : memref<1x1x1024xf32, #tpu.memory_space<vmem>>, vector<1x1x256xf32>
    %22 = vector.shape_cast %21 : vector<1x1x256xf32> to vector<1x256xf32>
    %23 = vector.shape_cast %20 : vector<1x256xf32> to vector<1x1x256xf32>
    tpu.vector_store %arg8[%c0_15, %c0_16, %c0_17], %23 {strides = array<i32>} : memref<1x1x1024xf32, #tpu.memory_space<vmem>>, vector<1x1x256xf32>,
    %c0_18 = arith.constant 0 : index
    %c256 = arith.constant 256 : index
    %24 = vector.load %arg6[%c0_18, %c256] : memref<128x1024xbf16, #tpu.memory_space<vmem>>, vector<128x256xbf16>
    %cst_19 = arith.constant dense<0.000000e+00> : vector<16x256xf32>
    %25 = tpu.matmul %13, %24, %cst_19 {dimension_numbers = #tpu.dot_dimension_numbers<[1], [0], [0], [1], [0, 0, 1, 1], [], []>} : vector<16x128xbf16>, vector<128x256xbf16>, vector<16x256xf32> -> vector<16x256xf32>
    %c0_20 = arith.constant 0 : index
    %c0_21 = arith.constant 0 : index
    %c256_22 = arith.constant 256 : index
    %26 = vector.load %arg8[%c0_20, %c0_21, %c256_22] : memref<1x1x1024xf32, #tpu.memory_space<vmem>>, vector<1x1x256xf32>
    %27 = vector.shape_cast %26 : vector<1x1x256xf32> to vector<1x256xf32>
    %cst_23 = arith.constant dense<0xFF800000> : vector<256xf32>
    %28 = vector.multi_reduction <maximumf>, %25, %cst_23 [0] : vector<16x256xf32> to vector<256xf32>
    %29 = vector.shape_cast %28 : vector<256xf32> to vector<1x256xf32>
    %30 = arith.maximumf %27, %29 : vector<1x256xf32>
    %c0_24 = arith.constant 0 : index
    %c0_25 = arith.constant 0 : index
    %c256_26 = arith.constant 256 : index
    %31 = vector.load %arg8[%c0_24, %c0_25, %c256_26] : memref<1x1x1024xf32, #tpu.memory_space<vmem>>, vector<1x1x256xf32>
    %32 = vector.shape_cast %31 : vector<1x1x256xf32> to vector<1x256xf32>
    %33 = vector.shape_cast %30 : vector<1x256xf32> to vector<1x1x256xf32>
    tpu.vector_store %arg8[%c0_24, %c0_25, %c256_26], %33 {strides = array<i32>} : memref<1x1x1024xf32, #tpu.memory_space<vmem>>, vector<1x1x256xf32>,
    %c0_27 = arith.constant 0 : index
    %c512 = arith.constant 512 : index
    %34 = vector.load %arg6[%c0_27, %c512] : memref<128x1024xbf16, #tpu.memory_space<vmem>>, vector<128x256xbf16>
    %cst_28 = arith.constant dense<0.000000e+00> : vector<16x256xf32>
    %35 = tpu.matmul %13, %34, %cst_28 {dimension_numbers = #tpu.dot_dimension_numbers<[1], [0], [0], [1], [0, 0, 1, 1], [], []>} : vector<16x128xbf16>, vector<128x256xbf16>, vector<16x256xf32> -> vector<16x256xf32>
    %c0_29 = arith.constant 0 : index
    %c0_30 = arith.constant 0 : index
    %c512_31 = arith.constant 512 : index
    %36 = vector.load %arg8[%c0_29, %c0_30, %c512_31] : memref<1x1x1024xf32, #tpu.memory_space<vmem>>, vector<1x1x256xf32>
    %37 = vector.shape_cast %36 : vector<1x1x256xf32> to vector<1x256xf32>
    %cst_32 = arith.constant dense<0xFF800000> : vector<256xf32>
    %38 = vector.multi_reduction <maximumf>, %35, %cst_32 [0] : vector<16x256xf32> to vector<256xf32>
    %39 = vector.shape_cast %38 : vector<256xf32> to vector<1x256xf32>
    %40 = arith.maximumf %37, %39 : vector<1x256xf32>
    %c0_33 = arith.constant 0 : index
    %c0_34 = arith.constant 0 : index
    %c512_35 = arith.constant 512 : index
    %41 = vector.load %arg8[%c0_33, %c0_34, %c512_35] : memref<1x1x1024xf32, #tpu.memory_space<vmem>>, vector<1x1x256xf32>
    %42 = vector.shape_cast %41 : vector<1x1x256xf32> to vector<1x256xf32>
    %43 = vector.shape_cast %40 : vector<1x256xf32> to vector<1x1x256xf32>
    tpu.vector_store %arg8[%c0_33, %c0_34, %c512_35], %43 {strides = array<i32>} : memref<1x1x1024xf32, #tpu.memory_space<vmem>>, vector<1x1x256xf32>,
    %c0_36 = arith.constant 0 : index
    %c768 = arith.constant 768 : index
    %44 = vector.load %arg6[%c0_36, %c768] : memref<128x1024xbf16, #tpu.memory_space<vmem>>, vector<128x256xbf16>
    %cst_37 = arith.constant dense<0.000000e+00> : vector<16x256xf32>
    %45 = tpu.matmul %13, %44, %cst_37 {dimension_numbers = #tpu.dot_dimension_numbers<[1], [0], [0], [1], [0, 0, 1, 1], [], []>} : vector<16x128xbf16>, vector<128x256xbf16>, vector<16x256xf32> -> vector<16x256xf32>
    %c0_38 = arith.constant 0 : index
    %c0_39 = arith.constant 0 : index
    %c768_40 = arith.constant 768 : index
    %46 = vector.load %arg8[%c0_38, %c0_39, %c768_40] : memref<1x1x1024xf32, #tpu.memory_space<vmem>>, vector<1x1x256xf32>
    %47 = vector.shape_cast %46 : vector<1x1x256xf32> to vector<1x256xf32>
    %cst_41 = arith.constant dense<0xFF800000> : vector<256xf32>
    %48 = vector.multi_reduction <maximumf>, %45, %cst_41 [0] : vector<16x256xf32> to vector<256xf32>
    %49 = vector.shape_cast %48 : vector<256xf32> to vector<1x256xf32>
    %50 = arith.maximumf %47, %49 : vector<1x256xf32>
    %c0_42 = arith.constant 0 : index
    %c0_43 = arith.constant 0 : index
    %c768_44 = arith.constant 768 : index
    %51 = vector.load %arg8[%c0_42, %c0_43, %c768_44] : memref<1x1x1024xf32, #tpu.memory_space<vmem>>, vector<1x1x256xf32>
    %52 = vector.shape_cast %51 : vector<1x1x256xf32> to vector<1x256xf32>
    %53 = vector.shape_cast %50 : vector<1x256xf32> to vector<1x1x256xf32>
    tpu.vector_store %arg8[%c0_42, %c0_43, %c768_44], %53 {strides = array<i32>} : memref<1x1x1024xf32, #tpu.memory_space<vmem>>, vector<1x1x256xf32>,
    %c0_i32_45 = arith.constant 0 : i32
    %54 = arith.cmpi eq, %arg1, %c0_i32_45 : i32
    %55 = arith.extui %54 : i1 to i32
    %c0_i32_46 = arith.constant 0 : i32
    %56 = arith.cmpi ne, %55, %c0_i32_46 : i32
    scf.if %56 {
      %c0_47 = arith.constant 0 : index
      %c0_48 = arith.constant 0 : index
      %c0_49 = arith.constant 0 : index
      %57 = vector.load %arg8[%c0_47, %c0_48, %c0_49] : memref<1x1x1024xf32, #tpu.memory_space<vmem>>, vector<1x1x1024xf32>
      %58 = vector.shape_cast %57 : vector<1x1x1024xf32> to vector<1x1024xf32>
      %c0_50 = arith.constant 0 : index
      %c0_51 = arith.constant 0 : index
      %59 = vector.load %arg7[%c0_50, %c0_51] : memref<1x1024xf32, #tpu.memory_space<vmem>>, vector<1x1024xf32>
      %60 = arith.addf %58, %59 : vector<1x1024xf32>
      %c0_52 = arith.constant 0 : index
      %c0_53 = arith.constant 0 : index
      %c0_54 = arith.constant 0 : index
      %61 = vector.load %arg8[%c0_52, %c0_53, %c0_54] : memref<1x1x1024xf32, #tpu.memory_space<vmem>>, vector<1x1x1024xf32>
      %62 = vector.shape_cast %61 : vector<1x1x1024xf32> to vector<1x1024xf32>
      %63 = vector.shape_cast %60 : vector<1x1024xf32> to vector<1x1x1024xf32>
      tpu.vector_store %arg8[%c0_52, %c0_53, %c0_54], %63 {strides = array<i32>} : memref<1x1x1024xf32, #tpu.memory_space<vmem>>, vector<1x1x1024xf32>,
    } else {
    }
    return
  }
  func.func @transform_0(%arg0: i32, %arg1: i32) -> (i32, i32, i32) {
    %c0_i32 = arith.constant 0 : i32
    %c0_i32_0 = arith.constant 0 : i32
    return %arg0, %arg1, %c0_i32 : i32, i32, i32
  }
  func.func @transform_1(%arg0: i32, %arg1: i32) -> (i32, i32, i32) {
    %c0_i32 = arith.constant 0 : i32
    %c0_i32_0 = arith.constant 0 : i32
    %c0_i32_1 = arith.constant 0 : i32
    return %arg0, %c0_i32, %c0_i32_0 : i32, i32, i32
  }
  func.func @transform_2(%arg0: i32, %arg1: i32) -> (i32, i32) {
    %c0_i32 = arith.constant 0 : i32
    %c0_i32_0 = arith.constant 0 : i32
    %c0_i32_1 = arith.constant 0 : i32
    return %c0_i32, %c0_i32_0 : i32, i32
  }
  func.func @transform_3(%arg0: i32, %arg1: i32) -> (i32, i32) {
    %c0_i32 = arith.constant 0 : i32
    %c0_i32_0 = arith.constant 0 : i32
    %c0_i32_1 = arith.constant 0 : i32
    return %c0_i32, %c0_i32_0 : i32, i32
  }
  func.func @transform_4(%arg0: i32, %arg1: i32) -> (i32, i32) {
    %c0_i32 = arith.constant 0 : i32
    %c0_i32_0 = arith.constant 0 : i32
    %c0_i32_1 = arith.constant 0 : i32
    return %c0_i32, %c0_i32_0 : i32, i32
  }
  func.func @transform_5(%arg0: i32, %arg1: i32) -> (i32, i32) {
    %c0_i32 = arith.constant 0 : i32
    %c0_i32_0 = arith.constant 0 : i32
    %c0_i32_1 = arith.constant 0 : i32
    return %c0_i32, %c0_i32_0 : i32, i32
  }
  func.func @transform_6(%arg0: i32, %arg1: i32) -> (i32, i32, i32) {
    %c0_i32 = arith.constant 0 : i32
    %c0_i32_0 = arith.constant 0 : i32
    %c0_i32_1 = arith.constant 0 : i32
    return %arg0, %c0_i32, %c0_i32_0 : i32, i32, i32
  }
}

</mosaic_0001>

<bundles_post_ra>
// kernel: transform_forward.5
= control target key start
LH: loop header
LB: loop body
LE: loop exit
PB: predicated region body
PF: predicated region fallthrough
CT: control target
= control target key end

     0   :  { %s1578_s21 = smov 0   ;;  %s1580_s22 = smov 0   ;;  %s1887_s0 = inlined_call_operand.vmem [shape: bf16[2,16,64], index: 0, kind: input, shape index: {}]   ;;  %s1888_s1 = inlined_call_operand.vmem [shape: f32[2,64,64], index: 1, kind: input, shape index: {}]   ;;  %s1889_s2 = inlined_call_operand.vmem [shape: f32[64,128], index: 2, kind: input, shape index: {}]   ;;  %s1890_s3 = inlined_call_operand.vmem [shape: f32[1,128], index: 3, kind: input, shape index: {}]   ;;  %s1891_s4 = inlined_call_operand.vmem [shape: bf16[128,1024], index: 4, kind: input, shape index: {}]   ;;  %s1892_s5 = inlined_call_operand.vmem [shape: f32[1,1024], index: 5, kind: input, shape index: {}]   ;;  %s1893_s6 = inlined_call_operand.vmem [shape: f32[2,1,1024], index: 6, kind: output, shape index: {}]  }
   0x1   :  { %s1582_s23 = smov 0  }
   0x2 LB: > { %s28_s24 = sadd.s32 1, %s1532_s22  ;;  %p1322_p0 = scmp.ge.s32.totalorder %s1536_s23, 1  ;;  %s1536_s23 = sphi %s1582_s23, %s16_s23   ;;  %s1532_s22 = sphi %s1580_s22, %s1897_s22   ;;  %s1528_s21 = sphi %s1578_s21, %s1896_s21  }
   0x3   : > { %p30_p1 = scmp.ge.s32.totalorder %s28_s24, 2  ;;  %p241_p2 = scmp.lt.s32.totalorder %s1536_s23, 3 }
   0x5   : > { %s1899_s24 = smov (%p30_p1, %s28_s24), 0  ;;  %p242_p3 = pnand %p1322_p0, %p241_p2 }
   0x6   : > { %v312_v0 = vld [vmem:[%s1889_s2] sm:$0xff] (!%p242_p3)  ;;  %v313_v1 = vld [vmem:[%s1889_s2 + $0x8] sm:$0xff] (!%p242_p3)  ;;  %v314_v2 = vld [vmem:[%s1889_s2 + $0x10] sm:$0xff] (!%p242_p3)  ;;  %p280_p4 = scmp.lt.s32.totalorder (!%p242_p3), %s1528_s21, 1  ;;  %vm320_vm0 = vcmask (!%p242_p3), 523264   ;;  %v1538_v20 = vmov (!%p242_p3), 0.0  }
   0x7   : > { %245 = sbr.rel (%p242_p3) target bundleno = 755 (0x2f3), region = 44  ;;  %v1468_v3 = vpack.c.bf16 (!%p242_p3), %v313_v1, %v312_v0  ;;  %v315_v4 = vld [vmem:[%s1889_s2 + $0x18] sm:$0xff] (!%p242_p3)  ;;  %v316_v6 = vld [vmem:[%s1889_s2 + $0x20] sm:$0xff] (!%p242_p3)  ;;  %v317_v7 = vld [vmem:[%s1889_s2 + $0x28] sm:$0xff] (!%p242_p3)  ;;  %1456 = vmatprep.subr.bf16.mxu1 (!%p242_p3), %v1538_v20  ;;  %vm1539_vm1 = vmmov (!%p242_p3), 0  }
   0x8   : > { %v1472_v5 = vpack.c.bf16 (!%p242_p3), %v315_v4, %v314_v2  ;;  %v1476_v8 = vpack.c.bf16 (!%p242_p3), %v317_v7, %v316_v6  ;;  %v318_v9 = vld [vmem:[%s1889_s2 + $0x30] sm:$0xff] (!%p242_p3)  ;;  %v319_v10 = vld [vmem:[%s1889_s2 + $0x38] sm:$0xff] (!%p242_p3)  ;;  %1464 = vmatprep.mubr.msk.bf16.mxu1 (!%p242_p3), %vm1539_vm1, %v1538_v20  ;;  %v532_v21 = vld [vmem:[%s1891_s4] sm:$0xff] (!%p242_p3) }
   0x9   : > { %1469 = vmatprep.subr.bf16.mxu0 (!%p242_p3), %v1468_v3  ;;  %v1480_v12 = vpack.c.bf16 (!%p242_p3), %v319_v10, %v318_v9  ;;  %v533_v22 = vld [vmem:[%s1891_s4 + $0x20] sm:$0xff] (!%p242_p3)  ;;  %v710_v54 = vld [vmem:[%s1891_s4 + $0x8] sm:$0xff] (!%p242_p3) }
   0xa   : > { %1471 = vmatpush3.bf16.msra.mxu0 (!%p242_p3), %v1468_v3  ;;  %v1339_v23 = vcombine.low (!%p242_p3), %v532_v21, %v533_v22  ;;  %v1340_v24 = vcombine.high (!%p242_p3), %v532_v21, %v533_v22  ;;  %v534_v25 = vld [vmem:[%s1891_s4 + $0x40] sm:$0xff] (!%p242_p3)  ;;  %v711_v55 = vld [vmem:[%s1891_s4 + $0x28] sm:$0xff] (!%p242_p3) }
   0xb   : > { %1473 = vmatprep.subr.bf16.mxu0 (!%p242_p3), %v1472_v5  ;;  %v535_v26 = vld [vmem:[%s1891_s4 + $0x60] sm:$0xff] (!%p242_p3)  ;;  %v1356_v58 = vcombine.high (!%p242_p3), %v710_v54, %v711_v55  ;;  %v712_v60 = vld [vmem:[%s1891_s4 + $0x48] sm:$0xff] (!%p242_p3)  ;;  %v1355_v63 = vcombine.low (!%p242_p3), %v710_v54, %v711_v55 }
   0xc   : > { %v1342_v27 = vcombine.high (!%p242_p3), %v534_v25, %v535_v26  ;;  %v1341_v28 = vcombine.low (!%p242_p3), %v534_v25, %v535_v26  ;;  %v536_v29 = vld [vmem:[%s1891_s4 + $0x80] sm:$0xff] (!%p242_p3)  ;;  %v713_v61 = vld [vmem:[%s1891_s4 + $0x68] sm:$0xff] (!%p242_p3) }
   0xd   : > { %v537_v30 = vld [vmem:[%s1891_s4 + $0xa0] sm:$0xff] (!%p242_p3)  ;;  %v1358_v0 = vcombine.high (!%p242_p3), %v712_v60, %v713_v61  ;;  %v714_v1 = vld [vmem:[%s1891_s4 + $0x88] sm:$0xff] (!%p242_p3)  ;;  %v1357_v3 = vcombine.low (!%p242_p3), %v712_v60, %v713_v61  ;;  %v889_v60 = vld [vmem:[%s1891_s4 + $0xb0] sm:$0xff] (!%p242_p3) }
   0xe   : > { %s1901_s21 = smov (!%p280_p4, %s1528_s21), 1  ;;  %1475 = vmatpush3.bf16.msra.mxu0 %v1472_v5  ;;  %v1344_v31 = vcombine.high %v536_v29, %v537_v30  ;;  %v1343_v32 = vcombine.low %v536_v29, %v537_v30  ;;  %v538_v33 = vld [vmem:[%s1891_s4 + $0xc0] sm:$0xff]  ;;  %v715_v2 = vld [vmem:[%s1891_s4 + $0xa8] sm:$0xff]  ;;  %v1062_v61 = vld [vmem:[%s1891_s4 + $0x98] sm:$0xff] }
   0xf   : > { %s1406_s13 = sshll.u32 %s1901_s21, 6  ;;  %1477 = vmatprep.subr.bf16.mxu0 %v1476_v8  ;;  %s1405_s25 = sshll.u32 %s1901_s21, 3  ;;  %v539_v34 = vld [vmem:[%s1891_s4 + $0xe0] sm:$0xff]  ;;  %v1360_v4 = vcombine.high %v714_v1, %v715_v2  ;;  %v716_v5 = vld [vmem:[%s1891_s4 + $0xc8] sm:$0xff]  ;;  %v1359_v7 = vcombine.low %v714_v1, %v715_v2 }
  0x10   : > { %s293_s16 = scalar_lea.vmem %s1888_s1, %s1406_s13  ;;  %s1640_s28 = scalar_lea.vmem %s1887_s0, %s1405_s25  ;;  %v1346_v35 = vcombine.high %v538_v33, %v539_v34  ;;  %v1345_v36 = vcombine.low %v538_v33, %v539_v34  ;;  %v540_v37 = vld [vmem:[%s1891_s4 + $0x100] sm:$0xff]  ;;  %v717_v6 = vld [vmem:[%s1891_s4 + $0xe8] sm:$0xff]  ;;  %v884_v34 = vld [vmem:[%s1891_s4 + $0x10] sm:$0xff] }
  0x11   : > { %v304_v11 = vld [vmem:[%s293_s16] sm:$0xff]  ;;  %v305_v13 = vld [vmem:[%s293_s16 + $0x8] sm:$0xff]  ;;  %v306_v14 = vld [vmem:[%s293_s16 + $0x10] sm:$0xff] }
  0x12   : > { %1444 = vmatprep.mubr.msk.f32.mxu0 %vm320_vm0, %v304_v11  ;;  %1479 = vmatpush3.bf16.msra.mxu0 %v1476_v8  ;;  %v307_v15 = vld [vmem:[%s293_s16 + $0x18] sm:$0xff]  ;;  %v308_v16 = vld [vmem:[%s293_s16 + $0x20] sm:$0xff]  ;;  %v309_v17 = vld [vmem:[%s293_s16 + $0x28] sm:$0xff]  ;;  %v1362_v8 = vcombine.high %v716_v5, %v717_v6  ;;  %v1361_v11 = vcombine.low %v716_v5, %v717_v6 }
  0x13   : > { %1481 = vmatprep.subr.bf16.mxu0 %v1480_v12  ;;  %v310_v18 = vld [vmem:[%s293_s16 + $0x30] sm:$0xff]  ;;  %v311_v19 = vld [vmem:[%s293_s16 + $0x38] sm:$0xff]  ;;  %v541_v38 = vld [vmem:[%s1891_s4 + $0x120] sm:$0xff] }
  0x14   : > { %v1348_v39 = vcombine.high %v540_v37, %v541_v38  ;;  %v1347_v40 = vcombine.low %v540_v37, %v541_v38  ;;  %v542_v41 = vld [vmem:[%s1891_s4 + $0x140] sm:$0xff]  ;;  %v718_v9 = vld [vmem:[%s1891_s4 + $0x108] sm:$0xff]  ;;  %v1059_v38 = vld [vmem:[%s1891_s4 + $0x38] sm:$0xff] }
  0x15   : > { %v543_v42 = vld [vmem:[%s1891_s4 + $0x160] sm:$0xff]  ;;  %v719_v10 = vld [vmem:[%s1891_s4 + $0x128] sm:$0xff]  ;;  %v1064_v5 = vld [vmem:[%s1891_s4 + $0xd8] sm:$0xff] }
  0x16   : > { %1483 = vmatpush3.bf16.msra.mxu0 %v1480_v12  ;;  %v1350_v43 = vcombine.high %v542_v41, %v543_v42  ;;  %v1349_v44 = vcombine.low %v542_v41, %v543_v42  ;;  %v1513_v62 = vld [vmem:[%s1640_s28] sm:$0xff]   ;;  %v1364_v12 = vcombine.high %v718_v9, %v719_v10  ;;  %v723_v22 = vld [vmem:[%s1891_s4 + $0x1a8] sm:$0xff]  ;;  %v1540_v42 = vmov 0   ;;  %v1065_v6 = vld [vmem:[%s1891_s4 + $0xf8] sm:$0xff]  ;;  %s1850_s28 = scalar_lea.vmem %s1893_s6, %s1405_s25 }
  0x17   : > { %628 = vmatprep.subr.bf16.mxu0 %v1340_v24  ;;  %v546_v26 = vld [vmem:[%s1891_s4 + $0x1c0] sm:$0xff]  ;;  %v725_v30 = vld [vmem:[%s1891_s4 + $0x1e8] sm:$0xff] }
  0x19   : > { %1445 = vmatmul.mubr.msk.f32.vlgmr.msra.gmra.mrb[0].mxu0 %vm320_vm0, %v305_v13  ;;  %v720_v13 = vld [vmem:[%s1891_s4 + $0x148] sm:$0xff] }
  0x1a   : > { %1447 = vmatprep.mubr.msk.f32.mxu0 %vm320_vm0, %v306_v14  ;;  %629 = vmatpush1.bf16.msra.mxu0 %v1339_v23  ;;  %v721_v14 = vld [vmem:[%s1891_s4 + $0x168] sm:$0xff] }
  0x1b   : > { %630 = vmatprep.subr.bf16.mxu0 %v1342_v27  ;;  %v547_v27 = vld [vmem:[%s1891_s4 + $0x1e0] sm:$0xff] }
  0x1c   : > { %v1354_v29 = vcombine.high %v546_v26, %v547_v27 }
  0x1d   : > { %1448 = vmatmul.mubr.msk.f32.gmra.mrb[2].mxu0 %vm320_vm0, %v307_v15  ;;  %v1363_v15 = vcombine.low %v718_v9, %v719_v10  ;;  %v1394_v10 = vcombine.high %v1064_v5, %v1065_v6 }
  0x1e   : > { %1450 = vmatprep.mubr.msk.f32.mxu0 %vm320_vm0, %v308_v16  ;;  %631 = vmatpush1.bf16.msra.mxu0 %v1341_v28  ;;  %v1366_v16 = vcombine.high %v720_v13, %v721_v14  ;;  %v724_v28 = vld [vmem:[%s1891_s4 + $0x1c8] sm:$0xff] }
  0x1f   : > { %632 = vmatprep.subr.bf16.mxu0 %v1344_v31  ;;  %v1353_v31 = vcombine.low %v546_v26, %v547_v27  ;;  %v1370_v33 = vcombine.high %v724_v28, %v725_v30  ;;  %v896_v27 = vld [vmem:[%s1891_s4 + $0x190] sm:$0xff] }
  0x21   : > { %1451 = vmatmul.mubr.msk.f32.gmra.mrb[4].mxu0 %vm320_vm0, %v309_v17  ;;  %v1365_v17 = vcombine.low %v720_v13, %v721_v14  ;;  %v1066_v13 = vld [vmem:[%s1891_s4 + $0x118] sm:$0xff] }
  0x22   : > { %1453 = vmatprep.mubr.msk.f32.mxu0 %vm320_vm0, %v310_v18  ;;  %633 = vmatpush1.bf16.msra.mxu0 %v1343_v32  ;;  %v544_v18 = vld [vmem:[%s1891_s4 + $0x180] sm:$0xff]  ;;  %v1369_v32 = vcombine.low %v724_v28, %v725_v30  ;;  %v1067_v14 = vld [vmem:[%s1891_s4 + $0x138] sm:$0xff]  ;;  %v897_v28 = vld [vmem:[%s1891_s4 + $0x1b0] sm:$0xff] }
  0x23   : > { %634 = vmatprep.subr.bf16.mxu0 %v1346_v35  ;;  %v885_v35 = vld [vmem:[%s1891_s4 + $0x30] sm:$0xff]  ;;  %v1071_v30 = vld [vmem:[%s1891_s4 + $0x1b8] sm:$0xff] }
  0x24   : > { %v1372_v37 = vcombine.high %v884_v34, %v885_v35 }
  0x25   : > { %1454 = vmatmul.mubr.msk.f32.gmra.mrb[6].mxu0 %vm320_vm0, %v311_v19  ;;  %v545_v19 = vld [vmem:[%s1891_s4 + $0x1a0] sm:$0xff] }
  0x26   : > { %635 = vmatpush1.bf16.msra.mxu0 %v1345_v36  ;;  %v1352_v21 = vcombine.high %v544_v18, %v545_v19  ;;  %v1351_v23 = vcombine.low %v544_v18, %v545_v19  ;;  %v1058_v36 = vld [vmem:[%s1891_s4 + $0x18] sm:$0xff]  ;;  %660 = vmatprep.mubr.bf16.mxu0 %v1540_v42  ;;  %v1396_v18 = vcombine.high %v1066_v13, %v1067_v14  ;;  %v894_v19 = vld [vmem:[%s1891_s4 + $0x150] sm:$0xff] }
  0x27   : > { %636 = vmatprep.subr.bf16.mxu0 %v1348_v39  ;;  %v1371_v39 = vcombine.low %v884_v34, %v885_v35  ;;  %v1388_v41 = vcombine.high %v1058_v36, %v1059_v38  ;;  %v898_v35 = vld [vmem:[%s1891_s4 + $0x1d0] sm:$0xff] }
  0x2a   : > { %637 = vmatpush1.bf16.msra.mxu0 %v1347_v40  ;;  %v1387_v40 = vcombine.low %v1058_v36, %v1059_v38  ;;  %v899_v36 = vld [vmem:[%s1891_s4 + $0x1f0] sm:$0xff]  ;;  %v1073_v38 = vld [vmem:[%s1891_s4 + $0x1f8] sm:$0xff] }
  0x2b   : > { %638 = vmatprep.subr.bf16.mxu0 %v1350_v43  ;;  %v1336_v43 = vld [vmem:[%s1890_s3] ss:$0 sm:$0xff] }
  0x2e   : > { %639 = vmatpush1.bf16.msra.mxu0 %v1349_v44 }
  0x2f   : > { %640 = vmatprep.subr.bf16.mxu0 %v1352_v21  ;;  %v1068_v21 = vld [vmem:[%s1891_s4 + $0x158] sm:$0xff] }
  0x32   : > { %641 = vmatpush1.bf16.msra.mxu0 %v1351_v23 }
  0x33   : > { %642 = vmatprep.subr.bf16.mxu0 %v1354_v29  ;;  %v1070_v29 = vld [vmem:[%s1891_s4 + $0x198] sm:$0xff] }
  0x34   : > { %v1400_v34 = vcombine.high %v1070_v29, %v1071_v30 }
  0x36   : > { %643 = vmatpush1.bf16.msra.mxu0 %v1353_v31 }
  0x37   : > { %980 = vmatprep.subr.bf16.mxu0 %v1372_v37  ;;  %v1072_v37 = vld [vmem:[%s1891_s4 + $0x1d8] sm:$0xff] }
  0xec   : > { %v1446_v45 = vpop.f32.mrb[0].mxu0 }
  0xed   : > { %v411_v46 = vpop.f32.mrb[1].mxu0 }
  0xee   : > { %v468_v47 = vpack.c.bf16 %v1446_v45, %v411_v46 }
  0xf0   : > { %v1449_v48 = vpop.f32.mrb[2].mxu0  ;;  %1457 = vmatpush3.bf16.msra.mxu1 %v468_v47 }
  0xf1   : > { %v421_v49 = vpop.f32.mrb[3].mxu0  ;;  %1458 = vmatprep.subr.bf16.mxu1 %v1538_v20 }
  0xf2   : > { %v469_v50 = vpack.c.bf16 %v1449_v48, %v421_v49 }
  0xf4   : > { %v1452_v51 = vpop.f32.mrb[4].mxu0  ;;  %1459 = vmatpush3.bf16.msra.mxu1 %v469_v50  ;;  %v886_v50 = vld [vmem:[%s1891_s4 + $0x50] sm:$0xff] }
  0xf5   : > { %v431_v52 = vpop.f32.mrb[5].mxu0  ;;  %1460 = vmatprep.subr.bf16.mxu1 %v1538_v20 }
  0xf6   : > { %v470_v53 = vpack.c.bf16 %v1452_v51, %v431_v52  ;;  %v887_v51 = vld [vmem:[%s1891_s4 + $0x70] sm:$0xff]  ;;  %v1060_v52 = vld [vmem:[%s1891_s4 + $0x58] sm:$0xff] }
  0xf8   : > { %v1455_v56 = vpop.f32.mrb[6].mxu0  ;;  %1461 = vmatpush3.bf16.msra.mxu1 %v470_v53  ;;  %v1061_v53 = vld [vmem:[%s1891_s4 + $0x78] sm:$0xff] }
  0xf9   : > { %v441_v57 = vpop.f32.mrb[7].mxu0  ;;  %1462 = vmatprep.subr.bf16.mxu1 %v1538_v20  ;;  %v722_v20 = vld [vmem:[%s1891_s4 + $0x188] sm:$0xff] }
  0xfa   : > { %v471_v59 = vpack.c.bf16 %v1455_v56, %v441_v57  ;;  %v1367_v24 = vcombine.low %v722_v20, %v723_v22  ;;  %v1368_v25 = vcombine.high %v722_v20, %v723_v22  ;;  %v1374_v57 = vcombine.high %v886_v50, %v887_v51  ;;  %v895_v20 = vld [vmem:[%s1891_s4 + $0x170] sm:$0xff]  ;;  %v1069_v22 = vld [vmem:[%s1891_s4 + $0x178] sm:$0xff] }
  0xfb   : > { %v1398_v26 = vcombine.high %v1068_v21, %v1069_v22  ;;  %v1381_v31 = vcombine.low %v894_v19, %v895_v20 }
  0xfc   : > { %1463 = vmatpush3.bf16.msra.mxu1 %v471_v59  ;;  %v888_v59 = vld [vmem:[%s1891_s4 + $0x90] sm:$0xff] }
  0xfd   : > { %806 = vmatprep.subr.bf16.mxu1 %v1356_v58  ;;  %v1390_v58 = vcombine.high %v1060_v52, %v1061_v53  ;;  %v1376_v1 = vcombine.high %v888_v59, %v889_v60 }
  0xff   : > { %1465 = vmatmul.mubr.msk.bf16.vlgmr.msra.gmra.mrb[0].mxu1 %vm320_vm0, %v1513_v62  ;;  %v1063_v62 = vld [vmem:[%s1891_s4 + $0xb8] sm:$0xff] }
 0x100   : > { %807 = vmatpush1.bf16.msra.mxu1 %v1355_v63  ;;  %838 = vmatprep.mubr.bf16.mxu1 %v1540_v42  ;;  %v1373_v63 = vcombine.low %v886_v50, %v887_v51  ;;  %v1392_v2 = vcombine.high %v1062_v61, %v1063_v62 }
 0x101   : > { %808 = vmatprep.subr.bf16.mxu1 %v1358_v0  ;;  %v1389_v0 = vcombine.low %v1060_v52, %v1061_v53 }
 0x104   : > { %809 = vmatpush1.bf16.msra.mxu1 %v1357_v3  ;;  %v890_v3 = vld [vmem:[%s1891_s4 + $0xd0] sm:$0xff] }
 0x105   : > { %810 = vmatprep.subr.bf16.mxu1 %v1360_v4  ;;  %v891_v4 = vld [vmem:[%s1891_s4 + $0xf0] sm:$0xff] }
 0x106   : > { %v1378_v9 = vcombine.high %v890_v3, %v891_v4 }
 0x108   : > { %811 = vmatpush1.bf16.msra.mxu1 %v1359_v7  ;;  %v1375_v7 = vcombine.low %v888_v59, %v889_v60 }
 0x109   : > { %812 = vmatprep.subr.bf16.mxu1 %v1362_v8  ;;  %v1391_v8 = vcombine.low %v1062_v61, %v1063_v62 }
 0x10c   : > { %813 = vmatpush1.bf16.msra.mxu1 %v1361_v11  ;;  %v892_v11 = vld [vmem:[%s1891_s4 + $0x110] sm:$0xff] }
 0x10d   : > { %814 = vmatprep.subr.bf16.mxu1 %v1364_v12  ;;  %v893_v12 = vld [vmem:[%s1891_s4 + $0x130] sm:$0xff] }
 0x10e   : > { %v1379_v23 = vcombine.low %v892_v11, %v893_v12 }
 0x110   : > { %815 = vmatpush1.bf16.msra.mxu1 %v1363_v15  ;;  %v1377_v15 = vcombine.low %v890_v3, %v891_v4  ;;  %v692_v3 = vlaneseq }
 0x111   : > { %816 = vmatprep.subr.bf16.mxu1 %v1366_v16  ;;  %v1393_v16 = vcombine.low %v1064_v5, %v1065_v6 }
 0x112   : > { %vm1855_vm2 = vcmp.lt.s32.totalorder %v692_v3, 256 }
 0x114   : > { %817 = vmatpush1.bf16.msra.mxu1 %v1365_v17  ;;  %v1380_v17 = vcombine.high %v892_v11, %v893_v12 }
 0x115   : > { %818 = vmatprep.subr.bf16.mxu1 %v1368_v25  ;;  %v1382_v25 = vcombine.high %v894_v19, %v895_v20 }
 0x118   : > { %819 = vmatpush1.bf16.msra.mxu1 %v1367_v24  ;;  %v1395_v24 = vcombine.low %v1066_v13, %v1067_v14  ;;  %v693_v13 = vshrl.u32 %v692_v3, 7 }
 0x119   : > { %820 = vmatprep.subr.bf16.mxu1 %v1370_v33  ;;  %v1384_v33 = vcombine.high %v896_v27, %v897_v28 }
 0x11c   : > { %821 = vmatpush1.bf16.msra.mxu1 %v1369_v32  ;;  %v1397_v32 = vcombine.low %v1068_v21, %v1069_v22 }
 0x11d   : > { %1154 = vmatprep.subr.bf16.mxu1 %v1388_v41  ;;  %v1386_v41 = vcombine.high %v898_v35, %v899_v36 }
 0x1d2   : > { %v522_v44 = vpop.f32.mrb[0].mxu1 }
 0x1d3   : > { %v523_v45 = vadd.f32 %v1336_v43, %v522_v44  ;;  %v1466_v46 = vpop.f32.mrb[1].mxu1  ;;  %v1401_v44 = vcombine.low %v1072_v37, %v1073_v38 }
 0x1d4   : > { %v525_v47 = vpop.f32.mrb[2].mxu1 }
 0x1d5   : > { %v526_v48 = vadd.f32 %v1336_v43, %v525_v47  ;;  %v1467_v49 = vpop.f32.mrb[3].mxu1  ;;  %v529_v54 = vmax.f32 %v523_v45, 0.0  ;;  %v1385_v43 = vcombine.low %v898_v35, %v899_v36  ;;  %v1541_v45 = vmov -inf  }
 0x1d6   : > { %303 = vst [vmem:[%s1850_s28] sm:$0xff] %v1541_v45 }
 0x1d7   : > { %v530_v55 = vmax.f32 %v526_v48, 0.0 }
 0x1d9   : > { %v1767_v56 = vpack.c.bf16 %v530_v55, %v529_v54 }
 0x1db   : > { %661 = vmatmul.mubr.bf16.vlgmr.msra.gmra.mrb[8].mxu0 %v1767_v56  ;;  %839 = vmatmul.mubr.bf16.vlgmr.msra.gmra.mrb[4].mxu1 %v1767_v56 }
 0x1dc   : > { %981 = vmatpush1.bf16.msra.mxu0 %v1371_v39  ;;  %1155 = vmatpush1.bf16.msra.mxu1 %v1387_v40  ;;  %v1383_v39 = vcombine.low %v896_v27, %v897_v28  ;;  %v1399_v40 = vcombine.low %v1070_v29, %v1071_v30 }
 0x1dd   : > { %982 = vmatprep.subr.bf16.mxu0 %v1374_v57  ;;  %1156 = vmatprep.subr.bf16.mxu1 %v1390_v58  ;;  %v671_v28 = vld [vmem:[%s1850_s28] sm:$0x3]  ;;  %v849_v29 = vld [vmem:[%s1850_s28 + $0x2] sm:$0x3] }
 0x1de   : > { %1012 = vmatprep.mubr.bf16.mxu0 %v1540_v42  ;;  %1186 = vmatprep.mubr.bf16.mxu1 %v1540_v42  ;;  %v1402_v42 = vcombine.high %v1072_v37, %v1073_v38 }
 0x1e0   : > { %983 = vmatpush1.bf16.msra.mxu0 %v1373_v63  ;;  %1157 = vmatpush1.bf16.msra.mxu1 %v1389_v0 }
 0x1e1   : > { %984 = vmatprep.subr.bf16.mxu0 %v1376_v1  ;;  %1158 = vmatprep.subr.bf16.mxu1 %v1392_v2  ;;  %v1542_v1 = vmov 1966171168  }
 0x1e2   : > { %v690_v2 = vunpack.c.l.s4 %v1542_v1 }
 0x1e4   : > { %985 = vmatpush1.bf16.msra.mxu0 %v1375_v7  ;;  %1159 = vmatpush1.bf16.msra.mxu1 %v1391_v8  ;;  %v691_v12 = vunpack.c.0.s8 %v690_v2 }
 0x1e5   : > { %986 = vmatprep.subr.bf16.mxu0 %v1378_v9  ;;  %1160 = vmatprep.subr.bf16.mxu1 %v1394_v10 }
 0x1e6   : > { %v694_v22 = vsub.s32 %v691_v12, %v693_v13  ;;  %v1197_v12 = vld [vmem:[%s1850_s28 + $0x6] sm:$0x3] }
 0x1e8   : > { %987 = vmatpush1.bf16.msra.mxu0 %v1377_v15  ;;  %1161 = vmatpush1.bf16.msra.mxu1 %v1393_v16 }
 0x1e9   : > { %988 = vmatprep.subr.bf16.mxu0 %v1380_v17  ;;  %1162 = vmatprep.subr.bf16.mxu1 %v1396_v18 }
 0x1ec   : > { %989 = vmatpush1.bf16.msra.mxu0 %v1379_v23  ;;  %1163 = vmatpush1.bf16.msra.mxu1 %v1395_v24 }
 0x1ed   : > { %990 = vmatprep.subr.bf16.mxu0 %v1382_v25  ;;  %1164 = vmatprep.subr.bf16.mxu1 %v1398_v26 }
 0x1f0   : > { %991 = vmatpush1.bf16.msra.mxu0 %v1381_v31  ;;  %1165 = vmatpush1.bf16.msra.mxu1 %v1397_v32 }
 0x1f1   : > { %992 = vmatprep.subr.bf16.mxu0 %v1384_v33  ;;  %1166 = vmatprep.subr.bf16.mxu1 %v1400_v34 }
 0x1f4   : > { %993 = vmatpush1.bf16.msra.mxu0 %v1383_v39  ;;  %1167 = vmatpush1.bf16.msra.mxu1 %v1399_v40 }
 0x1f5   : > { %994 = vmatprep.subr.bf16.mxu0 %v1386_v41  ;;  %1168 = vmatprep.subr.bf16.mxu1 %v1402_v42 }
 0x1f8   : > { %995 = vmatpush1.bf16.msra.mxu0 %v1385_v43  ;;  %1169 = vmatpush1.bf16.msra.mxu1 %v1401_v44 }
 0x1fb   : > { %1013 = vmatmul.mubr.bf16.vlgmr.msra.gmra.mrb[12].mxu0 %v1767_v56  ;;  %1187 = vmatmul.mubr.bf16.vlgmr.msra.gmra.mrb[8].mxu1 %v1767_v56 }
 0x2ae   : > { %v662_v46 = vpop.f32.mrb[8].mxu0  ;;  %v840_v47 = vpop.f32.mrb[4].mxu1 }
 0x2af   : > { %v664_v48 = vpop.f32.mrb[9].mxu0  ;;  %v842_v49 = vpop.f32.mrb[5].mxu1 }
 0x2b0   : > { %v666_v50 = vpop.f32.mrb[10].mxu0  ;;  %v844_v51 = vpop.f32.mrb[6].mxu1 }
 0x2b1   : > { %v672_v52 = vmax.f32 %v662_v46, %v666_v50  ;;  %v850_v53 = vmax.f32 %v840_v47, %v844_v51  ;;  %v668_v54 = vpop.f32.mrb[11].mxu0  ;;  %v846_v55 = vpop.f32.mrb[7].mxu1 }
 0x2b2   : > { %v679_v56 = vmax.f32 %v664_v48, %v668_v54  ;;  %v857_v57 = vmax.f32 %v842_v49, %v846_v55 }
 0x2b3   : > { %v673_v58 = vrot.slane %v672_v52, 4  ;;  %v851_v59 = vrot.slane %v850_v53, 4 }
 0x2b4   : > { %v680_v60 = vrot.slane %v679_v56, 4  ;;  %v858_v61 = vrot.slane %v857_v57, 4 }
 0x2b5   : > { %v674_v62 = vmax.f32 %v672_v52, %v673_v58  ;;  %v852_v63 = vmax.f32 %v850_v53, %v851_v59 }
 0x2b6   : > { %v681_v0 = vmax.f32 %v679_v56, %v680_v60  ;;  %v859_v4 = vmax.f32 %v857_v57, %v858_v61 }
 0x2b7   : > { %v675_v5 = vrot.slane %v674_v62, 2  ;;  %v853_v6 = vrot.slane %v852_v63, 2 }
 0x2b8   : > { %v682_v7 = vrot.slane %v681_v0, 2  ;;  %v860_v8 = vrot.slane %v859_v4, 2 }
 0x2b9   : > { %v676_v9 = vmax.f32 %v674_v62, %v675_v5  ;;  %v854_v10 = vmax.f32 %v852_v63, %v853_v6 }
 0x2ba   : > { %v683_v11 = vmax.f32 %v681_v0, %v682_v7  ;;  %v861_v14 = vmax.f32 %v859_v4, %v860_v8 }
 0x2bb   : > { %v677_v15 = vrot.slane %v676_v9, 1  ;;  %v855_v16 = vrot.slane %v854_v10, 1 }
 0x2bc   : > { %v684_v17 = vrot.slane %v683_v11, 1  ;;  %v862_v18 = vrot.slane %v861_v14, 1 }
 0x2bd   : > { %v678_v19 = vmax.f32 %v676_v9, %v677_v15  ;;  %v856_v20 = vmax.f32 %v854_v10, %v855_v16 }
 0x2be   : > { %v685_v21 = vmax.f32 %v683_v11, %v684_v17  ;;  %v863_v23 = vmax.f32 %v861_v14, %v862_v18  ;;  %v1023_v11 = vld [vmem:[%s1850_s28 + $0x4] sm:$0x3] }
 0x2bf   : > { %v1236_v17 = vld [vmem:[%s1892_s5] sm:$0xff] }
 0x2c0   : > { %v688_v24 = vcombine.low %v678_v19, %v685_v21  ;;  %v866_v25 = vcombine.low %v856_v20, %v863_v23 }
 0x2c2   : > { %v695_v26 = vrot.slane %v688_v24, %v694_v22  ;;  %v873_v27 = vrot.slane %v866_v25, %v694_v22 }
 0x2c4   : > { %v702_v30 = vrot.slane %v695_v26, %v694_v22  ;;  %v880_v31 = vrot.slane %v873_v27, %v694_v22 }
 0x2c6   : > { %v704_v33 = vmax.f32 %v671_v28, %v702_v30  ;;  %v882_v34 = vmax.f32 %v849_v29, %v880_v31 }
 0x2c8   : > { %709 = vst.msk [vmem:[%s1850_s28] sm:$0x3] %vm1855_vm2, %v704_v33  ;;  %883 = vst.msk [vmem:[%s1850_s28 + $0x2] sm:$0x3] %vm1855_vm2, %v882_v34 }
 0x2ce   : > { %v1014_v35 = vpop.f32.mrb[12].mxu0  ;;  %v1188_v36 = vpop.f32.mrb[8].mxu1 }
 0x2cf   : > { %v1016_v37 = vpop.f32.mrb[13].mxu0  ;;  %v1190_v38 = vpop.f32.mrb[9].mxu1 }
 0x2d0   : > { %v1018_v39 = vpop.f32.mrb[14].mxu0  ;;  %v1192_v40 = vpop.f32.mrb[10].mxu1 }
 0x2d1   : > { %v1024_v41 = vmax.f32 %v1014_v35, %v1018_v39  ;;  %v1198_v42 = vmax.f32 %v1188_v36, %v1192_v40  ;;  %v1020_v43 = vpop.f32.mrb[15].mxu0  ;;  %v1194_v44 = vpop.f32.mrb[11].mxu1 }
 0x2d2   : > { %v1031_v45 = vmax.f32 %v1016_v37, %v1020_v43  ;;  %v1205_v46 = vmax.f32 %v1190_v38, %v1194_v44 }
 0x2d3   : > { %v1025_v47 = vrot.slane %v1024_v41, 4  ;;  %v1199_v48 = vrot.slane %v1198_v42, 4 }
 0x2d4   : > { %v1032_v49 = vrot.slane %v1031_v45, 4  ;;  %v1206_v50 = vrot.slane %v1205_v46, 4 }
 0x2d5   : > { %v1026_v51 = vmax.f32 %v1024_v41, %v1025_v47  ;;  %v1200_v52 = vmax.f32 %v1198_v42, %v1199_v48 }
 0x2d6   : > { %v1033_v53 = vmax.f32 %v1031_v45, %v1032_v49  ;;  %v1207_v54 = vmax.f32 %v1205_v46, %v1206_v50 }
 0x2d7   : > { %v1027_v55 = vrot.slane %v1026_v51, 2  ;;  %v1201_v56 = vrot.slane %v1200_v52, 2 }
 0x2d8   : > { %v1034_v57 = vrot.slane %v1033_v53, 2  ;;  %v1208_v58 = vrot.slane %v1207_v54, 2 }
 0x2d9   : > { %v1028_v59 = vmax.f32 %v1026_v51, %v1027_v55  ;;  %v1202_v60 = vmax.f32 %v1200_v52, %v1201_v56 }
 0x2da   : > { %v1035_v61 = vmax.f32 %v1033_v53, %v1034_v57  ;;  %v1209_v62 = vmax.f32 %v1207_v54, %v1208_v58 }
 0x2db   : > { %v1029_v63 = vrot.slane %v1028_v59, 1  ;;  %v1203_v0 = vrot.slane %v1202_v60, 1 }
 0x2dc   : > { %v1036_v1 = vrot.slane %v1035_v61, 1  ;;  %v1210_v2 = vrot.slane %v1209_v62, 1 }
 0x2dd   : > { %v1030_v3 = vmax.f32 %v1028_v59, %v1029_v63  ;;  %v1204_v4 = vmax.f32 %v1202_v60, %v1203_v0 }
 0x2de   : > { %v1037_v5 = vmax.f32 %v1035_v61, %v1036_v1  ;;  %v1211_v6 = vmax.f32 %v1209_v62, %v1210_v2 }
 0x2e0   : > { %v1040_v7 = vcombine.low %v1030_v3, %v1037_v5  ;;  %v1214_v8 = vcombine.low %v1204_v4, %v1211_v6 }
 0x2e2   : > { %v1047_v9 = vrot.slane %v1040_v7, %v694_v22  ;;  %v1221_v10 = vrot.slane %v1214_v8, %v694_v22 }
 0x2e4   : > { %v1054_v13 = vrot.slane %v1047_v9, %v694_v22  ;;  %v1228_v14 = vrot.slane %v1221_v10, %v694_v22 }
 0x2e6   : > { %v1056_v15 = vmax.f32 %v1023_v11, %v1054_v13  ;;  %v1230_v16 = vmax.f32 %v1197_v12, %v1228_v14 }
 0x2e8   : > { %1057 = vst.msk [vmem:[%s1850_s28 + $0x4] sm:$0x3] %vm1855_vm2, %v1056_v15  ;;  %1231 = vst.msk [vmem:[%s1850_s28 + $0x6] sm:$0x3] %vm1855_vm2, %v1230_v16 }
 0x2ef   : > { %v1235_v18 = vld [vmem:[%s1850_s28] sm:$0xff] }
 0x2f0   : > { %v1237_v19 = vadd.f32 %v1236_v17, %v1235_v18 }
 0x2f2   : > { %1238 = vst [vmem:[%s1850_s28] sm:$0xff] %v1237_v19 }
 0x2f3 PF: > { %s16_s23 = sadd.s32 1, %s1536_s23   ;;  %s1896_s21 = smov %s1532_s22 }
 0x2f4   : > { %p13_p5 = scmp.ge.s32.totalorder %s16_s23, 4   ;;  %s1897_s22 = smov %s1899_s24 }
 0x2f6   :  { %15 = sbr.rel (!%p13_p5) target bundleno = 2 (0x2), region = 85 }

// kernel: transform_forward.3
= control target key start
LH: loop header
LB: loop body
LE: loop exit
PB: predicated region body
PF: predicated region fallthrough
CT: control target
= control target key end

     0   :  { %s6382_s0 = inlined_call_operand.vmem [shape: f32[2,16,3], index: 0, kind: input, shape index: {}]   ;;  %s6383_s1 = inlined_call_operand.hbm [shape: bf16[3,64], index: 1, kind: input, shape index: {}]   ;;  %s6384_s2 = inlined_call_operand.hbm [shape: f32[1,64], index: 2, kind: input, shape index: {}]   ;;  %s6385_s3 = inlined_call_operand.hbm [shape: bf16[64,128], index: 3, kind: input, shape index: {}]   ;;  %s6386_s4 = inlined_call_operand.hbm [shape: f32[1,128], index: 4, kind: input, shape index: {}]   ;;  %s6387_s5 = inlined_call_operand.hbm [shape: bf16[128,1024], index: 5, kind: input, shape index: {}]   ;;  %s6388_s6 = inlined_call_operand.hbm [shape: f32[1,1024], index: 6, kind: input, shape index: {}]   ;;  %s6389_s7 = inlined_call_operand.hbm [shape: bf16[1024,512], index: 7, kind: input, shape index: {}]   ;;  %s6390_s8 = inlined_call_operand.hbm [shape: f32[1,512], index: 8, kind: input, shape index: {}]   ;;  %s6391_s9 = inlined_call_operand.hbm [shape: bf16[512,256], index: 9, kind: input, shape index: {}]   ;;  %s6392_s10 = inlined_call_operand.hbm [shape: f32[1,256], index: 10, kind: input, shape index: {}]   ;;  %s6393_s11 = inlined_call_operand.vmem [shape: bf16[256,9], index: 11, kind: input, shape index: {}]   ;;  %s6394_s12 = inlined_call_operand.hbm [shape: f32[1,9], index: 12, kind: input, shape index: {}]   ;;  %s6395_s13 = inlined_call_operand.vmem [shape: f32[2,1,9], index: 13, kind: output, shape index: {}]  }
   0x1   :  { %6401 = sst [smem:[#allocation27_spill]] %s6383_s1 }
   0x2   :  { %6402 = sst [smem:[#allocation28_spill]] %s6384_s2 }
   0x3   :  { %6403 = sst [smem:[#allocation29_spill]] %s6393_s11 }
   0x4   :  { %6404 = sst [smem:[#allocation30_spill]] %s6395_s13 }
   0x5   :  { %18 = vsyncpa [#allocation4], 0 }
   0x6   :  { %19 = vsyncpa [#allocation6], 0 }
   0x7   :  { %20 = vsyncpa [#allocation9], 0 }
   0x8   :  { %21 = vsyncpa [#allocation12], 0 }
   0x9   :  { %22 = vsyncpa [#allocation15], 0 }
   0xa   :  { %23 = vsyncpa [#allocation18], 0  ;;  %s5924_s25 = smov 0   ;;  %s5926_s26 = smov 0  }
   0xb   :  { %s5928_s27 = smov 0  }
   0xc LB: > { %6405 = sst [smem:[#allocation26_spill]] %s5827_s27  ;;  %s5829_s28 = smov [#allocation5]   ;;  %s5827_s27 = sphi %s5928_s27, %s29_s27   ;;  %s5823_s26 = sphi %s5926_s26, %s6420_s26   ;;  %s5819_s25 = sphi %s5924_s25, %s6419_s25  }
   0xd   : > { %s376_s29 = sshll.u32 %s5829_s28, 4  ;;  %s4303_s30 = sadd.s32 4294967295, %s5827_s27   ;;  %s5946_s29 = int_to_ptr.vmem [resolvable:$true] %s376_s29 }
   0xe   : > { %p4305_p0 = scmp.ge.s32.totalorder %s5827_s27, 1  ;;  %p352_p1 = scmp.lt.s32.totalorder %s5827_s27, 3 }
   0xf   : > { %p5942_p2 = scmp.eq.s32.totalorder %s4303_s30, 0  ;;  %s5830_s16 = smov [#allocation8]  }
  0x10   : > { %p5948_p3 = pnand %p4305_p0, %p352_p1  ;;  %s400_s17 = sshll.u32 %s5830_s16, 4  ;;  %s5954_s17 = int_to_ptr.vmem [resolvable:$true] %s400_s17 }
  0x11   : > { %s6406_s14 = scalar_select %p5942_p2, 1, 0 }
  0x12   : > { %s6407_s15 = scalar_select %p5948_p3, 1, 0 }
  0x13   : > { %p4868_p4 = pneg %p5948_p3  ;;  %s5831_s18 = smov [#allocation11]  }
  0x14   : > { %s424_s19 = sshll.u32 %s5831_s18, 4  ;;  %s5832_s21 = smov [#allocation14]   ;;  %s5962_s19 = int_to_ptr.vmem [resolvable:$true] %s424_s19 }
  0x15   : > { %p5958_p5 = pnand %p5942_p2, %p4868_p4  ;;  %s448_s22 = sshll.u32 %s5832_s21, 4  ;;  %s5964_s22 = int_to_ptr.vmem [resolvable:$true] %s448_s22 }
  0x16   : > { %s6409_s2 = sld [smem:[#allocation28_spill]] }
  0x17   : > { %p5974_p7 = pneg %p5958_p5 }
  0x1c   : > { %s5473_s28 = scalar_lea.hbm %s6409_s2, 16 }
  0x1d   : > { %p5474_p6 = scmp.ne.s32.totalorder %s6409_s2, %s5473_s28  ;;  %p5480_p10 = scmp.lt.u32.totalorder %s5473_s28, %s6409_s2 }
  0x1f   : > { %p5476_p8 = pnand %p5974_p7, %p5474_p6 }
  0x21   : > { %p5477_p9 = pneg %p5476_p8 }
  0x23   : > { %p5482_p11 = pnand %p5480_p10, %p5477_p9 }
  0x25   : > { %5485 = shalt.err (!%p5482_p11)
}
  0x26   : > { %s5486_s23 = scalar_lea.vmem %s5946_s29, 16  ;;  %s5493_s24 = scalar_lea.vmem %s5946_s29, 32 }
  0x27   : > { %p5487_p12 = scmp.ne.s32.totalorder %s5946_s29, %s5486_s23  ;;  %p5494_p1 = scmp.lt.s32.totalorder %s5946_s29, %s5946_s29 }
  0x28   : > { %p5495_p4 = scmp.lt.s32.totalorder %s5493_s24, %s5486_s23 }
  0x29   : > { %p5489_p13 = pnand %p5487_p12, %p5974_p7 }
  0x2a   : > { %p5496_p6 = por %p5495_p4, %p5494_p1 }
  0x2b   : > { %p5490_p0 = pneg %p5489_p13 }
  0x2d   : > { %p5497_p8 = pnand %p5496_p6, %p5490_p0 }
  0x2f   : > { %5500 = shalt.err (!%p5497_p8)
}
  0x30   : > { %4874 = dma.hbm_to_vmem [thread:$0]  (!%p5958_p5), %s6409_s2, 16, %s5946_s29, [#allocation6]  }
  0x31   : > { %s5501_s21 = scalar_lea.hbm %s6386_s4, 16 }
  0x32   : > { %p5502_p9 = scmp.ne.s32.totalorder %s6386_s4, %s5501_s21  ;;  %p5508_p12 = scmp.lt.u32.totalorder %s5501_s21, %s6386_s4 }
  0x34   : > { %p5504_p10 = pnand %p5502_p9, %p5974_p7 }
  0x36   : > { %p5505_p11 = pneg %p5504_p10 }
  0x38   : > { %p5510_p13 = pnand %p5508_p12, %p5505_p11 }
  0x3a   : > { %5513 = shalt.err (!%p5510_p13)
}
  0x3b   : > { %s5514_s29 = scalar_lea.vmem %s5954_s17, 16  ;;  %s5521_s11 = scalar_lea.vmem %s5954_s17, 32 }
  0x3c   : > { %p5515_p0 = scmp.ne.s32.totalorder %s5954_s17, %s5514_s29  ;;  %p5522_p6 = scmp.lt.s32.totalorder %s5954_s17, %s5954_s17 }
  0x3d   : > { %p5523_p8 = scmp.lt.s32.totalorder %s5521_s11, %s5514_s29 }
  0x3e   : > { %p5517_p1 = pnand %p5515_p0, %p5974_p7 }
  0x3f   : > { %p5524_p9 = por %p5523_p8, %p5522_p6 }
  0x40   : > { %p5518_p4 = pneg %p5517_p1 }
  0x42   : > { %p5525_p10 = pnand %p5524_p9, %p5518_p4 }
  0x44   : > { %5528 = shalt.err (!%p5525_p10)
}
  0x45   : > { %4880 = dma.hbm_to_vmem [thread:$0]  (!%p5958_p5), %s6386_s4, 16, %s5954_s17, [#allocation9]  }
  0x46   : > { %s5529_s16 = scalar_lea.hbm %s6388_s6, 128 }
  0x47   : > { %p5530_p11 = scmp.ne.s32.totalorder %s6388_s6, %s5529_s16  ;;  %p5536_p0 = scmp.lt.u32.totalorder %s5529_s16, %s6388_s6 }
  0x49   : > { %p5532_p12 = pnand %p5530_p11, %p5974_p7 }
  0x4b   : > { %p5533_p13 = pneg %p5532_p12 }
  0x4d   : > { %p5538_p1 = pnand %p5536_p0, %p5533_p13 }
  0x4f   : > { %5541 = shalt.err (!%p5538_p1)
}
  0x50   : > { %s5542_s17 = scalar_lea.vmem %s5962_s19, 128  ;;  %p5550_p9 = scmp.lt.s32.totalorder %s5962_s19, %s5962_s19 }
  0x51   : > { %p5543_p4 = scmp.ne.s32.totalorder %s5962_s19, %s5542_s17  ;;  %p5551_p10 = scmp.lt.s32.totalorder %s5542_s17, %s5542_s17 }
  0x53   : > { %p5545_p6 = pnand %p5543_p4, %p5974_p7  ;;  %p5552_p11 = por %p5551_p10, %p5550_p9 }
  0x55   : > { %p5546_p8 = pneg %p5545_p6 }
  0x57   : > { %p5553_p12 = pnand %p5552_p11, %p5546_p8 }
  0x59   : > { %5556 = shalt.err (!%p5553_p12)
}
  0x5a   : > { %4886 = dma.hbm_to_vmem [thread:$0]  (!%p5958_p5), %s6388_s6, 128, %s5962_s19, [#allocation12]  }
  0x5b   : > { %s5557_s30 = scalar_lea.hbm %s6390_s8, 64 }
  0x5c   : > { %p5558_p13 = scmp.ne.s32.totalorder %s6390_s8, %s5557_s30  ;;  %p5564_p4 = scmp.lt.u32.totalorder %s5557_s30, %s6390_s8 }
  0x5e   : > { %p5560_p0 = pnand %p5558_p13, %p5974_p7 }
  0x60   : > { %p5561_p1 = pneg %p5560_p0 }
  0x62   : > { %p5566_p6 = pnand %p5564_p4, %p5561_p1 }
  0x64   : > { %5569 = shalt.err (!%p5566_p6)
}
  0x65   : > { %s5570_s19 = scalar_lea.vmem %s5964_s22, 64  ;;  %p5578_p11 = scmp.lt.s32.totalorder %s5964_s22, %s5964_s22 }
  0x66   : > { %p5571_p8 = scmp.ne.s32.totalorder %s5964_s22, %s5570_s19  ;;  %p5579_p12 = scmp.lt.s32.totalorder %s5570_s19, %s5570_s19 }
  0x68   : > { %p5573_p9 = pnand %p5571_p8, %p5974_p7  ;;  %p5580_p13 = por %p5579_p12, %p5578_p11 }
  0x6a   : > { %p5574_p10 = pneg %p5573_p9 }
  0x6c   : > { %p5581_p0 = pnand %p5580_p13, %p5574_p10 }
  0x6e   : > { %5584 = shalt.err (!%p5581_p0)
}
  0x6f   : > { %4892 = dma.hbm_to_vmem [thread:$0]  (!%p5958_p5), %s6390_s8, 64, %s5964_s22, [#allocation15]  }
  0x70   : > { %s5833_s11 = smov [#allocation17]   ;;  %s5585_s30 = scalar_lea.hbm %s6392_s10, 32 }
  0x71   : > { %s472_s13 = sshll.u32 %s5833_s11, 4  ;;  %p5586_p1 = scmp.ne.s32.totalorder %s6392_s10, %s5585_s30  ;;  %s473_s13 = int_to_ptr.vmem [resolvable:$true] %s472_s13 }
  0x72   : > { %p5592_p8 = scmp.lt.u32.totalorder %s5585_s30, %s6392_s10 }
  0x73   : > { %p5588_p4 = pnand %p5586_p1, %p5974_p7 }
  0x75   : > { %p5589_p6 = pneg %p5588_p4 }
  0x77   : > { %p5594_p9 = pnand %p5592_p8, %p5589_p6 }
  0x79   : > { %5597 = shalt.err (!%p5594_p9)
}
  0x7a   : > { %s5598_s22 = scalar_lea.vmem %s473_s13, 32  ;;  %p5606_p13 = scmp.lt.s32.totalorder %s473_s13, %s473_s13 }
  0x7b   : > { %p5599_p10 = scmp.ne.s32.totalorder %s473_s13, %s5598_s22  ;;  %p5607_p0 = scmp.lt.s32.totalorder %s5598_s22, %s5598_s22 }
  0x7d   : > { %p5601_p11 = pnand %p5599_p10, %p5974_p7  ;;  %p5608_p2 = por %p5607_p0, %p5606_p13 }
  0x7f   : > { %p5602_p12 = pneg %p5601_p11 }
  0x81   : > { %p5609_p3 = pnand %p5608_p2, %p5602_p12 }
  0x83   : > { %5612 = shalt.err (!%p5609_p3)
}
  0x84   : > { %4898 = dma.hbm_to_vmem [thread:$0]  (!%p5958_p5), %s6392_s10, 32, %s473_s13, [#allocation18]  }
  0x85   : > { %s41_s17 = sadd.s32 1, %s5823_s26  ;;  %s5834_s11 = smov [#allocation3]  }
  0x86   : > { %p43_p1 = scmp.ge.s32.totalorder %s41_s17, 2  ;;  %s365_s27 = sshll.u32 %s5834_s11, 4  ;;  %s366_s27 = int_to_ptr.vmem [resolvable:$true] %s365_s27 }
  0x87   : > { %s6411_s1 = sld [smem:[#allocation27_spill]] }
  0x88   : > { %s6422_s17 = smov (%p43_p1, %s41_s17), 0 }
  0x8d   : > { %s5613_s16 = scalar_lea.hbm %s6411_s1, 32 }
  0x8e   : > { %p5614_p2 = scmp.ne.s32.totalorder %s6411_s1, %s5613_s16  ;;  %p5620_p6 = scmp.lt.u32.totalorder %s5613_s16, %s6411_s1 }
  0x90   : > { %p5616_p3 = pnand %p5614_p2, %p5974_p7 }
  0x92   : > { %p5617_p4 = pneg %p5616_p3 }
  0x94   : > { %p5622_p8 = pnand %p5620_p6, %p5617_p4 }
  0x96   : > { %5625 = shalt.err (!%p5622_p8)
}
  0x97   : > { %s5626_s22 = scalar_lea.vmem %s366_s27, 32  ;;  %p5634_p12 = scmp.lt.s32.totalorder %s366_s27, %s366_s27 }
  0x98   : > { %p5627_p9 = scmp.ne.s32.totalorder %s366_s27, %s5626_s22  ;;  %p5635_p13 = scmp.lt.s32.totalorder %s5626_s22, %s5626_s22 }
  0x9a   : > { %p5629_p10 = pnand %p5627_p9, %p5974_p7  ;;  %p5636_p0 = por %p5635_p13, %p5634_p12 }
  0x9c   : > { %p5630_p11 = pneg %p5629_p10 }
  0x9e   : > { %p5637_p1 = pnand %p5636_p0, %p5630_p11 }
  0xa0   : > { %5640 = shalt.err (!%p5637_p1)
}
  0xa1   : > { %4871 = dma.hbm_to_vmem [thread:$0]  (!%p5958_p5), %s6411_s1, 32, %s366_s27, [#allocation4]  }
  0xa2   : > { %s5835_s11 = smov [#allocation7]   ;;  %s5641_s21 = scalar_lea.hbm %s6385_s3, 512 }
  0xa3   : > { %s386_s28 = sshll.u32 %s5835_s11, 4  ;;  %p5642_p2 = scmp.ne.s32.totalorder %s6385_s3, %s5641_s21  ;;  %s387_s28 = int_to_ptr.vmem [resolvable:$true] %s386_s28 }
  0xa4   : > { %p5648_p6 = scmp.lt.u32.totalorder %s5641_s21, %s6385_s3 }
  0xa5   : > { %p5644_p3 = pnand %p5642_p2, %p5974_p7 }
  0xa7   : > { %p5645_p4 = pneg %p5644_p3 }
  0xa9   : > { %p5650_p8 = pnand %p5648_p6, %p5645_p4 }
  0xab   : > { %5653 = shalt.err (!%p5650_p8)
}
  0xac   : > { %s5654_s27 = scalar_lea.vmem %s387_s28, 512  ;;  %p5662_p12 = scmp.lt.s32.totalorder %s387_s28, %s387_s28 }
  0xad   : > { %p5655_p9 = scmp.ne.s32.totalorder %s387_s28, %s5654_s27  ;;  %p5663_p13 = scmp.lt.s32.totalorder %s5654_s27, %s5654_s27 }
  0xaf   : > { %p5657_p10 = pnand %p5655_p9, %p5974_p7  ;;  %p5664_p0 = por %p5663_p13, %p5662_p12 }
  0xb1   : > { %p5658_p11 = pneg %p5657_p10 }
  0xb3   : > { %p5665_p1 = pnand %p5664_p0, %p5658_p11 }
  0xb5   : > { %5668 = shalt.err (!%p5665_p1)
}
  0xb6   : > { %s5836_s19 = smov 64   ;;  %s5837_s29 = smov 4  }
  0xb7   : > { %4877 = dma.hbm_to_vmem [thread:$0]  (!%p5958_p5), %s6385_s3, 512, %s387_s28, [#allocation6], %s5836_s19, %s5836_s19, %s5837_s29  }
  0xb8   : > { %s5838_s16 = smov [#allocation10]   ;;  %s5669_s13 = scalar_lea.hbm %s6387_s5, 8192 }
  0xb9   : > { %s410_s21 = sshll.u32 %s5838_s16, 4  ;;  %p5670_p2 = scmp.ne.s32.totalorder %s6387_s5, %s5669_s13  ;;  %s411_s21 = int_to_ptr.vmem [resolvable:$true] %s410_s21 }
  0xba   : > { %p5676_p6 = scmp.lt.u32.totalorder %s5669_s13, %s6387_s5 }
  0xbb   : > { %p5672_p3 = pnand %p5670_p2, %p5974_p7 }
  0xbd   : > { %p5673_p4 = pneg %p5672_p3 }
  0xbf   : > { %p5678_p8 = pnand %p5676_p6, %p5673_p4 }
  0xc1   : > { %5681 = shalt.err (!%p5678_p8)
}
  0xc2   : > { %s5682_s28 = scalar_lea.vmem %s411_s21, 8192  ;;  %p5690_p12 = scmp.lt.s32.totalorder %s411_s21, %s411_s21 }
  0xc3   : > { %p5683_p9 = scmp.ne.s32.totalorder %s411_s21, %s5682_s28  ;;  %p5691_p13 = scmp.lt.s32.totalorder %s5682_s28, %s5682_s28 }
  0xc5   : > { %p5685_p10 = pnand %p5683_p9, %p5974_p7  ;;  %p5692_p0 = por %p5691_p13, %p5690_p12 }
  0xc7   : > { %p5686_p11 = pneg %p5685_p10 }
  0xc9   : > { %p5693_p1 = pnand %p5692_p0, %p5686_p11 }
  0xcb   : > { %5696 = shalt.err (!%p5693_p1)
}
  0xcc   : > { %s5839_s19 = smov 512   ;;  %s5840_s29 = smov 32  }
  0xcd   : > { %4883 = dma.hbm_to_vmem [thread:$0]  (!%p5958_p5), %s6387_s5, 8192, %s411_s21, [#allocation9], %s5839_s19, %s5839_s19, %s5840_s29  }
  0xce   : > { %s5841_s11 = smov [#allocation13]   ;;  %s5697_s24 = scalar_lea.hbm %s6389_s7, 32768 }
  0xcf   : > { %s434_s30 = sshll.u32 %s5841_s11, 4  ;;  %p5698_p2 = scmp.ne.s32.totalorder %s6389_s7, %s5697_s24  ;;  %s435_s30 = int_to_ptr.vmem [resolvable:$true] %s434_s30 }
  0xd0   : > { %p5704_p6 = scmp.lt.u32.totalorder %s5697_s24, %s6389_s7 }
  0xd1   : > { %p5700_p3 = pnand %p5698_p2, %p5974_p7 }
  0xd3   : > { %p5701_p4 = pneg %p5700_p3 }
  0xd5   : > { %p5706_p8 = pnand %p5704_p6, %p5701_p4 }
  0xd7   : > { %5709 = shalt.err (!%p5706_p8)
}
  0xd8   : > { %s5710_s21 = scalar_lea.vmem %s435_s30, 32768  ;;  %p5718_p12 = scmp.lt.s32.totalorder %s435_s30, %s435_s30 }
  0xd9   : > { %p5711_p9 = scmp.ne.s32.totalorder %s435_s30, %s5710_s21  ;;  %p5719_p13 = scmp.lt.s32.totalorder %s5710_s21, %s5710_s21 }
  0xdb   : > { %p5713_p10 = pnand %p5711_p9, %p5974_p7  ;;  %p5720_p0 = por %p5719_p13, %p5718_p12 }
  0xdd   : > { %p5714_p11 = pneg %p5713_p10 }
  0xdf   : > { %p5721_p1 = pnand %p5720_p0, %p5714_p11 }
  0xe1   : > { %5724 = shalt.err (!%p5721_p1)
}
  0xe2   : > { %s5842_s19 = smov 256   ;;  %s5843_s29 = smov 16  }
  0xe3   : > { %4889 = dma.hbm_to_vmem [thread:$0]  (!%p5958_p5), %s6389_s7, 32768, %s435_s30, [#allocation12], %s5842_s19, %s5842_s19, %s5843_s29  }
  0xe4   : > { %s5844_s11 = smov [#allocation16]   ;;  %s5725_s13 = scalar_lea.hbm %s6391_s9, 8192 }
  0xe5   : > { %s458_s16 = sshll.u32 %s5844_s11, 4  ;;  %p5726_p2 = scmp.ne.s32.totalorder %s6391_s9, %s5725_s13  ;;  %s459_s16 = int_to_ptr.vmem [resolvable:$true] %s458_s16 }
  0xe6   : > { %p5732_p6 = scmp.lt.u32.totalorder %s5725_s13, %s6391_s9 }
  0xe7   : > { %p5728_p3 = pnand %p5726_p2, %p5974_p7 }
  0xe9   : > { %p5729_p4 = pneg %p5728_p3 }
  0xeb   : > { %p5734_p8 = pnand %p5732_p6, %p5729_p4 }
  0xed   : > { %5737 = shalt.err (!%p5734_p8)
}
  0xee   : > { %s5738_s30 = scalar_lea.vmem %s459_s16, 8192  ;;  %p5746_p12 = scmp.lt.s32.totalorder %s459_s16, %s459_s16 }
  0xef   : > { %p5739_p9 = scmp.ne.s32.totalorder %s459_s16, %s5738_s30  ;;  %p5747_p13 = scmp.lt.s32.totalorder %s5738_s30, %s5738_s30 }
  0xf1   : > { %p5741_p10 = pnand %p5739_p9, %p5974_p7  ;;  %p5748_p0 = por %p5747_p13, %p5746_p12 }
  0xf3   : > { %p5742_p11 = pneg %p5741_p10 }
  0xf5   : > { %p5749_p1 = pnand %p5748_p0, %p5742_p11 }
  0xf7   : > { %5752 = shalt.err (!%p5749_p1)
}
  0xf8   : > { %s5845_s19 = smov 128   ;;  %s5846_s29 = smov 8  }
  0xf9   : > { %4895 = dma.hbm_to_vmem [thread:$0]  (!%p5958_p5), %s6391_s9, 8192, %s459_s16, [#allocation15], %s5845_s19, %s5845_s19, %s5846_s29  }
  0xfa   : > { %s5847_s11 = smov [#allocation19]   ;;  %s5753_s22 = scalar_lea.hbm %s6394_s12, 16 }
  0xfb   : > { %s486_s23 = sshll.u32 %s5847_s11, 4  ;;  %p5754_p2 = scmp.ne.s32.totalorder %s6394_s12, %s5753_s22  ;;  %s487_s23 = int_to_ptr.vmem [resolvable:$true] %s486_s23 }
  0xfc   : > { %p5760_p6 = scmp.lt.u32.totalorder %s5753_s22, %s6394_s12 }
  0xfd   : > { %p5756_p3 = pnand %p5754_p2, %p5974_p7 }
  0xff   : > { %p5757_p4 = pneg %p5756_p3 }
 0x101   : > { %p5762_p8 = pnand %p5760_p6, %p5757_p4 }
 0x103   : > { %5765 = shalt.err (!%p5762_p8)
}
 0x104   : > { %s5766_s16 = scalar_lea.vmem %s487_s23, 16  ;;  %s5773_s19 = scalar_lea.vmem %s487_s23, 32 }
 0x105   : > { %p5767_p9 = scmp.ne.s32.totalorder %s487_s23, %s5766_s16  ;;  %p5774_p12 = scmp.lt.s32.totalorder %s487_s23, %s487_s23 }
 0x106   : > { %p5775_p13 = scmp.lt.s32.totalorder %s5773_s19, %s5766_s16 }
 0x107   : > { %p5769_p10 = pnand %p5767_p9, %p5974_p7 }
 0x108   : > { %p5776_p0 = por %p5775_p13, %p5774_p12 }
 0x109   : > { %p5770_p11 = pneg %p5769_p10 }
 0x10b   : > { %p5777_p1 = pnand %p5776_p0, %p5770_p11 }
 0x10d   : > { %5780 = shalt.err (!%p5777_p1)
}
 0x10e   : > { %4901 = dma.hbm_to_vmem [thread:$0]  (!%p5958_p5), %s6394_s12, 16, %s487_s23, [#allocation18]  }
 0x10f   : > { %p6412_p2 = scmp.ne.s32.totalorder %s6407_s15, 0 }
 0x110   : > { %p6413_p3 = scmp.ne.s32.totalorder (!%p6412_p2), %s6406_s14, 0 }
 0x111   : > { %512 = sbr.rel (%p6412_p2) target bundleno = 1972 (0x7b4), region = 72 }
 0x118   : > { %5794 = dma.done.wait (%p6413_p3), [#allocation4], 32  }
 0x119   : > { %5796 = vsyncadd (%p6413_p3), [#allocation4], 4294967264 }
 0x11a   : > { %5798 = dma.done.wait (%p6413_p3), [#allocation6], 528  }
 0x11b   : > { %5800 = vsyncadd (%p6413_p3), [#allocation6], 4294966768 }
 0x11c   : > { %5802 = dma.done.wait (%p6413_p3), [#allocation9], 8208  }
 0x11d   : > { %5804 = vsyncadd (%p6413_p3), [#allocation9], 4294959088 }
 0x11e   : > { %5806 = dma.done.wait (%p6413_p3), [#allocation12], 32896  }
 0x11f   : > { %5808 = vsyncadd (%p6413_p3), [#allocation12], 4294934400 }
 0x120   : > { %5810 = dma.done.wait (%p6413_p3), [#allocation15], 8256  }
 0x121   : > { %5812 = vsyncadd (%p6413_p3), [#allocation15], 4294959040 }
 0x122   : > { %5814 = dma.done.wait (%p6413_p3), [#allocation18], 48  }
 0x123   : > { %5816 = vsyncadd (%p6413_p3), [#allocation18], 4294967248  ;;  %vm632_vm0 = vcmask 1040384   ;;  %v5848_v0 = vmov 0.0   ;;  %p599_p5 = scmp.lt.s32.totalorder %s5819_s25, 1  ;;  %vm633_vm1 = vcmask 1041408  }
 0x124   : > { %4772 = vmatprep.subr.bf16.mxu1 %v5848_v0  ;;  %v5849_v1 = vmov 65535   ;;  %vm5850_vm2 = vmmov 0   ;;  %v620_v4 = vld [vmem:[#allocation3] sm:$0x3]  ;;  %vm628_vm3 = vcmask 23552   ;;  %v4973_v9 = vld [vmem:[#allocation7] sm:$0xff]  }
 0x125   : > { %v634_v2 = vsel %vm632_vm0, 4294967295, %v5849_v1  ;;  %4774 = vmatprep.mubr.msk.bf16.mxu1 %vm5850_vm2, %v5848_v0  ;;  %s6424_s25 = smov (!%p599_p5, %s5819_s25), 1  ;;  %v4974_v10 = vld [vmem:[#allocation7 + $0x8] sm:$0xff]   ;;  %v4975_v11 = vld [vmem:[#allocation7 + $0x10] sm:$0xff]   ;;  %v4976_v12 = vld [vmem:[#allocation7 + $0x18] sm:$0xff]   ;;  %vm722_vm4 = vcmask 523264  }
 0x126   : > { %v635_v3 = vsel %vm633_vm1, %v634_v2, 0  ;;  %s4742_s15 = sshll.u32 %s6424_s25, 4  ;;  %v770_v13 = vld [vmem:[#allocation10] sm:$0xff]  ;;  %v1154_v17 = vld [vmem:[#allocation10 + $0x10] sm:$0xff]  ;;  %v4332_v41 = vld [vmem:[#allocation5] ss:$0 sm:$0xff] }
 0x127   : > { %s606_s18 = scalar_lea.vmem %s6382_s0, %s4742_s15  ;;  %v637_v7 = vand.u32 %v635_v3, %v620_v4  ;;  %v771_v14 = vld [vmem:[#allocation10 + $0x20] sm:$0xff]  ;;  %v1155_v18 = vld [vmem:[#allocation10 + $0x30] sm:$0xff]  ;;  %s6416_s23 = sld [smem:[#allocation29_spill]]  ;;  %vm4132_vm6 = vcmask 65536  }
 0x128   : > { %v617_v5 = vld [vmem:[%s606_s18] sm:$0xff]  ;;  %v618_v6 = vld [vmem:[%s606_s18 + $0x8] sm:$0xff]  ;;  %v4340_v15 = vcombine.low %v770_v13, %v771_v14  ;;  %v4341_v16 = vcombine.high %v770_v13, %v771_v14  ;;  %v4373_v19 = vcombine.high %v1154_v17, %v1155_v18  ;;  %v4372_v20 = vcombine.low %v1154_v17, %v1155_v18  ;;  %s6417_s2 = sld [smem:[#allocation30_spill]] }
 0x129   : > { %v619_v8 = vpack.c.bf16 %v618_v6, %v617_v5  ;;  %4773 = vmatpush3.bf16.msra.mxu1 %v637_v7  ;;  %v1156_v21 = vld [vmem:[#allocation10 + $0x50] sm:$0xff]  ;;  %v772_v48 = vld [vmem:[#allocation10 + $0x40] sm:$0xff] }
 0x12a   : > { %4778 = vmatprep.subr.bf16.mxu1 %v5848_v0  ;;  %1262 = vmatprep.subr.bf16.mxu0 %v4373_v19  ;;  %v1157_v22 = vld [vmem:[#allocation10 + $0x70] sm:$0xff]  ;;  %v773_v49 = vld [vmem:[#allocation10 + $0x60] sm:$0xff] }
 0x12b   : > { %1263 = vmatpush1.bf16.msra.mxu0 %v4372_v20  ;;  %v4375_v23 = vcombine.high %v1156_v21, %v1157_v22  ;;  %v4374_v24 = vcombine.low %v1156_v21, %v1157_v22  ;;  %v1158_v25 = vld [vmem:[#allocation10 + $0x90] sm:$0xff]  ;;  %v4343_v53 = vcombine.high %v772_v48, %v773_v49  ;;  %v774_v54 = vld [vmem:[#allocation10 + $0x80] sm:$0xff]  ;;  %v4342_v56 = vcombine.low %v772_v48, %v773_v49  ;;  %v972_v49 = vld [vmem:[#allocation10 + $0x108] sm:$0xff] }
 0x12c   : > { %4775 = vmatmul.mubr.msk.bf16.vlgmr.msra.gmra.mrb[0].mxu1 %vm628_vm3, %v619_v8  ;;  %v1159_v26 = vld [vmem:[#allocation10 + $0xb0] sm:$0xff]  ;;  %v775_v55 = vld [vmem:[#allocation10 + $0xa0] sm:$0xff] }
 0x12d   : > { %4779 = vmatpush3.bf16.msra.mxu1 %v4973_v9  ;;  %4786 = vmatprep.mubr.msk.bf16.mxu1 %vm5850_vm2, %v5848_v0  ;;  %v4377_v27 = vcombine.high %v1158_v25, %v1159_v26  ;;  %v4376_v28 = vcombine.low %v1158_v25, %v1159_v26  ;;  %v1160_v29 = vld [vmem:[#allocation10 + $0xd0] sm:$0xff]  ;;  %v4345_v57 = vcombine.high %v774_v54, %v775_v55  ;;  %v776_v58 = vld [vmem:[#allocation10 + $0xc0] sm:$0xff] }
 0x12e   : > { %4780 = vmatprep.subr.bf16.mxu1 %v5848_v0  ;;  %1264 = vmatprep.subr.bf16.mxu0 %v4375_v23  ;;  %v1161_v30 = vld [vmem:[#allocation10 + $0xf0] sm:$0xff]  ;;  %v777_v59 = vld [vmem:[#allocation10 + $0xe0] sm:$0xff]  ;;  %v4344_v60 = vcombine.low %v774_v54, %v775_v55  ;;  %v964_v23 = vld [vmem:[#allocation10 + $0x8] sm:$0xff]  ;;  %s610_s11 = scalar_lea.vmem %s6417_s2, %s6424_s25 }
 0x12f   : > { %1265 = vmatpush1.bf16.msra.mxu0 %v4374_v24  ;;  %v4379_v31 = vcombine.high %v1160_v29, %v1161_v30  ;;  %v4378_v32 = vcombine.low %v1160_v29, %v1161_v30  ;;  %v1162_v33 = vld [vmem:[#allocation10 + $0x110] sm:$0xff]  ;;  %v4347_v61 = vcombine.high %v776_v58, %v777_v59  ;;  %v778_v62 = vld [vmem:[#allocation10 + $0x100] sm:$0xff]  ;;  %v965_v24 = vld [vmem:[#allocation10 + $0x28] sm:$0xff] }
 0x130   : > { %1266 = vmatprep.subr.bf16.mxu0 %v4377_v27  ;;  %v1163_v34 = vld [vmem:[#allocation10 + $0x130] sm:$0xff]  ;;  %v779_v63 = vld [vmem:[#allocation10 + $0x120] sm:$0xff]  ;;  %v4357_v25 = vcombine.high %v964_v23, %v965_v24  ;;  %v4356_v26 = vcombine.low %v964_v23, %v965_v24  ;;  %v5851_v27 = vmov 0   ;;  %v975_v54 = vld [vmem:[#allocation10 + $0x168] sm:$0xff] }
 0x131   : > { %4781 = vmatpush3.bf16.msra.mxu1 %v4974_v10  ;;  %v4381_v35 = vcombine.high %v1162_v33, %v1163_v34  ;;  %v4380_v36 = vcombine.low %v1162_v33, %v1163_v34  ;;  %v1164_v37 = vld [vmem:[#allocation10 + $0x150] sm:$0xff]  ;;  %v4349_v1 = vcombine.high %v778_v62, %v779_v63  ;;  %v780_v2 = vld [vmem:[#allocation10 + $0x140] sm:$0xff]  ;;  %v4348_v4 = vcombine.low %v778_v62, %v779_v63  ;;  %v979_v62 = vld [vmem:[#allocation10 + $0x1e8] sm:$0xff] }
 0x132   : > { %4782 = vmatprep.subr.bf16.mxu1 %v5848_v0  ;;  %v1165_v38 = vld [vmem:[#allocation10 + $0x170] sm:$0xff]  ;;  %v781_v3 = vld [vmem:[#allocation10 + $0x160] sm:$0xff]  ;;  %1294 = vmatprep.mubr.bf16.mxu0 %v5851_v27 }
 0x133   : > { %1267 = vmatpush1.bf16.msra.mxu0 %v4376_v28  ;;  %v4383_v39 = vcombine.high %v1164_v37, %v1165_v38  ;;  %v4382_v40 = vcombine.low %v1164_v37, %v1165_v38  ;;  %v4351_v5 = vcombine.high %v780_v2, %v781_v3  ;;  %v4350_v6 = vcombine.low %v780_v2, %v781_v3  ;;  %v782_v7 = vld [vmem:[#allocation10 + $0x180] sm:$0xff]  ;;  %v1166_v10 = vld [vmem:[#allocation10 + $0x190] sm:$0xff]  ;;  %v4334_v28 = vld [vmem:[#allocation8] ss:$0 sm:$0xff] }
 0x134   : > { %1268 = vmatprep.subr.bf16.mxu0 %v4379_v31  ;;  %v783_v8 = vld [vmem:[#allocation10 + $0x1a0] sm:$0xff]  ;;  %v1168_v18 = vld [vmem:[#allocation10 + $0x1d0] sm:$0xff]  ;;  %v1345_v2 = vld [vmem:[#allocation10 + $0x38] sm:$0xff] }
 0x135   : > { %4783 = vmatpush3.bf16.msra.mxu1 %v4975_v11  ;;  %v4353_v9 = vcombine.high %v782_v7, %v783_v8  ;;  %v1167_v11 = vld [vmem:[#allocation10 + $0x1b0] sm:$0xff] }
 0x136   : > { %4784 = vmatprep.subr.bf16.mxu1 %v5848_v0  ;;  %v4346_v0 = vcombine.low %v776_v58, %v777_v59  ;;  %v4385_v13 = vcombine.high %v1166_v10, %v1167_v11  ;;  %v4384_v14 = vcombine.low %v1166_v10, %v1167_v11  ;;  %v1169_v19 = vld [vmem:[#allocation10 + $0x1f0] sm:$0xff]  ;;  %v977_v58 = vld [vmem:[#allocation10 + $0x1a8] sm:$0xff]  ;;  %v1349_v10 = vld [vmem:[#allocation10 + $0xb8] sm:$0xff] }
 0x137   : > { %1269 = vmatpush1.bf16.msra.mxu0 %v4378_v32  ;;  %v4387_v21 = vcombine.high %v1168_v18, %v1169_v19  ;;  %v4386_v22 = vcombine.low %v1168_v18, %v1169_v19  ;;  %v1353_v18 = vld [vmem:[#allocation10 + $0x138] sm:$0xff] }
 0x138   : > { %1270 = vmatprep.subr.bf16.mxu0 %v4381_v35  ;;  %v966_v35 = vld [vmem:[#allocation10 + $0x48] sm:$0xff] }
 0x139   : > { %4785 = vmatpush3.bf16.msra.mxu1 %v4976_v12  ;;  %v4352_v12 = vcombine.low %v782_v7, %v783_v8 }
 0x13a   : > { %878 = vmatprep.subr.bf16.mxu1 %v4341_v16  ;;  %v785_v16 = vld [vmem:[#allocation10 + $0x1e0] sm:$0xff] }
 0x13b   : > { %1271 = vmatpush1.bf16.msra.mxu0 %v4380_v36  ;;  %v967_v36 = vld [vmem:[#allocation10 + $0x68] sm:$0xff] }
 0x13c   : > { %1272 = vmatprep.subr.bf16.mxu0 %v4383_v39 }
 0x13f   : > { %1273 = vmatpush1.bf16.msra.mxu0 %v4382_v40  ;;  %v4359_v40 = vcombine.high %v966_v35, %v967_v36 }
 0x140   : > { %1274 = vmatprep.subr.bf16.mxu0 %v4385_v13  ;;  %v1350_v13 = vld [vmem:[#allocation10 + $0xd8] sm:$0xff] }
 0x143   : > { %1275 = vmatpush1.bf16.msra.mxu0 %v4384_v14  ;;  %v1351_v14 = vld [vmem:[#allocation10 + $0xf8] sm:$0xff] }
 0x144   : > { %1276 = vmatprep.subr.bf16.mxu0 %v4387_v21  ;;  %v4394_v19 = vcombine.low %v1350_v13, %v1351_v14  ;;  %v1354_v21 = vld [vmem:[#allocation10 + $0x158] sm:$0xff] }
 0x147   : > { %1277 = vmatpush1.bf16.msra.mxu0 %v4386_v22  ;;  %v1355_v22 = vld [vmem:[#allocation10 + $0x178] sm:$0xff] }
 0x148   : > { %v4399_v24 = vcombine.high %v1354_v21, %v1355_v22 }
 0x1ff   : > { %v673_v42 = vpop.f32.mrb[0].mxu1 }
 0x200   : > { %v674_v43 = vadd.f32 %v4332_v41, %v673_v42  ;;  %v4776_v44 = vpop.f32.mrb[1].mxu1  ;;  %v969_v42 = vld [vmem:[#allocation10 + $0xa8] sm:$0xff] }
 0x201   : > { %v676_v45 = vpop.f32.mrb[2].mxu1 }
 0x202   : > { %v677_v46 = vadd.f32 %v4332_v41, %v676_v45  ;;  %v4777_v47 = vpop.f32.mrb[3].mxu1  ;;  %v680_v50 = vmax.f32 %v674_v43, 0.0  ;;  %v968_v41 = vld [vmem:[#allocation10 + $0x88] sm:$0xff]  ;;  %v4358_v43 = vcombine.low %v966_v35, %v967_v36  ;;  %v4982_v36 = vld [vmem:[#allocation13 + $0xc] ss:$16 sps:$4 sm:$0xff]  }
 0x203   : > { %v4361_v44 = vcombine.high %v968_v41, %v969_v42  ;;  %v970_v45 = vld [vmem:[#allocation10 + $0xc8] sm:$0xff]  ;;  %v4360_v47 = vcombine.low %v968_v41, %v969_v42  ;;  %v4988_v41 = vld [vmem:[#allocation13 + $0x2c] ss:$16 sps:$4 sm:$0xff]  }
 0x204   : > { %v681_v51 = vmax.f32 %v677_v46, 0.0  ;;  %v971_v46 = vld [vmem:[#allocation10 + $0xe8] sm:$0xff] }
 0x205   : > { %v4363_v48 = vcombine.high %v970_v45, %v971_v46  ;;  %v4979_v35 = vld [vmem:[#allocation13 + $0x4] ss:$16 sps:$4 sm:$0xff]   ;;  %v4983_v42 = vld [vmem:[#allocation13 + $0x20] ss:$16 sps:$4 sm:$0xff]  }
 0x206   : > { %v682_v52 = vpack.c.bf16 %v681_v51, %v680_v50  ;;  %v973_v50 = vld [vmem:[#allocation10 + $0x128] sm:$0xff]  ;;  %v4362_v51 = vcombine.low %v970_v45, %v971_v46  ;;  %3145 = vmatprep.subr.bf16.mxu0 %v4979_v35  ;;  %v4992_v46 = vld [vmem:[#allocation13 + $0x48] ss:$16 sps:$4 sm:$0xff]  }
 0x207   : > { %v4364_v55 = vcombine.low %v972_v49, %v973_v50  ;;  %v4989_v45 = vld [vmem:[#allocation13 + $0x40] ss:$16 sps:$4 sm:$0xff]   ;;  %v5075_v35 = vld [vmem:[#allocation13 + $0x204] ss:$16 sps:$4 sm:$0xff]  }
 0x208   : > { %4787 = vmatmul.mubr.msk.bf16.vlgmr.msra.gmra.mrb[4].mxu1 %vm722_vm4, %v682_v52  ;;  %v4365_v52 = vcombine.high %v972_v49, %v973_v50  ;;  %v4995_v49 = vld [vmem:[#allocation13 + $0x60] ss:$16 sps:$4 sm:$0xff]   ;;  %v4998_v50 = vld [vmem:[#allocation13 + $0x68] ss:$16 sps:$4 sm:$0xff]  }
 0x209   : > { %879 = vmatpush1.bf16.msra.mxu1 %v4340_v15  ;;  %v784_v15 = vld [vmem:[#allocation10 + $0x1c0] sm:$0xff]  ;;  %910 = vmatprep.mubr.bf16.mxu1 %v5851_v27 }
 0x20a   : > { %880 = vmatprep.subr.bf16.mxu1 %v4343_v53  ;;  %v4355_v17 = vcombine.high %v784_v15, %v785_v16  ;;  %v4354_v20 = vcombine.low %v784_v15, %v785_v16  ;;  %v974_v53 = vld [vmem:[#allocation10 + $0x148] sm:$0xff]  ;;  %v4395_v16 = vcombine.high %v1350_v13, %v1351_v14  ;;  %v5040_v14 = vld [vmem:[#allocation13 + $0x148] ss:$16 sps:$4 sm:$0xff]  }
 0x20b   : > { %v4366_v59 = vcombine.low %v974_v53, %v975_v54  ;;  %v5037_v13 = vld [vmem:[#allocation13 + $0x140] ss:$16 sps:$4 sm:$0xff]  }
 0x20d   : > { %881 = vmatpush1.bf16.msra.mxu1 %v4342_v56  ;;  %v4367_v56 = vcombine.high %v974_v53, %v975_v54  ;;  %v5001_v53 = vld [vmem:[#allocation13 + $0x80] ss:$16 sps:$4 sm:$0xff]   ;;  %v5004_v54 = vld [vmem:[#allocation13 + $0x88] ss:$16 sps:$4 sm:$0xff]  }
 0x20e   : > { %882 = vmatprep.subr.bf16.mxu1 %v4345_v57  ;;  %v976_v57 = vld [vmem:[#allocation10 + $0x188] sm:$0xff] }
 0x20f   : > { %v4368_v63 = vcombine.low %v976_v57, %v977_v58 }
 0x211   : > { %883 = vmatpush1.bf16.msra.mxu1 %v4344_v60  ;;  %v4369_v60 = vcombine.high %v976_v57, %v977_v58  ;;  %v5007_v57 = vld [vmem:[#allocation13 + $0xa0] ss:$16 sps:$4 sm:$0xff]   ;;  %v5010_v58 = vld [vmem:[#allocation13 + $0xa8] ss:$16 sps:$4 sm:$0xff]  }
 0x212   : > { %884 = vmatprep.subr.bf16.mxu1 %v4347_v61  ;;  %v978_v61 = vld [vmem:[#allocation10 + $0x1c8] sm:$0xff] }
 0x213   : > { %v4370_v3 = vcombine.low %v978_v61, %v979_v62 }
 0x215   : > { %885 = vmatpush1.bf16.msra.mxu1 %v4346_v0  ;;  %v4371_v0 = vcombine.high %v978_v61, %v979_v62  ;;  %v5013_v61 = vld [vmem:[#allocation13 + $0xc0] ss:$16 sps:$4 sm:$0xff]   ;;  %v5016_v62 = vld [vmem:[#allocation13 + $0xc8] ss:$16 sps:$4 sm:$0xff]  }
 0x216   : > { %886 = vmatprep.subr.bf16.mxu1 %v4349_v1  ;;  %v1344_v1 = vld [vmem:[#allocation10 + $0x18] sm:$0xff] }
 0x217   : > { %v4388_v7 = vcombine.low %v1344_v1, %v1345_v2 }
 0x219   : > { %887 = vmatpush1.bf16.msra.mxu1 %v4348_v4  ;;  %v4389_v4 = vcombine.high %v1344_v1, %v1345_v2  ;;  %v5019_v1 = vld [vmem:[#allocation13 + $0xe0] ss:$16 sps:$4 sm:$0xff]   ;;  %v5022_v2 = vld [vmem:[#allocation13 + $0xe8] ss:$16 sps:$4 sm:$0xff]  }
 0x21a   : > { %888 = vmatprep.subr.bf16.mxu1 %v4351_v5  ;;  %v1346_v5 = vld [vmem:[#allocation10 + $0x58] sm:$0xff] }
 0x21d   : > { %889 = vmatpush1.bf16.msra.mxu1 %v4350_v6  ;;  %v1347_v6 = vld [vmem:[#allocation10 + $0x78] sm:$0xff] }
 0x21e   : > { %890 = vmatprep.subr.bf16.mxu1 %v4353_v9  ;;  %v4391_v8 = vcombine.high %v1346_v5, %v1347_v6  ;;  %v1348_v9 = vld [vmem:[#allocation10 + $0x98] sm:$0xff]  ;;  %v4390_v11 = vcombine.low %v1346_v5, %v1347_v6  ;;  %v5028_v6 = vld [vmem:[#allocation13 + $0x108] ss:$16 sps:$4 sm:$0xff]  }
 0x21f   : > { %v4392_v15 = vcombine.low %v1348_v9, %v1349_v10  ;;  %v5025_v5 = vld [vmem:[#allocation13 + $0x100] ss:$16 sps:$4 sm:$0xff]  }
 0x221   : > { %891 = vmatpush1.bf16.msra.mxu1 %v4352_v12  ;;  %v4393_v12 = vcombine.high %v1348_v9, %v1349_v10  ;;  %v5031_v9 = vld [vmem:[#allocation13 + $0x120] ss:$16 sps:$4 sm:$0xff]   ;;  %v5034_v10 = vld [vmem:[#allocation13 + $0x128] ss:$16 sps:$4 sm:$0xff]  }
 0x222   : > { %892 = vmatprep.subr.bf16.mxu1 %v4355_v17  ;;  %v1352_v17 = vld [vmem:[#allocation10 + $0x118] sm:$0xff] }
 0x223   : > { %v4396_v23 = vcombine.low %v1352_v17, %v1353_v18 }
 0x225   : > { %893 = vmatpush1.bf16.msra.mxu1 %v4354_v20  ;;  %v4397_v20 = vcombine.high %v1352_v17, %v1353_v18  ;;  %v5043_v17 = vld [vmem:[#allocation13 + $0x160] ss:$16 sps:$4 sm:$0xff]   ;;  %v5046_v18 = vld [vmem:[#allocation13 + $0x168] ss:$16 sps:$4 sm:$0xff]  }
 0x226   : > { %1072 = vmatprep.subr.bf16.mxu1 %v4357_v25  ;;  %v1356_v25 = vld [vmem:[#allocation10 + $0x198] sm:$0xff] }
 0x2db   : > { %v760_v29 = vpop.f32.mrb[4].mxu1 }
 0x2dc   : > { %v761_v30 = vadd.f32 %v4334_v28, %v760_v29  ;;  %v4788_v31 = vpop.f32.mrb[5].mxu1  ;;  %v1358_v29 = vld [vmem:[#allocation10 + $0x1d8] sm:$0xff] }
 0x2dd   : > { %v763_v32 = vpop.f32.mrb[6].mxu1 }
 0x2de   : > { %v764_v33 = vadd.f32 %v4334_v28, %v763_v32  ;;  %v4789_v34 = vpop.f32.mrb[7].mxu1  ;;  %v767_v37 = vmax.f32 %v761_v30, 0.0  ;;  %v1359_v30 = vld [vmem:[#allocation10 + $0x1f8] sm:$0xff] }
 0x2df   : > { %v4403_v32 = vcombine.high %v1358_v29, %v1359_v30  ;;  %v5852_v34 = vmov -inf  }
 0x2e0   : > { %v768_v38 = vmax.f32 %v764_v33, 0.0  ;;  %v4402_v33 = vcombine.low %v1358_v29, %v1359_v30  ;;  %616 = vst [vmem:[#allocation2] sm:$0xff] %v5852_v34  ;;  %v5064_v29 = vld [vmem:[#allocation13 + $0x1c8] ss:$16 sps:$4 sm:$0xff]   ;;  %v5066_v30 = vld [vmem:[#allocation13 + $0x1cc] ss:$16 sps:$4 sm:$0xff]  }
 0x2e1   : > { %v5070_v34 = vld [vmem:[#allocation13 + $0x1e8] ss:$16 sps:$4 sm:$0xff]  }
 0x2e2   : > { %v6233_v39 = vpack.c.bf16 %v768_v38, %v767_v37  ;;  %v4977_v37 = vld [vmem:[#allocation13] ss:$16 sps:$4 sm:$0xff]   ;;  %v4980_v38 = vld [vmem:[#allocation13 + $0x8] ss:$16 sps:$4 sm:$0xff]  }
 0x2e4   : > { %911 = vmatmul.mubr.bf16.vlgmr.msra.gmra.mrb[8].mxu1 %v6233_v39  ;;  %1295 = vmatmul.mubr.bf16.vlgmr.msra.gmra.mrb[0].mxu0 %v6233_v39 }
 0x2e5   : > { %1073 = vmatpush1.bf16.msra.mxu1 %v4356_v26  ;;  %1104 = vmatprep.mubr.bf16.mxu1 %v5851_v27  ;;  %v1357_v26 = vld [vmem:[#allocation10 + $0x1b8] sm:$0xff] }
 0x2e6   : > { %1074 = vmatprep.subr.bf16.mxu1 %v4359_v40  ;;  %v4401_v28 = vcombine.high %v1356_v25, %v1357_v26  ;;  %v4400_v31 = vcombine.low %v1356_v25, %v1357_v26  ;;  %3146 = vmatpush1.bf16.msra.mxu0 %v4977_v37  ;;  %v4985_v40 = vld [vmem:[#allocation13 + $0x24] ss:$16 sps:$4 sm:$0xff]   ;;  %v5055_v25 = vld [vmem:[#allocation13 + $0x1a0] ss:$16 sps:$4 sm:$0xff]   ;;  %v5058_v26 = vld [vmem:[#allocation13 + $0x1a8] ss:$16 sps:$4 sm:$0xff]   ;;  %v788_v37 = vlaneseq }
 0x2e7   : > { %3147 = vmatprep.subr.bf16.mxu0 %v4985_v40 }
 0x2e8   : > { %vm6262_vm5 = vcmp.lt.s32.totalorder %v788_v37, 256 }
 0x2e9   : > { %1075 = vmatpush1.bf16.msra.mxu1 %v4358_v43  ;;  %v4986_v43 = vld [vmem:[#allocation13 + $0x28] ss:$16 sps:$4 sm:$0xff]  }
 0x2ea   : > { %1076 = vmatprep.subr.bf16.mxu1 %v4361_v44  ;;  %3148 = vmatpush1.bf16.msra.mxu0 %v4983_v42  ;;  %v4991_v44 = vld [vmem:[#allocation13 + $0x44] ss:$16 sps:$4 sm:$0xff]   ;;  %v1170_v42 = vld [vmem:[#allocation11 + $0x4] sm:$0x3] }
 0x2eb   : > { %3149 = vmatprep.subr.bf16.mxu0 %v4991_v44 }
 0x2ed   : > { %1077 = vmatpush1.bf16.msra.mxu1 %v4360_v47  ;;  %v4997_v47 = vld [vmem:[#allocation13 + $0x64] ss:$16 sps:$4 sm:$0xff]  }
 0x2ee   : > { %1078 = vmatprep.subr.bf16.mxu1 %v4363_v48  ;;  %3150 = vmatpush1.bf16.msra.mxu0 %v4989_v45  ;;  %v5000_v48 = vld [vmem:[#allocation13 + $0x6c] ss:$16 sps:$4 sm:$0xff]  }
 0x2ef   : > { %3151 = vmatprep.subr.bf16.mxu0 %v4997_v47 }
 0x2f1   : > { %1079 = vmatpush1.bf16.msra.mxu1 %v4362_v51  ;;  %v5003_v51 = vld [vmem:[#allocation13 + $0x84] ss:$16 sps:$4 sm:$0xff]  }
 0x2f2   : > { %1080 = vmatprep.subr.bf16.mxu1 %v4365_v52  ;;  %3152 = vmatpush1.bf16.msra.mxu0 %v4995_v49  ;;  %v5006_v52 = vld [vmem:[#allocation13 + $0x8c] ss:$16 sps:$4 sm:$0xff]  }
 0x2f3   : > { %3153 = vmatprep.subr.bf16.mxu0 %v5003_v51 }
 0x2f5   : > { %1081 = vmatpush1.bf16.msra.mxu1 %v4364_v55  ;;  %v5009_v55 = vld [vmem:[#allocation13 + $0xa4] ss:$16 sps:$4 sm:$0xff]  }
 0x2f6   : > { %1082 = vmatprep.subr.bf16.mxu1 %v4367_v56  ;;  %3154 = vmatpush1.bf16.msra.mxu0 %v5001_v53  ;;  %v5012_v56 = vld [vmem:[#allocation13 + $0xac] ss:$16 sps:$4 sm:$0xff]  }
 0x2f7   : > { %3155 = vmatprep.subr.bf16.mxu0 %v5009_v55 }
 0x2f9   : > { %1083 = vmatpush1.bf16.msra.mxu1 %v4366_v59  ;;  %v5015_v59 = vld [vmem:[#allocation13 + $0xc4] ss:$16 sps:$4 sm:$0xff]  }
 0x2fa   : > { %1084 = vmatprep.subr.bf16.mxu1 %v4369_v60  ;;  %3156 = vmatpush1.bf16.msra.mxu0 %v5007_v57  ;;  %v5018_v60 = vld [vmem:[#allocation13 + $0xcc] ss:$16 sps:$4 sm:$0xff]  }
 0x2fb   : > { %3157 = vmatprep.subr.bf16.mxu0 %v5015_v59 }
 0x2fd   : > { %1085 = vmatpush1.bf16.msra.mxu1 %v4368_v63  ;;  %v5021_v63 = vld [vmem:[#allocation13 + $0xe4] ss:$16 sps:$4 sm:$0xff]  }
 0x2fe   : > { %1086 = vmatprep.subr.bf16.mxu1 %v4371_v0  ;;  %3158 = vmatpush1.bf16.msra.mxu0 %v5013_v61  ;;  %v5024_v0 = vld [vmem:[#allocation13 + $0xec] ss:$16 sps:$4 sm:$0xff]  }
 0x2ff   : > { %3159 = vmatprep.subr.bf16.mxu0 %v5021_v63 }
 0x301   : > { %1087 = vmatpush1.bf16.msra.mxu1 %v4370_v3  ;;  %v5027_v3 = vld [vmem:[#allocation13 + $0x104] ss:$16 sps:$4 sm:$0xff]  }
 0x302   : > { %1452 = vmatprep.subr.bf16.mxu1 %v4389_v4  ;;  %3160 = vmatpush1.bf16.msra.mxu0 %v5019_v1  ;;  %v5030_v4 = vld [vmem:[#allocation13 + $0x10c] ss:$16 sps:$4 sm:$0xff]  }
 0x303   : > { %3161 = vmatprep.subr.bf16.mxu0 %v5027_v3 }
 0x304   : > { %1105 = vmatmul.mubr.bf16.vlgmr.msra.gmra.mrb[12].mxu1 %v6233_v39 }
 0x305   : > { %1453 = vmatpush1.bf16.msra.mxu1 %v4388_v7  ;;  %1484 = vmatprep.mubr.bf16.mxu1 %v5851_v27  ;;  %v4398_v27 = vcombine.low %v1354_v21, %v1355_v22  ;;  %v5033_v7 = vld [vmem:[#allocation13 + $0x124] ss:$16 sps:$4 sm:$0xff]   ;;  %v5049_v21 = vld [vmem:[#allocation13 + $0x180] ss:$16 sps:$4 sm:$0xff]   ;;  %v5052_v22 = vld [vmem:[#allocation13 + $0x188] ss:$16 sps:$4 sm:$0xff]  }
 0x306   : > { %1454 = vmatprep.subr.bf16.mxu1 %v4391_v8  ;;  %3162 = vmatpush1.bf16.msra.mxu0 %v5025_v5  ;;  %v5036_v8 = vld [vmem:[#allocation13 + $0x12c] ss:$16 sps:$4 sm:$0xff]  }
 0x307   : > { %3163 = vmatprep.subr.bf16.mxu0 %v5033_v7 }
 0x309   : > { %1455 = vmatpush1.bf16.msra.mxu1 %v4390_v11  ;;  %v5039_v11 = vld [vmem:[#allocation13 + $0x144] ss:$16 sps:$4 sm:$0xff]  }
 0x30a   : > { %1456 = vmatprep.subr.bf16.mxu1 %v4393_v12  ;;  %3164 = vmatpush1.bf16.msra.mxu0 %v5031_v9  ;;  %v5042_v12 = vld [vmem:[#allocation13 + $0x14c] ss:$16 sps:$4 sm:$0xff]  }
 0x30b   : > { %3165 = vmatprep.subr.bf16.mxu0 %v5039_v11 }
 0x30d   : > { %1457 = vmatpush1.bf16.msra.mxu1 %v4392_v15  ;;  %v5045_v15 = vld [vmem:[#allocation13 + $0x164] ss:$16 sps:$4 sm:$0xff]  }
 0x30e   : > { %1458 = vmatprep.subr.bf16.mxu1 %v4395_v16  ;;  %3166 = vmatpush1.bf16.msra.mxu0 %v5037_v13  ;;  %v5048_v16 = vld [vmem:[#allocation13 + $0x16c] ss:$16 sps:$4 sm:$0xff]  }
 0x30f   : > { %3167 = vmatprep.subr.bf16.mxu0 %v5045_v15 }
 0x311   : > { %1459 = vmatpush1.bf16.msra.mxu1 %v4394_v19  ;;  %v5051_v19 = vld [vmem:[#allocation13 + $0x184] ss:$16 sps:$4 sm:$0xff]  }
 0x312   : > { %1460 = vmatprep.subr.bf16.mxu1 %v4397_v20  ;;  %3168 = vmatpush1.bf16.msra.mxu0 %v5043_v17  ;;  %v5054_v20 = vld [vmem:[#allocation13 + $0x18c] ss:$16 sps:$4 sm:$0xff]  }
 0x313   : > { %3169 = vmatprep.subr.bf16.mxu0 %v5051_v19 }
 0x315   : > { %1461 = vmatpush1.bf16.msra.mxu1 %v4396_v23  ;;  %v5057_v23 = vld [vmem:[#allocation13 + $0x1a4] ss:$16 sps:$4 sm:$0xff]  }
 0x316   : > { %1462 = vmatprep.subr.bf16.mxu1 %v4399_v24  ;;  %3170 = vmatpush1.bf16.msra.mxu0 %v5049_v21  ;;  %v5060_v24 = vld [vmem:[#allocation13 + $0x1ac] ss:$16 sps:$4 sm:$0xff]  }
 0x317   : > { %3171 = vmatprep.subr.bf16.mxu0 %v5057_v23 }
 0x319   : > { %1463 = vmatpush1.bf16.msra.mxu1 %v4398_v27  ;;  %v5063_v27 = vld [vmem:[#allocation13 + $0x1c4] ss:$16 sps:$4 sm:$0xff]  }
 0x31a   : > { %1464 = vmatprep.subr.bf16.mxu1 %v4401_v28  ;;  %3172 = vmatpush1.bf16.msra.mxu0 %v5055_v25  ;;  %v5061_v28 = vld [vmem:[#allocation13 + $0x1c0] ss:$16 sps:$4 sm:$0xff]  }
 0x31b   : > { %3173 = vmatprep.subr.bf16.mxu0 %v5063_v27 }
 0x31d   : > { %1465 = vmatpush1.bf16.msra.mxu1 %v4400_v31  ;;  %v5069_v31 = vld [vmem:[#allocation13 + $0x1e4] ss:$16 sps:$4 sm:$0xff]  }
 0x31e   : > { %1466 = vmatprep.subr.bf16.mxu1 %v4403_v32  ;;  %v5072_v32 = vld [vmem:[#allocation13 + $0x1ec] ss:$16 sps:$4 sm:$0xff]   ;;  %3174 = vmatpush1.bf16.msra.mxu0 %v5061_v28 }
 0x31f   : > { %3175 = vmatprep.subr.bf16.mxu0 %v5069_v31 }
 0x321   : > { %1467 = vmatpush1.bf16.msra.mxu1 %v4402_v33  ;;  %v5067_v33 = vld [vmem:[#allocation13 + $0x1e0] ss:$16 sps:$4 sm:$0xff]  }
 0x322   : > { %3309 = vmatprep.subr.bf16.mxu1 %v4982_v36  ;;  %3176 = vmatpush1.bf16.msra.mxu0 %v5067_v33  ;;  %v5078_v36 = vld [vmem:[#allocation13 + $0x20c] ss:$16 sps:$4 sm:$0xff]  }
 0x323   : > { %3186 = vmatprep.subr.bf16.mxu0 %v5075_v35 }
 0x324   : > { %1485 = vmatmul.mubr.bf16.vlgmr.msra.gmra.mrb[16].mxu1 %v6233_v39  ;;  %v4994_v39 = vld [vmem:[#allocation13 + $0x4c] ss:$16 sps:$4 sm:$0xff]  }
 0x325   : > { %3310 = vmatpush1.bf16.msra.mxu1 %v4980_v38  ;;  %v6242_v38 = vshrl.u32 %v788_v37, 7 }
 0x326   : > { %3311 = vmatprep.subr.bf16.mxu1 %v4988_v41  ;;  %v786_v41 = vld [vmem:[#allocation11] sm:$0x3] }
 0x327   : > { %v6245_v40 = vsub.s32 0, %v6242_v38 }
 0x329   : > { %3312 = vmatpush1.bf16.msra.mxu1 %v4986_v43  ;;  %v6248_v43 = vsub.s32 1, %v6242_v38  ;;  %v791_v44 = vrot.slane %v786_v41, %v6245_v40 }
 0x32a   : > { %3313 = vmatprep.subr.bf16.mxu1 %v4994_v39  ;;  %v1175_v39 = vrot.slane %v1170_v42, %v6245_v40 }
 0x32b   : > { %v795_v45 = vrot.slane %v786_v41, %v6248_v43 }
 0x32d   : > { %3314 = vmatpush1.bf16.msra.mxu1 %v4992_v46  ;;  %v1179_v46 = vrot.slane %v1170_v42, %v6248_v43 }
 0x32e   : > { %3315 = vmatprep.subr.bf16.mxu1 %v5000_v48 }
 0x331   : > { %3316 = vmatpush1.bf16.msra.mxu1 %v4998_v50 }
 0x332   : > { %3317 = vmatprep.subr.bf16.mxu1 %v5006_v52 }
 0x335   : > { %3318 = vmatpush1.bf16.msra.mxu1 %v5004_v54 }
 0x336   : > { %3319 = vmatprep.subr.bf16.mxu1 %v5012_v56 }
 0x339   : > { %3320 = vmatpush1.bf16.msra.mxu1 %v5010_v58 }
 0x33a   : > { %3321 = vmatprep.subr.bf16.mxu1 %v5018_v60 }
 0x33d   : > { %3322 = vmatpush1.bf16.msra.mxu1 %v5016_v62 }
 0x33e   : > { %3323 = vmatprep.subr.bf16.mxu1 %v5024_v0 }
 0x341   : > { %3324 = vmatpush1.bf16.msra.mxu1 %v5022_v2 }
 0x342   : > { %3325 = vmatprep.subr.bf16.mxu1 %v5030_v4 }
 0x345   : > { %3326 = vmatpush1.bf16.msra.mxu1 %v5028_v6 }
 0x346   : > { %3327 = vmatprep.subr.bf16.mxu1 %v5036_v8 }
 0x349   : > { %3328 = vmatpush1.bf16.msra.mxu1 %v5034_v10 }
 0x34a   : > { %3329 = vmatprep.subr.bf16.mxu1 %v5042_v12 }
 0x34d   : > { %3330 = vmatpush1.bf16.msra.mxu1 %v5040_v14 }
 0x34e   : > { %3331 = vmatprep.subr.bf16.mxu1 %v5048_v16 }
 0x351   : > { %3332 = vmatpush1.bf16.msra.mxu1 %v5046_v18  ;;  %v5853_v18 = vmov 1966171168  }
 0x352   : > { %3333 = vmatprep.subr.bf16.mxu1 %v5054_v20  ;;  %v944_v19 = vunpack.c.l.s4 %v5853_v18 }
 0x354   : > { %v945_v28 = vunpack.c.0.s8 %v944_v19 }
 0x355   : > { %3334 = vmatpush1.bf16.msra.mxu1 %v5052_v22 }
 0x356   : > { %3335 = vmatprep.subr.bf16.mxu1 %v5060_v24  ;;  %v6255_v41 = vsub.s32 %v945_v28, %v6242_v38 }
 0x359   : > { %3336 = vmatpush1.bf16.msra.mxu1 %v5058_v26 }
 0x35a   : > { %3337 = vmatprep.subr.bf16.mxu1 %v5066_v30 }
 0x35d   : > { %3338 = vmatpush1.bf16.msra.mxu1 %v5064_v29 }
 0x35e   : > { %3339 = vmatprep.subr.bf16.mxu1 %v5072_v32 }
 0x361   : > { %3340 = vmatpush1.bf16.msra.mxu1 %v5070_v34 }
 0x362   : > { %3350 = vmatprep.subr.bf16.mxu1 %v5078_v36 }
 0x3b7   : > { %v912_v47 = vpop.f32.mrb[8].mxu1  ;;  %v1296_v48 = vpop.f32.mrb[0].mxu0 }
 0x3b8   : > { %v913_v49 = vadd.f32 %v912_v47, %v791_v44  ;;  %v1297_v50 = vadd.f32 %v1296_v48, %v1175_v39  ;;  %v914_v51 = vpop.f32.mrb[9].mxu1  ;;  %v1298_v52 = vpop.f32.mrb[1].mxu0  ;;  %v925_v47 = vld [vmem:[#allocation2] sm:$0x3]  ;;  %v1309_v48 = vld [vmem:[#allocation2 + $0x4] sm:$0x3] }
 0x3b9   : > { %v915_v53 = vadd.f32 %v914_v51, %v795_v45  ;;  %v1299_v54 = vadd.f32 %v1298_v52, %v1179_v46  ;;  %v916_v55 = vpop.f32.mrb[10].mxu1  ;;  %v1300_v56 = vpop.f32.mrb[2].mxu0  ;;  %v980_v51 = vld [vmem:[#allocation11 + $0x2] sm:$0x3]  ;;  %v5081_v52 = vld [vmem:[#allocation13 + $0x224] ss:$16 sps:$4 sm:$0xff]  }
 0x3ba   : > { %v917_v57 = vadd.f32 %v916_v55, %v791_v44  ;;  %v1301_v58 = vadd.f32 %v1300_v56, %v1175_v39  ;;  %v918_v59 = vpop.f32.mrb[11].mxu1  ;;  %v1302_v60 = vpop.f32.mrb[3].mxu0  ;;  %v921_v63 = vmax.f32 %v913_v49, 0.0  ;;  %v1305_v0 = vmax.f32 %v1297_v50, 0.0 }
 0x3bb   : > { %v919_v61 = vadd.f32 %v918_v59, %v795_v45  ;;  %v1303_v62 = vadd.f32 %v1302_v60, %v1179_v46  ;;  %v922_v3 = vmax.f32 %v915_v53, 0.0  ;;  %v1306_v4 = vmax.f32 %v1299_v54, 0.0 }
 0x3bc   : > { %v923_v1 = vmax.f32 %v917_v57, 0.0  ;;  %v1307_v2 = vmax.f32 %v1301_v58, 0.0  ;;  %v985_v55 = vrot.slane %v980_v51, %v6245_v40  ;;  %v989_v56 = vrot.slane %v980_v51, %v6248_v43 }
 0x3bd   : > { %v924_v5 = vmax.f32 %v919_v61, 0.0  ;;  %v1308_v6 = vmax.f32 %v1303_v62, 0.0 }
 0x3be   : > { %v926_v7 = vmax.f32 %v921_v63, %v923_v1  ;;  %v1310_v8 = vmax.f32 %v1305_v0, %v1307_v2 }
 0x3bf   : > { %v933_v9 = vmax.f32 %v922_v3, %v924_v5  ;;  %v1317_v10 = vmax.f32 %v1306_v4, %v1308_v6 }
 0x3c0   : > { %v927_v11 = vrot.slane %v926_v7, 4  ;;  %v1311_v12 = vrot.slane %v1310_v8, 4 }
 0x3c1   : > { %v934_v13 = vrot.slane %v933_v9, 4  ;;  %v1318_v14 = vrot.slane %v1317_v10, 4 }
 0x3c2   : > { %v928_v15 = vmax.f32 %v926_v7, %v927_v11  ;;  %v1312_v16 = vmax.f32 %v1310_v8, %v1311_v12 }
 0x3c3   : > { %v935_v17 = vmax.f32 %v933_v9, %v934_v13  ;;  %v1319_v20 = vmax.f32 %v1317_v10, %v1318_v14 }
 0x3c4   : > { %v929_v21 = vrot.slane %v928_v15, 2  ;;  %v1313_v22 = vrot.slane %v1312_v16, 2 }
 0x3c5   : > { %v936_v23 = vrot.slane %v935_v17, 2  ;;  %v1320_v24 = vrot.slane %v1319_v20, 2 }
 0x3c6   : > { %v930_v25 = vmax.f32 %v928_v15, %v929_v21  ;;  %v1314_v26 = vmax.f32 %v1312_v16, %v1313_v22  ;;  %v1360_v22 = vld [vmem:[#allocation11 + $0x6] sm:$0x3] }
 0x3c7   : > { %v937_v27 = vmax.f32 %v935_v17, %v936_v23  ;;  %v1321_v29 = vmax.f32 %v1319_v20, %v1320_v24  ;;  %v1119_v20 = vld [vmem:[#allocation2 + $0x2] sm:$0x3]  ;;  %v1365_v24 = vrot.slane %v1360_v22, %v6245_v40 }
 0x3c8   : > { %v931_v30 = vrot.slane %v930_v25, 1  ;;  %v1315_v31 = vrot.slane %v1314_v26, 1 }
 0x3c9   : > { %v938_v32 = vrot.slane %v937_v27, 1  ;;  %v1322_v33 = vrot.slane %v1321_v29, 1 }
 0x3ca   : > { %v932_v34 = vmax.f32 %v930_v25, %v931_v30  ;;  %v1316_v35 = vmax.f32 %v1314_v26, %v1315_v31  ;;  %v1369_v25 = vrot.slane %v1360_v22, %v6248_v43  ;;  %v5105_v22 = vld [vmem:[#allocation13 + $0x2a4] ss:$16 sps:$4 sm:$0xff]  }
 0x3cb   : > { %v939_v36 = vmax.f32 %v937_v27, %v938_v32  ;;  %v1323_v42 = vmax.f32 %v1321_v29, %v1322_v33 }
 0x3cd   : > { %v942_v44 = vcombine.low %v932_v34, %v939_v36  ;;  %v1326_v39 = vcombine.low %v1316_v35, %v1323_v42 }
 0x3cf   : > { %v949_v45 = vrot.slane %v942_v44, %v6255_v41  ;;  %v1333_v46 = vrot.slane %v1326_v39, %v6255_v41 }
 0x3d1   : > { %v956_v49 = vrot.slane %v949_v45, %v6255_v41  ;;  %v1340_v50 = vrot.slane %v1333_v46, %v6255_v41 }
 0x3d3   : > { %v958_v53 = vmax.f32 %v925_v47, %v956_v49  ;;  %v1342_v54 = vmax.f32 %v1309_v48, %v1340_v50 }
 0x3d5   : > { %963 = vst.msk [vmem:[#allocation2] sm:$0x3] %vm6262_vm5, %v958_v53  ;;  %1343 = vst.msk [vmem:[#allocation2 + $0x4] sm:$0x3] %vm6262_vm5, %v1342_v54 }
 0x3d7   : > { %v1106_v57 = vpop.f32.mrb[12].mxu1 }
 0x3d8   : > { %v1107_v58 = vadd.f32 %v1106_v57, %v985_v55  ;;  %v1108_v59 = vpop.f32.mrb[13].mxu1 }
 0x3d9   : > { %v1109_v60 = vadd.f32 %v1108_v59, %v989_v56  ;;  %v1110_v37 = vpop.f32.mrb[14].mxu1 }
 0x3da   : > { %v1111_v61 = vadd.f32 %v1110_v37, %v985_v55  ;;  %v1112_v62 = vpop.f32.mrb[15].mxu1  ;;  %v1115_v0 = vmax.f32 %v1107_v58, 0.0 }
 0x3db   : > { %v1113_v63 = vadd.f32 %v1112_v62, %v989_v56  ;;  %v1116_v2 = vmax.f32 %v1109_v60, 0.0  ;;  %v1499_v60 = vld [vmem:[#allocation2 + $0x6] sm:$0x3]  ;;  %v1553_v62 = vsub.s32 3, %v6242_v38 }
 0x3dc   : > { %v1117_v1 = vmax.f32 %v1111_v61, 0.0 }
 0x3dd   : > { %v1118_v3 = vmax.f32 %v1113_v63, 0.0 }
 0x3de   : > { %v1120_v4 = vmax.f32 %v1115_v0, %v1117_v1 }
 0x3df   : > { %v1127_v5 = vmax.f32 %v1116_v2, %v1118_v3 }
 0x3e0   : > { %v1121_v6 = vrot.slane %v1120_v4, 4 }
 0x3e1   : > { %v1128_v7 = vrot.slane %v1127_v5, 4 }
 0x3e2   : > { %v1122_v8 = vmax.f32 %v1120_v4, %v1121_v6  ;;  %v5076_v4 = vld [vmem:[#allocation13 + $0x208] ss:$16 sps:$4 sm:$0xff]   ;;  %v5084_v6 = vld [vmem:[#allocation13 + $0x22c] ss:$16 sps:$4 sm:$0xff]  }
 0x3e3   : > { %v1129_v9 = vmax.f32 %v1127_v5, %v1128_v7 }
 0x3e4   : > { %v1123_v10 = vrot.slane %v1122_v8, 2 }
 0x3e5   : > { %v1130_v11 = vrot.slane %v1129_v9, 2 }
 0x3e6   : > { %v1124_v12 = vmax.f32 %v1122_v8, %v1123_v10  ;;  %v5079_v8 = vld [vmem:[#allocation13 + $0x220] ss:$16 sps:$4 sm:$0xff]   ;;  %v5087_v10 = vld [vmem:[#allocation13 + $0x244] ss:$16 sps:$4 sm:$0xff]  }
 0x3e7   : > { %v1131_v13 = vmax.f32 %v1129_v9, %v1130_v11  ;;  %v5082_v9 = vld [vmem:[#allocation13 + $0x228] ss:$16 sps:$4 sm:$0xff]   ;;  %v5090_v11 = vld [vmem:[#allocation13 + $0x24c] ss:$16 sps:$4 sm:$0xff]  }
 0x3e8   : > { %v1125_v14 = vrot.slane %v1124_v12, 1 }
 0x3e9   : > { %v1132_v15 = vrot.slane %v1131_v13, 1 }
 0x3ea   : > { %v1126_v16 = vmax.f32 %v1124_v12, %v1125_v14  ;;  %v5085_v12 = vld [vmem:[#allocation13 + $0x240] ss:$16 sps:$4 sm:$0xff]   ;;  %v5093_v14 = vld [vmem:[#allocation13 + $0x264] ss:$16 sps:$4 sm:$0xff]  }
 0x3eb   : > { %v1133_v17 = vmax.f32 %v1131_v13, %v1132_v15  ;;  %v5088_v13 = vld [vmem:[#allocation13 + $0x248] ss:$16 sps:$4 sm:$0xff]   ;;  %v5096_v15 = vld [vmem:[#allocation13 + $0x26c] ss:$16 sps:$4 sm:$0xff]  }
 0x3ed   : > { %v1136_v18 = vcombine.low %v1126_v16, %v1133_v17  ;;  %v5091_v16 = vld [vmem:[#allocation13 + $0x260] ss:$16 sps:$4 sm:$0xff]   ;;  %v5094_v17 = vld [vmem:[#allocation13 + $0x268] ss:$16 sps:$4 sm:$0xff]  }
 0x3ef   : > { %v1143_v19 = vrot.slane %v1136_v18, %v6255_v41  ;;  %v5099_v18 = vld [vmem:[#allocation13 + $0x284] ss:$16 sps:$4 sm:$0xff]  }
 0x3f1   : > { %v1150_v21 = vrot.slane %v1143_v19, %v6255_v41  ;;  %v5102_v19 = vld [vmem:[#allocation13 + $0x28c] ss:$16 sps:$4 sm:$0xff]  }
 0x3f3   : > { %v1152_v23 = vmax.f32 %v1119_v20, %v1150_v21  ;;  %v5097_v20 = vld [vmem:[#allocation13 + $0x280] ss:$16 sps:$4 sm:$0xff]   ;;  %v5100_v21 = vld [vmem:[#allocation13 + $0x288] ss:$16 sps:$4 sm:$0xff]  }
 0x3f5   : > { %1153 = vst.msk [vmem:[#allocation2 + $0x2] sm:$0x3] %vm6262_vm5, %v1152_v23  ;;  %v5108_v23 = vld [vmem:[#allocation13 + $0x2ac] ss:$16 sps:$4 sm:$0xff]  }
 0x3f7   : > { %v1486_v26 = vpop.f32.mrb[16].mxu1 }
 0x3f8   : > { %v1487_v27 = vadd.f32 %v1486_v26, %v1365_v24  ;;  %v1488_v28 = vpop.f32.mrb[17].mxu1  ;;  %v5111_v26 = vld [vmem:[#allocation13 + $0x2c4] ss:$16 sps:$4 sm:$0xff]  }
 0x3f9   : > { %v1489_v29 = vadd.f32 %v1488_v28, %v1369_v25  ;;  %v1490_v30 = vpop.f32.mrb[18].mxu1  ;;  %v5109_v28 = vld [vmem:[#allocation13 + $0x2c0] ss:$16 sps:$4 sm:$0xff]  }
 0x3fa   : > { %v1491_v31 = vadd.f32 %v1490_v30, %v1365_v24  ;;  %v1492_v32 = vpop.f32.mrb[19].mxu1  ;;  %v1495_v34 = vmax.f32 %v1487_v27, 0.0  ;;  %v5103_v24 = vld [vmem:[#allocation13 + $0x2a0] ss:$16 sps:$4 sm:$0xff]   ;;  %v5114_v27 = vld [vmem:[#allocation13 + $0x2cc] ss:$16 sps:$4 sm:$0xff]  }
 0x3fb   : > { %v1493_v33 = vadd.f32 %v1492_v32, %v1369_v25  ;;  %v1496_v36 = vmax.f32 %v1489_v29, 0.0  ;;  %v5106_v25 = vld [vmem:[#allocation13 + $0x2a8] ss:$16 sps:$4 sm:$0xff]   ;;  %v5117_v30 = vld [vmem:[#allocation13 + $0x2e4] ss:$16 sps:$4 sm:$0xff]  }
 0x3fc   : > { %v1497_v35 = vmax.f32 %v1491_v31, 0.0  ;;  %v5112_v29 = vld [vmem:[#allocation13 + $0x2c8] ss:$16 sps:$4 sm:$0xff]   ;;  %v5120_v31 = vld [vmem:[#allocation13 + $0x2ec] ss:$16 sps:$4 sm:$0xff]  }
 0x3fd   : > { %v1498_v42 = vmax.f32 %v1493_v33, 0.0  ;;  %v5115_v32 = vld [vmem:[#allocation13 + $0x2e0] ss:$16 sps:$4 sm:$0xff]   ;;  %v5118_v33 = vld [vmem:[#allocation13 + $0x2e8] ss:$16 sps:$4 sm:$0xff]  }
 0x3fe   : > { %v1500_v44 = vmax.f32 %v1495_v34, %v1497_v35  ;;  %v5123_v34 = vld [vmem:[#allocation13 + $0x304] ss:$16 sps:$4 sm:$0xff]   ;;  %v5126_v35 = vld [vmem:[#allocation13 + $0x30c] ss:$16 sps:$4 sm:$0xff]  }
 0x3ff   : > { %v1507_v39 = vmax.f32 %v1496_v36, %v1498_v42  ;;  %v5121_v36 = vld [vmem:[#allocation13 + $0x300] ss:$16 sps:$4 sm:$0xff]   ;;  %v5124_v42 = vld [vmem:[#allocation13 + $0x308] ss:$16 sps:$4 sm:$0xff]  }
 0x400   : > { %v1501_v45 = vrot.slane %v1500_v44, 4 }
 0x401   : > { %v1508_v46 = vrot.slane %v1507_v39, 4 }
 0x402   : > { %v1502_v47 = vmax.f32 %v1500_v44, %v1501_v45  ;;  %v5129_v44 = vld [vmem:[#allocation13 + $0x324] ss:$16 sps:$4 sm:$0xff]   ;;  %v5127_v45 = vld [vmem:[#allocation13 + $0x320] ss:$16 sps:$4 sm:$0xff]  }
 0x403   : > { %v1509_v48 = vmax.f32 %v1507_v39, %v1508_v46  ;;  %v5132_v39 = vld [vmem:[#allocation13 + $0x32c] ss:$16 sps:$4 sm:$0xff]   ;;  %v5130_v46 = vld [vmem:[#allocation13 + $0x328] ss:$16 sps:$4 sm:$0xff]  }
 0x404   : > { %v1503_v49 = vrot.slane %v1502_v47, 2 }
 0x405   : > { %v1510_v50 = vrot.slane %v1509_v48, 2 }
 0x406   : > { %v1504_v51 = vmax.f32 %v1502_v47, %v1503_v49  ;;  %v5135_v47 = vld [vmem:[#allocation13 + $0x344] ss:$16 sps:$4 sm:$0xff]   ;;  %v5133_v49 = vld [vmem:[#allocation13 + $0x340] ss:$16 sps:$4 sm:$0xff]  }
 0x407   : > { %v1511_v53 = vmax.f32 %v1509_v48, %v1510_v50  ;;  %v5138_v48 = vld [vmem:[#allocation13 + $0x34c] ss:$16 sps:$4 sm:$0xff]   ;;  %v5136_v50 = vld [vmem:[#allocation13 + $0x348] ss:$16 sps:$4 sm:$0xff]  }
 0x408   : > { %v1505_v54 = vrot.slane %v1504_v51, 1 }
 0x409   : > { %v1512_v55 = vrot.slane %v1511_v53, 1 }
 0x40a   : > { %v1506_v56 = vmax.f32 %v1504_v51, %v1505_v54  ;;  %v5141_v51 = vld [vmem:[#allocation13 + $0x364] ss:$16 sps:$4 sm:$0xff]   ;;  %v5139_v54 = vld [vmem:[#allocation13 + $0x360] ss:$16 sps:$4 sm:$0xff]  }
 0x40b   : > { %v1513_v57 = vmax.f32 %v1511_v53, %v1512_v55  ;;  %v5144_v53 = vld [vmem:[#allocation13 + $0x36c] ss:$16 sps:$4 sm:$0xff]   ;;  %v5142_v55 = vld [vmem:[#allocation13 + $0x368] ss:$16 sps:$4 sm:$0xff]  }
 0x40d   : > { %v1516_v58 = vcombine.low %v1506_v56, %v1513_v57  ;;  %v5147_v56 = vld [vmem:[#allocation13 + $0x384] ss:$16 sps:$4 sm:$0xff]   ;;  %v5150_v57 = vld [vmem:[#allocation13 + $0x38c] ss:$16 sps:$4 sm:$0xff]  }
 0x40f   : > { %v1523_v59 = vrot.slane %v1516_v58, %v6255_v41  ;;  %v5145_v58 = vld [vmem:[#allocation13 + $0x380] ss:$16 sps:$4 sm:$0xff]  }
 0x411   : > { %v1530_v37 = vrot.slane %v1523_v59, %v6255_v41  ;;  %v5073_v41 = vld [vmem:[#allocation13 + $0x200] ss:$16 sps:$4 sm:$0xff]   ;;  %v5148_v59 = vld [vmem:[#allocation13 + $0x388] ss:$16 sps:$4 sm:$0xff]  }
 0x413   : > { %v1532_v61 = vmax.f32 %v1499_v60, %v1530_v37  ;;  %v5153_v60 = vld [vmem:[#allocation13 + $0x3a4] ss:$16 sps:$4 sm:$0xff]   ;;  %v5156_v37 = vld [vmem:[#allocation13 + $0x3ac] ss:$16 sps:$4 sm:$0xff]  }
 0x415   : > { %1533 = vst.msk [vmem:[#allocation2 + $0x6] sm:$0x3] %vm6262_vm5, %v1532_v61  ;;  %v5151_v61 = vld [vmem:[#allocation13 + $0x3a0] ss:$16 sps:$4 sm:$0xff]  }
 0x41c   : > { %v6283_v63 = vld [vmem:[#allocation2] sm:$0xff] }
 0x41d   : > { %v1546_v0 = vrot.slane %v6283_v63, %v6248_v43  ;;  %v1542_v1 = vrot.slane %v6283_v63, %v6245_v40  ;;  %v1554_v2 = vrot.slane %v6283_v63, %v1553_v62 }
 0x41f   : > { %v1580_v3 = vpack.c.bf16 %v1546_v0, %v1546_v0  ;;  %v1579_v5 = vpack.c.bf16 %v1542_v1, %v1542_v1  ;;  %v1582_v7 = vpack.c.bf16 %v1554_v2, %v1554_v2  ;;  %v5154_v0 = vld [vmem:[#allocation13 + $0x3a8] ss:$16 sps:$4 sm:$0xff]   ;;  %v5159_v1 = vld [vmem:[#allocation13 + $0x3c4] ss:$16 sps:$4 sm:$0xff]   ;;  %v5162_v2 = vld [vmem:[#allocation13 + $0x3cc] ss:$16 sps:$4 sm:$0xff]  }
 0x421   : > { %3177 = vmatprep.mubr.bf16.mxu0 %v1580_v3  ;;  %3341 = vmatprep.mubr.bf16.mxu1 %v1580_v3  ;;  %v5157_v3 = vld [vmem:[#allocation13 + $0x3c0] ss:$16 sps:$4 sm:$0xff]  }
 0x422   : > { %3178 = vmatmul.mubr.bf16.vlgmr.msra.gmra.mrb[4].mxu0 %v1579_v5  ;;  %3342 = vmatmul.mubr.bf16.vlgmr.msra.gmra.mrb[20].mxu1 %v1579_v5  ;;  %v5168_v5 = vld [vmem:[#allocation13 + $0x3ec] ss:$16 sps:$4 sm:$0xff]  }
 0x423   : > { %3187 = vmatpush1.bf16.msra.mxu0 %v5073_v41  ;;  %3351 = vmatpush1.bf16.msra.mxu1 %v5076_v4  ;;  %v5160_v41 = vld [vmem:[#allocation13 + $0x3c8] ss:$16 sps:$4 sm:$0xff]   ;;  %v5165_v4 = vld [vmem:[#allocation13 + $0x3e4] ss:$16 sps:$4 sm:$0xff]  }
 0x424   : > { %3218 = vmatprep.mubr.bf16.mxu0 %v1582_v7  ;;  %3382 = vmatprep.mubr.bf16.mxu1 %v1582_v7  ;;  %v5163_v7 = vld [vmem:[#allocation13 + $0x3e0] ss:$16 sps:$4 sm:$0xff]  }
 0x425   : > { %3188 = vmatprep.subr.bf16.mxu0 %v5081_v52  ;;  %3352 = vmatprep.subr.bf16.mxu1 %v5084_v6  ;;  %v1549_v52 = vsub.s32 2, %v6242_v38  ;;  %v1561_v6 = vsub.s32 5, %v6242_v38 }
 0x427   : > { %3189 = vmatpush1.bf16.msra.mxu0 %v5079_v8  ;;  %3353 = vmatpush1.bf16.msra.mxu1 %v5082_v9  ;;  %v5166_v8 = vld [vmem:[#allocation13 + $0x3e8] ss:$16 sps:$4 sm:$0xff]   ;;  %v1550_v9 = vrot.slane %v6283_v63, %v1549_v52 }
 0x428   : > { %3190 = vmatprep.subr.bf16.mxu0 %v5087_v10  ;;  %3354 = vmatprep.subr.bf16.mxu1 %v5090_v11  ;;  %v5171_v10 = vld [vmem:[#allocation13 + $0x404] ss:$16 sps:$4 sm:$0xff]   ;;  %v5174_v11 = vld [vmem:[#allocation13 + $0x40c] ss:$16 sps:$4 sm:$0xff]  }
 0x42b   : > { %3191 = vmatpush1.bf16.msra.mxu0 %v5085_v12  ;;  %3355 = vmatpush1.bf16.msra.mxu1 %v5088_v13  ;;  %v1562_v12 = vrot.slane %v6283_v63, %v1561_v6  ;;  %v5169_v13 = vld [vmem:[#allocation13 + $0x400] ss:$16 sps:$4 sm:$0xff]   ;;  %v5244_v6 = vld [vmem:[#allocation13 + $0x588] ss:$16 sps:$4 sm:$0xff]  }
 0x42c   : > { %3192 = vmatprep.subr.bf16.mxu0 %v5093_v14  ;;  %3356 = vmatprep.subr.bf16.mxu1 %v5096_v15  ;;  %v1581_v14 = vpack.c.bf16 %v1550_v9, %v1550_v9  ;;  %v5172_v15 = vld [vmem:[#allocation13 + $0x408] ss:$16 sps:$4 sm:$0xff]   ;;  %v5247_v9 = vld [vmem:[#allocation13 + $0x5a0] ss:$16 sps:$4 sm:$0xff]  }
 0x42f   : > { %3193 = vmatpush1.bf16.msra.mxu0 %v5091_v16  ;;  %3357 = vmatpush1.bf16.msra.mxu1 %v5094_v17  ;;  %v1584_v16 = vpack.c.bf16 %v1562_v12, %v1562_v12  ;;  %v5177_v17 = vld [vmem:[#allocation13 + $0x424] ss:$16 sps:$4 sm:$0xff]   ;;  %v5258_v12 = vld [vmem:[#allocation13 + $0x5cc] ss:$16 sps:$4 sm:$0xff]  }
 0x430   : > { %3194 = vmatprep.subr.bf16.mxu0 %v5099_v18  ;;  %3358 = vmatprep.subr.bf16.mxu1 %v5102_v19  ;;  %v5180_v18 = vld [vmem:[#allocation13 + $0x42c] ss:$16 sps:$4 sm:$0xff]   ;;  %v5175_v19 = vld [vmem:[#allocation13 + $0x420] ss:$16 sps:$4 sm:$0xff]  }
 0x433   : > { %3195 = vmatpush1.bf16.msra.mxu0 %v5097_v20  ;;  %3359 = vmatpush1.bf16.msra.mxu1 %v5100_v21  ;;  %v5178_v20 = vld [vmem:[#allocation13 + $0x428] ss:$16 sps:$4 sm:$0xff]   ;;  %v5183_v21 = vld [vmem:[#allocation13 + $0x444] ss:$16 sps:$4 sm:$0xff]  }
 0x434   : > { %3196 = vmatprep.subr.bf16.mxu0 %v5105_v22  ;;  %3360 = vmatprep.subr.bf16.mxu1 %v5108_v23  ;;  %v5186_v22 = vld [vmem:[#allocation13 + $0x44c] ss:$16 sps:$4 sm:$0xff]   ;;  %v5181_v23 = vld [vmem:[#allocation13 + $0x440] ss:$16 sps:$4 sm:$0xff]  }
 0x437   : > { %3197 = vmatpush1.bf16.msra.mxu0 %v5103_v24  ;;  %3361 = vmatpush1.bf16.msra.mxu1 %v5106_v25  ;;  %v5184_v24 = vld [vmem:[#allocation13 + $0x448] ss:$16 sps:$4 sm:$0xff]   ;;  %v5189_v25 = vld [vmem:[#allocation13 + $0x464] ss:$16 sps:$4 sm:$0xff]  }
 0x438   : > { %3198 = vmatprep.subr.bf16.mxu0 %v5111_v26  ;;  %3362 = vmatprep.subr.bf16.mxu1 %v5114_v27  ;;  %v5192_v26 = vld [vmem:[#allocation13 + $0x46c] ss:$16 sps:$4 sm:$0xff]   ;;  %v5187_v27 = vld [vmem:[#allocation13 + $0x460] ss:$16 sps:$4 sm:$0xff]  }
 0x43b   : > { %3199 = vmatpush1.bf16.msra.mxu0 %v5109_v28  ;;  %3363 = vmatpush1.bf16.msra.mxu1 %v5112_v29  ;;  %v5190_v28 = vld [vmem:[#allocation13 + $0x468] ss:$16 sps:$4 sm:$0xff]   ;;  %v5195_v29 = vld [vmem:[#allocation13 + $0x484] ss:$16 sps:$4 sm:$0xff]  }
 0x43c   : > { %3200 = vmatprep.subr.bf16.mxu0 %v5117_v30  ;;  %3364 = vmatprep.subr.bf16.mxu1 %v5120_v31  ;;  %v5198_v30 = vld [vmem:[#allocation13 + $0x48c] ss:$16 sps:$4 sm:$0xff]   ;;  %v5193_v31 = vld [vmem:[#allocation13 + $0x480] ss:$16 sps:$4 sm:$0xff]  }
 0x43f   : > { %3201 = vmatpush1.bf16.msra.mxu0 %v5115_v32  ;;  %3365 = vmatpush1.bf16.msra.mxu1 %v5118_v33  ;;  %v5196_v32 = vld [vmem:[#allocation13 + $0x488] ss:$16 sps:$4 sm:$0xff]   ;;  %v5201_v33 = vld [vmem:[#allocation13 + $0x4a4] ss:$16 sps:$4 sm:$0xff]  }
 0x440   : > { %3202 = vmatprep.subr.bf16.mxu0 %v5123_v34  ;;  %3366 = vmatprep.subr.bf16.mxu1 %v5126_v35  ;;  %v5204_v34 = vld [vmem:[#allocation13 + $0x4ac] ss:$16 sps:$4 sm:$0xff]   ;;  %v5199_v35 = vld [vmem:[#allocation13 + $0x4a0] ss:$16 sps:$4 sm:$0xff]  }
 0x443   : > { %3203 = vmatpush1.bf16.msra.mxu0 %v5121_v36  ;;  %3367 = vmatpush1.bf16.msra.mxu1 %v5124_v42  ;;  %v5202_v36 = vld [vmem:[#allocation13 + $0x4a8] ss:$16 sps:$4 sm:$0xff]   ;;  %v5207_v42 = vld [vmem:[#allocation13 + $0x4c4] ss:$16 sps:$4 sm:$0xff]  }
 0x444   : > { %3204 = vmatprep.subr.bf16.mxu0 %v5129_v44  ;;  %3368 = vmatprep.subr.bf16.mxu1 %v5132_v39  ;;  %v5210_v44 = vld [vmem:[#allocation13 + $0x4cc] ss:$16 sps:$4 sm:$0xff]   ;;  %v5205_v39 = vld [vmem:[#allocation13 + $0x4c0] ss:$16 sps:$4 sm:$0xff]  }
 0x447   : > { %3205 = vmatpush1.bf16.msra.mxu0 %v5127_v45  ;;  %3369 = vmatpush1.bf16.msra.mxu1 %v5130_v46  ;;  %v5208_v45 = vld [vmem:[#allocation13 + $0x4c8] ss:$16 sps:$4 sm:$0xff]   ;;  %v5213_v46 = vld [vmem:[#allocation13 + $0x4e4] ss:$16 sps:$4 sm:$0xff]  }
 0x448   : > { %3206 = vmatprep.subr.bf16.mxu0 %v5135_v47  ;;  %3370 = vmatprep.subr.bf16.mxu1 %v5138_v48  ;;  %v5216_v47 = vld [vmem:[#allocation13 + $0x4ec] ss:$16 sps:$4 sm:$0xff]   ;;  %v5211_v48 = vld [vmem:[#allocation13 + $0x4e0] ss:$16 sps:$4 sm:$0xff]  }
 0x44b   : > { %3207 = vmatpush1.bf16.msra.mxu0 %v5133_v49  ;;  %3371 = vmatpush1.bf16.msra.mxu1 %v5136_v50  ;;  %v5214_v49 = vld [vmem:[#allocation13 + $0x4e8] ss:$16 sps:$4 sm:$0xff]   ;;  %v5219_v50 = vld [vmem:[#allocation13 + $0x504] ss:$16 sps:$4 sm:$0xff]  }
 0x44c   : > { %3208 = vmatprep.subr.bf16.mxu0 %v5141_v51  ;;  %3372 = vmatprep.subr.bf16.mxu1 %v5144_v53  ;;  %v5222_v51 = vld [vmem:[#allocation13 + $0x50c] ss:$16 sps:$4 sm:$0xff]   ;;  %v5217_v53 = vld [vmem:[#allocation13 + $0x500] ss:$16 sps:$4 sm:$0xff]  }
 0x44f   : > { %3209 = vmatpush1.bf16.msra.mxu0 %v5139_v54  ;;  %3373 = vmatpush1.bf16.msra.mxu1 %v5142_v55  ;;  %v5220_v54 = vld [vmem:[#allocation13 + $0x508] ss:$16 sps:$4 sm:$0xff]   ;;  %v5225_v55 = vld [vmem:[#allocation13 + $0x524] ss:$16 sps:$4 sm:$0xff]  }
 0x450   : > { %3210 = vmatprep.subr.bf16.mxu0 %v5147_v56  ;;  %3374 = vmatprep.subr.bf16.mxu1 %v5150_v57  ;;  %v5228_v56 = vld [vmem:[#allocation13 + $0x52c] ss:$16 sps:$4 sm:$0xff]   ;;  %v5223_v57 = vld [vmem:[#allocation13 + $0x520] ss:$16 sps:$4 sm:$0xff]  }
 0x453   : > { %3211 = vmatpush1.bf16.msra.mxu0 %v5145_v58  ;;  %3375 = vmatpush1.bf16.msra.mxu1 %v5148_v59  ;;  %v5226_v58 = vld [vmem:[#allocation13 + $0x528] ss:$16 sps:$4 sm:$0xff]   ;;  %v5231_v59 = vld [vmem:[#allocation13 + $0x544] ss:$16 sps:$4 sm:$0xff]  }
 0x454   : > { %3212 = vmatprep.subr.bf16.mxu0 %v5153_v60  ;;  %3376 = vmatprep.subr.bf16.mxu1 %v5156_v37  ;;  %v5234_v60 = vld [vmem:[#allocation13 + $0x54c] ss:$16 sps:$4 sm:$0xff]   ;;  %v5229_v37 = vld [vmem:[#allocation13 + $0x540] ss:$16 sps:$4 sm:$0xff]  }
 0x457   : > { %3213 = vmatpush1.bf16.msra.mxu0 %v5151_v61  ;;  %3377 = vmatpush1.bf16.msra.mxu1 %v5154_v0  ;;  %v5232_v61 = vld [vmem:[#allocation13 + $0x548] ss:$16 sps:$4 sm:$0xff]   ;;  %v5237_v0 = vld [vmem:[#allocation13 + $0x564] ss:$16 sps:$4 sm:$0xff]  }
 0x458   : > { %3214 = vmatprep.subr.bf16.mxu0 %v5159_v1  ;;  %3378 = vmatprep.subr.bf16.mxu1 %v5162_v2  ;;  %v5240_v1 = vld [vmem:[#allocation13 + $0x56c] ss:$16 sps:$4 sm:$0xff]   ;;  %v5235_v2 = vld [vmem:[#allocation13 + $0x560] ss:$16 sps:$4 sm:$0xff]  }
 0x45b   : > { %3215 = vmatpush1.bf16.msra.mxu0 %v5157_v3  ;;  %3379 = vmatpush1.bf16.msra.mxu1 %v5160_v41  ;;  %v5238_v3 = vld [vmem:[#allocation13 + $0x568] ss:$16 sps:$4 sm:$0xff]   ;;  %v5243_v41 = vld [vmem:[#allocation13 + $0x584] ss:$16 sps:$4 sm:$0xff]  }
 0x45c   : > { %3216 = vmatprep.subr.bf16.mxu0 %v5165_v4  ;;  %3380 = vmatprep.subr.bf16.mxu1 %v5168_v5  ;;  %v5246_v4 = vld [vmem:[#allocation13 + $0x58c] ss:$16 sps:$4 sm:$0xff]   ;;  %v5241_v5 = vld [vmem:[#allocation13 + $0x580] ss:$16 sps:$4 sm:$0xff]  }
 0x45f   : > { %3217 = vmatpush1.bf16.msra.mxu0 %v5163_v7  ;;  %3381 = vmatpush1.bf16.msra.mxu1 %v5166_v8  ;;  %v5249_v7 = vld [vmem:[#allocation13 + $0x5a4] ss:$16 sps:$4 sm:$0xff]   ;;  %v5252_v8 = vld [vmem:[#allocation13 + $0x5ac] ss:$16 sps:$4 sm:$0xff]  }
 0x460   : > { %3227 = vmatprep.subr.bf16.mxu0 %v5171_v10  ;;  %3391 = vmatprep.subr.bf16.mxu1 %v5174_v11  ;;  %v5250_v10 = vld [vmem:[#allocation13 + $0x5a8] ss:$16 sps:$4 sm:$0xff]   ;;  %v5255_v11 = vld [vmem:[#allocation13 + $0x5c4] ss:$16 sps:$4 sm:$0xff]  }
 0x462   : > { %3219 = vmatmul.mubr.bf16.vlgmr.msra.gmra.mrb[4].mxu0 %v1581_v14  ;;  %3383 = vmatmul.mubr.bf16.vlgmr.msra.gmra.mrb[20].mxu1 %v1581_v14  ;;  %v5256_v14 = vld [vmem:[#allocation13 + $0x5c8] ss:$16 sps:$4 sm:$0xff]  }
 0x463   : > { %3228 = vmatpush1.bf16.msra.mxu0 %v5169_v13  ;;  %3259 = vmatprep.mubr.bf16.mxu0 %v1584_v16  ;;  %v5253_v13 = vld [vmem:[#allocation13 + $0x5c0] ss:$16 sps:$4 sm:$0xff]  }
 0x464   : > { %3392 = vmatpush1.bf16.msra.mxu1 %v5172_v15  ;;  %3423 = vmatprep.mubr.bf16.mxu1 %v1584_v16  ;;  %v5261_v15 = vld [vmem:[#allocation13 + $0x5e4] ss:$16 sps:$4 sm:$0xff]   ;;  %v1557_v16 = vsub.s32 4, %v6242_v38 }
 0x465   : > { %3229 = vmatprep.subr.bf16.mxu0 %v5177_v17  ;;  %3393 = vmatprep.subr.bf16.mxu1 %v5180_v18  ;;  %v5264_v17 = vld [vmem:[#allocation13 + $0x5ec] ss:$16 sps:$4 sm:$0xff]   ;;  %v1569_v18 = vsub.s32 7, %v6242_v38 }
 0x467   : > { %3230 = vmatpush1.bf16.msra.mxu0 %v5175_v19  ;;  %v5259_v19 = vld [vmem:[#allocation13 + $0x5e0] ss:$16 sps:$4 sm:$0xff]  }
 0x468   : > { %3394 = vmatpush1.bf16.msra.mxu1 %v5178_v20  ;;  %3231 = vmatprep.subr.bf16.mxu0 %v5183_v21  ;;  %v5262_v20 = vld [vmem:[#allocation13 + $0x5e8] ss:$16 sps:$4 sm:$0xff]   ;;  %v1558_v21 = vrot.slane %v6283_v63, %v1557_v16  ;;  %v5342_v16 = vld [vmem:[#allocation13 + $0x78c] ss:$16 sps:$4 sm:$0xff]  }
 0x469   : > { %3395 = vmatprep.subr.bf16.mxu1 %v5186_v22  ;;  %v5267_v22 = vld [vmem:[#allocation13 + $0x604] ss:$16 sps:$4 sm:$0xff]  }
 0x46b   : > { %3232 = vmatpush1.bf16.msra.mxu0 %v5181_v23  ;;  %v5270_v23 = vld [vmem:[#allocation13 + $0x60c] ss:$16 sps:$4 sm:$0xff]  }
 0x46c   : > { %3396 = vmatpush1.bf16.msra.mxu1 %v5184_v24  ;;  %3233 = vmatprep.subr.bf16.mxu0 %v5189_v25  ;;  %v1570_v24 = vrot.slane %v6283_v63, %v1569_v18  ;;  %v5265_v25 = vld [vmem:[#allocation13 + $0x600] ss:$16 sps:$4 sm:$0xff]   ;;  %v5340_v18 = vld [vmem:[#allocation13 + $0x788] ss:$16 sps:$4 sm:$0xff]  }
 0x46d   : > { %3397 = vmatprep.subr.bf16.mxu1 %v5192_v26  ;;  %v1583_v26 = vpack.c.bf16 %v1558_v21, %v1558_v21  ;;  %v5343_v21 = vld [vmem:[#allocation13 + $0x7a0] ss:$16 sps:$4 sm:$0xff]  }
 0x46f   : > { %3234 = vmatpush1.bf16.msra.mxu0 %v5187_v27  ;;  %v5268_v27 = vld [vmem:[#allocation13 + $0x608] ss:$16 sps:$4 sm:$0xff]  }
 0x470   : > { %3398 = vmatpush1.bf16.msra.mxu1 %v5190_v28  ;;  %3235 = vmatprep.subr.bf16.mxu0 %v5195_v29  ;;  %v5273_v28 = vld [vmem:[#allocation13 + $0x624] ss:$16 sps:$4 sm:$0xff]   ;;  %v1586_v29 = vpack.c.bf16 %v1570_v24, %v1570_v24  ;;  %v5354_v24 = vld [vmem:[#allocation13 + $0x7cc] ss:$16 sps:$4 sm:$0xff]  }
 0x471   : > { %3399 = vmatprep.subr.bf16.mxu1 %v5198_v30  ;;  %v5276_v30 = vld [vmem:[#allocation13 + $0x62c] ss:$16 sps:$4 sm:$0xff]  }
 0x473   : > { %3236 = vmatpush1.bf16.msra.mxu0 %v5193_v31  ;;  %v5271_v31 = vld [vmem:[#allocation13 + $0x620] ss:$16 sps:$4 sm:$0xff]  }
 0x474   : > { %3400 = vmatpush1.bf16.msra.mxu1 %v5196_v32  ;;  %3237 = vmatprep.subr.bf16.mxu0 %v5201_v33  ;;  %v5274_v32 = vld [vmem:[#allocation13 + $0x628] ss:$16 sps:$4 sm:$0xff]   ;;  %v5279_v33 = vld [vmem:[#allocation13 + $0x644] ss:$16 sps:$4 sm:$0xff]  }
 0x475   : > { %3401 = vmatprep.subr.bf16.mxu1 %v5204_v34  ;;  %v5282_v34 = vld [vmem:[#allocation13 + $0x64c] ss:$16 sps:$4 sm:$0xff]  }
 0x477   : > { %3238 = vmatpush1.bf16.msra.mxu0 %v5199_v35  ;;  %v5277_v35 = vld [vmem:[#allocation13 + $0x640] ss:$16 sps:$4 sm:$0xff]  }
 0x478   : > { %3402 = vmatpush1.bf16.msra.mxu1 %v5202_v36  ;;  %3239 = vmatprep.subr.bf16.mxu0 %v5207_v42  ;;  %v5280_v36 = vld [vmem:[#allocation13 + $0x648] ss:$16 sps:$4 sm:$0xff]   ;;  %v5285_v42 = vld [vmem:[#allocation13 + $0x664] ss:$16 sps:$4 sm:$0xff]  }
 0x479   : > { %3403 = vmatprep.subr.bf16.mxu1 %v5210_v44  ;;  %v5288_v44 = vld [vmem:[#allocation13 + $0x66c] ss:$16 sps:$4 sm:$0xff]  }
 0x47b   : > { %3240 = vmatpush1.bf16.msra.mxu0 %v5205_v39  ;;  %v5283_v39 = vld [vmem:[#allocation13 + $0x660] ss:$16 sps:$4 sm:$0xff]  }
 0x47c   : > { %3404 = vmatpush1.bf16.msra.mxu1 %v5208_v45  ;;  %3241 = vmatprep.subr.bf16.mxu0 %v5213_v46  ;;  %v5286_v45 = vld [vmem:[#allocation13 + $0x668] ss:$16 sps:$4 sm:$0xff]   ;;  %v5291_v46 = vld [vmem:[#allocation13 + $0x684] ss:$16 sps:$4 sm:$0xff]  }
 0x47d   : > { %3405 = vmatprep.subr.bf16.mxu1 %v5216_v47  ;;  %v5294_v47 = vld [vmem:[#allocation13 + $0x68c] ss:$16 sps:$4 sm:$0xff]  }
 0x47f   : > { %3242 = vmatpush1.bf16.msra.mxu0 %v5211_v48  ;;  %v5289_v48 = vld [vmem:[#allocation13 + $0x680] ss:$16 sps:$4 sm:$0xff]  }
 0x480   : > { %3406 = vmatpush1.bf16.msra.mxu1 %v5214_v49  ;;  %3243 = vmatprep.subr.bf16.mxu0 %v5219_v50  ;;  %v5292_v49 = vld [vmem:[#allocation13 + $0x688] ss:$16 sps:$4 sm:$0xff]   ;;  %v5297_v50 = vld [vmem:[#allocation13 + $0x6a4] ss:$16 sps:$4 sm:$0xff]  }
 0x481   : > { %3407 = vmatprep.subr.bf16.mxu1 %v5222_v51  ;;  %v5300_v51 = vld [vmem:[#allocation13 + $0x6ac] ss:$16 sps:$4 sm:$0xff]  }
 0x483   : > { %3244 = vmatpush1.bf16.msra.mxu0 %v5217_v53  ;;  %v5295_v53 = vld [vmem:[#allocation13 + $0x6a0] ss:$16 sps:$4 sm:$0xff]  }
 0x484   : > { %3408 = vmatpush1.bf16.msra.mxu1 %v5220_v54  ;;  %3245 = vmatprep.subr.bf16.mxu0 %v5225_v55  ;;  %v5298_v54 = vld [vmem:[#allocation13 + $0x6a8] ss:$16 sps:$4 sm:$0xff]   ;;  %v5303_v55 = vld [vmem:[#allocation13 + $0x6c4] ss:$16 sps:$4 sm:$0xff]  }
 0x485   : > { %3409 = vmatprep.subr.bf16.mxu1 %v5228_v56  ;;  %v5306_v56 = vld [vmem:[#allocation13 + $0x6cc] ss:$16 sps:$4 sm:$0xff]  }
 0x487   : > { %3246 = vmatpush1.bf16.msra.mxu0 %v5223_v57  ;;  %v5301_v57 = vld [vmem:[#allocation13 + $0x6c0] ss:$16 sps:$4 sm:$0xff]  }
 0x488   : > { %3410 = vmatpush1.bf16.msra.mxu1 %v5226_v58  ;;  %3247 = vmatprep.subr.bf16.mxu0 %v5231_v59  ;;  %v5304_v58 = vld [vmem:[#allocation13 + $0x6c8] ss:$16 sps:$4 sm:$0xff]   ;;  %v5309_v59 = vld [vmem:[#allocation13 + $0x6e4] ss:$16 sps:$4 sm:$0xff]  }
 0x489   : > { %3411 = vmatprep.subr.bf16.mxu1 %v5234_v60  ;;  %v5312_v60 = vld [vmem:[#allocation13 + $0x6ec] ss:$16 sps:$4 sm:$0xff]  }
 0x48b   : > { %3248 = vmatpush1.bf16.msra.mxu0 %v5229_v37  ;;  %v5307_v37 = vld [vmem:[#allocation13 + $0x6e0] ss:$16 sps:$4 sm:$0xff]  }
 0x48c   : > { %3412 = vmatpush1.bf16.msra.mxu1 %v5232_v61  ;;  %3249 = vmatprep.subr.bf16.mxu0 %v5237_v0  ;;  %v5310_v61 = vld [vmem:[#allocation13 + $0x6e8] ss:$16 sps:$4 sm:$0xff]   ;;  %v5315_v0 = vld [vmem:[#allocation13 + $0x704] ss:$16 sps:$4 sm:$0xff]  }
 0x48d   : > { %3413 = vmatprep.subr.bf16.mxu1 %v5240_v1  ;;  %v5318_v1 = vld [vmem:[#allocation13 + $0x70c] ss:$16 sps:$4 sm:$0xff]  }
 0x48f   : > { %3250 = vmatpush1.bf16.msra.mxu0 %v5235_v2  ;;  %v5313_v2 = vld [vmem:[#allocation13 + $0x700] ss:$16 sps:$4 sm:$0xff]  }
 0x490   : > { %3414 = vmatpush1.bf16.msra.mxu1 %v5238_v3  ;;  %3251 = vmatprep.subr.bf16.mxu0 %v5243_v41  ;;  %v5316_v3 = vld [vmem:[#allocation13 + $0x708] ss:$16 sps:$4 sm:$0xff]   ;;  %v5321_v41 = vld [vmem:[#allocation13 + $0x724] ss:$16 sps:$4 sm:$0xff]  }
 0x491   : > { %3415 = vmatprep.subr.bf16.mxu1 %v5246_v4  ;;  %v5324_v4 = vld [vmem:[#allocation13 + $0x72c] ss:$16 sps:$4 sm:$0xff]  }
 0x493   : > { %3252 = vmatpush1.bf16.msra.mxu0 %v5241_v5  ;;  %v5319_v5 = vld [vmem:[#allocation13 + $0x720] ss:$16 sps:$4 sm:$0xff]  }
 0x494   : > { %3416 = vmatpush1.bf16.msra.mxu1 %v5244_v6  ;;  %3253 = vmatprep.subr.bf16.mxu0 %v5249_v7  ;;  %v5322_v6 = vld [vmem:[#allocation13 + $0x728] ss:$16 sps:$4 sm:$0xff]   ;;  %v5327_v7 = vld [vmem:[#allocation13 + $0x744] ss:$16 sps:$4 sm:$0xff]  }
 0x495   : > { %3417 = vmatprep.subr.bf16.mxu1 %v5252_v8  ;;  %v5330_v8 = vld [vmem:[#allocation13 + $0x74c] ss:$16 sps:$4 sm:$0xff]  }
 0x497   : > { %3254 = vmatpush1.bf16.msra.mxu0 %v5247_v9  ;;  %v5325_v9 = vld [vmem:[#allocation13 + $0x740] ss:$16 sps:$4 sm:$0xff]  }
 0x498   : > { %3418 = vmatpush1.bf16.msra.mxu1 %v5250_v10  ;;  %3255 = vmatprep.subr.bf16.mxu0 %v5255_v11  ;;  %v5328_v10 = vld [vmem:[#allocation13 + $0x748] ss:$16 sps:$4 sm:$0xff]   ;;  %v5333_v11 = vld [vmem:[#allocation13 + $0x764] ss:$16 sps:$4 sm:$0xff]  }
 0x499   : > { %3419 = vmatprep.subr.bf16.mxu1 %v5258_v12  ;;  %v5336_v12 = vld [vmem:[#allocation13 + $0x76c] ss:$16 sps:$4 sm:$0xff]  }
 0x49b   : > { %3256 = vmatpush1.bf16.msra.mxu0 %v5253_v13  ;;  %v5331_v13 = vld [vmem:[#allocation13 + $0x760] ss:$16 sps:$4 sm:$0xff]  }
 0x49c   : > { %3420 = vmatpush1.bf16.msra.mxu1 %v5256_v14  ;;  %3257 = vmatprep.subr.bf16.mxu0 %v5261_v15  ;;  %v5334_v14 = vld [vmem:[#allocation13 + $0x768] ss:$16 sps:$4 sm:$0xff]   ;;  %v5339_v15 = vld [vmem:[#allocation13 + $0x784] ss:$16 sps:$4 sm:$0xff]  }
 0x49d   : > { %3421 = vmatprep.subr.bf16.mxu1 %v5264_v17  ;;  %v5337_v17 = vld [vmem:[#allocation13 + $0x780] ss:$16 sps:$4 sm:$0xff]  }
 0x49f   : > { %3258 = vmatpush1.bf16.msra.mxu0 %v5259_v19  ;;  %v5345_v19 = vld [vmem:[#allocation13 + $0x7a4] ss:$16 sps:$4 sm:$0xff]  }
 0x4a0   : > { %3422 = vmatpush1.bf16.msra.mxu1 %v5262_v20  ;;  %3268 = vmatprep.subr.bf16.mxu0 %v5267_v22  ;;  %v5348_v20 = vld [vmem:[#allocation13 + $0x7ac] ss:$16 sps:$4 sm:$0xff]   ;;  %v5346_v22 = vld [vmem:[#allocation13 + $0x7a8] ss:$16 sps:$4 sm:$0xff]  }
 0x4a1   : > { %3432 = vmatprep.subr.bf16.mxu1 %v5270_v23  ;;  %v5351_v23 = vld [vmem:[#allocation13 + $0x7c4] ss:$16 sps:$4 sm:$0xff]  }
 0x4a2   : > { %3260 = vmatmul.mubr.bf16.vlgmr.msra.gmra.mrb[4].mxu0 %v1583_v26 }
 0x4a3   : > { %3424 = vmatmul.mubr.bf16.vlgmr.msra.gmra.mrb[20].mxu1 %v1583_v26  ;;  %3269 = vmatpush1.bf16.msra.mxu0 %v5265_v25  ;;  %v5349_v25 = vld [vmem:[#allocation13 + $0x7c0] ss:$16 sps:$4 sm:$0xff]   ;;  %v5352_v26 = vld [vmem:[#allocation13 + $0x7c8] ss:$16 sps:$4 sm:$0xff]  }
 0x4a4   : > { %3300 = vmatprep.mubr.bf16.mxu0 %v1586_v29  ;;  %3433 = vmatpush1.bf16.msra.mxu1 %v5268_v27  ;;  %v5357_v27 = vld [vmem:[#allocation13 + $0x7e4] ss:$16 sps:$4 sm:$0xff]  }
 0x4a5   : > { %3464 = vmatprep.mubr.bf16.mxu1 %v1586_v29  ;;  %3270 = vmatprep.subr.bf16.mxu0 %v5273_v28  ;;  %v1565_v28 = vsub.s32 6, %v6242_v38  ;;  %v5360_v29 = vld [vmem:[#allocation13 + $0x7ec] ss:$16 sps:$4 sm:$0xff]  }
 0x4a6   : > { %3434 = vmatprep.subr.bf16.mxu1 %v5276_v30  ;;  %v5355_v30 = vld [vmem:[#allocation13 + $0x7e0] ss:$16 sps:$4 sm:$0xff]  }
 0x4a7   : > { %3271 = vmatpush1.bf16.msra.mxu0 %v5271_v31  ;;  %v5358_v31 = vld [vmem:[#allocation13 + $0x7e8] ss:$16 sps:$4 sm:$0xff]  }
 0x4a8   : > { %3435 = vmatpush1.bf16.msra.mxu1 %v5274_v32  ;;  %3272 = vmatprep.subr.bf16.mxu0 %v5279_v33  ;;  %v1566_v32 = vrot.slane %v6283_v63, %v1565_v28  ;;  %v5363_v33 = vld [vmem:[#allocation16 + $0x4] ss:$8 sps:$4 sm:$0xff]   ;;  %v5370_v63 = vld [vmem:[#allocation16 + $0x30] ss:$8 sps:$4 sm:$0xff]  }
 0x4a9   : > { %3436 = vmatprep.subr.bf16.mxu1 %v5282_v34  ;;  %v5361_v34 = vld [vmem:[#allocation16] ss:$8 sps:$4 sm:$0xff]   ;;  %v5469_v38 = vld [vmem:[%s6416_s23 + $0x70] sm:$0xff]  }
 0x4ab   : > { %3273 = vmatpush1.bf16.msra.mxu0 %v5277_v35  ;;  %v1585_v35 = vpack.c.bf16 %v1566_v32, %v1566_v32 }
 0x4ac   : > { %3437 = vmatpush1.bf16.msra.mxu1 %v5280_v36  ;;  %3274 = vmatprep.subr.bf16.mxu0 %v5285_v42  ;;  %v5366_v36 = vld [vmem:[#allocation16 + $0x14] ss:$8 sps:$4 sm:$0xff]   ;;  %v5364_v42 = vld [vmem:[#allocation16 + $0x10] ss:$8 sps:$4 sm:$0xff]  }
 0x4ad   : > { %3438 = vmatprep.subr.bf16.mxu1 %v5288_v44  ;;  %v5369_v44 = vld [vmem:[#allocation16 + $0x24] ss:$8 sps:$4 sm:$0xff]  }
 0x4af   : > { %3275 = vmatpush1.bf16.msra.mxu0 %v5283_v39  ;;  %v5367_v39 = vld [vmem:[#allocation16 + $0x20] ss:$8 sps:$4 sm:$0xff]  }
 0x4b0   : > { %3439 = vmatpush1.bf16.msra.mxu1 %v5286_v45  ;;  %3276 = vmatprep.subr.bf16.mxu0 %v5291_v46  ;;  %v5372_v45 = vld [vmem:[#allocation16 + $0x34] ss:$8 sps:$4 sm:$0xff]   ;;  %v5375_v46 = vld [vmem:[#allocation16 + $0x44] ss:$8 sps:$4 sm:$0xff]  }
 0x4b1   : > { %3440 = vmatprep.subr.bf16.mxu1 %v5294_v47  ;;  %v5373_v47 = vld [vmem:[#allocation16 + $0x40] ss:$8 sps:$4 sm:$0xff]  }
 0x4b3   : > { %3277 = vmatpush1.bf16.msra.mxu0 %v5289_v48  ;;  %v5378_v48 = vld [vmem:[#allocation16 + $0x54] ss:$8 sps:$4 sm:$0xff]  }
 0x4b4   : > { %3441 = vmatpush1.bf16.msra.mxu1 %v5292_v49  ;;  %3278 = vmatprep.subr.bf16.mxu0 %v5297_v50  ;;  %v5376_v49 = vld [vmem:[#allocation16 + $0x50] ss:$8 sps:$4 sm:$0xff]   ;;  %v5381_v50 = vld [vmem:[#allocation16 + $0x64] ss:$8 sps:$4 sm:$0xff]  }
 0x4b5   : > { %3442 = vmatprep.subr.bf16.mxu1 %v5300_v51  ;;  %v5379_v51 = vld [vmem:[#allocation16 + $0x60] ss:$8 sps:$4 sm:$0xff]  }
 0x4b7   : > { %3279 = vmatpush1.bf16.msra.mxu0 %v5295_v53  ;;  %v5384_v53 = vld [vmem:[#allocation16 + $0x74] ss:$8 sps:$4 sm:$0xff]  }
 0x4b8   : > { %3443 = vmatpush1.bf16.msra.mxu1 %v5298_v54  ;;  %3280 = vmatprep.subr.bf16.mxu0 %v5303_v55  ;;  %v5382_v54 = vld [vmem:[#allocation16 + $0x70] ss:$8 sps:$4 sm:$0xff]   ;;  %v5387_v55 = vld [vmem:[#allocation16 + $0x84] ss:$8 sps:$4 sm:$0xff]  }
 0x4b9   : > { %3444 = vmatprep.subr.bf16.mxu1 %v5306_v56  ;;  %v5385_v56 = vld [vmem:[#allocation16 + $0x80] ss:$8 sps:$4 sm:$0xff]  }
 0x4bb   : > { %3281 = vmatpush1.bf16.msra.mxu0 %v5301_v57  ;;  %v5390_v57 = vld [vmem:[#allocation16 + $0x94] ss:$8 sps:$4 sm:$0xff]  }
 0x4bc   : > { %3445 = vmatpush1.bf16.msra.mxu1 %v5304_v58  ;;  %3282 = vmatprep.subr.bf16.mxu0 %v5309_v59  ;;  %v5388_v58 = vld [vmem:[#allocation16 + $0x90] ss:$8 sps:$4 sm:$0xff]   ;;  %v5393_v59 = vld [vmem:[#allocation16 + $0xa4] ss:$8 sps:$4 sm:$0xff]  }
 0x4bd   : > { %3446 = vmatprep.subr.bf16.mxu1 %v5312_v60  ;;  %v5391_v60 = vld [vmem:[#allocation16 + $0xa0] ss:$8 sps:$4 sm:$0xff]  }
 0x4bf   : > { %3283 = vmatpush1.bf16.msra.mxu0 %v5307_v37  ;;  %v5396_v37 = vld [vmem:[#allocation16 + $0xb4] ss:$8 sps:$4 sm:$0xff]  }
 0x4c0   : > { %3447 = vmatpush1.bf16.msra.mxu1 %v5310_v61  ;;  %3284 = vmatprep.subr.bf16.mxu0 %v5315_v0  ;;  %v5394_v61 = vld [vmem:[#allocation16 + $0xb0] ss:$8 sps:$4 sm:$0xff]   ;;  %v5399_v0 = vld [vmem:[#allocation16 + $0xc4] ss:$8 sps:$4 sm:$0xff]  }
 0x4c1   : > { %3448 = vmatprep.subr.bf16.mxu1 %v5318_v1  ;;  %v5397_v1 = vld [vmem:[#allocation16 + $0xc0] ss:$8 sps:$4 sm:$0xff]  }
 0x4c3   : > { %3285 = vmatpush1.bf16.msra.mxu0 %v5313_v2  ;;  %v5402_v2 = vld [vmem:[#allocation16 + $0xd4] ss:$8 sps:$4 sm:$0xff]  }
 0x4c4   : > { %3449 = vmatpush1.bf16.msra.mxu1 %v5316_v3  ;;  %3286 = vmatprep.subr.bf16.mxu0 %v5321_v41  ;;  %v5400_v3 = vld [vmem:[#allocation16 + $0xd0] ss:$8 sps:$4 sm:$0xff]   ;;  %v5405_v41 = vld [vmem:[#allocation16 + $0xe4] ss:$8 sps:$4 sm:$0xff]  }
 0x4c5   : > { %3450 = vmatprep.subr.bf16.mxu1 %v5324_v4  ;;  %v5403_v4 = vld [vmem:[#allocation16 + $0xe0] ss:$8 sps:$4 sm:$0xff]  }
 0x4c7   : > { %3287 = vmatpush1.bf16.msra.mxu0 %v5319_v5  ;;  %v5408_v5 = vld [vmem:[#allocation16 + $0xf4] ss:$8 sps:$4 sm:$0xff]  }
 0x4c8   : > { %3451 = vmatpush1.bf16.msra.mxu1 %v5322_v6  ;;  %3288 = vmatprep.subr.bf16.mxu0 %v5327_v7  ;;  %v5406_v6 = vld [vmem:[#allocation16 + $0xf0] ss:$8 sps:$4 sm:$0xff]   ;;  %v5411_v7 = vld [vmem:[#allocation16 + $0x104] ss:$8 sps:$4 sm:$0xff]  }
 0x4c9   : > { %3452 = vmatprep.subr.bf16.mxu1 %v5330_v8  ;;  %v5457_v8 = vld [vmem:[%s6416_s23 + $0x40] sm:$0xff]  }
 0x4cb   : > { %3289 = vmatpush1.bf16.msra.mxu0 %v5325_v9  ;;  %v5458_v9 = vld [vmem:[%s6416_s23] sm:$0xff]  }
 0x4cc   : > { %3453 = vmatpush1.bf16.msra.mxu1 %v5328_v10  ;;  %3290 = vmatprep.subr.bf16.mxu0 %v5333_v11  ;;  %v5459_v10 = vld [vmem:[%s6416_s23 + $0x48] sm:$0xff]  }
 0x4cd   : > { %3454 = vmatprep.subr.bf16.mxu1 %v5336_v12  ;;  %v5460_v11 = vld [vmem:[%s6416_s23 + $0x8] sm:$0xff]   ;;  %v5461_v12 = vld [vmem:[%s6416_s23 + $0x50] sm:$0xff]  }
 0x4cf   : > { %3291 = vmatpush1.bf16.msra.mxu0 %v5331_v13  ;;  %v5462_v13 = vld [vmem:[%s6416_s23 + $0x10] sm:$0xff]  }
 0x4d0   : > { %3455 = vmatpush1.bf16.msra.mxu1 %v5334_v14  ;;  %3292 = vmatprep.subr.bf16.mxu0 %v5339_v15  ;;  %v5463_v14 = vld [vmem:[%s6416_s23 + $0x58] sm:$0xff]  }
 0x4d1   : > { %3456 = vmatprep.subr.bf16.mxu1 %v5342_v16  ;;  %v5464_v15 = vld [vmem:[%s6416_s23 + $0x18] sm:$0xff]   ;;  %v5465_v16 = vld [vmem:[%s6416_s23 + $0x60] sm:$0xff]  }
 0x4d3   : > { %3293 = vmatpush1.bf16.msra.mxu0 %v5337_v17  ;;  %v5466_v17 = vld [vmem:[%s6416_s23 + $0x20] sm:$0xff]  }
 0x4d4   : > { %3457 = vmatpush1.bf16.msra.mxu1 %v5340_v18  ;;  %3294 = vmatprep.subr.bf16.mxu0 %v5345_v19  ;;  %v5467_v18 = vld [vmem:[%s6416_s23 + $0x68] sm:$0xff]  }
 0x4d5   : > { %3458 = vmatprep.subr.bf16.mxu1 %v5348_v20  ;;  %v5468_v19 = vld [vmem:[%s6416_s23 + $0x28] sm:$0xff]   ;;  %v6340_v20 = vld [vmem:[#allocation14] sm:$0xf] }
 0x4d7   : > { %3295 = vmatpush1.bf16.msra.mxu0 %v5343_v21  ;;  %v3128_v21 = vrot.slane %v6340_v20, %v6245_v40 }
 0x4d8   : > { %3459 = vmatpush1.bf16.msra.mxu1 %v5346_v22  ;;  %3296 = vmatprep.subr.bf16.mxu0 %v5351_v23  ;;  %v3132_v22 = vrot.slane %v6340_v20, %v6248_v43  ;;  %v3140_v23 = vrot.slane %v6340_v20, %v1553_v62 }
 0x4d9   : > { %3460 = vmatprep.subr.bf16.mxu1 %v5354_v24 }
 0x4db   : > { %3297 = vmatpush1.bf16.msra.mxu0 %v5349_v25 }
 0x4dc   : > { %3461 = vmatpush1.bf16.msra.mxu1 %v5352_v26  ;;  %3298 = vmatprep.subr.bf16.mxu0 %v5357_v27 }
 0x4dd   : > { %3462 = vmatprep.subr.bf16.mxu1 %v5360_v29 }
 0x4df   : > { %3299 = vmatpush1.bf16.msra.mxu0 %v5355_v30 }
 0x4e0   : > { %3463 = vmatpush1.bf16.msra.mxu1 %v5358_v31  ;;  %3877 = vmatprep.subr.bf16.mxu0 %v5363_v33 }
 0x4e1   : > { %4750 = vmatprep.subr.bf16.mxu1 %v5457_v8  ;;  %v3136_v8 = vrot.slane %v6340_v20, %v1549_v52  ;;  %v5470_v52 = vld [vmem:[%s6416_s23 + $0x30] sm:$0xff]  }
 0x4e2   : > { %3301 = vmatmul.mubr.bf16.vlgmr.msra.gmra.mrb[4].mxu0 %v1585_v35 }
 0x4e3   : > { %3465 = vmatmul.mubr.bf16.vlgmr.msra.gmra.mrb[20].mxu1 %v1585_v35  ;;  %3878 = vmatpush1.bf16.msra.mxu0 %v5361_v34 }
 0x4e4   : > { %3879 = vmatprep.subr.bf16.mxu0 %v5366_v36  ;;  %4751 = vmatpush3.bf16.msra.mxu1 %v5458_v9  ;;  %v5453_v9 = vld [vmem:[#allocation16 + $0x1e4] ss:$8 sps:$4 sm:$0xff]  }
 0x4e5   : > { %4752 = vmatprep.subr.bf16.mxu1 %v5459_v10  ;;  %v5451_v10 = vld [vmem:[#allocation16 + $0x1e0] ss:$8 sps:$4 sm:$0xff]  }
 0x4e7   : > { %3880 = vmatpush1.bf16.msra.mxu0 %v5364_v42 }
 0x4e8   : > { %3881 = vmatprep.subr.bf16.mxu0 %v5369_v44  ;;  %4753 = vmatpush3.bf16.msra.mxu1 %v5460_v11 }
 0x4e9   : > { %4754 = vmatprep.subr.bf16.mxu1 %v5461_v12  ;;  %v5456_v12 = vld [vmem:[#allocation16 + $0x1f4] ss:$8 sps:$4 sm:$0xff]  }
 0x4eb   : > { %3882 = vmatpush1.bf16.msra.mxu0 %v5367_v39  ;;  %v5409_v39 = vld [vmem:[#allocation16 + $0x100] ss:$8 sps:$4 sm:$0xff]  }
 0x4ec   : > { %3883 = vmatprep.subr.bf16.mxu0 %v5372_v45  ;;  %4755 = vmatpush3.bf16.msra.mxu1 %v5462_v13  ;;  %v5454_v13 = vld [vmem:[#allocation16 + $0x1f0] ss:$8 sps:$4 sm:$0xff]  }
 0x4ed   : > { %4756 = vmatprep.subr.bf16.mxu1 %v5463_v14 }
 0x4ef   : > { %3884 = vmatpush1.bf16.msra.mxu0 %v5370_v63  ;;  %v5414_v63 = vld [vmem:[#allocation16 + $0x114] ss:$8 sps:$4 sm:$0xff]  }
 0x4f0   : > { %3885 = vmatprep.subr.bf16.mxu0 %v5375_v46  ;;  %4757 = vmatpush3.bf16.msra.mxu1 %v5464_v15  ;;  %v5412_v46 = vld [vmem:[#allocation16 + $0x110] ss:$8 sps:$4 sm:$0xff]  }
 0x4f1   : > { %4758 = vmatprep.subr.bf16.mxu1 %v5465_v16  ;;  %v5471_v16 = vld [vmem:[%s6416_s23 + $0x78] sm:$0xff]  }
 0x4f3   : > { %3886 = vmatpush1.bf16.msra.mxu0 %v5373_v47  ;;  %v5417_v47 = vld [vmem:[#allocation16 + $0x124] ss:$8 sps:$4 sm:$0xff]  }
 0x4f4   : > { %3887 = vmatprep.subr.bf16.mxu0 %v5378_v48  ;;  %4759 = vmatpush3.bf16.msra.mxu1 %v5466_v17  ;;  %v5415_v48 = vld [vmem:[#allocation16 + $0x120] ss:$8 sps:$4 sm:$0xff]  }
 0x4f5   : > { %4760 = vmatprep.subr.bf16.mxu1 %v5467_v18  ;;  %v5472_v17 = vld [vmem:[%s6416_s23 + $0x38] sm:$0xff]  }
 0x4f6   : > { %v3545_v18 = vld [vmem:[#allocation17] sm:$0x3] }
 0x4f7   : > { %3888 = vmatpush1.bf16.msra.mxu0 %v5376_v49  ;;  %v5420_v49 = vld [vmem:[#allocation16 + $0x134] ss:$8 sps:$4 sm:$0xff]   ;;  %v3874_v20 = vrot.slane %v3545_v18, %v6248_v43 }
 0x4f8   : > { %3889 = vmatprep.subr.bf16.mxu0 %v5381_v50  ;;  %4761 = vmatpush3.bf16.msra.mxu1 %v5468_v19  ;;  %v5418_v50 = vld [vmem:[#allocation16 + $0x130] ss:$8 sps:$4 sm:$0xff]   ;;  %v3870_v19 = vrot.slane %v3545_v18, %v6245_v40 }
 0x4f9   : > { %4762 = vmatprep.subr.bf16.mxu1 %v5469_v38 }
 0x4fb   : > { %3890 = vmatpush1.bf16.msra.mxu0 %v5379_v51  ;;  %v5423_v51 = vld [vmem:[#allocation16 + $0x144] ss:$8 sps:$4 sm:$0xff]  }
 0x4fc   : > { %3891 = vmatprep.subr.bf16.mxu0 %v5384_v53  ;;  %v5421_v53 = vld [vmem:[#allocation16 + $0x140] ss:$8 sps:$4 sm:$0xff]   ;;  %4763 = vmatpush3.bf16.msra.mxu1 %v5470_v52 }
 0x4fd   : > { %4764 = vmatprep.subr.bf16.mxu1 %v5471_v16 }
 0x4ff   : > { %3892 = vmatpush1.bf16.msra.mxu0 %v5382_v54  ;;  %v5426_v54 = vld [vmem:[#allocation16 + $0x154] ss:$8 sps:$4 sm:$0xff]  }
 0x500   : > { %3893 = vmatprep.subr.bf16.mxu0 %v5387_v55  ;;  %v5424_v55 = vld [vmem:[#allocation16 + $0x150] ss:$8 sps:$4 sm:$0xff]   ;;  %4765 = vmatpush3.bf16.msra.mxu1 %v5472_v17 }
 0x503   : > { %3894 = vmatpush1.bf16.msra.mxu0 %v5385_v56  ;;  %v5429_v56 = vld [vmem:[#allocation16 + $0x164] ss:$8 sps:$4 sm:$0xff]  }
 0x504   : > { %3895 = vmatprep.subr.bf16.mxu0 %v5390_v57  ;;  %v5427_v57 = vld [vmem:[#allocation16 + $0x160] ss:$8 sps:$4 sm:$0xff]  }
 0x507   : > { %3896 = vmatpush1.bf16.msra.mxu0 %v5388_v58  ;;  %v5432_v58 = vld [vmem:[#allocation16 + $0x174] ss:$8 sps:$4 sm:$0xff]  }
 0x508   : > { %3897 = vmatprep.subr.bf16.mxu0 %v5393_v59  ;;  %v5430_v59 = vld [vmem:[#allocation16 + $0x170] ss:$8 sps:$4 sm:$0xff]  }
 0x50b   : > { %3898 = vmatpush1.bf16.msra.mxu0 %v5391_v60  ;;  %v5435_v60 = vld [vmem:[#allocation16 + $0x184] ss:$8 sps:$4 sm:$0xff]  }
 0x50c   : > { %3899 = vmatprep.subr.bf16.mxu0 %v5396_v37  ;;  %v5433_v37 = vld [vmem:[#allocation16 + $0x180] ss:$8 sps:$4 sm:$0xff]  }
 0x50f   : > { %3900 = vmatpush1.bf16.msra.mxu0 %v5394_v61  ;;  %v5438_v61 = vld [vmem:[#allocation16 + $0x194] ss:$8 sps:$4 sm:$0xff]  }
 0x510   : > { %3901 = vmatprep.subr.bf16.mxu0 %v5399_v0  ;;  %v5436_v0 = vld [vmem:[#allocation16 + $0x190] ss:$8 sps:$4 sm:$0xff]  }
 0x513   : > { %3902 = vmatpush1.bf16.msra.mxu0 %v5397_v1  ;;  %v5441_v1 = vld [vmem:[#allocation16 + $0x1a4] ss:$8 sps:$4 sm:$0xff]  }
 0x514   : > { %3903 = vmatprep.subr.bf16.mxu0 %v5402_v2  ;;  %v5439_v2 = vld [vmem:[#allocation16 + $0x1a0] ss:$8 sps:$4 sm:$0xff]  }
 0x517   : > { %3904 = vmatpush1.bf16.msra.mxu0 %v5400_v3  ;;  %v5444_v3 = vld [vmem:[#allocation16 + $0x1b4] ss:$8 sps:$4 sm:$0xff]  }
 0x518   : > { %3905 = vmatprep.subr.bf16.mxu0 %v5405_v41  ;;  %v5442_v41 = vld [vmem:[#allocation16 + $0x1b0] ss:$8 sps:$4 sm:$0xff]  }
 0x51b   : > { %3906 = vmatpush1.bf16.msra.mxu0 %v5403_v4  ;;  %v5447_v4 = vld [vmem:[#allocation16 + $0x1c4] ss:$8 sps:$4 sm:$0xff]  }
 0x51c   : > { %3907 = vmatprep.subr.bf16.mxu0 %v5408_v5  ;;  %v5445_v5 = vld [vmem:[#allocation16 + $0x1c0] ss:$8 sps:$4 sm:$0xff]  }
 0x51f   : > { %3908 = vmatpush1.bf16.msra.mxu0 %v5406_v6  ;;  %v5450_v6 = vld [vmem:[#allocation16 + $0x1d4] ss:$8 sps:$4 sm:$0xff]  }
 0x520   : > { %3918 = vmatprep.subr.bf16.mxu0 %v5411_v7  ;;  %v5448_v7 = vld [vmem:[#allocation16 + $0x1d0] ss:$8 sps:$4 sm:$0xff]  }
 0x5b5   : > { %v3302_v24 = vpop.f32.mrb[4].mxu0 }
 0x5b6   : > { %v4790_v25 = vadd.f32 %v3302_v24, %v3128_v21  ;;  %v6349_v26 = vpop.f32.mrb[20].mxu1  ;;  %v3304_v27 = vpop.f32.mrb[5].mxu0 }
 0x5b7   : > { %v4791_v28 = vadd.f32 %v3304_v27, %v3132_v22  ;;  %v3468_v29 = vpop.f32.mrb[21].mxu1  ;;  %v3306_v30 = vpop.f32.mrb[6].mxu0  ;;  %v4792_v11 = vadd.f32 %v6349_v26, %v3136_v8 }
 0x5b8   : > { %v3473_v31 = vmax.f32 %v4790_v25, 0.0  ;;  %v4793_v32 = vadd.f32 %v3468_v29, %v3140_v23  ;;  %v3470_v33 = vpop.f32.mrb[22].mxu1  ;;  %v3307_v34 = vpop.f32.mrb[7].mxu0 }
 0x5b9   : > { %v3474_v35 = vmax.f32 %v4791_v28, 0.0  ;;  %v3471_v36 = vpop.f32.mrb[23].mxu1  ;;  %v3475_v14 = vmax.f32 %v4792_v11, 0.0 }
 0x5ba   : > { %v3476_v42 = vmax.f32 %v4793_v32, 0.0  ;;  %v3477_v45 = vpack.c.bf16 %v3473_v31, %v3473_v31  ;;  %v3995_v32 = vld [vmem:[#allocation19] sm:$0x1] }
 0x5bb   : > { %v3478_v44 = vpack.c.bf16 %v3474_v35, %v3474_v35  ;;  %v3479_v15 = vpack.c.bf16 %v3475_v14, %v3475_v14 }
 0x5bc   : > { %v3480_v62 = vpack.c.bf16 %v3476_v42, %v3476_v42 }
 0x5bd   : > { %3909 = vmatprep.mubr.bf16.mxu0 %v3478_v44 }
 0x5be   : > { %3910 = vmatmul.mubr.bf16.vlgmr.msra.gmra.mrb[8].mxu0 %v3477_v45 }
 0x5bf   : > { %3919 = vmatpush1.bf16.msra.mxu0 %v5409_v39  ;;  %3950 = vmatprep.mubr.bf16.mxu0 %v3480_v62 }
 0x5c0   : > { %3920 = vmatprep.subr.bf16.mxu0 %v5414_v63 }
 0x5c3   : > { %3921 = vmatpush1.bf16.msra.mxu0 %v5412_v46 }
 0x5c4   : > { %3922 = vmatprep.subr.bf16.mxu0 %v5417_v47 }
 0x5c7   : > { %3923 = vmatpush1.bf16.msra.mxu0 %v5415_v48 }
 0x5c8   : > { %3924 = vmatprep.subr.bf16.mxu0 %v5420_v49 }
 0x5cb   : > { %3925 = vmatpush1.bf16.msra.mxu0 %v5418_v50 }
 0x5cc   : > { %3926 = vmatprep.subr.bf16.mxu0 %v5423_v51 }
 0x5cf   : > { %3927 = vmatpush1.bf16.msra.mxu0 %v5421_v53 }
 0x5d0   : > { %3928 = vmatprep.subr.bf16.mxu0 %v5426_v54 }
 0x5d3   : > { %3929 = vmatpush1.bf16.msra.mxu0 %v5424_v55 }
 0x5d4   : > { %3930 = vmatprep.subr.bf16.mxu0 %v5429_v56 }
 0x5d7   : > { %3931 = vmatpush1.bf16.msra.mxu0 %v5427_v57 }
 0x5d8   : > { %3932 = vmatprep.subr.bf16.mxu0 %v5432_v58 }
 0x5db   : > { %3933 = vmatpush1.bf16.msra.mxu0 %v5430_v59 }
 0x5dc   : > { %3934 = vmatprep.subr.bf16.mxu0 %v5435_v60 }
 0x5df   : > { %3935 = vmatpush1.bf16.msra.mxu0 %v5433_v37 }
 0x5e0   : > { %3936 = vmatprep.subr.bf16.mxu0 %v5438_v61 }
 0x5e3   : > { %3937 = vmatpush1.bf16.msra.mxu0 %v5436_v0 }
 0x5e4   : > { %3938 = vmatprep.subr.bf16.mxu0 %v5441_v1 }
 0x5e7   : > { %3939 = vmatpush1.bf16.msra.mxu0 %v5439_v2 }
 0x5e8   : > { %3940 = vmatprep.subr.bf16.mxu0 %v5444_v3 }
 0x5eb   : > { %3941 = vmatpush1.bf16.msra.mxu0 %v5442_v41 }
 0x5ec   : > { %3942 = vmatprep.subr.bf16.mxu0 %v5447_v4 }
 0x5ef   : > { %3943 = vmatpush1.bf16.msra.mxu0 %v5445_v5 }
 0x5f0   : > { %3944 = vmatprep.subr.bf16.mxu0 %v5450_v6 }
 0x5f3   : > { %3945 = vmatpush1.bf16.msra.mxu0 %v5448_v7 }
 0x5f4   : > { %3946 = vmatprep.subr.bf16.mxu0 %v5453_v9 }
 0x5f7   : > { %3947 = vmatpush1.bf16.msra.mxu0 %v5451_v10 }
 0x5f8   : > { %3948 = vmatprep.subr.bf16.mxu0 %v5456_v12 }
 0x5fb   : > { %3949 = vmatpush1.bf16.msra.mxu0 %v5454_v13 }
 0x5fe   : > { %3951 = vmatmul.mubr.bf16.vlgmr.msra.gmra.mrb[8].mxu0 %v3479_v15 }
 0x6d1   : > { %v3952_v21 = vpop.f32.mrb[8].mxu0 }
 0x6d2   : > { %v4794_v22 = vadd.f32 %v3952_v21, %v3870_v19  ;;  %v3954_v23 = vpop.f32.mrb[9].mxu0 }
 0x6d3   : > { %v4795_v24 = vadd.f32 %v3954_v23, %v3874_v20  ;;  %v3956_v25 = vpop.f32.mrb[10].mxu0 }
 0x6d4   : > { %v3959_v26 = vmax.f32 %v4794_v22, 0.0  ;;  %v3957_v27 = vpop.f32.mrb[11].mxu0 }
 0x6d5   : > { %v3960_v28 = vmax.f32 %v4795_v24, 0.0 }
 0x6d6   : > { %v3961_v30 = vpack.c.bf16 %v3959_v26, %v3959_v26 }
 0x6d7   : > { %v3962_v29 = vpack.c.bf16 %v3960_v28, %v3960_v28 }
 0x6d9   : > { %4124 = vmatprep.mubr.bf16.mxu1 %v3962_v29 }
 0x6da   : > { %4125 = vmatmul.mubr.bf16.vlgmr.msra.gmra.mrb[24].mxu1 %v3961_v30 }
 0x7ad   : > { %v4766_v31 = vpop.f32.mrb[24].mxu1 }
 0x7ae   : > { %v4767_v33 = vpop.f32.mrb[25].mxu1 }
 0x7af   : > { %v4768_v34 = vadd.f32 %v4767_v33, %v4766_v31  ;;  %v4769_v40 = vpop.f32.mrb[26].mxu1 }
 0x7b0   : > { %v4770_v43 = vpop.f32.mrb[27].mxu1 }
 0x7b1   : > { %v4127_v35 = vadd.f32 %v4768_v34, %v3995_v32 }
 0x7b3   : > { %4133 = vst.msk [vmem:[%s610_s11] sm:$0x1] %vm4132_vm6, %v4127_v35 }
 0x7b4 PF: > { %s6418_s24 = sld [smem:[#allocation26_spill]]  ;;  %s6419_s25 = smov %s5823_s26 }
 0x7b5   : > { %s6420_s26 = smov %s6422_s17 }
 0x7ba   : > { %s29_s27 = sadd.s32 1, %s6418_s24  }
 0x7bb   : > { %p26_p7 = scmp.ge.s32.totalorder %s29_s27, 4  }
 0x7bd   :  { %28 = sbr.rel (!%p26_p7) target bundleno = 12 (0xc), region = 155 }
 0x7c4   :  { %4151 = vsyncpa [#allocation4], 1 }
 0x7c5   :  { %4153 = vsyncpa [#allocation4 + $0x1], 1 }
 0x7c6   :  { %4154 = vsyncpa [#allocation6], 1 }
 0x7c7   :  { %4155 = vsyncpa [#allocation9], 1 }
 0x7c8   :  { %4156 = vsyncpa [#allocation12], 1 }
 0x7c9   :  { %4157 = vsyncpa [#allocation15], 1 }
 0x7ca   :  { %4158 = vsyncpa [#allocation18], 1 }

// kernel: transform_forward.4
= control target key start
LH: loop header
LB: loop body
LE: loop exit
PB: predicated region body
PF: predicated region fallthrough
CT: control target
= control target key end

     0   :  { %s12414_s0 = inlined_call_operand.vmem [shape: f32[2,16,3], index: 0, kind: input, shape index: {}]   ;;  %s12415_s1 = inlined_call_operand.vmem [shape: f32[2,3,3], index: 1, kind: input, shape index: {}]   ;;  %s12416_s2 = inlined_call_operand.hbm [shape: f32[3,64], index: 2, kind: input, shape index: {}]   ;;  %s12417_s3 = inlined_call_operand.hbm [shape: f32[1,64], index: 3, kind: input, shape index: {}]   ;;  %s12418_s4 = inlined_call_operand.hbm [shape: bf16[64,64], index: 4, kind: input, shape index: {}]   ;;  %s12419_s5 = inlined_call_operand.hbm [shape: f32[1,64], index: 5, kind: input, shape index: {}]   ;;  %s12420_s6 = inlined_call_operand.hbm [shape: bf16[64,128], index: 6, kind: input, shape index: {}]   ;;  %s12421_s7 = inlined_call_operand.hbm [shape: f32[1,128], index: 7, kind: input, shape index: {}]   ;;  %s12422_s8 = inlined_call_operand.hbm [shape: bf16[128,1024], index: 8, kind: input, shape index: {}]   ;;  %s12423_s9 = inlined_call_operand.hbm [shape: f32[1,1024], index: 9, kind: input, shape index: {}]   ;;  %s12424_s10 = inlined_call_operand.vmem [shape: bf16[1024,512], index: 10, kind: input, shape index: {}]   ;;  %s12425_s11 = inlined_call_operand.hbm [shape: f32[1,512], index: 11, kind: input, shape index: {}]   ;;  %s12426_s12 = inlined_call_operand.hbm [shape: bf16[512,256], index: 12, kind: input, shape index: {}]   ;;  %s12427_s13 = inlined_call_operand.hbm [shape: f32[1,256], index: 13, kind: input, shape index: {}]   ;;  %s12428_s14 = inlined_call_operand.hbm [shape: bf16[256,4096], index: 14, kind: input, shape index: {}]   ;;  %s12429_s15 = inlined_call_operand.hbm [shape: f32[1,4096], index: 15, kind: input, shape index: {}]   ;;  %s12430_s16 = inlined_call_operand.vmem [shape: bf16[2,16,64], index: 16, kind: output, shape index: {0}]   ;;  %s12431_s17 = inlined_call_operand.vmem [shape: f32[2,1,4096], index: 17, kind: output, shape index: {1}]  }
   0x1   :  { %12438 = sst [smem:[#allocation33_spill]] %s12414_s0 }
   0x2   :  { %12439 = sst [smem:[#allocation34_spill]] %s12415_s1 }
   0x3   :  { %12440 = sst [smem:[#allocation35_spill]] %s12416_s2 }
   0x4   :  { %12441 = sst [smem:[#allocation36_spill]] %s12417_s3 }
   0x5   :  { %12442 = sst [smem:[#allocation37_spill]] %s12424_s10 }
   0x6   :  { %12443 = sst [smem:[#allocation38_spill]] %s12430_s16 }
   0x7   :  { %12444 = sst [smem:[#allocation39_spill]] %s12431_s17 }
   0x8   :  { %23 = vsyncpa [#allocation5], 0 }
   0x9   :  { %24 = vsyncpa [#allocation7], 0 }
   0xa   :  { %25 = vsyncpa [#allocation10], 0 }
   0xb   :  { %26 = vsyncpa [#allocation13], 0 }
   0xc   :  { %27 = vsyncpa [#allocation16], 0 }
   0xd   :  { %28 = vsyncpa [#allocation19], 0 }
   0xe   :  { %29 = vsyncpa [#allocation22], 0  ;;  %s10937_s24 = smov 0   ;;  %s10939_s25 = smov 0  }
   0xf   :  { %s10941_s26 = smov 0  }
  0x10 LB: > { %12445 = sst [smem:[#allocation31_spill]] %s10811_s24  ;;  %s10821_s27 = smov [#allocation6]   ;;  %s10819_s26 = sphi %s10941_s26, %s35_s26   ;;  %s10815_s25 = sphi %s10939_s25, %s12465_s25   ;;  %s10811_s24 = sphi %s10937_s24, %s12464_s24  }
  0x11   : > { %12446 = sst [smem:[#allocation32_spill]] %s10819_s26  ;;  %s478_s28 = sshll.u32 %s10821_s27, 4  ;;  %s10959_s28 = int_to_ptr.vmem [resolvable:$true] %s478_s28 }
  0x12   : > { %s8708_s29 = sadd.s32 4294967295, %s10819_s26   ;;  %p8710_p0 = scmp.ge.s32.totalorder %s10819_s26, 1 }
  0x13   : > { %p454_p1 = scmp.lt.s32.totalorder %s10819_s26, 3  ;;  %p10955_p2 = scmp.eq.s32.totalorder %s8708_s29, 0 }
  0x14   : > { %s10822_s18 = smov [#allocation9]   ;;  %s10823_s1 = smov [#allocation12]  }
  0x15   : > { %s12447_s0 = scalar_select %p10955_p2, 1, 0 }
  0x16   : > { %p10961_p3 = pnand %p8710_p0, %p454_p1  ;;  %s502_s19 = sshll.u32 %s10822_s18, 4  ;;  %s10967_s19 = int_to_ptr.vmem [resolvable:$true] %s502_s19 }
  0x17   : > { %s526_s20 = sshll.u32 %s10823_s1, 4  ;;  %s10824_s22 = smov [#allocation15]   ;;  %s10975_s20 = int_to_ptr.vmem [resolvable:$true] %s526_s20 }
  0x18   : > { %s12448_s30 = scalar_select %p10961_p3, 1, 0 }
  0x19   : > { %p9800_p4 = pneg %p10961_p3  ;;  %s550_s23 = sshll.u32 %s10824_s22, 4  ;;  %s10977_s23 = int_to_ptr.vmem [resolvable:$true] %s550_s23 }
  0x1a   : > { %s12450_s3 = sld [smem:[#allocation36_spill]] }
  0x1b   : > { %p10971_p5 = pnand %p10955_p2, %p9800_p4 }
  0x1d   : > { %p10987_p7 = pneg %p10971_p5 }
  0x20   : > { %s10405_s18 = scalar_lea.hbm %s12450_s3, 16 }
  0x21   : > { %p10406_p6 = scmp.ne.s32.totalorder %s12450_s3, %s10405_s18  ;;  %p10412_p10 = scmp.lt.u32.totalorder %s10405_s18, %s12450_s3 }
  0x23   : > { %p10408_p8 = pnand %p10987_p7, %p10406_p6 }
  0x25   : > { %p10409_p9 = pneg %p10408_p8 }
  0x27   : > { %p10414_p11 = pnand %p10412_p10, %p10409_p9 }
  0x29   : > { %10417 = shalt.err (!%p10414_p11)
}
  0x2a   : > { %s10418_s17 = scalar_lea.vmem %s10959_s28, 16  ;;  %s10425_s26 = scalar_lea.vmem %s10959_s28, 32 }
  0x2b   : > { %p10419_p12 = scmp.ne.s32.totalorder %s10959_s28, %s10418_s17  ;;  %p10426_p1 = scmp.lt.s32.totalorder %s10959_s28, %s10959_s28 }
  0x2c   : > { %p10427_p4 = scmp.lt.s32.totalorder %s10425_s26, %s10418_s17 }
  0x2d   : > { %p10421_p13 = pnand %p10419_p12, %p10987_p7 }
  0x2e   : > { %p10428_p6 = por %p10427_p4, %p10426_p1 }
  0x2f   : > { %p10422_p0 = pneg %p10421_p13 }
  0x31   : > { %p10429_p8 = pnand %p10428_p6, %p10422_p0 }
  0x33   : > { %10432 = shalt.err (!%p10429_p8)
}
  0x34   : > { %9806 = dma.hbm_to_vmem [thread:$0]  (!%p10971_p5), %s12450_s3, 16, %s10959_s28, [#allocation7]  }
  0x35   : > { %s10433_s22 = scalar_lea.hbm %s12419_s5, 16 }
  0x36   : > { %p10434_p9 = scmp.ne.s32.totalorder %s12419_s5, %s10433_s22  ;;  %p10440_p12 = scmp.lt.u32.totalorder %s10433_s22, %s12419_s5 }
  0x38   : > { %p10436_p10 = pnand %p10434_p9, %p10987_p7 }
  0x3a   : > { %p10437_p11 = pneg %p10436_p10 }
  0x3c   : > { %p10442_p13 = pnand %p10440_p12, %p10437_p11 }
  0x3e   : > { %10445 = shalt.err (!%p10442_p13)
}
  0x3f   : > { %s10446_s28 = scalar_lea.vmem %s10967_s19, 16  ;;  %s10453_s16 = scalar_lea.vmem %s10967_s19, 32 }
  0x40   : > { %p10447_p0 = scmp.ne.s32.totalorder %s10967_s19, %s10446_s28  ;;  %p10454_p6 = scmp.lt.s32.totalorder %s10967_s19, %s10967_s19 }
  0x41   : > { %p10455_p8 = scmp.lt.s32.totalorder %s10453_s16, %s10446_s28 }
  0x42   : > { %p10449_p1 = pnand %p10447_p0, %p10987_p7 }
  0x43   : > { %p10456_p9 = por %p10455_p8, %p10454_p6 }
  0x44   : > { %p10450_p4 = pneg %p10449_p1 }
  0x46   : > { %p10457_p10 = pnand %p10456_p9, %p10450_p4 }
  0x48   : > { %10460 = shalt.err (!%p10457_p10)
}
  0x49   : > { %9812 = dma.hbm_to_vmem [thread:$0]  (!%p10971_p5), %s12419_s5, 16, %s10967_s19, [#allocation10]  }
  0x4a   : > { %s10461_s18 = scalar_lea.hbm %s12421_s7, 16 }
  0x4b   : > { %p10462_p11 = scmp.ne.s32.totalorder %s12421_s7, %s10461_s18  ;;  %p10468_p0 = scmp.lt.u32.totalorder %s10461_s18, %s12421_s7 }
  0x4d   : > { %p10464_p12 = pnand %p10462_p11, %p10987_p7 }
  0x4f   : > { %p10465_p13 = pneg %p10464_p12 }
  0x51   : > { %p10470_p1 = pnand %p10468_p0, %p10465_p13 }
  0x53   : > { %10473 = shalt.err (!%p10470_p1)
}
  0x54   : > { %s10474_s19 = scalar_lea.vmem %s10975_s20, 16  ;;  %s10481_s16 = scalar_lea.vmem %s10975_s20, 32 }
  0x55   : > { %p10475_p4 = scmp.ne.s32.totalorder %s10975_s20, %s10474_s19  ;;  %p10482_p9 = scmp.lt.s32.totalorder %s10975_s20, %s10975_s20 }
  0x56   : > { %p10483_p10 = scmp.lt.s32.totalorder %s10481_s16, %s10474_s19 }
  0x57   : > { %p10477_p6 = pnand %p10475_p4, %p10987_p7 }
  0x58   : > { %p10484_p11 = por %p10483_p10, %p10482_p9 }
  0x59   : > { %p10478_p8 = pneg %p10477_p6 }
  0x5b   : > { %p10485_p12 = pnand %p10484_p11, %p10478_p8 }
  0x5d   : > { %10488 = shalt.err (!%p10485_p12)
}
  0x5e   : > { %9818 = dma.hbm_to_vmem [thread:$0]  (!%p10971_p5), %s12421_s7, 16, %s10975_s20, [#allocation13]  }
  0x5f   : > { %s10489_s18 = scalar_lea.hbm %s12423_s9, 128 }
  0x60   : > { %p10490_p13 = scmp.ne.s32.totalorder %s12423_s9, %s10489_s18  ;;  %p10496_p4 = scmp.lt.u32.totalorder %s10489_s18, %s12423_s9 }
  0x62   : > { %p10492_p0 = pnand %p10490_p13, %p10987_p7 }
  0x64   : > { %p10493_p1 = pneg %p10492_p0 }
  0x66   : > { %p10498_p6 = pnand %p10496_p4, %p10493_p1 }
  0x68   : > { %10501 = shalt.err (!%p10498_p6)
}
  0x69   : > { %s10502_s20 = scalar_lea.vmem %s10977_s23, 128  ;;  %p10510_p11 = scmp.lt.s32.totalorder %s10977_s23, %s10977_s23 }
  0x6a   : > { %p10503_p8 = scmp.ne.s32.totalorder %s10977_s23, %s10502_s20  ;;  %p10511_p12 = scmp.lt.s32.totalorder %s10502_s20, %s10502_s20 }
  0x6c   : > { %p10505_p9 = pnand %p10503_p8, %p10987_p7  ;;  %p10512_p13 = por %p10511_p12, %p10510_p11 }
  0x6e   : > { %p10506_p10 = pneg %p10505_p9 }
  0x70   : > { %p10513_p0 = pnand %p10512_p13, %p10506_p10 }
  0x72   : > { %10516 = shalt.err (!%p10513_p0)
}
  0x73   : > { %9824 = dma.hbm_to_vmem [thread:$0]  (!%p10971_p5), %s12423_s9, 128, %s10977_s23, [#allocation16]  }
  0x74   : > { %s10825_s24 = smov [#allocation18]   ;;  %s10517_s18 = scalar_lea.hbm %s12426_s12, 8192 }
  0x75   : > { %s574_s10 = sshll.u32 %s10825_s24, 4  ;;  %p10518_p1 = scmp.ne.s32.totalorder %s12426_s12, %s10517_s18  ;;  %s575_s10 = int_to_ptr.vmem [resolvable:$true] %s574_s10 }
  0x76   : > { %p10524_p8 = scmp.lt.u32.totalorder %s10517_s18, %s12426_s12 }
  0x77   : > { %p10520_p4 = pnand %p10518_p1, %p10987_p7 }
  0x79   : > { %p10521_p6 = pneg %p10520_p4 }
  0x7b   : > { %p10526_p9 = pnand %p10524_p8, %p10521_p6 }
  0x7d   : > { %10529 = shalt.err (!%p10526_p9)
}
  0x7e   : > { %s10530_s23 = scalar_lea.vmem %s575_s10, 8192  ;;  %p10538_p13 = scmp.lt.s32.totalorder %s575_s10, %s575_s10 }
  0x7f   : > { %p10531_p10 = scmp.ne.s32.totalorder %s575_s10, %s10530_s23  ;;  %p10539_p0 = scmp.lt.s32.totalorder %s10530_s23, %s10530_s23 }
  0x81   : > { %p10533_p11 = pnand %p10531_p10, %p10987_p7  ;;  %p10540_p2 = por %p10539_p0, %p10538_p13 }
  0x83   : > { %p10534_p12 = pneg %p10533_p11 }
  0x85   : > { %p10541_p3 = pnand %p10540_p2, %p10534_p12 }
  0x87   : > { %10544 = shalt.err (!%p10541_p3)
}
  0x88   : > { %s10826_s20 = smov 128   ;;  %s10827_s19 = smov 8  }
  0x89   : > { %9830 = dma.hbm_to_vmem [thread:$0]  (!%p10971_p5), %s12426_s12, 8192, %s575_s10, [#allocation19], %s10826_s20, %s10826_s20, %s10827_s19  }
  0x8a   : > { %s10828_s27 = smov [#allocation21]   ;;  %s10545_s17 = scalar_lea.hbm %s12428_s14, 65536 }
  0x8b   : > { %s598_s29 = sshll.u32 %s10828_s27, 4  ;;  %p10546_p2 = scmp.ne.s32.totalorder %s12428_s14, %s10545_s17  ;;  %s599_s29 = int_to_ptr.vmem [resolvable:$true] %s598_s29 }
  0x8c   : > { %p10552_p4 = scmp.lt.u32.totalorder %s10545_s17, %s12428_s14 }
  0x8d   : > { %p10548_p3 = pnand %p10546_p2, %p10987_p7 }
  0x8f   : > { %p10549_p1 = pneg %p10548_p3 }
  0x91   : > { %p10554_p6 = pnand %p10552_p4, %p10549_p1 }
  0x93   : > { %10557 = shalt.err (!%p10554_p6)
}
  0x94   : > { %s10558_s10 = scalar_lea.vmem %s599_s29, 65536  ;;  %p10566_p11 = scmp.lt.s32.totalorder %s599_s29, %s599_s29 }
  0x95   : > { %p10559_p8 = scmp.ne.s32.totalorder %s599_s29, %s10558_s10  ;;  %p10567_p12 = scmp.lt.s32.totalorder %s10558_s10, %s10558_s10 }
  0x97   : > { %p10561_p9 = pnand %p10559_p8, %p10987_p7  ;;  %p10568_p13 = por %p10567_p12, %p10566_p11 }
  0x99   : > { %p10562_p10 = pneg %p10561_p9 }
  0x9b   : > { %p10569_p0 = pnand %p10568_p13, %p10562_p10 }
  0x9d   : > { %10572 = shalt.err (!%p10569_p0)
}
  0x9e   : > { %s10829_s19 = smov 2048   ;;  %s47_s3 = sadd.s32 1, %s10815_s25 }
  0x9f   : > { %9836 = dma.hbm_to_vmem [thread:$0]  (!%p10971_p5), %s12428_s14, 65536, %s599_s29, [#allocation22], %s10829_s19, %s10829_s19, %s10826_s20  }
  0xa0   : > { %p49_p2 = scmp.ge.s32.totalorder %s47_s3, 2  ;;  %s10830_s27 = smov [#allocation4]  }
  0xa1   : > { %s467_s18 = sshll.u32 %s10830_s27, 4  ;;  %s12452_s2 = sld [smem:[#allocation35_spill]]  ;;  %s468_s18 = int_to_ptr.vmem [resolvable:$true] %s467_s18 }
  0xa2   : > { %s12467_s3 = smov (%p49_p2, %s47_s3), 0 }
  0xa7   : > { %s10573_s26 = scalar_lea.hbm %s12452_s2, 64 }
  0xa8   : > { %p10574_p3 = scmp.ne.s32.totalorder %s12452_s2, %s10573_s26  ;;  %p10580_p6 = scmp.lt.u32.totalorder %s10573_s26, %s12452_s2 }
  0xaa   : > { %p10576_p1 = pnand %p10574_p3, %p10987_p7 }
  0xac   : > { %p10577_p4 = pneg %p10576_p1 }
  0xae   : > { %p10582_p8 = pnand %p10580_p6, %p10577_p4 }
  0xb0   : > { %10585 = shalt.err (!%p10582_p8)
}
  0xb1   : > { %s10586_s29 = scalar_lea.vmem %s468_s18, 64  ;;  %p10594_p12 = scmp.lt.s32.totalorder %s468_s18, %s468_s18 }
  0xb2   : > { %p10587_p9 = scmp.ne.s32.totalorder %s468_s18, %s10586_s29  ;;  %p10595_p13 = scmp.lt.s32.totalorder %s10586_s29, %s10586_s29 }
  0xb4   : > { %p10589_p10 = pnand %p10587_p9, %p10987_p7  ;;  %p10596_p0 = por %p10595_p13, %p10594_p12 }
  0xb6   : > { %p10590_p11 = pneg %p10589_p10 }
  0xb8   : > { %p10597_p2 = pnand %p10596_p0, %p10590_p11 }
  0xba   : > { %10600 = shalt.err (!%p10597_p2)
}
  0xbb   : > { %9803 = dma.hbm_to_vmem [thread:$0]  (!%p10971_p5), %s12452_s2, 64, %s468_s18, [#allocation5]  }
  0xbc   : > { %s10831_s24 = smov [#allocation8]   ;;  %s10601_s26 = scalar_lea.hbm %s12418_s4, 512 }
  0xbd   : > { %s488_s27 = sshll.u32 %s10831_s24, 4  ;;  %p10602_p3 = scmp.ne.s32.totalorder %s12418_s4, %s10601_s26  ;;  %s489_s27 = int_to_ptr.vmem [resolvable:$true] %s488_s27 }
  0xbe   : > { %p10608_p6 = scmp.lt.u32.totalorder %s10601_s26, %s12418_s4 }
  0xbf   : > { %p10604_p1 = pnand %p10602_p3, %p10987_p7 }
  0xc1   : > { %p10605_p4 = pneg %p10604_p1 }
  0xc3   : > { %p10610_p8 = pnand %p10608_p6, %p10605_p4 }
  0xc5   : > { %10613 = shalt.err (!%p10610_p8)
}
  0xc6   : > { %s10614_s18 = scalar_lea.vmem %s489_s27, 512  ;;  %p10622_p12 = scmp.lt.s32.totalorder %s489_s27, %s489_s27 }
  0xc7   : > { %p10615_p9 = scmp.ne.s32.totalorder %s489_s27, %s10614_s18  ;;  %p10623_p13 = scmp.lt.s32.totalorder %s10614_s18, %s10614_s18 }
  0xc9   : > { %p10617_p10 = pnand %p10615_p9, %p10987_p7  ;;  %p10624_p0 = por %p10623_p13, %p10622_p12 }
  0xcb   : > { %p10618_p11 = pneg %p10617_p10 }
  0xcd   : > { %p10625_p2 = pnand %p10624_p0, %p10618_p11 }
  0xcf   : > { %10628 = shalt.err (!%p10625_p2)
}
  0xd0   : > { %s10832_s29 = smov 64   ;;  %s10833_s19 = smov 4  }
  0xd1   : > { %9809 = dma.hbm_to_vmem [thread:$0]  (!%p10971_p5), %s12418_s4, 512, %s489_s27, [#allocation7], %s10832_s29, %s10832_s29, %s10833_s19  }
  0xd2   : > { %s10834_s22 = smov [#allocation11]   ;;  %s10835_s26 = smov [#allocation14]  }
  0xd3   : > { %s512_s17 = sshll.u32 %s10834_s22, 4  ;;  %s536_s28 = sshll.u32 %s10835_s26, 4  ;;  %s513_s17 = int_to_ptr.vmem [resolvable:$true] %s512_s17  ;;  %s11155_s28 = int_to_ptr.vmem [resolvable:$true] %s536_s28 }
  0xd4   : > { %s10629_s20 = scalar_lea.hbm %s12420_s6, 512 }
  0xd5   : > { %p10630_p3 = scmp.ne.s32.totalorder %s12420_s6, %s10629_s20  ;;  %p10636_p6 = scmp.lt.u32.totalorder %s10629_s20, %s12420_s6 }
  0xd7   : > { %p10632_p1 = pnand %p10630_p3, %p10987_p7 }
  0xd9   : > { %p10633_p4 = pneg %p10632_p1 }
  0xdb   : > { %p10638_p8 = pnand %p10636_p6, %p10633_p4 }
  0xdd   : > { %10641 = shalt.err (!%p10638_p8)
}
  0xde   : > { %s10642_s24 = scalar_lea.vmem %s513_s17, 512  ;;  %p10650_p12 = scmp.lt.s32.totalorder %s513_s17, %s513_s17 }
  0xdf   : > { %p10643_p9 = scmp.ne.s32.totalorder %s513_s17, %s10642_s24  ;;  %p10651_p13 = scmp.lt.s32.totalorder %s10642_s24, %s10642_s24 }
  0xe1   : > { %p10645_p10 = pnand %p10643_p9, %p10987_p7  ;;  %p10652_p0 = por %p10651_p13, %p10650_p12 }
  0xe3   : > { %p10646_p11 = pneg %p10645_p10 }
  0xe5   : > { %p10653_p2 = pnand %p10652_p0, %p10646_p11 }
  0xe7   : > { %10656 = shalt.err (!%p10653_p2)
}
  0xe8   : > { %9815 = dma.hbm_to_vmem [thread:$0]  (!%p10971_p5), %s12420_s6, 512, %s513_s17, [#allocation10], %s10832_s29, %s10832_s29, %s10833_s19  }
  0xe9   : > { %s10657_s10 = scalar_lea.hbm %s12422_s8, 8192 }
  0xea   : > { %p10658_p3 = scmp.ne.s32.totalorder %s12422_s8, %s10657_s10  ;;  %p10664_p6 = scmp.lt.u32.totalorder %s10657_s10, %s12422_s8 }
  0xec   : > { %p10660_p1 = pnand %p10658_p3, %p10987_p7 }
  0xee   : > { %p10661_p4 = pneg %p10660_p1 }
  0xf0   : > { %p10666_p8 = pnand %p10664_p6, %p10661_p4 }
  0xf2   : > { %10669 = shalt.err (!%p10666_p8)
}
  0xf3   : > { %s10670_s29 = scalar_lea.vmem %s11155_s28, 8192  ;;  %p10678_p12 = scmp.lt.s32.totalorder %s11155_s28, %s11155_s28 }
  0xf4   : > { %p10671_p9 = scmp.ne.s32.totalorder %s11155_s28, %s10670_s29  ;;  %p10679_p13 = scmp.lt.s32.totalorder %s10670_s29, %s10670_s29 }
  0xf6   : > { %p10673_p10 = pnand %p10671_p9, %p10987_p7  ;;  %p10680_p0 = por %p10679_p13, %p10678_p12 }
  0xf8   : > { %p10674_p11 = pneg %p10673_p10 }
  0xfa   : > { %p10681_p2 = pnand %p10680_p0, %p10674_p11 }
  0xfc   : > { %10684 = shalt.err (!%p10681_p2)
}
  0xfd   : > { %s10836_s19 = smov 512   ;;  %s10837_s17 = smov 32  }
  0xfe   : > { %9821 = dma.hbm_to_vmem [thread:$0]  (!%p10971_p5), %s12422_s8, 8192, %s11155_s28, [#allocation13], %s10836_s19, %s10836_s19, %s10837_s17  }
  0xff   : > { %s10838_s22 = smov [#allocation17]   ;;  %s10839_s23 = smov [#allocation20]  }
 0x100   : > { %s564_s26 = sshll.u32 %s10838_s22, 4  ;;  %s588_s10 = sshll.u32 %s10839_s23, 4  ;;  %s565_s26 = int_to_ptr.vmem [resolvable:$true] %s564_s26  ;;  %s11198_s10 = int_to_ptr.vmem [resolvable:$true] %s588_s10 }
 0x101   : > { %s10685_s16 = scalar_lea.hbm %s12425_s11, 64 }
 0x102   : > { %p10686_p3 = scmp.ne.s32.totalorder %s12425_s11, %s10685_s16  ;;  %p10692_p6 = scmp.lt.u32.totalorder %s10685_s16, %s12425_s11 }
 0x104   : > { %p10688_p1 = pnand %p10686_p3, %p10987_p7 }
 0x106   : > { %p10689_p4 = pneg %p10688_p1 }
 0x108   : > { %p10694_p8 = pnand %p10692_p6, %p10689_p4 }
 0x10a   : > { %10697 = shalt.err (!%p10694_p8)
}
 0x10b   : > { %s10698_s19 = scalar_lea.vmem %s565_s26, 64  ;;  %p10706_p12 = scmp.lt.s32.totalorder %s565_s26, %s565_s26 }
 0x10c   : > { %p10699_p9 = scmp.ne.s32.totalorder %s565_s26, %s10698_s19  ;;  %p10707_p13 = scmp.lt.s32.totalorder %s10698_s19, %s10698_s19 }
 0x10e   : > { %p10701_p10 = pnand %p10699_p9, %p10987_p7  ;;  %p10708_p0 = por %p10707_p13, %p10706_p12 }
 0x110   : > { %p10702_p11 = pneg %p10701_p10 }
 0x112   : > { %p10709_p2 = pnand %p10708_p0, %p10702_p11 }
 0x114   : > { %10712 = shalt.err (!%p10709_p2)
}
 0x115   : > { %9827 = dma.hbm_to_vmem [thread:$0]  (!%p10971_p5), %s12425_s11, 64, %s565_s26, [#allocation16]  }
 0x116   : > { %s10713_s20 = scalar_lea.hbm %s12427_s13, 32 }
 0x117   : > { %p10714_p3 = scmp.ne.s32.totalorder %s12427_s13, %s10713_s20  ;;  %p10720_p6 = scmp.lt.u32.totalorder %s10713_s20, %s12427_s13 }
 0x119   : > { %p10716_p1 = pnand %p10714_p3, %p10987_p7 }
 0x11b   : > { %p10717_p4 = pneg %p10716_p1 }
 0x11d   : > { %p10722_p8 = pnand %p10720_p6, %p10717_p4 }
 0x11f   : > { %10725 = shalt.err (!%p10722_p8)
}
 0x120   : > { %s10726_s26 = scalar_lea.vmem %s11198_s10, 32  ;;  %p10734_p12 = scmp.lt.s32.totalorder %s11198_s10, %s11198_s10 }
 0x121   : > { %p10727_p9 = scmp.ne.s32.totalorder %s11198_s10, %s10726_s26  ;;  %p10735_p13 = scmp.lt.s32.totalorder %s10726_s26, %s10726_s26 }
 0x123   : > { %p10729_p10 = pnand %p10727_p9, %p10987_p7  ;;  %p10736_p0 = por %p10735_p13, %p10734_p12 }
 0x125   : > { %p10730_p11 = pneg %p10729_p10 }
 0x127   : > { %p10737_p2 = pnand %p10736_p0, %p10730_p11 }
 0x129   : > { %10740 = shalt.err (!%p10737_p2)
}
 0x12a   : > { %9833 = dma.hbm_to_vmem [thread:$0]  (!%p10971_p5), %s12427_s13, 32, %s11198_s10, [#allocation19]  }
 0x12b   : > { %s10840_s19 = smov [#allocation23]   ;;  %s10741_s23 = scalar_lea.hbm %s12429_s15, 512 }
 0x12c   : > { %s612_s17 = sshll.u32 %s10840_s19, 4  ;;  %p10742_p3 = scmp.ne.s32.totalorder %s12429_s15, %s10741_s23  ;;  %s613_s17 = int_to_ptr.vmem [resolvable:$true] %s612_s17 }
 0x12d   : > { %p10748_p6 = scmp.lt.u32.totalorder %s10741_s23, %s12429_s15 }
 0x12e   : > { %p10744_p1 = pnand %p10742_p3, %p10987_p7 }
 0x130   : > { %p10745_p4 = pneg %p10744_p1 }
 0x132   : > { %p10750_p8 = pnand %p10748_p6, %p10745_p4 }
 0x134   : > { %10753 = shalt.err (!%p10750_p8)
}
 0x135   : > { %s10754_s10 = scalar_lea.vmem %s613_s17, 512  ;;  %p10762_p12 = scmp.lt.s32.totalorder %s613_s17, %s613_s17 }
 0x136   : > { %p10755_p9 = scmp.ne.s32.totalorder %s613_s17, %s10754_s10  ;;  %p10763_p13 = scmp.lt.s32.totalorder %s10754_s10, %s10754_s10 }
 0x138   : > { %p10757_p10 = pnand %p10755_p9, %p10987_p7  ;;  %p10764_p0 = por %p10763_p13, %p10762_p12 }
 0x13a   : > { %p10758_p11 = pneg %p10757_p10 }
 0x13c   : > { %p10765_p2 = pnand %p10764_p0, %p10758_p11 }
 0x13e   : > { %10768 = shalt.err (!%p10765_p2)
}
 0x13f   : > { %9839 = dma.hbm_to_vmem [thread:$0]  (!%p10971_p5), %s12429_s15, 512, %s613_s17, [#allocation22]  }
 0x140   : > { %p12453_p3 = scmp.ne.s32.totalorder %s12448_s30, 0 }
 0x141   : > { %p12454_p1 = scmp.ne.s32.totalorder (!%p12453_p3), %s12447_s0, 0 }
 0x142   : > { %645 = sbr.rel (%p12453_p3) target bundleno = 2961 (0xb91), region = 84 }
 0x149   : > { %10782 = dma.done.wait (%p12454_p1), [#allocation5], 64  }
 0x14a   : > { %10784 = vsyncadd (%p12454_p1), [#allocation5], 4294967232 }
 0x14b   : > { %10786 = dma.done.wait (%p12454_p1), [#allocation7], 528  }
 0x14c   : > { %10788 = vsyncadd (%p12454_p1), [#allocation7], 4294966768 }
 0x14d   : > { %10790 = dma.done.wait (%p12454_p1), [#allocation10], 528  }
 0x14e   : > { %10792 = vsyncadd (%p12454_p1), [#allocation10], 4294966768 }
 0x14f   : > { %10794 = dma.done.wait (%p12454_p1), [#allocation13], 8208  }
 0x150   : > { %10796 = vsyncadd (%p12454_p1), [#allocation13], 4294959088 }
 0x151   : > { %10798 = dma.done.wait (%p12454_p1), [#allocation16], 192  }
 0x152   : > { %10800 = vsyncadd (%p12454_p1), [#allocation16], 4294967104 }
 0x153   : > { %10802 = dma.done.wait (%p12454_p1), [#allocation19], 8224  }
 0x154   : > { %10804 = vsyncadd (%p12454_p1), [#allocation19], 4294959072 }
 0x155   : > { %10806 = dma.done.wait (%p12454_p1), [#allocation22], 66048  }
 0x156   : > { %10808 = vsyncadd (%p12454_p1), [#allocation22], 4294901248  ;;  %s12455_s30 = sld [smem:[#allocation31_spill]]  ;;  %v10841_v0 = vmov 0.0   ;;  %vm10842_vm0 = vmmov 0   ;;  %vm801_vm1 = vcmask 1042432  }
 0x157   : > { %9679 = vmatprep.subr.mxu0 %v10841_v0  ;;  %9681 = vmatprep.mubr.msk.f32.mxu0 %vm10842_vm0, %v10841_v0  ;;  %s12456_s24 = sld [smem:[#allocation34_spill]]  ;;  %vm797_vm2 = vcmask 23552   ;;  %v796_v1 = vld [vmem:[#allocation4] sm:$0x7]  ;;  %v9916_v3 = vld [vmem:[#allocation8] sm:$0xff]   ;;  %v9917_v4 = vld [vmem:[#allocation8 + $0x8] sm:$0xff]  }
 0x158   : > { %9684 = vmatprep.subr.bf16.mxu1 %v10841_v0  ;;  %9686 = vmatprep.mubr.msk.bf16.mxu1 %vm10842_vm0, %v10841_v0  ;;  %vm875_vm3 = vcmask 518144   ;;  %vm893_vm4 = vcmask 1040384   ;;  %vm894_vm5 = vcmask 1041408   ;;  %v10843_v7 = vmov 65535   ;;  %s12457_s22 = sld [smem:[#allocation33_spill]]  ;;  %v9918_v16 = vld [vmem:[#allocation8 + $0x10] sm:$0xff]  }
 0x159   : > { %9680 = vmatpush3.msk.msra.mxu0 %vm801_vm1, %v796_v1  ;;  %v895_v8 = vsel %vm893_vm4, 4294967295, %v10843_v7  ;;  %v9919_v17 = vld [vmem:[#allocation8 + $0x18] sm:$0xff]   ;;  %v9920_v18 = vld [vmem:[#allocation11] sm:$0xff]   ;;  %v9921_v19 = vld [vmem:[#allocation11 + $0x8] sm:$0xff]   ;;  %s12458_s27 = sld [smem:[#allocation38_spill]]  ;;  %vm951_vm6 = vcmask 519168  }
 0x15a   : > { %9690 = vmatprep.subr.bf16.mxu0 %v10841_v0  ;;  %v896_v10 = vsel %vm894_vm5, %v895_v8, 0  ;;  %v8747_v20 = vld [vmem:[#allocation6] ss:$0 sm:$0xff]  ;;  %vm993_vm7 = vcmask 523264   ;;  %v9922_v32 = vld [vmem:[#allocation11 + $0x10] sm:$0xff]   ;;  %v1127_v34 = vld [vmem:[#allocation14] sm:$0xff] }
 0x15b   : > { %v9923_v33 = vld [vmem:[#allocation11 + $0x18] sm:$0xff]   ;;  %v1128_v35 = vld [vmem:[#allocation14 + $0x20] sm:$0xff]  ;;  %v1321_v36 = vld [vmem:[#allocation14 + $0x8] sm:$0xff]  ;;  %s12462_s1 = sld [smem:[#allocation39_spill]] }
 0x15c   : > { %p762_p5 = scmp.lt.s32.totalorder %s12455_s30, 1  ;;  %v8763_v37 = vcombine.low %v1127_v34, %v1128_v35  ;;  %v8764_v38 = vcombine.high %v1127_v34, %v1128_v35  ;;  %v1322_v39 = vld [vmem:[#allocation14 + $0x28] sm:$0xff]  ;;  %v1129_v40 = vld [vmem:[#allocation14 + $0x40] sm:$0xff]  ;;  %v8751_v62 = vld [vmem:[#allocation9] ss:$0 sm:$0xff] }
 0x15d   : > { %v1130_v41 = vld [vmem:[#allocation14 + $0x60] sm:$0xff]  ;;  %v8779_v42 = vcombine.low %v1321_v36, %v1322_v39  ;;  %v8780_v43 = vcombine.high %v1321_v36, %v1322_v39 }
 0x15e   : > { %s12469_s30 = smov (!%p762_p5, %s12455_s30), 1  ;;  %v8766_v44 = vcombine.high %v1129_v40, %v1130_v41  ;;  %v8765_v45 = vcombine.low %v1129_v40, %v1130_v41  ;;  %v1131_v46 = vld [vmem:[#allocation14 + $0x80] sm:$0xff]  ;;  %v1336_v40 = vld [vmem:[#allocation14 + $0x1e8] sm:$0xff] }
 0x15f   : > { %s8741_s0 = sshll.u32 %s12469_s30, 2  ;;  %s9661_s19 = sshll.u32 %s12469_s30, 4  ;;  %v1132_v47 = vld [vmem:[#allocation14 + $0xa0] sm:$0xff] }
 0x160   : > { %s774_s28 = scalar_lea.vmem %s12456_s24, %s8741_s0  ;;  %s769_s23 = scalar_lea.vmem %s12457_s22, %s9661_s19  ;;  %v8768_v48 = vcombine.high %v1131_v46, %v1132_v47  ;;  %v8767_v49 = vcombine.low %v1131_v46, %v1132_v47  ;;  %v1133_v50 = vld [vmem:[#allocation14 + $0xc0] sm:$0xff]  ;;  %v1701_v46 = vld [vmem:[#allocation14 + $0x18] sm:$0xff] }
 0x161   : > { %v795_v2 = vld [vmem:[%s774_s28] sm:$0x7]  ;;  %v878_v13 = vld [vmem:[%s769_s23 + $0x8] sm:$0xff]  ;;  %s9662_s20 = sshll.u32 %s12469_s30, 3  ;;  %v1134_v51 = vld [vmem:[#allocation14 + $0xe0] sm:$0xff]  ;;  %s12459_s0 = sld [smem:[#allocation37_spill]] }
 0x162   : > { %9682 = vmatmul.mubr.msk.f32.vlgmr.msra.gmra.mrb[0].mxu0 %vm797_vm2, %v795_v2  ;;  %v877_v12 = vld [vmem:[%s769_s23] sm:$0xff]  ;;  %s783_s10 = scalar_lea.vmem %s12458_s27, %s9662_s20  ;;  %v8770_v52 = vcombine.high %v1133_v50, %v1134_v51  ;;  %v8769_v53 = vcombine.low %v1133_v50, %v1134_v51  ;;  %v1135_v54 = vld [vmem:[#allocation14 + $0x100] sm:$0xff]  ;;  %s8744_s29 = sshll.u32 %s12469_s30, 5 }
 0x163   : > { %9698 = vmatprep.mubr.msk.bf16.mxu0 %vm10842_vm0, %v10841_v0  ;;  %9691 = vmatpush3.bf16.msra.mxu0 %v9916_v3  ;;  %v879_v15 = vpack.c.bf16 %v878_v13, %v877_v12  ;;  %v1136_v55 = vld [vmem:[#allocation14 + $0x120] sm:$0xff]  ;;  %v1326_v12 = vld [vmem:[#allocation14 + $0xa8] sm:$0xff]  ;;  %s12300_s30 = scalar_lea.vmem %s12462_s1, %s8744_s29 }
 0x164   : > { %9692 = vmatprep.subr.bf16.mxu0 %v10841_v0  ;;  %v8772_v56 = vcombine.high %v1135_v54, %v1136_v55  ;;  %v8771_v57 = vcombine.low %v1135_v54, %v1136_v55  ;;  %v1137_v58 = vld [vmem:[#allocation14 + $0x140] sm:$0xff] }
 0x165   : > { %v1138_v59 = vld [vmem:[#allocation14 + $0x160] sm:$0xff] }
 0x166   : > { %v8774_v60 = vcombine.high %v1137_v58, %v1138_v59  ;;  %v8773_v61 = vcombine.low %v1137_v58, %v1138_v59  ;;  %v1141_v36 = vld [vmem:[#allocation14 + $0x1c0] sm:$0xff] }
 0x167   : > { %9693 = vmatpush3.bf16.msra.mxu0 %v9917_v4 }
 0x168   : > { %9694 = vmatprep.subr.bf16.mxu0 %v10841_v0 }
 0x16b   : > { %9695 = vmatpush3.bf16.msra.mxu0 %v9918_v16  ;;  %v1328_v16 = vld [vmem:[#allocation14 + $0xe8] sm:$0xff] }
 0x16c   : > { %9696 = vmatprep.subr.bf16.mxu0 %v10841_v0 }
 0x16f   : > { %9697 = vmatpush3.bf16.msra.mxu0 %v9919_v17 }
 0x170   : > { %1235 = vmatprep.subr.bf16.mxu0 %v8764_v38  ;;  %v1335_v38 = vld [vmem:[#allocation14 + $0x1c8] sm:$0xff] }
 0x235   : > { %v871_v5 = vpop.f32.mrb[0].mxu0 }
 0x236   : > { %876 = vst.msk [vmem:[#allocation3] sm:$0x7] %vm875_vm3, %v871_v5  ;;  %v9683_v6 = vpop.f32.mrb[1].mxu0  ;;  %v1323_v5 = vld [vmem:[#allocation14 + $0x48] sm:$0xff] }
 0x237   : > { %v1324_v6 = vld [vmem:[#allocation14 + $0x68] sm:$0xff] }
 0x238   : > { %v8781_v13 = vcombine.low %v1323_v5, %v1324_v6 }
 0x23d   : > { %v880_v9 = vld [vmem:[#allocation3] sm:$0x7] }
 0x23e   : > { %v881_v11 = vpack.c.bf16 %v880_v9, %v880_v9 }
 0x240   : > { %v898_v14 = vand.u32 %v896_v10, %v881_v11  ;;  %v8782_v10 = vcombine.high %v1323_v5, %v1324_v6  ;;  %v1325_v11 = vld [vmem:[#allocation14 + $0x88] sm:$0xff]  ;;  %v1515_v5 = vld [vmem:[#allocation14 + $0x90] sm:$0xff] }
 0x241   : > { %v8783_v17 = vcombine.low %v1325_v11, %v1326_v12  ;;  %v1516_v6 = vld [vmem:[#allocation14 + $0xb0] sm:$0xff] }
 0x242   : > { %9685 = vmatpush3.bf16.msra.mxu1 %v898_v14  ;;  %v8784_v14 = vcombine.high %v1325_v11, %v1326_v12  ;;  %v8800_v11 = vcombine.high %v1515_v5, %v1516_v6 }
 0x243   : > { %9702 = vmatprep.subr.bf16.mxu1 %v10841_v0 }
 0x245   : > { %9687 = vmatmul.mubr.msk.bf16.vlgmr.msra.gmra.mrb[0].mxu1 %vm797_vm2, %v879_v15  ;;  %v1327_v15 = vld [vmem:[#allocation14 + $0xc8] sm:$0xff] }
 0x246   : > { %9710 = vmatprep.mubr.msk.bf16.mxu1 %vm10842_vm0, %v10841_v0  ;;  %9703 = vmatpush3.bf16.msra.mxu1 %v9920_v18  ;;  %v8786_v18 = vcombine.high %v1327_v15, %v1328_v16 }
 0x247   : > { %9704 = vmatprep.subr.bf16.mxu1 %v10841_v0 }
 0x24a   : > { %9705 = vmatpush3.bf16.msra.mxu1 %v9921_v19  ;;  %v1329_v19 = vld [vmem:[#allocation14 + $0x108] sm:$0xff] }
 0x24b   : > { %9706 = vmatprep.subr.bf16.mxu1 %v10841_v0 }
 0x24e   : > { %9707 = vmatpush3.bf16.msra.mxu1 %v9922_v32  ;;  %v1334_v32 = vld [vmem:[#allocation14 + $0x1a8] sm:$0xff] }
 0x24f   : > { %9708 = vmatprep.subr.bf16.mxu1 %v10841_v0 }
 0x252   : > { %9709 = vmatpush3.bf16.msra.mxu1 %v9923_v33 }
 0x253   : > { %1429 = vmatprep.subr.bf16.mxu1 %v8780_v43  ;;  %v8794_v43 = vcombine.high %v1335_v38, %v1336_v40 }
 0x318   : > { %v934_v21 = vpop.f32.mrb[0].mxu1 }
 0x319   : > { %v935_v22 = vadd.f32 %v8747_v20, %v934_v21  ;;  %v9688_v23 = vpop.f32.mrb[1].mxu1  ;;  %v8785_v21 = vcombine.low %v1327_v15, %v1328_v16  ;;  %v1707_v15 = vld [vmem:[#allocation14 + $0xd8] sm:$0xff] }
 0x31a   : > { %v937_v24 = vpop.f32.mrb[2].mxu1  ;;  %v1331_v23 = vld [vmem:[#allocation14 + $0x148] sm:$0xff]  ;;  %v1708_v16 = vld [vmem:[#allocation14 + $0xf8] sm:$0xff] }
 0x31b   : > { %v941_v25 = vmax.f32 %v935_v22, 0.0  ;;  %v938_v26 = vadd.f32 %v8747_v20, %v937_v24  ;;  %v9689_v27 = vpop.f32.mrb[3].mxu1  ;;  %v1330_v20 = vld [vmem:[#allocation14 + $0x128] sm:$0xff] }
 0x31c   : > { %v8788_v22 = vcombine.high %v1329_v19, %v1330_v20  ;;  %v1332_v24 = vld [vmem:[#allocation14 + $0x168] sm:$0xff] }
 0x31d   : > { %v9663_v28 = vpack.c.bf16 %v941_v25, %v941_v25  ;;  %v942_v29 = vmax.f32 %v938_v26, 0.0  ;;  %v8790_v26 = vcombine.high %v1331_v23, %v1332_v24  ;;  %v8789_v27 = vcombine.low %v1331_v23, %v1332_v24  ;;  %v1709_v23 = vld [vmem:[#allocation14 + $0x118] sm:$0xff] }
 0x31e   : > { %v1710_v24 = vld [vmem:[#allocation14 + $0x138] sm:$0xff] }
 0x31f   : > { %952 = vst.msk [vmem:[%s783_s10] sm:$0xf] %vm951_vm6, %v9663_v28  ;;  %v943_v30 = vpack.c.bf16 %v942_v29, %v941_v25  ;;  %v9664_v31 = vpack.c.bf16 %v942_v29, %v942_v29  ;;  %v8787_v25 = vcombine.low %v1329_v19, %v1330_v20  ;;  %v1139_v28 = vld [vmem:[#allocation14 + $0x180] sm:$0xff]  ;;  %v8818_v20 = vcombine.high %v1707_v15, %v1708_v16 }
 0x320   : > { %v1140_v29 = vld [vmem:[#allocation14 + $0x1a0] sm:$0xff] }
 0x321   : > { %953 = vst.msk [vmem:[%s783_s10 + $0x4] sm:$0xf] %vm951_vm6, %v9664_v31  ;;  %9699 = vmatmul.mubr.msk.bf16.vlgmr.msra.gmra.mrb[4].mxu0 %vm993_vm7, %v943_v30  ;;  %v1333_v30 = vld [vmem:[#allocation14 + $0x188] sm:$0xff]  ;;  %v8776_v31 = vcombine.high %v1139_v28, %v1140_v29  ;;  %v8775_v33 = vcombine.low %v1139_v28, %v1140_v29  ;;  %v8820_v28 = vcombine.high %v1709_v23, %v1710_v24  ;;  %v1521_v29 = vld [vmem:[#allocation14 + $0x150] sm:$0xff] }
 0x322   : > { %1236 = vmatpush1.bf16.msra.mxu0 %v8763_v37  ;;  %v8791_v34 = vcombine.low %v1333_v30, %v1334_v32  ;;  %v8792_v35 = vcombine.high %v1333_v30, %v1334_v32  ;;  %v1142_v37 = vld [vmem:[#allocation14 + $0x1e0] sm:$0xff]  ;;  %v1522_v30 = vld [vmem:[#allocation14 + $0x170] sm:$0xff]  ;;  %v1712_v32 = vld [vmem:[#allocation14 + $0x178] sm:$0xff] }
 0x323   : > { %1237 = vmatprep.subr.bf16.mxu0 %v8766_v44  ;;  %v8778_v39 = vcombine.high %v1141_v36, %v1142_v37  ;;  %v8777_v41 = vcombine.low %v1141_v36, %v1142_v37  ;;  %v1511_v44 = vld [vmem:[#allocation14 + $0x10] sm:$0xff] }
 0x324   : > { %v1523_v37 = vld [vmem:[#allocation14 + $0x190] sm:$0xff] }
 0x326   : > { %1238 = vmatpush1.bf16.msra.mxu0 %v8765_v45  ;;  %v1512_v45 = vld [vmem:[#allocation14 + $0x30] sm:$0xff] }
 0x327   : > { %1239 = vmatprep.subr.bf16.mxu0 %v8768_v48  ;;  %v8796_v47 = vcombine.high %v1511_v44, %v1512_v45  ;;  %v1702_v48 = vld [vmem:[#allocation14 + $0x38] sm:$0xff] }
 0x328   : > { %v8811_v50 = vcombine.low %v1701_v46, %v1702_v48  ;;  %v8812_v51 = vcombine.high %v1701_v46, %v1702_v48  ;;  %v1526_v46 = vld [vmem:[#allocation14 + $0x1f0] sm:$0xff]  ;;  %v1716_v48 = vld [vmem:[#allocation14 + $0x1f8] sm:$0xff] }
 0x32a   : > { %1240 = vmatpush1.bf16.msra.mxu0 %v8767_v49  ;;  %v8795_v49 = vcombine.low %v1511_v44, %v1512_v45  ;;  %v1525_v45 = vld [vmem:[#allocation14 + $0x1d0] sm:$0xff] }
 0x32b   : > { %1241 = vmatprep.subr.bf16.mxu0 %v8770_v52  ;;  %v10844_v52 = vmov 0  }
 0x32c   : > { %1267 = vmatprep.mubr.bf16.mxu0 %v10844_v52 }
 0x32e   : > { %1242 = vmatpush1.bf16.msra.mxu0 %v8769_v53  ;;  %v8757_v53 = vld [vmem:[#allocation12] ss:$0 sm:$0xff] }
 0x32f   : > { %1243 = vmatprep.subr.bf16.mxu0 %v8772_v56 }
 0x332   : > { %1244 = vmatpush1.bf16.msra.mxu0 %v8771_v57 }
 0x333   : > { %1245 = vmatprep.subr.bf16.mxu0 %v8774_v60  ;;  %v1513_v60 = vld [vmem:[#allocation14 + $0x50] sm:$0xff] }
 0x336   : > { %1246 = vmatpush1.bf16.msra.mxu0 %v8773_v61  ;;  %v1514_v61 = vld [vmem:[#allocation14 + $0x70] sm:$0xff] }
 0x337   : > { %1247 = vmatprep.subr.bf16.mxu0 %v8776_v31  ;;  %v1711_v31 = vld [vmem:[#allocation14 + $0x158] sm:$0xff] }
 0x338   : > { %v8822_v36 = vcombine.high %v1711_v31, %v1712_v32 }
 0x33a   : > { %1248 = vmatpush1.bf16.msra.mxu0 %v8775_v33 }
 0x33b   : > { %1249 = vmatprep.subr.bf16.mxu0 %v8778_v39  ;;  %v1713_v39 = vld [vmem:[#allocation14 + $0x198] sm:$0xff] }
 0x33e   : > { %1250 = vmatpush1.bf16.msra.mxu0 %v8777_v41  ;;  %v8805_v41 = vcombine.low %v1521_v29, %v1522_v30 }
 0x33f   : > { %1619 = vmatprep.subr.bf16.mxu0 %v8796_v47  ;;  %v1715_v47 = vld [vmem:[#allocation14 + $0x1d8] sm:$0xff] }
 0x3f4   : > { %v1031_v63 = vpop.f32.mrb[4].mxu0 }
 0x3f5   : > { %v1032_v0 = vadd.f32 %v8751_v62, %v1031_v63  ;;  %v9700_v1 = vpop.f32.mrb[5].mxu0  ;;  %v1704_v63 = vld [vmem:[#allocation14 + $0x78] sm:$0xff] }
 0x3f6   : > { %v1034_v2 = vpop.f32.mrb[6].mxu0 }
 0x3f7   : > { %v1035_v3 = vadd.f32 %v8751_v62, %v1034_v2  ;;  %v9701_v4 = vpop.f32.mrb[7].mxu0  ;;  %v1038_v7 = vmax.f32 %v1032_v0, 0.0  ;;  %v1703_v62 = vld [vmem:[#allocation14 + $0x58] sm:$0xff] }
 0x3f8   : > { %v8814_v4 = vcombine.high %v1703_v62, %v1704_v63 }
 0x3f9   : > { %v1039_v8 = vmax.f32 %v1035_v3, 0.0  ;;  %v8798_v3 = vcombine.high %v1513_v60, %v1514_v61 }
 0x3fb   : > { %v1040_v9 = vpack.c.bf16 %v1039_v8, %v1038_v7  ;;  %v1705_v7 = vld [vmem:[#allocation14 + $0x98] sm:$0xff] }
 0x3fc   : > { %v1706_v8 = vld [vmem:[#allocation14 + $0xb8] sm:$0xff] }
 0x3fd   : > { %9711 = vmatmul.mubr.msk.bf16.vlgmr.msra.gmra.mrb[4].mxu1 %vm993_vm7, %v1040_v9  ;;  %v8797_v9 = vcombine.low %v1513_v60, %v1514_v61  ;;  %v8816_v12 = vcombine.high %v1705_v7, %v1706_v8  ;;  %v9935_v60 = vld [vmem:[%s12459_s0 + $0x2c] ss:$16 sps:$4 sm:$0xff]   ;;  %v9930_v61 = vld [vmem:[%s12459_s0 + $0x20] ss:$16 sps:$4 sm:$0xff]  }
 0x3fe   : > { %1430 = vmatpush1.bf16.msra.mxu1 %v8779_v42  ;;  %v8793_v42 = vcombine.low %v1335_v38, %v1336_v40  ;;  %1461 = vmatprep.mubr.bf16.mxu1 %v10844_v52  ;;  %v1524_v38 = vld [vmem:[#allocation14 + $0x1b0] sm:$0xff]  ;;  %v1714_v40 = vld [vmem:[#allocation14 + $0x1b8] sm:$0xff] }
 0x3ff   : > { %1431 = vmatprep.subr.bf16.mxu1 %v8782_v10  ;;  %v8813_v10 = vcombine.low %v1703_v62, %v1704_v63  ;;  %v8824_v44 = vcombine.high %v1713_v39, %v1714_v40  ;;  %v9933_v62 = vld [vmem:[%s12459_s0 + $0x28] ss:$16 sps:$4 sm:$0xff]   ;;  %v9938_v63 = vld [vmem:[%s12459_s0 + $0x44] ss:$16 sps:$4 sm:$0xff]  }
 0x402   : > { %1432 = vmatpush1.bf16.msra.mxu1 %v8781_v13  ;;  %v1517_v13 = vld [vmem:[#allocation14 + $0xd0] sm:$0xff] }
 0x403   : > { %1433 = vmatprep.subr.bf16.mxu1 %v8784_v14  ;;  %v1518_v14 = vld [vmem:[#allocation14 + $0xf0] sm:$0xff] }
 0x404   : > { %v8802_v19 = vcombine.high %v1517_v13, %v1518_v14 }
 0x406   : > { %1434 = vmatpush1.bf16.msra.mxu1 %v8783_v17  ;;  %v8799_v17 = vcombine.low %v1515_v5, %v1516_v6  ;;  %v9947_v5 = vld [vmem:[%s12459_s0 + $0x6c] ss:$16 sps:$4 sm:$0xff]   ;;  %v9942_v6 = vld [vmem:[%s12459_s0 + $0x60] ss:$16 sps:$4 sm:$0xff]  }
 0x407   : > { %1435 = vmatprep.subr.bf16.mxu1 %v8786_v18  ;;  %v8815_v18 = vcombine.low %v1705_v7, %v1706_v8  ;;  %v9945_v7 = vld [vmem:[%s12459_s0 + $0x68] ss:$16 sps:$4 sm:$0xff]   ;;  %v9950_v8 = vld [vmem:[%s12459_s0 + $0x84] ss:$16 sps:$4 sm:$0xff]  }
 0x40a   : > { %1436 = vmatpush1.bf16.msra.mxu1 %v8785_v21  ;;  %v1519_v21 = vld [vmem:[#allocation14 + $0x110] sm:$0xff] }
 0x40b   : > { %1437 = vmatprep.subr.bf16.mxu1 %v8788_v22  ;;  %v1520_v22 = vld [vmem:[#allocation14 + $0x130] sm:$0xff] }
 0x40c   : > { %v8803_v33 = vcombine.low %v1519_v21, %v1520_v22 }
 0x40e   : > { %1438 = vmatpush1.bf16.msra.mxu1 %v8787_v25  ;;  %v8801_v25 = vcombine.low %v1517_v13, %v1518_v14  ;;  %v9954_v13 = vld [vmem:[%s12459_s0 + $0xa0] ss:$16 sps:$4 sm:$0xff]   ;;  %v9957_v14 = vld [vmem:[%s12459_s0 + $0xa8] ss:$16 sps:$4 sm:$0xff]  }
 0x40f   : > { %1439 = vmatprep.subr.bf16.mxu1 %v8790_v26  ;;  %v8817_v26 = vcombine.low %v1707_v15, %v1708_v16  ;;  %v9959_v15 = vld [vmem:[%s12459_s0 + $0xac] ss:$16 sps:$4 sm:$0xff]   ;;  %v9962_v16 = vld [vmem:[%s12459_s0 + $0xc4] ss:$16 sps:$4 sm:$0xff]  }
 0x412   : > { %1440 = vmatpush1.bf16.msra.mxu1 %v8789_v27  ;;  %v8804_v27 = vcombine.high %v1519_v21, %v1520_v22  ;;  %v9971_v21 = vld [vmem:[%s12459_s0 + $0xec] ss:$16 sps:$4 sm:$0xff]   ;;  %v9966_v22 = vld [vmem:[%s12459_s0 + $0xe0] ss:$16 sps:$4 sm:$0xff]  }
 0x413   : > { %1441 = vmatprep.subr.bf16.mxu1 %v8792_v35  ;;  %v8806_v35 = vcombine.high %v1521_v29, %v1522_v30  ;;  %v9983_v29 = vld [vmem:[%s12459_s0 + $0x12c] ss:$16 sps:$4 sm:$0xff]   ;;  %v9978_v30 = vld [vmem:[%s12459_s0 + $0x120] ss:$16 sps:$4 sm:$0xff]  }
 0x416   : > { %1442 = vmatpush1.bf16.msra.mxu1 %v8791_v34  ;;  %v8819_v34 = vcombine.low %v1709_v23, %v1710_v24  ;;  %v9969_v23 = vld [vmem:[%s12459_s0 + $0xe8] ss:$16 sps:$4 sm:$0xff]   ;;  %v9974_v24 = vld [vmem:[%s12459_s0 + $0x104] ss:$16 sps:$4 sm:$0xff]  }
 0x417   : > { %1443 = vmatprep.subr.bf16.mxu1 %v8794_v43  ;;  %v8808_v43 = vcombine.high %v1523_v37, %v1524_v38 }
 0x41a   : > { %1444 = vmatpush1.bf16.msra.mxu1 %v8793_v42  ;;  %v8821_v42 = vcombine.low %v1711_v31, %v1712_v32  ;;  %v9981_v31 = vld [vmem:[%s12459_s0 + $0x128] ss:$16 sps:$4 sm:$0xff]   ;;  %v9986_v32 = vld [vmem:[%s12459_s0 + $0x144] ss:$16 sps:$4 sm:$0xff]  }
 0x41b   : > { %1809 = vmatprep.subr.bf16.mxu1 %v8812_v51  ;;  %v8810_v51 = vcombine.high %v1525_v45, %v1526_v46 }
 0x4d0   : > { %v1117_v54 = vpop.f32.mrb[4].mxu1 }
 0x4d1   : > { %v1118_v55 = vadd.f32 %v8757_v53, %v1117_v54  ;;  %v9712_v56 = vpop.f32.mrb[5].mxu1  ;;  %v8825_v54 = vcombine.low %v1715_v47, %v1716_v48 }
 0x4d2   : > { %v1120_v57 = vpop.f32.mrb[6].mxu1  ;;  %v9929_v56 = vld [vmem:[%s12459_s0 + $0xc] ss:$16 sps:$4 sm:$0xff]  }
 0x4d3   : > { %v1121_v58 = vadd.f32 %v8757_v53, %v1120_v57  ;;  %v9713_v59 = vpop.f32.mrb[7].mxu1  ;;  %v1124_v0 = vmax.f32 %v1118_v55, 0.0  ;;  %v8809_v53 = vcombine.low %v1525_v45, %v1526_v46  ;;  %v9926_v55 = vld [vmem:[%s12459_s0 + $0x4] ss:$16 sps:$4 sm:$0xff]   ;;  %v9924_v57 = vld [vmem:[%s12459_s0] ss:$16 sps:$4 sm:$0xff]  }
 0x4d4   : > { %v9932_v59 = vld [vmem:[%s12459_s0 + $0x24] ss:$16 sps:$4 sm:$0xff]   ;;  %v10007_v45 = vld [vmem:[%s12459_s0 + $0x1ac] ss:$16 sps:$4 sm:$0xff]   ;;  %v10002_v46 = vld [vmem:[%s12459_s0 + $0x1a0] ss:$16 sps:$4 sm:$0xff]  }
 0x4d5   : > { %v1125_v1 = vmax.f32 %v1121_v58, 0.0  ;;  %v9927_v58 = vld [vmem:[%s12459_s0 + $0x8] ss:$16 sps:$4 sm:$0xff]  }
 0x4d7   : > { %v11327_v2 = vpack.c.bf16 %v1125_v1, %v1124_v0  ;;  %v9941_v0 = vld [vmem:[%s12459_s0 + $0x4c] ss:$16 sps:$4 sm:$0xff]   ;;  %v9936_v1 = vld [vmem:[%s12459_s0 + $0x40] ss:$16 sps:$4 sm:$0xff]  }
 0x4d9   : > { %1268 = vmatmul.mubr.bf16.vlgmr.msra.gmra.mrb[8].mxu0 %v11327_v2  ;;  %1462 = vmatmul.mubr.bf16.vlgmr.msra.gmra.mrb[8].mxu1 %v11327_v2 }
 0x4da   : > { %1620 = vmatpush1.bf16.msra.mxu0 %v8795_v49  ;;  %1810 = vmatpush1.bf16.msra.mxu1 %v8811_v50  ;;  %v8807_v49 = vcombine.low %v1523_v37, %v1524_v38  ;;  %v8823_v50 = vcombine.low %v1713_v39, %v1714_v40  ;;  %v9995_v37 = vld [vmem:[%s12459_s0 + $0x16c] ss:$16 sps:$4 sm:$0xff]   ;;  %v9990_v38 = vld [vmem:[%s12459_s0 + $0x160] ss:$16 sps:$4 sm:$0xff]   ;;  %v9993_v39 = vld [vmem:[%s12459_s0 + $0x168] ss:$16 sps:$4 sm:$0xff]  }
 0x4db   : > { %1621 = vmatprep.subr.bf16.mxu0 %v8798_v3  ;;  %1811 = vmatprep.subr.bf16.mxu1 %v8814_v4  ;;  %v10845_v3 = vmov -inf   ;;  %v9944_v4 = vld [vmem:[%s12459_s0 + $0x64] ss:$16 sps:$4 sm:$0xff]  }
 0x4dc   : > { %1651 = vmatprep.mubr.bf16.mxu0 %v10844_v52  ;;  %1841 = vmatprep.mubr.bf16.mxu1 %v10844_v52  ;;  %v8826_v52 = vcombine.high %v1715_v47, %v1716_v48  ;;  %794 = vst [vmem:[#allocation2] sm:$0xff] %v10845_v3  ;;  %v9998_v40 = vld [vmem:[%s12459_s0 + $0x184] ss:$16 sps:$4 sm:$0xff]   ;;  %v10005_v47 = vld [vmem:[%s12459_s0 + $0x1a8] ss:$16 sps:$4 sm:$0xff]  }
 0x4dd   : > { %v10010_v48 = vld [vmem:[%s12459_s0 + $0x1c4] ss:$16 sps:$4 sm:$0xff]  }
 0x4de   : > { %1622 = vmatpush1.bf16.msra.mxu0 %v8797_v9  ;;  %1812 = vmatpush1.bf16.msra.mxu1 %v8813_v10  ;;  %v9953_v9 = vld [vmem:[%s12459_s0 + $0x8c] ss:$16 sps:$4 sm:$0xff]   ;;  %v9948_v10 = vld [vmem:[%s12459_s0 + $0x80] ss:$16 sps:$4 sm:$0xff]  }
 0x4df   : > { %1623 = vmatprep.subr.bf16.mxu0 %v8800_v11  ;;  %1813 = vmatprep.subr.bf16.mxu1 %v8816_v12  ;;  %v9951_v11 = vld [vmem:[%s12459_s0 + $0x88] ss:$16 sps:$4 sm:$0xff]   ;;  %v9956_v12 = vld [vmem:[%s12459_s0 + $0xa4] ss:$16 sps:$4 sm:$0xff]  }
 0x4e2   : > { %1624 = vmatpush1.bf16.msra.mxu0 %v8799_v17  ;;  %1814 = vmatpush1.bf16.msra.mxu1 %v8815_v18  ;;  %v9965_v17 = vld [vmem:[%s12459_s0 + $0xcc] ss:$16 sps:$4 sm:$0xff]   ;;  %v9960_v18 = vld [vmem:[%s12459_s0 + $0xc0] ss:$16 sps:$4 sm:$0xff]  }
 0x4e3   : > { %1625 = vmatprep.subr.bf16.mxu0 %v8802_v19  ;;  %1815 = vmatprep.subr.bf16.mxu1 %v8818_v20  ;;  %v9963_v19 = vld [vmem:[%s12459_s0 + $0xc8] ss:$16 sps:$4 sm:$0xff]   ;;  %v9968_v20 = vld [vmem:[%s12459_s0 + $0xe4] ss:$16 sps:$4 sm:$0xff]  }
 0x4e6   : > { %1626 = vmatpush1.bf16.msra.mxu0 %v8801_v25  ;;  %1816 = vmatpush1.bf16.msra.mxu1 %v8817_v26  ;;  %v9977_v25 = vld [vmem:[%s12459_s0 + $0x10c] ss:$16 sps:$4 sm:$0xff]   ;;  %v9972_v26 = vld [vmem:[%s12459_s0 + $0x100] ss:$16 sps:$4 sm:$0xff]  }
 0x4e7   : > { %1627 = vmatprep.subr.bf16.mxu0 %v8804_v27  ;;  %1817 = vmatprep.subr.bf16.mxu1 %v8820_v28  ;;  %v9975_v27 = vld [vmem:[%s12459_s0 + $0x108] ss:$16 sps:$4 sm:$0xff]   ;;  %v9980_v28 = vld [vmem:[%s12459_s0 + $0x124] ss:$16 sps:$4 sm:$0xff]  }
 0x4ea   : > { %1628 = vmatpush1.bf16.msra.mxu0 %v8803_v33  ;;  %1818 = vmatpush1.bf16.msra.mxu1 %v8819_v34  ;;  %v9989_v33 = vld [vmem:[%s12459_s0 + $0x14c] ss:$16 sps:$4 sm:$0xff]   ;;  %v9984_v34 = vld [vmem:[%s12459_s0 + $0x140] ss:$16 sps:$4 sm:$0xff]  }
 0x4eb   : > { %1629 = vmatprep.subr.bf16.mxu0 %v8806_v35  ;;  %1819 = vmatprep.subr.bf16.mxu1 %v8822_v36  ;;  %v9987_v35 = vld [vmem:[%s12459_s0 + $0x148] ss:$16 sps:$4 sm:$0xff]   ;;  %v9992_v36 = vld [vmem:[%s12459_s0 + $0x164] ss:$16 sps:$4 sm:$0xff]  }
 0x4ee   : > { %1630 = vmatpush1.bf16.msra.mxu0 %v8805_v41  ;;  %1820 = vmatpush1.bf16.msra.mxu1 %v8821_v42  ;;  %v10001_v41 = vld [vmem:[%s12459_s0 + $0x18c] ss:$16 sps:$4 sm:$0xff]   ;;  %v9996_v42 = vld [vmem:[%s12459_s0 + $0x180] ss:$16 sps:$4 sm:$0xff]  }
 0x4ef   : > { %1631 = vmatprep.subr.bf16.mxu0 %v8808_v43  ;;  %1821 = vmatprep.subr.bf16.mxu1 %v8824_v44  ;;  %v9999_v43 = vld [vmem:[%s12459_s0 + $0x188] ss:$16 sps:$4 sm:$0xff]   ;;  %v10004_v44 = vld [vmem:[%s12459_s0 + $0x1a4] ss:$16 sps:$4 sm:$0xff]  }
 0x4f2   : > { %1632 = vmatpush1.bf16.msra.mxu0 %v8807_v49  ;;  %1822 = vmatpush1.bf16.msra.mxu1 %v8823_v50  ;;  %v10008_v49 = vld [vmem:[%s12459_s0 + $0x1c0] ss:$16 sps:$4 sm:$0xff]   ;;  %v10013_v50 = vld [vmem:[%s12459_s0 + $0x1cc] ss:$16 sps:$4 sm:$0xff]  }
 0x4f3   : > { %1633 = vmatprep.subr.bf16.mxu0 %v8810_v51  ;;  %1823 = vmatprep.subr.bf16.mxu1 %v8826_v52  ;;  %v10011_v51 = vld [vmem:[%s12459_s0 + $0x1c8] ss:$16 sps:$4 sm:$0xff]   ;;  %v10016_v52 = vld [vmem:[%s12459_s0 + $0x1e4] ss:$16 sps:$4 sm:$0xff]  }
 0x4f6   : > { %1634 = vmatpush1.bf16.msra.mxu0 %v8809_v53  ;;  %1824 = vmatpush1.bf16.msra.mxu1 %v8825_v54  ;;  %v10019_v53 = vld [vmem:[%s12459_s0 + $0x1ec] ss:$16 sps:$4 sm:$0xff]   ;;  %v10014_v54 = vld [vmem:[%s12459_s0 + $0x1e0] ss:$16 sps:$4 sm:$0xff]  }
 0x4f7   : > { %3502 = vmatprep.subr.bf16.mxu0 %v9926_v55  ;;  %3666 = vmatprep.subr.bf16.mxu1 %v9929_v56  ;;  %v10017_v55 = vld [vmem:[%s12459_s0 + $0x1e8] ss:$16 sps:$4 sm:$0xff]   ;;  %v10022_v56 = vld [vmem:[%s12459_s0 + $0x204] ss:$16 sps:$4 sm:$0xff]  }
 0x4f9   : > { %1652 = vmatmul.mubr.bf16.vlgmr.msra.gmra.mrb[12].mxu0 %v11327_v2  ;;  %1842 = vmatmul.mubr.bf16.vlgmr.msra.gmra.mrb[12].mxu1 %v11327_v2  ;;  %v9939_v2 = vld [vmem:[%s12459_s0 + $0x48] ss:$16 sps:$4 sm:$0xff]  }
 0x4fa   : > { %3503 = vmatpush1.bf16.msra.mxu0 %v9924_v57  ;;  %3667 = vmatpush1.bf16.msra.mxu1 %v9927_v58  ;;  %v10025_v57 = vld [vmem:[%s12459_s0 + $0x20c] ss:$16 sps:$4 sm:$0xff]   ;;  %v1145_v58 = vlaneseq }
 0x4fb   : > { %3504 = vmatprep.subr.bf16.mxu0 %v9932_v59  ;;  %3668 = vmatprep.subr.bf16.mxu1 %v9935_v60 }
 0x4fc   : > { %v11532_v59 = vshrl.u32 %v1145_v58, 7  ;;  %vm11552_vm8 = vcmp.lt.s32.totalorder %v1145_v58, 256 }
 0x4fe   : > { %3505 = vmatpush1.bf16.msra.mxu0 %v9930_v61  ;;  %3669 = vmatpush1.bf16.msra.mxu1 %v9933_v62  ;;  %v11535_v60 = vsub.s32 0, %v11532_v59  ;;  %v1143_v61 = vld [vmem:[#allocation15] sm:$0x3]  ;;  %v1337_v62 = vld [vmem:[#allocation15 + $0x2] sm:$0x3] }
 0x4ff   : > { %3506 = vmatprep.subr.bf16.mxu0 %v9938_v63  ;;  %3670 = vmatprep.subr.bf16.mxu1 %v9941_v0  ;;  %v11538_v63 = vsub.s32 1, %v11532_v59 }
 0x500   : > { %v1148_v0 = vrot.slane %v1143_v61, %v11535_v60 }
 0x501   : > { %v1346_v3 = vrot.slane %v1337_v62, %v11538_v63 }
 0x502   : > { %3507 = vmatpush1.bf16.msra.mxu0 %v9936_v1  ;;  %3671 = vmatpush1.bf16.msra.mxu1 %v9939_v2  ;;  %v1342_v1 = vrot.slane %v1337_v62, %v11535_v60  ;;  %v1152_v2 = vrot.slane %v1143_v61, %v11538_v63 }
 0x503   : > { %3508 = vmatprep.subr.bf16.mxu0 %v9944_v4  ;;  %3672 = vmatprep.subr.bf16.mxu1 %v9947_v5 }
 0x506   : > { %3509 = vmatpush1.bf16.msra.mxu0 %v9942_v6  ;;  %3673 = vmatpush1.bf16.msra.mxu1 %v9945_v7 }
 0x507   : > { %3510 = vmatprep.subr.bf16.mxu0 %v9950_v8  ;;  %3674 = vmatprep.subr.bf16.mxu1 %v9953_v9 }
 0x50a   : > { %3511 = vmatpush1.bf16.msra.mxu0 %v9948_v10  ;;  %3675 = vmatpush1.bf16.msra.mxu1 %v9951_v11 }
 0x50b   : > { %3512 = vmatprep.subr.bf16.mxu0 %v9956_v12  ;;  %3676 = vmatprep.subr.bf16.mxu1 %v9959_v15 }
 0x50e   : > { %3513 = vmatpush1.bf16.msra.mxu0 %v9954_v13  ;;  %3677 = vmatpush1.bf16.msra.mxu1 %v9957_v14 }
 0x50f   : > { %3514 = vmatprep.subr.bf16.mxu0 %v9962_v16  ;;  %3678 = vmatprep.subr.bf16.mxu1 %v9965_v17 }
 0x512   : > { %3515 = vmatpush1.bf16.msra.mxu0 %v9960_v18  ;;  %3679 = vmatpush1.bf16.msra.mxu1 %v9963_v19 }
 0x513   : > { %3516 = vmatprep.subr.bf16.mxu0 %v9968_v20  ;;  %3680 = vmatprep.subr.bf16.mxu1 %v9971_v21 }
 0x516   : > { %3517 = vmatpush1.bf16.msra.mxu0 %v9966_v22  ;;  %3681 = vmatpush1.bf16.msra.mxu1 %v9969_v23 }
 0x517   : > { %3518 = vmatprep.subr.bf16.mxu0 %v9974_v24  ;;  %3682 = vmatprep.subr.bf16.mxu1 %v9977_v25 }
 0x51a   : > { %3519 = vmatpush1.bf16.msra.mxu0 %v9972_v26  ;;  %3683 = vmatpush1.bf16.msra.mxu1 %v9975_v27 }
 0x51b   : > { %3520 = vmatprep.subr.bf16.mxu0 %v9980_v28  ;;  %3684 = vmatprep.subr.bf16.mxu1 %v9983_v29 }
 0x51e   : > { %3521 = vmatpush1.bf16.msra.mxu0 %v9978_v30  ;;  %3685 = vmatpush1.bf16.msra.mxu1 %v9981_v31 }
 0x51f   : > { %3522 = vmatprep.subr.bf16.mxu0 %v9986_v32  ;;  %3686 = vmatprep.subr.bf16.mxu1 %v9989_v33 }
 0x522   : > { %3523 = vmatpush1.bf16.msra.mxu0 %v9984_v34  ;;  %3687 = vmatpush1.bf16.msra.mxu1 %v9987_v35 }
 0x523   : > { %3524 = vmatprep.subr.bf16.mxu0 %v9992_v36  ;;  %3688 = vmatprep.subr.bf16.mxu1 %v9995_v37 }
 0x526   : > { %3525 = vmatpush1.bf16.msra.mxu0 %v9990_v38  ;;  %3689 = vmatpush1.bf16.msra.mxu1 %v9993_v39  ;;  %v10846_v38 = vmov 1966171168  }
 0x527   : > { %3526 = vmatprep.subr.bf16.mxu0 %v9998_v40  ;;  %3690 = vmatprep.subr.bf16.mxu1 %v10001_v41  ;;  %v1301_v39 = vunpack.c.l.s4 %v10846_v38 }
 0x52a   : > { %3527 = vmatpush1.bf16.msra.mxu0 %v9996_v42  ;;  %3691 = vmatpush1.bf16.msra.mxu1 %v9999_v43 }
 0x52b   : > { %3528 = vmatprep.subr.bf16.mxu0 %v10004_v44  ;;  %3692 = vmatprep.subr.bf16.mxu1 %v10007_v45 }
 0x52e   : > { %3529 = vmatpush1.bf16.msra.mxu0 %v10002_v46  ;;  %3693 = vmatpush1.bf16.msra.mxu1 %v10005_v47 }
 0x52f   : > { %3530 = vmatprep.subr.bf16.mxu0 %v10010_v48  ;;  %3694 = vmatprep.subr.bf16.mxu1 %v10013_v50  ;;  %v1302_v48 = vunpack.c.0.s8 %v1301_v39 }
 0x532   : > { %3531 = vmatpush1.bf16.msra.mxu0 %v10008_v49  ;;  %3695 = vmatpush1.bf16.msra.mxu1 %v10011_v51 }
 0x533   : > { %3532 = vmatprep.subr.bf16.mxu0 %v10016_v52  ;;  %3696 = vmatprep.subr.bf16.mxu1 %v10019_v53 }
 0x536   : > { %3533 = vmatpush1.bf16.msra.mxu0 %v10014_v54  ;;  %3697 = vmatpush1.bf16.msra.mxu1 %v10017_v55 }
 0x537   : > { %3543 = vmatprep.subr.bf16.mxu0 %v10022_v56  ;;  %3707 = vmatprep.subr.bf16.mxu1 %v10025_v57  ;;  %v11545_v57 = vsub.s32 %v1302_v48, %v11532_v59 }
 0x5ac   : > { %v1269_v4 = vpop.f32.mrb[8].mxu0  ;;  %v1463_v5 = vpop.f32.mrb[8].mxu1 }
 0x5ad   : > { %v1270_v6 = vadd.f32 %v1269_v4, %v1148_v0  ;;  %v1464_v7 = vadd.f32 %v1463_v5, %v1342_v1  ;;  %v1271_v8 = vpop.f32.mrb[9].mxu0  ;;  %v1465_v9 = vpop.f32.mrb[9].mxu1  ;;  %v1282_v4 = vld [vmem:[#allocation2] sm:$0x3]  ;;  %v1476_v5 = vld [vmem:[#allocation2 + $0x2] sm:$0x3] }
 0x5ae   : > { %v1272_v10 = vadd.f32 %v1271_v8, %v1152_v2  ;;  %v1466_v11 = vadd.f32 %v1465_v9, %v1346_v3  ;;  %v1273_v12 = vpop.f32.mrb[10].mxu0  ;;  %v1467_v13 = vpop.f32.mrb[10].mxu1  ;;  %v1527_v8 = vld [vmem:[#allocation15 + $0x4] sm:$0x3]  ;;  %v1717_v9 = vld [vmem:[#allocation15 + $0x6] sm:$0x3] }
 0x5af   : > { %v1274_v14 = vadd.f32 %v1273_v12, %v1148_v0  ;;  %v1468_v15 = vadd.f32 %v1467_v13, %v1342_v1  ;;  %v1275_v16 = vpop.f32.mrb[11].mxu0  ;;  %v1469_v17 = vpop.f32.mrb[11].mxu1  ;;  %v1278_v20 = vmax.f32 %v1270_v6, 0.0  ;;  %v1472_v21 = vmax.f32 %v1464_v7, 0.0 }
 0x5b0   : > { %v1276_v18 = vadd.f32 %v1275_v16, %v1152_v2  ;;  %v1470_v19 = vadd.f32 %v1469_v17, %v1346_v3  ;;  %v1279_v24 = vmax.f32 %v1272_v10, 0.0  ;;  %v1473_v25 = vmax.f32 %v1466_v11, 0.0  ;;  %v10020_v10 = vld [vmem:[%s12459_s0 + $0x200] ss:$16 sps:$4 sm:$0xff]  }
 0x5b1   : > { %v1280_v22 = vmax.f32 %v1274_v14, 0.0  ;;  %v1474_v23 = vmax.f32 %v1468_v15, 0.0  ;;  %v1532_v13 = vrot.slane %v1527_v8, %v11535_v60  ;;  %v1722_v14 = vrot.slane %v1717_v9, %v11535_v60 }
 0x5b2   : > { %v1281_v26 = vmax.f32 %v1276_v18, 0.0  ;;  %v1475_v27 = vmax.f32 %v1470_v19, 0.0  ;;  %v1536_v15 = vrot.slane %v1527_v8, %v11538_v63  ;;  %v1726_v16 = vrot.slane %v1717_v9, %v11538_v63 }
 0x5b3   : > { %v1283_v28 = vmax.f32 %v1278_v20, %v1280_v22  ;;  %v1477_v29 = vmax.f32 %v1472_v21, %v1474_v23 }
 0x5b4   : > { %v1290_v30 = vmax.f32 %v1279_v24, %v1281_v26  ;;  %v1484_v31 = vmax.f32 %v1473_v25, %v1475_v27 }
 0x5b5   : > { %v1284_v32 = vrot.slane %v1283_v28, 4  ;;  %v1478_v33 = vrot.slane %v1477_v29, 4 }
 0x5b6   : > { %v1291_v34 = vrot.slane %v1290_v30, 4  ;;  %v1485_v35 = vrot.slane %v1484_v31, 4 }
 0x5b7   : > { %v1285_v36 = vmax.f32 %v1283_v28, %v1284_v32  ;;  %v1479_v37 = vmax.f32 %v1477_v29, %v1478_v33 }
 0x5b8   : > { %v1292_v40 = vmax.f32 %v1290_v30, %v1291_v34  ;;  %v1486_v41 = vmax.f32 %v1484_v31, %v1485_v35 }
 0x5b9   : > { %v1286_v42 = vrot.slane %v1285_v36, 2  ;;  %v1480_v43 = vrot.slane %v1479_v37, 2 }
 0x5ba   : > { %v1293_v44 = vrot.slane %v1292_v40, 2  ;;  %v1487_v45 = vrot.slane %v1486_v41, 2 }
 0x5bb   : > { %v1287_v46 = vmax.f32 %v1285_v36, %v1286_v42  ;;  %v1481_v47 = vmax.f32 %v1479_v37, %v1480_v43 }
 0x5bc   : > { %v1294_v49 = vmax.f32 %v1292_v40, %v1293_v44  ;;  %v1488_v50 = vmax.f32 %v1486_v41, %v1487_v45 }
 0x5bd   : > { %v1288_v51 = vrot.slane %v1287_v46, 1  ;;  %v1482_v52 = vrot.slane %v1481_v47, 1 }
 0x5be   : > { %v1295_v53 = vrot.slane %v1294_v49, 1  ;;  %v1489_v54 = vrot.slane %v1488_v50, 1 }
 0x5bf   : > { %v1289_v55 = vmax.f32 %v1287_v46, %v1288_v51  ;;  %v1483_v56 = vmax.f32 %v1481_v47, %v1482_v52 }
 0x5c0   : > { %v1296_v61 = vmax.f32 %v1294_v49, %v1295_v53  ;;  %v1490_v62 = vmax.f32 %v1488_v50, %v1489_v54 }
 0x5c2   : > { %v1299_v0 = vcombine.low %v1289_v55, %v1296_v61  ;;  %v1493_v1 = vcombine.low %v1483_v56, %v1490_v62 }
 0x5c4   : > { %v1306_v2 = vrot.slane %v1299_v0, %v11545_v57  ;;  %v1500_v3 = vrot.slane %v1493_v1, %v11545_v57 }
 0x5c6   : > { %v1313_v6 = vrot.slane %v1306_v2, %v11545_v57  ;;  %v1507_v7 = vrot.slane %v1500_v3, %v11545_v57 }
 0x5c8   : > { %v1315_v11 = vmax.f32 %v1282_v4, %v1313_v6  ;;  %v1509_v12 = vmax.f32 %v1476_v5, %v1507_v7 }
 0x5ca   : > { %1320 = vst.msk [vmem:[#allocation2] sm:$0x3] %vm11552_vm8, %v1315_v11  ;;  %1510 = vst.msk [vmem:[#allocation2 + $0x2] sm:$0x3] %vm11552_vm8, %v1509_v12 }
 0x5cc   : > { %v1653_v58 = vpop.f32.mrb[12].mxu0  ;;  %v1843_v17 = vpop.f32.mrb[12].mxu1 }
 0x5cd   : > { %v1654_v18 = vadd.f32 %v1653_v58, %v1532_v13  ;;  %v1844_v19 = vadd.f32 %v1843_v17, %v1722_v14  ;;  %v1655_v20 = vpop.f32.mrb[13].mxu0  ;;  %v1845_v21 = vpop.f32.mrb[13].mxu1 }
 0x5ce   : > { %v1656_v22 = vadd.f32 %v1655_v20, %v1536_v15  ;;  %v1846_v23 = vadd.f32 %v1845_v21, %v1726_v16  ;;  %v1657_v24 = vpop.f32.mrb[14].mxu0  ;;  %v1847_v25 = vpop.f32.mrb[14].mxu1 }
 0x5cf   : > { %v1658_v26 = vadd.f32 %v1657_v24, %v1532_v13  ;;  %v1848_v27 = vadd.f32 %v1847_v25, %v1722_v14  ;;  %v1659_v28 = vpop.f32.mrb[15].mxu0  ;;  %v1849_v29 = vpop.f32.mrb[15].mxu1  ;;  %v1662_v32 = vmax.f32 %v1654_v18, 0.0  ;;  %v1852_v33 = vmax.f32 %v1844_v19, 0.0  ;;  %v1666_v14 = vld [vmem:[#allocation2 + $0x4] sm:$0x3] }
 0x5d0   : > { %v1660_v30 = vadd.f32 %v1659_v28, %v1536_v15  ;;  %v1850_v31 = vadd.f32 %v1849_v29, %v1726_v16  ;;  %v1663_v36 = vmax.f32 %v1656_v22, 0.0  ;;  %v1853_v37 = vmax.f32 %v1846_v23, 0.0  ;;  %v1856_v15 = vld [vmem:[#allocation2 + $0x6] sm:$0x3]  ;;  %v10023_v25 = vld [vmem:[%s12459_s0 + $0x208] ss:$16 sps:$4 sm:$0xff]  }
 0x5d1   : > { %v1664_v34 = vmax.f32 %v1658_v26, 0.0  ;;  %v1854_v35 = vmax.f32 %v1848_v27, 0.0  ;;  %v11573_v19 = vsub.s32 3, %v11532_v59  ;;  %v10028_v27 = vld [vmem:[%s12459_s0 + $0x224] ss:$16 sps:$4 sm:$0xff]  }
 0x5d2   : > { %v1665_v38 = vmax.f32 %v1660_v30, 0.0  ;;  %v1855_v39 = vmax.f32 %v1850_v31, 0.0  ;;  %v10031_v28 = vld [vmem:[%s12459_s0 + $0x22c] ss:$16 sps:$4 sm:$0xff]   ;;  %v10026_v30 = vld [vmem:[%s12459_s0 + $0x220] ss:$16 sps:$4 sm:$0xff]  }
 0x5d3   : > { %v1667_v40 = vmax.f32 %v1662_v32, %v1664_v34  ;;  %v1857_v41 = vmax.f32 %v1852_v33, %v1854_v35  ;;  %v10029_v31 = vld [vmem:[%s12459_s0 + $0x228] ss:$16 sps:$4 sm:$0xff]   ;;  %v10034_v32 = vld [vmem:[%s12459_s0 + $0x244] ss:$16 sps:$4 sm:$0xff]   ;;  %v10037_v33 = vld [vmem:[%s12459_s0 + $0x24c] ss:$16 sps:$4 sm:$0xff]  }
 0x5d4   : > { %v1674_v42 = vmax.f32 %v1663_v36, %v1665_v38  ;;  %v1864_v43 = vmax.f32 %v1853_v37, %v1855_v39  ;;  %v10032_v34 = vld [vmem:[%s12459_s0 + $0x240] ss:$16 sps:$4 sm:$0xff]   ;;  %v10035_v35 = vld [vmem:[%s12459_s0 + $0x248] ss:$16 sps:$4 sm:$0xff]   ;;  %v10040_v36 = vld [vmem:[%s12459_s0 + $0x264] ss:$16 sps:$4 sm:$0xff]  }
 0x5d5   : > { %v1668_v44 = vrot.slane %v1667_v40, 4  ;;  %v1858_v45 = vrot.slane %v1857_v41, 4  ;;  %v10043_v37 = vld [vmem:[%s12459_s0 + $0x26c] ss:$16 sps:$4 sm:$0xff]   ;;  %v10038_v38 = vld [vmem:[%s12459_s0 + $0x260] ss:$16 sps:$4 sm:$0xff]  }
 0x5d6   : > { %v1675_v46 = vrot.slane %v1674_v42, 4  ;;  %v1865_v47 = vrot.slane %v1864_v43, 4  ;;  %v10041_v39 = vld [vmem:[%s12459_s0 + $0x268] ss:$16 sps:$4 sm:$0xff]  }
 0x5d7   : > { %v1669_v48 = vmax.f32 %v1667_v40, %v1668_v44  ;;  %v1859_v49 = vmax.f32 %v1857_v41, %v1858_v45  ;;  %v10046_v40 = vld [vmem:[%s12459_s0 + $0x284] ss:$16 sps:$4 sm:$0xff]   ;;  %v10049_v41 = vld [vmem:[%s12459_s0 + $0x28c] ss:$16 sps:$4 sm:$0xff]  }
 0x5d8   : > { %v1676_v50 = vmax.f32 %v1674_v42, %v1675_v46  ;;  %v1866_v51 = vmax.f32 %v1864_v43, %v1865_v47  ;;  %v10044_v42 = vld [vmem:[%s12459_s0 + $0x280] ss:$16 sps:$4 sm:$0xff]   ;;  %v10047_v43 = vld [vmem:[%s12459_s0 + $0x288] ss:$16 sps:$4 sm:$0xff]   ;;  %v10052_v44 = vld [vmem:[%s12459_s0 + $0x2a4] ss:$16 sps:$4 sm:$0xff]  }
 0x5d9   : > { %v1670_v52 = vrot.slane %v1669_v48, 2  ;;  %v1860_v53 = vrot.slane %v1859_v49, 2  ;;  %v10055_v45 = vld [vmem:[%s12459_s0 + $0x2ac] ss:$16 sps:$4 sm:$0xff]   ;;  %v10050_v46 = vld [vmem:[%s12459_s0 + $0x2a0] ss:$16 sps:$4 sm:$0xff]  }
 0x5da   : > { %v1677_v54 = vrot.slane %v1676_v50, 2  ;;  %v1867_v55 = vrot.slane %v1866_v51, 2  ;;  %v10053_v47 = vld [vmem:[%s12459_s0 + $0x2a8] ss:$16 sps:$4 sm:$0xff]  }
 0x5db   : > { %v1671_v56 = vmax.f32 %v1669_v48, %v1670_v52  ;;  %v1861_v61 = vmax.f32 %v1859_v49, %v1860_v53  ;;  %v10058_v48 = vld [vmem:[%s12459_s0 + $0x2c4] ss:$16 sps:$4 sm:$0xff]   ;;  %v10061_v49 = vld [vmem:[%s12459_s0 + $0x2cc] ss:$16 sps:$4 sm:$0xff]  }
 0x5dc   : > { %v1678_v62 = vmax.f32 %v1676_v50, %v1677_v54  ;;  %v1868_v0 = vmax.f32 %v1866_v51, %v1867_v55  ;;  %v10056_v50 = vld [vmem:[%s12459_s0 + $0x2c0] ss:$16 sps:$4 sm:$0xff]   ;;  %v10059_v51 = vld [vmem:[%s12459_s0 + $0x2c8] ss:$16 sps:$4 sm:$0xff]   ;;  %v10064_v52 = vld [vmem:[%s12459_s0 + $0x2e4] ss:$16 sps:$4 sm:$0xff]  }
 0x5dd   : > { %v1672_v1 = vrot.slane %v1671_v56, 1  ;;  %v1862_v2 = vrot.slane %v1861_v61, 1  ;;  %v10067_v53 = vld [vmem:[%s12459_s0 + $0x2ec] ss:$16 sps:$4 sm:$0xff]   ;;  %v10062_v54 = vld [vmem:[%s12459_s0 + $0x2e0] ss:$16 sps:$4 sm:$0xff]  }
 0x5de   : > { %v1679_v3 = vrot.slane %v1678_v62, 1  ;;  %v1869_v4 = vrot.slane %v1868_v0, 1  ;;  %v10065_v55 = vld [vmem:[%s12459_s0 + $0x2e8] ss:$16 sps:$4 sm:$0xff]  }
 0x5df   : > { %v1673_v5 = vmax.f32 %v1671_v56, %v1672_v1  ;;  %v1863_v6 = vmax.f32 %v1861_v61, %v1862_v2  ;;  %v10070_v56 = vld [vmem:[%s12459_s0 + $0x304] ss:$16 sps:$4 sm:$0xff]   ;;  %v10073_v61 = vld [vmem:[%s12459_s0 + $0x30c] ss:$16 sps:$4 sm:$0xff]  }
 0x5e0   : > { %v1680_v7 = vmax.f32 %v1678_v62, %v1679_v3  ;;  %v1870_v8 = vmax.f32 %v1868_v0, %v1869_v4  ;;  %v10068_v62 = vld [vmem:[%s12459_s0 + $0x300] ss:$16 sps:$4 sm:$0xff]   ;;  %v10071_v0 = vld [vmem:[%s12459_s0 + $0x308] ss:$16 sps:$4 sm:$0xff]   ;;  %v10076_v1 = vld [vmem:[%s12459_s0 + $0x324] ss:$16 sps:$4 sm:$0xff]  }
 0x5e1   : > { %v10079_v2 = vld [vmem:[%s12459_s0 + $0x32c] ss:$16 sps:$4 sm:$0xff]   ;;  %v10074_v3 = vld [vmem:[%s12459_s0 + $0x320] ss:$16 sps:$4 sm:$0xff]   ;;  %v10077_v4 = vld [vmem:[%s12459_s0 + $0x328] ss:$16 sps:$4 sm:$0xff]  }
 0x5e2   : > { %v1683_v9 = vcombine.low %v1673_v5, %v1680_v7  ;;  %v1873_v11 = vcombine.low %v1863_v6, %v1870_v8  ;;  %v10082_v5 = vld [vmem:[%s12459_s0 + $0x344] ss:$16 sps:$4 sm:$0xff]   ;;  %v10085_v6 = vld [vmem:[%s12459_s0 + $0x34c] ss:$16 sps:$4 sm:$0xff]   ;;  %v10080_v7 = vld [vmem:[%s12459_s0 + $0x340] ss:$16 sps:$4 sm:$0xff]  }
 0x5e3   : > { %v10083_v8 = vld [vmem:[%s12459_s0 + $0x348] ss:$16 sps:$4 sm:$0xff]  }
 0x5e4   : > { %v1690_v12 = vrot.slane %v1683_v9, %v11545_v57  ;;  %v1880_v13 = vrot.slane %v1873_v11, %v11545_v57  ;;  %v10088_v9 = vld [vmem:[%s12459_s0 + $0x364] ss:$16 sps:$4 sm:$0xff]   ;;  %v10091_v11 = vld [vmem:[%s12459_s0 + $0x36c] ss:$16 sps:$4 sm:$0xff]  }
 0x5e6   : > { %v1697_v16 = vrot.slane %v1690_v12, %v11545_v57  ;;  %v1887_v58 = vrot.slane %v1880_v13, %v11545_v57  ;;  %v10086_v12 = vld [vmem:[%s12459_s0 + $0x360] ss:$16 sps:$4 sm:$0xff]   ;;  %v10089_v13 = vld [vmem:[%s12459_s0 + $0x368] ss:$16 sps:$4 sm:$0xff]  }
 0x5e8   : > { %v1699_v17 = vmax.f32 %v1666_v14, %v1697_v16  ;;  %v1889_v18 = vmax.f32 %v1856_v15, %v1887_v58  ;;  %v10094_v14 = vld [vmem:[%s12459_s0 + $0x384] ss:$16 sps:$4 sm:$0xff]   ;;  %v10097_v15 = vld [vmem:[%s12459_s0 + $0x38c] ss:$16 sps:$4 sm:$0xff]   ;;  %v10092_v16 = vld [vmem:[%s12459_s0 + $0x380] ss:$16 sps:$4 sm:$0xff]  }
 0x5e9   : > { %v10095_v58 = vld [vmem:[%s12459_s0 + $0x388] ss:$16 sps:$4 sm:$0xff]  }
 0x5ea   : > { %1700 = vst.msk [vmem:[#allocation2 + $0x4] sm:$0x3] %vm11552_vm8, %v1699_v17  ;;  %1890 = vst.msk [vmem:[#allocation2 + $0x6] sm:$0x3] %vm11552_vm8, %v1889_v18  ;;  %v10100_v17 = vld [vmem:[%s12459_s0 + $0x3a4] ss:$16 sps:$4 sm:$0xff]  }
 0x5eb   : > { %v10103_v18 = vld [vmem:[%s12459_s0 + $0x3ac] ss:$16 sps:$4 sm:$0xff]  }
 0x5f1   : > { %v11575_v20 = vld [vmem:[#allocation2] sm:$0xff] }
 0x5f2   : > { %v1903_v21 = vrot.slane %v11575_v20, %v11538_v63  ;;  %v1899_v22 = vrot.slane %v11575_v20, %v11535_v60  ;;  %v1911_v23 = vrot.slane %v11575_v20, %v11573_v19 }
 0x5f4   : > { %v1937_v24 = vpack.c.bf16 %v1903_v21, %v1903_v21  ;;  %v1936_v26 = vpack.c.bf16 %v1899_v22, %v1899_v22  ;;  %v1939_v29 = vpack.c.bf16 %v1911_v23, %v1911_v23  ;;  %v10098_v21 = vld [vmem:[%s12459_s0 + $0x3a0] ss:$16 sps:$4 sm:$0xff]   ;;  %v10101_v22 = vld [vmem:[%s12459_s0 + $0x3a8] ss:$16 sps:$4 sm:$0xff]   ;;  %v10106_v23 = vld [vmem:[%s12459_s0 + $0x3c4] ss:$16 sps:$4 sm:$0xff]  }
 0x5f6   : > { %3534 = vmatprep.mubr.bf16.mxu0 %v1937_v24  ;;  %3698 = vmatprep.mubr.bf16.mxu1 %v1937_v24  ;;  %v10109_v24 = vld [vmem:[%s12459_s0 + $0x3cc] ss:$16 sps:$4 sm:$0xff]  }
 0x5f7   : > { %3535 = vmatmul.mubr.bf16.vlgmr.msra.gmra.mrb[16].mxu0 %v1936_v26  ;;  %3699 = vmatmul.mubr.bf16.vlgmr.msra.gmra.mrb[16].mxu1 %v1936_v26  ;;  %v10112_v26 = vld [vmem:[%s12459_s0 + $0x3e4] ss:$16 sps:$4 sm:$0xff]  }
 0x5f8   : > { %3544 = vmatpush1.bf16.msra.mxu0 %v10020_v10  ;;  %3708 = vmatpush1.bf16.msra.mxu1 %v10023_v25  ;;  %v10104_v10 = vld [vmem:[%s12459_s0 + $0x3c0] ss:$16 sps:$4 sm:$0xff]   ;;  %v10107_v25 = vld [vmem:[%s12459_s0 + $0x3c8] ss:$16 sps:$4 sm:$0xff]  }
 0x5f9   : > { %3575 = vmatprep.mubr.bf16.mxu0 %v1939_v29  ;;  %3739 = vmatprep.mubr.bf16.mxu1 %v1939_v29  ;;  %v11767_v29 = vsub.s32 5, %v11532_v59 }
 0x5fa   : > { %3545 = vmatprep.subr.bf16.mxu0 %v10028_v27  ;;  %3709 = vmatprep.subr.bf16.mxu1 %v10031_v28  ;;  %v10115_v27 = vld [vmem:[%s12459_s0 + $0x3ec] ss:$16 sps:$4 sm:$0xff]   ;;  %v11764_v28 = vsub.s32 2, %v11532_v59 }
 0x5fc   : > { %3546 = vmatpush1.bf16.msra.mxu0 %v10026_v30  ;;  %3710 = vmatpush1.bf16.msra.mxu1 %v10029_v31  ;;  %v10110_v30 = vld [vmem:[%s12459_s0 + $0x3e0] ss:$16 sps:$4 sm:$0xff]   ;;  %v10113_v31 = vld [vmem:[%s12459_s0 + $0x3e8] ss:$16 sps:$4 sm:$0xff]  }
 0x5fd   : > { %3547 = vmatprep.subr.bf16.mxu0 %v10034_v32  ;;  %3711 = vmatprep.subr.bf16.mxu1 %v10037_v33  ;;  %v1907_v32 = vrot.slane %v11575_v20, %v11764_v28  ;;  %v10118_v33 = vld [vmem:[%s12459_s0 + $0x404] ss:$16 sps:$4 sm:$0xff]  }
 0x600   : > { %3548 = vmatpush1.bf16.msra.mxu0 %v10032_v34  ;;  %3712 = vmatpush1.bf16.msra.mxu1 %v10035_v35  ;;  %v10121_v34 = vld [vmem:[%s12459_s0 + $0x40c] ss:$16 sps:$4 sm:$0xff]   ;;  %v1919_v35 = vrot.slane %v11575_v20, %v11767_v29 }
 0x601   : > { %3549 = vmatprep.subr.bf16.mxu0 %v10040_v36  ;;  %3713 = vmatprep.subr.bf16.mxu1 %v10043_v37  ;;  %v10116_v36 = vld [vmem:[%s12459_s0 + $0x400] ss:$16 sps:$4 sm:$0xff]   ;;  %v1938_v37 = vpack.c.bf16 %v1907_v32, %v1907_v32  ;;  %v10196_v32 = vld [vmem:[%s12459_s0 + $0x5a4] ss:$16 sps:$4 sm:$0xff]  }
 0x604   : > { %3550 = vmatpush1.bf16.msra.mxu0 %v10038_v38  ;;  %3714 = vmatpush1.bf16.msra.mxu1 %v10041_v39  ;;  %v10119_v38 = vld [vmem:[%s12459_s0 + $0x408] ss:$16 sps:$4 sm:$0xff]   ;;  %v1941_v39 = vpack.c.bf16 %v1919_v35, %v1919_v35 }
 0x605   : > { %3551 = vmatprep.subr.bf16.mxu0 %v10046_v40  ;;  %3715 = vmatprep.subr.bf16.mxu1 %v10049_v41  ;;  %v10124_v40 = vld [vmem:[%s12459_s0 + $0x424] ss:$16 sps:$4 sm:$0xff]   ;;  %v10127_v41 = vld [vmem:[%s12459_s0 + $0x42c] ss:$16 sps:$4 sm:$0xff]   ;;  %v10197_v35 = vld [vmem:[%s12459_s0 + $0x5a8] ss:$16 sps:$4 sm:$0xff]  }
 0x608   : > { %3552 = vmatpush1.bf16.msra.mxu0 %v10044_v42  ;;  %3716 = vmatpush1.bf16.msra.mxu1 %v10047_v43  ;;  %v10122_v42 = vld [vmem:[%s12459_s0 + $0x420] ss:$16 sps:$4 sm:$0xff]   ;;  %v10125_v43 = vld [vmem:[%s12459_s0 + $0x428] ss:$16 sps:$4 sm:$0xff]  }
 0x609   : > { %3553 = vmatprep.subr.bf16.mxu0 %v10052_v44  ;;  %3717 = vmatprep.subr.bf16.mxu1 %v10055_v45  ;;  %v10130_v44 = vld [vmem:[%s12459_s0 + $0x444] ss:$16 sps:$4 sm:$0xff]   ;;  %v10133_v45 = vld [vmem:[%s12459_s0 + $0x44c] ss:$16 sps:$4 sm:$0xff]  }
 0x60c   : > { %3554 = vmatpush1.bf16.msra.mxu0 %v10050_v46  ;;  %3718 = vmatpush1.bf16.msra.mxu1 %v10053_v47  ;;  %v10128_v46 = vld [vmem:[%s12459_s0 + $0x440] ss:$16 sps:$4 sm:$0xff]   ;;  %v10131_v47 = vld [vmem:[%s12459_s0 + $0x448] ss:$16 sps:$4 sm:$0xff]  }
 0x60d   : > { %3555 = vmatprep.subr.bf16.mxu0 %v10058_v48  ;;  %3719 = vmatprep.subr.bf16.mxu1 %v10061_v49  ;;  %v10136_v48 = vld [vmem:[%s12459_s0 + $0x464] ss:$16 sps:$4 sm:$0xff]   ;;  %v10139_v49 = vld [vmem:[%s12459_s0 + $0x46c] ss:$16 sps:$4 sm:$0xff]  }
 0x610   : > { %3556 = vmatpush1.bf16.msra.mxu0 %v10056_v50  ;;  %3720 = vmatpush1.bf16.msra.mxu1 %v10059_v51  ;;  %v10134_v50 = vld [vmem:[%s12459_s0 + $0x460] ss:$16 sps:$4 sm:$0xff]   ;;  %v10137_v51 = vld [vmem:[%s12459_s0 + $0x468] ss:$16 sps:$4 sm:$0xff]  }
 0x611   : > { %3557 = vmatprep.subr.bf16.mxu0 %v10064_v52  ;;  %3721 = vmatprep.subr.bf16.mxu1 %v10067_v53  ;;  %v10142_v52 = vld [vmem:[%s12459_s0 + $0x484] ss:$16 sps:$4 sm:$0xff]   ;;  %v10145_v53 = vld [vmem:[%s12459_s0 + $0x48c] ss:$16 sps:$4 sm:$0xff]  }
 0x614   : > { %3558 = vmatpush1.bf16.msra.mxu0 %v10062_v54  ;;  %3722 = vmatpush1.bf16.msra.mxu1 %v10065_v55  ;;  %v10140_v54 = vld [vmem:[%s12459_s0 + $0x480] ss:$16 sps:$4 sm:$0xff]   ;;  %v10143_v55 = vld [vmem:[%s12459_s0 + $0x488] ss:$16 sps:$4 sm:$0xff]  }
 0x615   : > { %3559 = vmatprep.subr.bf16.mxu0 %v10070_v56  ;;  %3723 = vmatprep.subr.bf16.mxu1 %v10073_v61  ;;  %v10148_v56 = vld [vmem:[%s12459_s0 + $0x4a4] ss:$16 sps:$4 sm:$0xff]   ;;  %v10151_v61 = vld [vmem:[%s12459_s0 + $0x4ac] ss:$16 sps:$4 sm:$0xff]  }
 0x618   : > { %3560 = vmatpush1.bf16.msra.mxu0 %v10068_v62  ;;  %3724 = vmatpush1.bf16.msra.mxu1 %v10071_v0  ;;  %v10146_v62 = vld [vmem:[%s12459_s0 + $0x4a0] ss:$16 sps:$4 sm:$0xff]   ;;  %v10149_v0 = vld [vmem:[%s12459_s0 + $0x4a8] ss:$16 sps:$4 sm:$0xff]  }
 0x619   : > { %3561 = vmatprep.subr.bf16.mxu0 %v10076_v1  ;;  %3725 = vmatprep.subr.bf16.mxu1 %v10079_v2  ;;  %v10154_v1 = vld [vmem:[%s12459_s0 + $0x4c4] ss:$16 sps:$4 sm:$0xff]   ;;  %v10157_v2 = vld [vmem:[%s12459_s0 + $0x4cc] ss:$16 sps:$4 sm:$0xff]  }
 0x61c   : > { %3562 = vmatpush1.bf16.msra.mxu0 %v10074_v3  ;;  %3726 = vmatpush1.bf16.msra.mxu1 %v10077_v4  ;;  %v10152_v3 = vld [vmem:[%s12459_s0 + $0x4c0] ss:$16 sps:$4 sm:$0xff]   ;;  %v10155_v4 = vld [vmem:[%s12459_s0 + $0x4c8] ss:$16 sps:$4 sm:$0xff]  }
 0x61d   : > { %3563 = vmatprep.subr.bf16.mxu0 %v10082_v5  ;;  %3727 = vmatprep.subr.bf16.mxu1 %v10085_v6  ;;  %v10160_v5 = vld [vmem:[%s12459_s0 + $0x4e4] ss:$16 sps:$4 sm:$0xff]   ;;  %v10163_v6 = vld [vmem:[%s12459_s0 + $0x4ec] ss:$16 sps:$4 sm:$0xff]  }
 0x620   : > { %3564 = vmatpush1.bf16.msra.mxu0 %v10080_v7  ;;  %3728 = vmatpush1.bf16.msra.mxu1 %v10083_v8  ;;  %v10158_v7 = vld [vmem:[%s12459_s0 + $0x4e0] ss:$16 sps:$4 sm:$0xff]   ;;  %v10161_v8 = vld [vmem:[%s12459_s0 + $0x4e8] ss:$16 sps:$4 sm:$0xff]  }
 0x621   : > { %3565 = vmatprep.subr.bf16.mxu0 %v10088_v9  ;;  %3729 = vmatprep.subr.bf16.mxu1 %v10091_v11  ;;  %v10166_v9 = vld [vmem:[%s12459_s0 + $0x504] ss:$16 sps:$4 sm:$0xff]   ;;  %v10169_v11 = vld [vmem:[%s12459_s0 + $0x50c] ss:$16 sps:$4 sm:$0xff]  }
 0x624   : > { %3566 = vmatpush1.bf16.msra.mxu0 %v10086_v12  ;;  %3730 = vmatpush1.bf16.msra.mxu1 %v10089_v13  ;;  %v10164_v12 = vld [vmem:[%s12459_s0 + $0x500] ss:$16 sps:$4 sm:$0xff]   ;;  %v10167_v13 = vld [vmem:[%s12459_s0 + $0x508] ss:$16 sps:$4 sm:$0xff]  }
 0x625   : > { %3567 = vmatprep.subr.bf16.mxu0 %v10094_v14  ;;  %3731 = vmatprep.subr.bf16.mxu1 %v10097_v15  ;;  %v10172_v14 = vld [vmem:[%s12459_s0 + $0x524] ss:$16 sps:$4 sm:$0xff]   ;;  %v10175_v15 = vld [vmem:[%s12459_s0 + $0x52c] ss:$16 sps:$4 sm:$0xff]  }
 0x628   : > { %3568 = vmatpush1.bf16.msra.mxu0 %v10092_v16  ;;  %3732 = vmatpush1.bf16.msra.mxu1 %v10095_v58  ;;  %v10170_v16 = vld [vmem:[%s12459_s0 + $0x520] ss:$16 sps:$4 sm:$0xff]   ;;  %v10173_v58 = vld [vmem:[%s12459_s0 + $0x528] ss:$16 sps:$4 sm:$0xff]  }
 0x629   : > { %3569 = vmatprep.subr.bf16.mxu0 %v10100_v17  ;;  %3733 = vmatprep.subr.bf16.mxu1 %v10103_v18  ;;  %v10178_v17 = vld [vmem:[%s12459_s0 + $0x544] ss:$16 sps:$4 sm:$0xff]   ;;  %v10181_v18 = vld [vmem:[%s12459_s0 + $0x54c] ss:$16 sps:$4 sm:$0xff]  }
 0x62c   : > { %3570 = vmatpush1.bf16.msra.mxu0 %v10098_v21  ;;  %3734 = vmatpush1.bf16.msra.mxu1 %v10101_v22  ;;  %v10176_v21 = vld [vmem:[%s12459_s0 + $0x540] ss:$16 sps:$4 sm:$0xff]   ;;  %v10179_v22 = vld [vmem:[%s12459_s0 + $0x548] ss:$16 sps:$4 sm:$0xff]  }
 0x62d   : > { %3571 = vmatprep.subr.bf16.mxu0 %v10106_v23  ;;  %3735 = vmatprep.subr.bf16.mxu1 %v10109_v24  ;;  %v10184_v23 = vld [vmem:[%s12459_s0 + $0x564] ss:$16 sps:$4 sm:$0xff]   ;;  %v10187_v24 = vld [vmem:[%s12459_s0 + $0x56c] ss:$16 sps:$4 sm:$0xff]  }
 0x630   : > { %3572 = vmatpush1.bf16.msra.mxu0 %v10104_v10  ;;  %3736 = vmatpush1.bf16.msra.mxu1 %v10107_v25  ;;  %v10182_v10 = vld [vmem:[%s12459_s0 + $0x560] ss:$16 sps:$4 sm:$0xff]   ;;  %v10185_v25 = vld [vmem:[%s12459_s0 + $0x568] ss:$16 sps:$4 sm:$0xff]  }
 0x631   : > { %3573 = vmatprep.subr.bf16.mxu0 %v10112_v26  ;;  %3737 = vmatprep.subr.bf16.mxu1 %v10115_v27  ;;  %v10190_v26 = vld [vmem:[%s12459_s0 + $0x584] ss:$16 sps:$4 sm:$0xff]   ;;  %v10193_v27 = vld [vmem:[%s12459_s0 + $0x58c] ss:$16 sps:$4 sm:$0xff]  }
 0x634   : > { %3574 = vmatpush1.bf16.msra.mxu0 %v10110_v30  ;;  %3738 = vmatpush1.bf16.msra.mxu1 %v10113_v31  ;;  %v10188_v30 = vld [vmem:[%s12459_s0 + $0x580] ss:$16 sps:$4 sm:$0xff]   ;;  %v10191_v31 = vld [vmem:[%s12459_s0 + $0x588] ss:$16 sps:$4 sm:$0xff]  }
 0x635   : > { %3584 = vmatprep.subr.bf16.mxu0 %v10118_v33  ;;  %3748 = vmatprep.subr.bf16.mxu1 %v10121_v34  ;;  %v10199_v33 = vld [vmem:[%s12459_s0 + $0x5ac] ss:$16 sps:$4 sm:$0xff]   ;;  %v10194_v34 = vld [vmem:[%s12459_s0 + $0x5a0] ss:$16 sps:$4 sm:$0xff]  }
 0x637   : > { %3576 = vmatmul.mubr.bf16.vlgmr.msra.gmra.mrb[16].mxu0 %v1938_v37  ;;  %3740 = vmatmul.mubr.bf16.vlgmr.msra.gmra.mrb[16].mxu1 %v1938_v37  ;;  %v10205_v37 = vld [vmem:[%s12459_s0 + $0x5cc] ss:$16 sps:$4 sm:$0xff]  }
 0x638   : > { %3585 = vmatpush1.bf16.msra.mxu0 %v10116_v36  ;;  %3616 = vmatprep.mubr.bf16.mxu0 %v1941_v39  ;;  %v10202_v36 = vld [vmem:[%s12459_s0 + $0x5c4] ss:$16 sps:$4 sm:$0xff]  }
 0x639   : > { %3749 = vmatpush1.bf16.msra.mxu1 %v10119_v38  ;;  %3780 = vmatprep.mubr.bf16.mxu1 %v1941_v39  ;;  %v10200_v38 = vld [vmem:[%s12459_s0 + $0x5c0] ss:$16 sps:$4 sm:$0xff]   ;;  %v10203_v39 = vld [vmem:[%s12459_s0 + $0x5c8] ss:$16 sps:$4 sm:$0xff]  }
 0x63a   : > { %3586 = vmatprep.subr.bf16.mxu0 %v10124_v40  ;;  %3750 = vmatprep.subr.bf16.mxu1 %v10127_v41  ;;  %v10208_v40 = vld [vmem:[%s12459_s0 + $0x5e4] ss:$16 sps:$4 sm:$0xff]   ;;  %v11963_v41 = vsub.s32 4, %v11532_v59 }
 0x63c   : > { %3587 = vmatpush1.bf16.msra.mxu0 %v10122_v42  ;;  %v10211_v42 = vld [vmem:[%s12459_s0 + $0x5ec] ss:$16 sps:$4 sm:$0xff]  }
 0x63d   : > { %3751 = vmatpush1.bf16.msra.mxu1 %v10125_v43  ;;  %3588 = vmatprep.subr.bf16.mxu0 %v10130_v44  ;;  %v11969_v43 = vsub.s32 7, %v11532_v59  ;;  %v10206_v44 = vld [vmem:[%s12459_s0 + $0x5e0] ss:$16 sps:$4 sm:$0xff]  }
 0x63e   : > { %3752 = vmatprep.subr.bf16.mxu1 %v10133_v45  ;;  %v10209_v45 = vld [vmem:[%s12459_s0 + $0x5e8] ss:$16 sps:$4 sm:$0xff]  }
 0x640   : > { %3589 = vmatpush1.bf16.msra.mxu0 %v10128_v46  ;;  %v1915_v46 = vrot.slane %v11575_v20, %v11963_v41 }
 0x641   : > { %3753 = vmatpush1.bf16.msra.mxu1 %v10131_v47  ;;  %3590 = vmatprep.subr.bf16.mxu0 %v10136_v48  ;;  %v10214_v47 = vld [vmem:[%s12459_s0 + $0x604] ss:$16 sps:$4 sm:$0xff]   ;;  %v10217_v48 = vld [vmem:[%s12459_s0 + $0x60c] ss:$16 sps:$4 sm:$0xff]  }
 0x642   : > { %3754 = vmatprep.subr.bf16.mxu1 %v10139_v49  ;;  %v1927_v49 = vrot.slane %v11575_v20, %v11969_v43 }
 0x644   : > { %3591 = vmatpush1.bf16.msra.mxu0 %v10134_v50  ;;  %v10212_v50 = vld [vmem:[%s12459_s0 + $0x600] ss:$16 sps:$4 sm:$0xff]  }
 0x645   : > { %3755 = vmatpush1.bf16.msra.mxu1 %v10137_v51  ;;  %3592 = vmatprep.subr.bf16.mxu0 %v10142_v52  ;;  %v1940_v51 = vpack.c.bf16 %v1915_v46, %v1915_v46  ;;  %v10215_v52 = vld [vmem:[%s12459_s0 + $0x608] ss:$16 sps:$4 sm:$0xff]   ;;  %v10284_v46 = vld [vmem:[%s12459_s0 + $0x780] ss:$16 sps:$4 sm:$0xff]  }
 0x646   : > { %3756 = vmatprep.subr.bf16.mxu1 %v10145_v53  ;;  %v10220_v53 = vld [vmem:[%s12459_s0 + $0x624] ss:$16 sps:$4 sm:$0xff]  }
 0x648   : > { %3593 = vmatpush1.bf16.msra.mxu0 %v10140_v54  ;;  %v1943_v54 = vpack.c.bf16 %v1927_v49, %v1927_v49  ;;  %v10295_v49 = vld [vmem:[%s12459_s0 + $0x7ac] ss:$16 sps:$4 sm:$0xff]  }
 0x649   : > { %3757 = vmatpush1.bf16.msra.mxu1 %v10143_v55  ;;  %3594 = vmatprep.subr.bf16.mxu0 %v10148_v56  ;;  %v10223_v55 = vld [vmem:[%s12459_s0 + $0x62c] ss:$16 sps:$4 sm:$0xff]   ;;  %v10218_v56 = vld [vmem:[%s12459_s0 + $0x620] ss:$16 sps:$4 sm:$0xff]  }
 0x64a   : > { %3758 = vmatprep.subr.bf16.mxu1 %v10151_v61  ;;  %v10221_v61 = vld [vmem:[%s12459_s0 + $0x628] ss:$16 sps:$4 sm:$0xff]  }
 0x64c   : > { %3595 = vmatpush1.bf16.msra.mxu0 %v10146_v62  ;;  %v10226_v62 = vld [vmem:[%s12459_s0 + $0x644] ss:$16 sps:$4 sm:$0xff]  }
 0x64d   : > { %3759 = vmatpush1.bf16.msra.mxu1 %v10149_v0  ;;  %3596 = vmatprep.subr.bf16.mxu0 %v10154_v1  ;;  %v10229_v0 = vld [vmem:[%s12459_s0 + $0x64c] ss:$16 sps:$4 sm:$0xff]   ;;  %v10224_v1 = vld [vmem:[%s12459_s0 + $0x640] ss:$16 sps:$4 sm:$0xff]  }
 0x64e   : > { %3760 = vmatprep.subr.bf16.mxu1 %v10157_v2  ;;  %v10227_v2 = vld [vmem:[%s12459_s0 + $0x648] ss:$16 sps:$4 sm:$0xff]  }
 0x650   : > { %3597 = vmatpush1.bf16.msra.mxu0 %v10152_v3  ;;  %v10232_v3 = vld [vmem:[%s12459_s0 + $0x664] ss:$16 sps:$4 sm:$0xff]  }
 0x651   : > { %3761 = vmatpush1.bf16.msra.mxu1 %v10155_v4  ;;  %3598 = vmatprep.subr.bf16.mxu0 %v10160_v5  ;;  %v10235_v4 = vld [vmem:[%s12459_s0 + $0x66c] ss:$16 sps:$4 sm:$0xff]   ;;  %v10230_v5 = vld [vmem:[%s12459_s0 + $0x660] ss:$16 sps:$4 sm:$0xff]  }
 0x652   : > { %3762 = vmatprep.subr.bf16.mxu1 %v10163_v6  ;;  %v10233_v6 = vld [vmem:[%s12459_s0 + $0x668] ss:$16 sps:$4 sm:$0xff]  }
 0x654   : > { %3599 = vmatpush1.bf16.msra.mxu0 %v10158_v7  ;;  %v10238_v7 = vld [vmem:[%s12459_s0 + $0x684] ss:$16 sps:$4 sm:$0xff]  }
 0x655   : > { %3763 = vmatpush1.bf16.msra.mxu1 %v10161_v8  ;;  %3600 = vmatprep.subr.bf16.mxu0 %v10166_v9  ;;  %v10241_v8 = vld [vmem:[%s12459_s0 + $0x68c] ss:$16 sps:$4 sm:$0xff]   ;;  %v10236_v9 = vld [vmem:[%s12459_s0 + $0x680] ss:$16 sps:$4 sm:$0xff]  }
 0x656   : > { %3764 = vmatprep.subr.bf16.mxu1 %v10169_v11  ;;  %v10239_v11 = vld [vmem:[%s12459_s0 + $0x688] ss:$16 sps:$4 sm:$0xff]  }
 0x658   : > { %3601 = vmatpush1.bf16.msra.mxu0 %v10164_v12  ;;  %v10244_v12 = vld [vmem:[%s12459_s0 + $0x6a4] ss:$16 sps:$4 sm:$0xff]  }
 0x659   : > { %3765 = vmatpush1.bf16.msra.mxu1 %v10167_v13  ;;  %3602 = vmatprep.subr.bf16.mxu0 %v10172_v14  ;;  %v10247_v13 = vld [vmem:[%s12459_s0 + $0x6ac] ss:$16 sps:$4 sm:$0xff]   ;;  %v10242_v14 = vld [vmem:[%s12459_s0 + $0x6a0] ss:$16 sps:$4 sm:$0xff]  }
 0x65a   : > { %3766 = vmatprep.subr.bf16.mxu1 %v10175_v15  ;;  %v10245_v15 = vld [vmem:[%s12459_s0 + $0x6a8] ss:$16 sps:$4 sm:$0xff]  }
 0x65c   : > { %3603 = vmatpush1.bf16.msra.mxu0 %v10170_v16  ;;  %v10250_v16 = vld [vmem:[%s12459_s0 + $0x6c4] ss:$16 sps:$4 sm:$0xff]  }
 0x65d   : > { %3767 = vmatpush1.bf16.msra.mxu1 %v10173_v58  ;;  %3604 = vmatprep.subr.bf16.mxu0 %v10178_v17  ;;  %v10253_v58 = vld [vmem:[%s12459_s0 + $0x6cc] ss:$16 sps:$4 sm:$0xff]   ;;  %v10248_v17 = vld [vmem:[%s12459_s0 + $0x6c0] ss:$16 sps:$4 sm:$0xff]  }
 0x65e   : > { %3768 = vmatprep.subr.bf16.mxu1 %v10181_v18  ;;  %v10251_v18 = vld [vmem:[%s12459_s0 + $0x6c8] ss:$16 sps:$4 sm:$0xff]  }
 0x660   : > { %3605 = vmatpush1.bf16.msra.mxu0 %v10176_v21  ;;  %v10256_v21 = vld [vmem:[%s12459_s0 + $0x6e4] ss:$16 sps:$4 sm:$0xff]  }
 0x661   : > { %3769 = vmatpush1.bf16.msra.mxu1 %v10179_v22  ;;  %3606 = vmatprep.subr.bf16.mxu0 %v10184_v23  ;;  %v10259_v22 = vld [vmem:[%s12459_s0 + $0x6ec] ss:$16 sps:$4 sm:$0xff]   ;;  %v10254_v23 = vld [vmem:[%s12459_s0 + $0x6e0] ss:$16 sps:$4 sm:$0xff]  }
 0x662   : > { %3770 = vmatprep.subr.bf16.mxu1 %v10187_v24  ;;  %v10257_v24 = vld [vmem:[%s12459_s0 + $0x6e8] ss:$16 sps:$4 sm:$0xff]  }
 0x664   : > { %3607 = vmatpush1.bf16.msra.mxu0 %v10182_v10  ;;  %v10262_v10 = vld [vmem:[%s12459_s0 + $0x704] ss:$16 sps:$4 sm:$0xff]  }
 0x665   : > { %3771 = vmatpush1.bf16.msra.mxu1 %v10185_v25  ;;  %3608 = vmatprep.subr.bf16.mxu0 %v10190_v26  ;;  %v10265_v25 = vld [vmem:[%s12459_s0 + $0x70c] ss:$16 sps:$4 sm:$0xff]   ;;  %v10260_v26 = vld [vmem:[%s12459_s0 + $0x700] ss:$16 sps:$4 sm:$0xff]  }
 0x666   : > { %3772 = vmatprep.subr.bf16.mxu1 %v10193_v27  ;;  %v10263_v27 = vld [vmem:[%s12459_s0 + $0x708] ss:$16 sps:$4 sm:$0xff]  }
 0x668   : > { %3609 = vmatpush1.bf16.msra.mxu0 %v10188_v30  ;;  %v10268_v30 = vld [vmem:[%s12459_s0 + $0x724] ss:$16 sps:$4 sm:$0xff]  }
 0x669   : > { %3773 = vmatpush1.bf16.msra.mxu1 %v10191_v31  ;;  %3610 = vmatprep.subr.bf16.mxu0 %v10196_v32  ;;  %v10271_v31 = vld [vmem:[%s12459_s0 + $0x72c] ss:$16 sps:$4 sm:$0xff]   ;;  %v10266_v32 = vld [vmem:[%s12459_s0 + $0x720] ss:$16 sps:$4 sm:$0xff]  }
 0x66a   : > { %3774 = vmatprep.subr.bf16.mxu1 %v10199_v33  ;;  %v10269_v33 = vld [vmem:[%s12459_s0 + $0x728] ss:$16 sps:$4 sm:$0xff]  }
 0x66c   : > { %3611 = vmatpush1.bf16.msra.mxu0 %v10194_v34  ;;  %v10274_v34 = vld [vmem:[%s12459_s0 + $0x744] ss:$16 sps:$4 sm:$0xff]  }
 0x66d   : > { %3775 = vmatpush1.bf16.msra.mxu1 %v10197_v35  ;;  %3612 = vmatprep.subr.bf16.mxu0 %v10202_v36  ;;  %v10277_v35 = vld [vmem:[%s12459_s0 + $0x74c] ss:$16 sps:$4 sm:$0xff]   ;;  %v10272_v36 = vld [vmem:[%s12459_s0 + $0x740] ss:$16 sps:$4 sm:$0xff]  }
 0x66e   : > { %3776 = vmatprep.subr.bf16.mxu1 %v10205_v37  ;;  %v10275_v37 = vld [vmem:[%s12459_s0 + $0x748] ss:$16 sps:$4 sm:$0xff]  }
 0x670   : > { %3613 = vmatpush1.bf16.msra.mxu0 %v10200_v38  ;;  %v10280_v38 = vld [vmem:[%s12459_s0 + $0x764] ss:$16 sps:$4 sm:$0xff]  }
 0x671   : > { %3777 = vmatpush1.bf16.msra.mxu1 %v10203_v39  ;;  %3614 = vmatprep.subr.bf16.mxu0 %v10208_v40  ;;  %v10283_v39 = vld [vmem:[%s12459_s0 + $0x76c] ss:$16 sps:$4 sm:$0xff]   ;;  %v10278_v40 = vld [vmem:[%s12459_s0 + $0x760] ss:$16 sps:$4 sm:$0xff]  }
 0x672   : > { %3778 = vmatprep.subr.bf16.mxu1 %v10211_v42  ;;  %v10281_v42 = vld [vmem:[%s12459_s0 + $0x768] ss:$16 sps:$4 sm:$0xff]  }
 0x674   : > { %3615 = vmatpush1.bf16.msra.mxu0 %v10206_v44  ;;  %v10286_v44 = vld [vmem:[%s12459_s0 + $0x784] ss:$16 sps:$4 sm:$0xff]  }
 0x675   : > { %3779 = vmatpush1.bf16.msra.mxu1 %v10209_v45  ;;  %3625 = vmatprep.subr.bf16.mxu0 %v10214_v47  ;;  %v10289_v45 = vld [vmem:[%s12459_s0 + $0x78c] ss:$16 sps:$4 sm:$0xff]   ;;  %v10287_v47 = vld [vmem:[%s12459_s0 + $0x788] ss:$16 sps:$4 sm:$0xff]  }
 0x676   : > { %3789 = vmatprep.subr.bf16.mxu1 %v10217_v48  ;;  %v10292_v48 = vld [vmem:[%s12459_s0 + $0x7a4] ss:$16 sps:$4 sm:$0xff]  }
 0x677   : > { %3617 = vmatmul.mubr.bf16.vlgmr.msra.gmra.mrb[16].mxu0 %v1940_v51 }
 0x678   : > { %3781 = vmatmul.mubr.bf16.vlgmr.msra.gmra.mrb[16].mxu1 %v1940_v51  ;;  %3626 = vmatpush1.bf16.msra.mxu0 %v10212_v50  ;;  %v10290_v50 = vld [vmem:[%s12459_s0 + $0x7a0] ss:$16 sps:$4 sm:$0xff]   ;;  %v10293_v51 = vld [vmem:[%s12459_s0 + $0x7a8] ss:$16 sps:$4 sm:$0xff]  }
 0x679   : > { %3657 = vmatprep.mubr.bf16.mxu0 %v1943_v54  ;;  %3790 = vmatpush1.bf16.msra.mxu1 %v10215_v52  ;;  %v10298_v52 = vld [vmem:[%s12459_s0 + $0x7c4] ss:$16 sps:$4 sm:$0xff]  }
 0x67a   : > { %3821 = vmatprep.mubr.bf16.mxu1 %v1943_v54  ;;  %3627 = vmatprep.subr.bf16.mxu0 %v10220_v53  ;;  %v10301_v53 = vld [vmem:[%s12459_s0 + $0x7cc] ss:$16 sps:$4 sm:$0xff]   ;;  %v10296_v54 = vld [vmem:[%s12459_s0 + $0x7c0] ss:$16 sps:$4 sm:$0xff]  }
 0x67b   : > { %3791 = vmatprep.subr.bf16.mxu1 %v10223_v55  ;;  %v10299_v55 = vld [vmem:[%s12459_s0 + $0x7c8] ss:$16 sps:$4 sm:$0xff]  }
 0x67c   : > { %3628 = vmatpush1.bf16.msra.mxu0 %v10218_v56  ;;  %v10304_v56 = vld [vmem:[%s12459_s0 + $0x7e4] ss:$16 sps:$4 sm:$0xff]  }
 0x67d   : > { %3792 = vmatpush1.bf16.msra.mxu1 %v10221_v61  ;;  %3629 = vmatprep.subr.bf16.mxu0 %v10226_v62  ;;  %v12165_v61 = vsub.s32 6, %v11532_v59  ;;  %v10307_v62 = vld [vmem:[%s12459_s0 + $0x7ec] ss:$16 sps:$4 sm:$0xff]  }
 0x67e   : > { %3793 = vmatprep.subr.bf16.mxu1 %v10229_v0  ;;  %v10302_v0 = vld [vmem:[%s12459_s0 + $0x7e0] ss:$16 sps:$4 sm:$0xff]  }
 0x67f   : > { %v1923_v59 = vrot.slane %v11575_v20, %v12165_v61  ;;  %v10317_v20 = vld [vmem:[#allocation18 + $0x30] ss:$8 sps:$4 sm:$0xff]  }
 0x680   : > { %3630 = vmatpush1.bf16.msra.mxu0 %v10224_v1  ;;  %v10305_v1 = vld [vmem:[%s12459_s0 + $0x7e8] ss:$16 sps:$4 sm:$0xff]  }
 0x681   : > { %3794 = vmatpush1.bf16.msra.mxu1 %v10227_v2  ;;  %3631 = vmatprep.subr.bf16.mxu0 %v10232_v3  ;;  %v10310_v2 = vld [vmem:[#allocation18 + $0x4] ss:$8 sps:$4 sm:$0xff]   ;;  %v10308_v3 = vld [vmem:[#allocation18] ss:$8 sps:$4 sm:$0xff]  }
 0x682   : > { %3795 = vmatprep.subr.bf16.mxu1 %v10235_v4  ;;  %v1942_v4 = vpack.c.bf16 %v1923_v59, %v1923_v59  ;;  %v4480_v59 = vld [vmem:[#allocation21 + $0x500] sm:$0xff] }
 0x684   : > { %3632 = vmatpush1.bf16.msra.mxu0 %v10230_v5  ;;  %v10313_v5 = vld [vmem:[#allocation18 + $0x14] ss:$8 sps:$4 sm:$0xff]  }
 0x685   : > { %3796 = vmatpush1.bf16.msra.mxu1 %v10233_v6  ;;  %3633 = vmatprep.subr.bf16.mxu0 %v10238_v7  ;;  %v10311_v6 = vld [vmem:[#allocation18 + $0x10] ss:$8 sps:$4 sm:$0xff]   ;;  %v10316_v7 = vld [vmem:[#allocation18 + $0x24] ss:$8 sps:$4 sm:$0xff]  }
 0x686   : > { %3797 = vmatprep.subr.bf16.mxu1 %v10241_v8  ;;  %v10314_v8 = vld [vmem:[#allocation18 + $0x20] ss:$8 sps:$4 sm:$0xff]  }
 0x688   : > { %3634 = vmatpush1.bf16.msra.mxu0 %v10236_v9  ;;  %v10319_v9 = vld [vmem:[#allocation18 + $0x34] ss:$8 sps:$4 sm:$0xff]  }
 0x689   : > { %3798 = vmatpush1.bf16.msra.mxu1 %v10239_v11  ;;  %3635 = vmatprep.subr.bf16.mxu0 %v10244_v12  ;;  %v10322_v11 = vld [vmem:[#allocation18 + $0x44] ss:$8 sps:$4 sm:$0xff]   ;;  %v10320_v12 = vld [vmem:[#allocation18 + $0x40] ss:$8 sps:$4 sm:$0xff]  }
 0x68a   : > { %3799 = vmatprep.subr.bf16.mxu1 %v10247_v13  ;;  %v10325_v13 = vld [vmem:[#allocation18 + $0x54] ss:$8 sps:$4 sm:$0xff]  }
 0x68c   : > { %3636 = vmatpush1.bf16.msra.mxu0 %v10242_v14  ;;  %v10323_v14 = vld [vmem:[#allocation18 + $0x50] ss:$8 sps:$4 sm:$0xff]  }
 0x68d   : > { %3800 = vmatpush1.bf16.msra.mxu1 %v10245_v15  ;;  %3637 = vmatprep.subr.bf16.mxu0 %v10250_v16  ;;  %v10328_v15 = vld [vmem:[#allocation18 + $0x64] ss:$8 sps:$4 sm:$0xff]   ;;  %v10326_v16 = vld [vmem:[#allocation18 + $0x60] ss:$8 sps:$4 sm:$0xff]  }
 0x68e   : > { %3801 = vmatprep.subr.bf16.mxu1 %v10253_v58  ;;  %v10331_v58 = vld [vmem:[#allocation18 + $0x74] ss:$8 sps:$4 sm:$0xff]  }
 0x690   : > { %3638 = vmatpush1.bf16.msra.mxu0 %v10248_v17  ;;  %v10329_v17 = vld [vmem:[#allocation18 + $0x70] ss:$8 sps:$4 sm:$0xff]  }
 0x691   : > { %3802 = vmatpush1.bf16.msra.mxu1 %v10251_v18  ;;  %3639 = vmatprep.subr.bf16.mxu0 %v10256_v21  ;;  %v10334_v18 = vld [vmem:[#allocation18 + $0x84] ss:$8 sps:$4 sm:$0xff]   ;;  %v10332_v21 = vld [vmem:[#allocation18 + $0x80] ss:$8 sps:$4 sm:$0xff]  }
 0x692   : > { %3803 = vmatprep.subr.bf16.mxu1 %v10259_v22  ;;  %v10337_v22 = vld [vmem:[#allocation18 + $0x94] ss:$8 sps:$4 sm:$0xff]  }
 0x694   : > { %3640 = vmatpush1.bf16.msra.mxu0 %v10254_v23  ;;  %v10335_v23 = vld [vmem:[#allocation18 + $0x90] ss:$8 sps:$4 sm:$0xff]  }
 0x695   : > { %3804 = vmatpush1.bf16.msra.mxu1 %v10257_v24  ;;  %3641 = vmatprep.subr.bf16.mxu0 %v10262_v10  ;;  %v10340_v24 = vld [vmem:[#allocation18 + $0xa4] ss:$8 sps:$4 sm:$0xff]   ;;  %v10338_v10 = vld [vmem:[#allocation18 + $0xa0] ss:$8 sps:$4 sm:$0xff]  }
 0x696   : > { %3805 = vmatprep.subr.bf16.mxu1 %v10265_v25  ;;  %v10343_v25 = vld [vmem:[#allocation18 + $0xb4] ss:$8 sps:$4 sm:$0xff]  }
 0x698   : > { %3642 = vmatpush1.bf16.msra.mxu0 %v10260_v26  ;;  %v10341_v26 = vld [vmem:[#allocation18 + $0xb0] ss:$8 sps:$4 sm:$0xff]  }
 0x699   : > { %3806 = vmatpush1.bf16.msra.mxu1 %v10263_v27  ;;  %3643 = vmatprep.subr.bf16.mxu0 %v10268_v30  ;;  %v10346_v27 = vld [vmem:[#allocation18 + $0xc4] ss:$8 sps:$4 sm:$0xff]   ;;  %v10344_v30 = vld [vmem:[#allocation18 + $0xc0] ss:$8 sps:$4 sm:$0xff]  }
 0x69a   : > { %3807 = vmatprep.subr.bf16.mxu1 %v10271_v31  ;;  %v10349_v31 = vld [vmem:[#allocation18 + $0xd4] ss:$8 sps:$4 sm:$0xff]  }
 0x69c   : > { %3644 = vmatpush1.bf16.msra.mxu0 %v10266_v32  ;;  %v10347_v32 = vld [vmem:[#allocation18 + $0xd0] ss:$8 sps:$4 sm:$0xff]  }
 0x69d   : > { %3808 = vmatpush1.bf16.msra.mxu1 %v10269_v33  ;;  %3645 = vmatprep.subr.bf16.mxu0 %v10274_v34  ;;  %v10352_v33 = vld [vmem:[#allocation18 + $0xe4] ss:$8 sps:$4 sm:$0xff]   ;;  %v10350_v34 = vld [vmem:[#allocation18 + $0xe0] ss:$8 sps:$4 sm:$0xff]  }
 0x69e   : > { %3809 = vmatprep.subr.bf16.mxu1 %v10277_v35  ;;  %v10355_v35 = vld [vmem:[#allocation18 + $0xf4] ss:$8 sps:$4 sm:$0xff]  }
 0x6a0   : > { %3646 = vmatpush1.bf16.msra.mxu0 %v10272_v36  ;;  %v10353_v36 = vld [vmem:[#allocation18 + $0xf0] ss:$8 sps:$4 sm:$0xff]  }
 0x6a1   : > { %3810 = vmatpush1.bf16.msra.mxu1 %v10275_v37  ;;  %3647 = vmatprep.subr.bf16.mxu0 %v10280_v38  ;;  %v10358_v37 = vld [vmem:[#allocation18 + $0x104] ss:$8 sps:$4 sm:$0xff]  }
 0x6a2   : > { %3811 = vmatprep.subr.bf16.mxu1 %v10283_v39  ;;  %v4320_v38 = vld [vmem:[#allocation21] sm:$0xff] }
 0x6a3   : > { %v4336_v39 = vld [vmem:[#allocation21 + $0x80] sm:$0xff] }
 0x6a4   : > { %3648 = vmatpush1.bf16.msra.mxu0 %v10278_v40  ;;  %v9147_v40 = vcombine.low %v4320_v38, %v4336_v39 }
 0x6a5   : > { %3812 = vmatpush1.bf16.msra.mxu1 %v10281_v42  ;;  %3649 = vmatprep.subr.bf16.mxu0 %v10286_v44  ;;  %v9148_v42 = vcombine.high %v4320_v38, %v4336_v39  ;;  %v4352_v44 = vld [vmem:[#allocation21 + $0x100] sm:$0xff] }
 0x6a6   : > { %3813 = vmatprep.subr.bf16.mxu1 %v10289_v45  ;;  %v4368_v45 = vld [vmem:[#allocation21 + $0x180] sm:$0xff] }
 0x6a8   : > { %3650 = vmatpush1.bf16.msra.mxu0 %v10284_v46  ;;  %v9180_v46 = vcombine.high %v4352_v44, %v4368_v45 }
 0x6a9   : > { %3814 = vmatpush1.bf16.msra.mxu1 %v10287_v47  ;;  %3651 = vmatprep.subr.bf16.mxu0 %v10292_v48  ;;  %v9179_v47 = vcombine.low %v4352_v44, %v4368_v45  ;;  %v4384_v48 = vld [vmem:[#allocation21 + $0x200] sm:$0xff] }
 0x6aa   : > { %3815 = vmatprep.subr.bf16.mxu1 %v10295_v49  ;;  %v4400_v49 = vld [vmem:[#allocation21 + $0x280] sm:$0xff] }
 0x6ac   : > { %3652 = vmatpush1.bf16.msra.mxu0 %v10290_v50  ;;  %v9212_v50 = vcombine.high %v4384_v48, %v4400_v49 }
 0x6ad   : > { %3816 = vmatpush1.bf16.msra.mxu1 %v10293_v51  ;;  %3653 = vmatprep.subr.bf16.mxu0 %v10298_v52  ;;  %v9211_v51 = vcombine.low %v4384_v48, %v4400_v49  ;;  %v4416_v52 = vld [vmem:[#allocation21 + $0x300] sm:$0xff] }
 0x6ae   : > { %3817 = vmatprep.subr.bf16.mxu1 %v10301_v53  ;;  %v4432_v53 = vld [vmem:[#allocation21 + $0x380] sm:$0xff] }
 0x6b0   : > { %3654 = vmatpush1.bf16.msra.mxu0 %v10296_v54  ;;  %v9244_v54 = vcombine.high %v4416_v52, %v4432_v53 }
 0x6b1   : > { %3818 = vmatpush1.bf16.msra.mxu1 %v10299_v55  ;;  %3655 = vmatprep.subr.bf16.mxu0 %v10304_v56  ;;  %v9243_v55 = vcombine.low %v4416_v52, %v4432_v53  ;;  %v4448_v56 = vld [vmem:[#allocation21 + $0x400] sm:$0xff] }
 0x6b2   : > { %3819 = vmatprep.subr.bf16.mxu1 %v10307_v62  ;;  %v4464_v62 = vld [vmem:[#allocation21 + $0x480] sm:$0xff] }
 0x6b4   : > { %3656 = vmatpush1.bf16.msra.mxu0 %v10302_v0  ;;  %v9276_v0 = vcombine.high %v4448_v56, %v4464_v62 }
 0x6b5   : > { %3820 = vmatpush1.bf16.msra.mxu1 %v10305_v1  ;;  %4234 = vmatprep.subr.bf16.mxu0 %v10310_v2  ;;  %v9275_v1 = vcombine.low %v4448_v56, %v4464_v62  ;;  %v4496_v2 = vld [vmem:[#allocation21 + $0x580] sm:$0xff] }
 0x6b6   : > { %7560 = vmatprep.subr.bf16.mxu1 %v9148_v42 }
 0x6b7   : > { %3658 = vmatmul.mubr.bf16.vlgmr.msra.gmra.mrb[16].mxu0 %v1942_v4 }
 0x6b8   : > { %3822 = vmatmul.mubr.bf16.vlgmr.msra.gmra.mrb[16].mxu1 %v1942_v4  ;;  %4235 = vmatpush1.bf16.msra.mxu0 %v10308_v3  ;;  %v9308_v3 = vcombine.high %v4480_v59, %v4496_v2  ;;  %v9307_v4 = vcombine.low %v4480_v59, %v4496_v2  ;;  %v10356_v59 = vld [vmem:[#allocation18 + $0x100] ss:$8 sps:$4 sm:$0xff]  }
 0x6b9   : > { %4236 = vmatprep.subr.bf16.mxu0 %v10313_v5  ;;  %7561 = vmatpush1.bf16.msra.mxu1 %v9147_v40  ;;  %v4512_v5 = vld [vmem:[#allocation21 + $0x600] sm:$0xff] }
 0x6ba   : > { %7562 = vmatprep.subr.bf16.mxu1 %v9180_v46 }
 0x6bc   : > { %4237 = vmatpush1.bf16.msra.mxu0 %v10311_v6  ;;  %v4528_v6 = vld [vmem:[#allocation21 + $0x680] sm:$0xff] }
 0x6bd   : > { %4238 = vmatprep.subr.bf16.mxu0 %v10316_v7  ;;  %7563 = vmatpush1.bf16.msra.mxu1 %v9179_v47  ;;  %v9340_v7 = vcombine.high %v4512_v5, %v4528_v6 }
 0x6be   : > { %7564 = vmatprep.subr.bf16.mxu1 %v9212_v50 }
 0x6c0   : > { %4239 = vmatpush1.bf16.msra.mxu0 %v10314_v8  ;;  %v9339_v8 = vcombine.low %v4512_v5, %v4528_v6  ;;  %v10359_v5 = vld [vmem:[#allocation18 + $0x110] ss:$8 sps:$4 sm:$0xff]   ;;  %v10364_v6 = vld [vmem:[#allocation18 + $0x124] ss:$8 sps:$4 sm:$0xff]  }
 0x6c1   : > { %4240 = vmatprep.subr.bf16.mxu0 %v10319_v9  ;;  %7565 = vmatpush1.bf16.msra.mxu1 %v9211_v51  ;;  %v4544_v9 = vld [vmem:[#allocation21 + $0x700] sm:$0xff] }
 0x6c2   : > { %7566 = vmatprep.subr.bf16.mxu1 %v9244_v54 }
 0x6c4   : > { %4241 = vmatpush1.bf16.msra.mxu0 %v10317_v20  ;;  %v4560_v20 = vld [vmem:[#allocation21 + $0x780] sm:$0xff] }
 0x6c5   : > { %4242 = vmatprep.subr.bf16.mxu0 %v10322_v11  ;;  %7567 = vmatpush1.bf16.msra.mxu1 %v9243_v55  ;;  %v9372_v11 = vcombine.high %v4544_v9, %v4560_v20 }
 0x6c6   : > { %7568 = vmatprep.subr.bf16.mxu1 %v9276_v0 }
 0x6c8   : > { %4243 = vmatpush1.bf16.msra.mxu0 %v10320_v12  ;;  %v9371_v12 = vcombine.low %v4544_v9, %v4560_v20  ;;  %v10365_v9 = vld [vmem:[#allocation18 + $0x130] ss:$8 sps:$4 sm:$0xff]   ;;  %v10370_v20 = vld [vmem:[#allocation18 + $0x144] ss:$8 sps:$4 sm:$0xff]  }
 0x6c9   : > { %4244 = vmatprep.subr.bf16.mxu0 %v10325_v13  ;;  %7569 = vmatpush1.bf16.msra.mxu1 %v9275_v1  ;;  %v4576_v13 = vld [vmem:[#allocation21 + $0x800] sm:$0xff] }
 0x6ca   : > { %7570 = vmatprep.subr.bf16.mxu1 %v9308_v3  ;;  %v10361_v3 = vld [vmem:[#allocation18 + $0x114] ss:$8 sps:$4 sm:$0xff]  }
 0x6cc   : > { %4245 = vmatpush1.bf16.msra.mxu0 %v10323_v14  ;;  %v4592_v14 = vld [vmem:[#allocation21 + $0x880] sm:$0xff] }
 0x6cd   : > { %4246 = vmatprep.subr.bf16.mxu0 %v10328_v15  ;;  %7571 = vmatpush1.bf16.msra.mxu1 %v9307_v4  ;;  %v9404_v15 = vcombine.high %v4576_v13, %v4592_v14 }
 0x6ce   : > { %7572 = vmatprep.subr.bf16.mxu1 %v9340_v7  ;;  %v10362_v7 = vld [vmem:[#allocation18 + $0x120] ss:$8 sps:$4 sm:$0xff]  }
 0x6d0   : > { %4247 = vmatpush1.bf16.msra.mxu0 %v10326_v16  ;;  %v9403_v16 = vcombine.low %v4576_v13, %v4592_v14  ;;  %v10371_v13 = vld [vmem:[#allocation18 + $0x150] ss:$8 sps:$4 sm:$0xff]   ;;  %v10376_v14 = vld [vmem:[#allocation18 + $0x164] ss:$8 sps:$4 sm:$0xff]  }
 0x6d1   : > { %4248 = vmatprep.subr.bf16.mxu0 %v10331_v58  ;;  %7573 = vmatpush1.bf16.msra.mxu1 %v9339_v8  ;;  %v4608_v58 = vld [vmem:[#allocation21 + $0x900] sm:$0xff]  ;;  %v10367_v8 = vld [vmem:[#allocation18 + $0x134] ss:$8 sps:$4 sm:$0xff]  }
 0x6d2   : > { %7574 = vmatprep.subr.bf16.mxu1 %v9372_v11  ;;  %v10368_v11 = vld [vmem:[#allocation18 + $0x140] ss:$8 sps:$4 sm:$0xff]  }
 0x6d4   : > { %4249 = vmatpush1.bf16.msra.mxu0 %v10329_v17  ;;  %v4624_v17 = vld [vmem:[#allocation21 + $0x980] sm:$0xff] }
 0x6d5   : > { %4250 = vmatprep.subr.bf16.mxu0 %v10334_v18  ;;  %7575 = vmatpush1.bf16.msra.mxu1 %v9371_v12  ;;  %v9436_v18 = vcombine.high %v4608_v58, %v4624_v17  ;;  %v10373_v12 = vld [vmem:[#allocation18 + $0x154] ss:$8 sps:$4 sm:$0xff]  }
 0x6d6   : > { %7576 = vmatprep.subr.bf16.mxu1 %v9404_v15  ;;  %v10374_v15 = vld [vmem:[#allocation18 + $0x160] ss:$8 sps:$4 sm:$0xff]  }
 0x6d8   : > { %4251 = vmatpush1.bf16.msra.mxu0 %v10332_v21  ;;  %v9435_v21 = vcombine.low %v4608_v58, %v4624_v17  ;;  %v10377_v58 = vld [vmem:[#allocation18 + $0x170] ss:$8 sps:$4 sm:$0xff]   ;;  %v10382_v17 = vld [vmem:[#allocation18 + $0x184] ss:$8 sps:$4 sm:$0xff]  }
 0x6d9   : > { %4252 = vmatprep.subr.bf16.mxu0 %v10337_v22  ;;  %7577 = vmatpush1.bf16.msra.mxu1 %v9403_v16  ;;  %v4640_v22 = vld [vmem:[#allocation21 + $0xa00] sm:$0xff]  ;;  %v10379_v16 = vld [vmem:[#allocation18 + $0x174] ss:$8 sps:$4 sm:$0xff]  }
 0x6da   : > { %7578 = vmatprep.subr.bf16.mxu1 %v9436_v18  ;;  %v10380_v18 = vld [vmem:[#allocation18 + $0x180] ss:$8 sps:$4 sm:$0xff]  }
 0x6dc   : > { %4253 = vmatpush1.bf16.msra.mxu0 %v10335_v23  ;;  %v4656_v23 = vld [vmem:[#allocation21 + $0xa80] sm:$0xff] }
 0x6dd   : > { %4254 = vmatprep.subr.bf16.mxu0 %v10340_v24  ;;  %v9468_v24 = vcombine.high %v4640_v22, %v4656_v23  ;;  %7579 = vmatpush1.bf16.msra.mxu1 %v9435_v21  ;;  %v10385_v21 = vld [vmem:[#allocation18 + $0x194] ss:$8 sps:$4 sm:$0xff]  }
 0x6df   : > { %7580 = vmatprep.subr.bf16.mxu1 %v9468_v24  ;;  %v10386_v24 = vld [vmem:[#allocation18 + $0x1a0] ss:$8 sps:$4 sm:$0xff]  }
 0x6e0   : > { %4255 = vmatpush1.bf16.msra.mxu0 %v10338_v10  ;;  %v9467_v10 = vcombine.low %v4640_v22, %v4656_v23  ;;  %v10383_v22 = vld [vmem:[#allocation18 + $0x190] ss:$8 sps:$4 sm:$0xff]   ;;  %v10388_v23 = vld [vmem:[#allocation18 + $0x1a4] ss:$8 sps:$4 sm:$0xff]  }
 0x6e1   : > { %4256 = vmatprep.subr.bf16.mxu0 %v10343_v25  ;;  %v4672_v25 = vld [vmem:[#allocation21 + $0xb00] sm:$0xff] }
 0x6e2   : > { %7581 = vmatpush1.bf16.msra.mxu1 %v9467_v10  ;;  %v10391_v10 = vld [vmem:[#allocation18 + $0x1b4] ss:$8 sps:$4 sm:$0xff]  }
 0x6e4   : > { %4257 = vmatpush1.bf16.msra.mxu0 %v10341_v26  ;;  %v4688_v26 = vld [vmem:[#allocation21 + $0xb80] sm:$0xff] }
 0x6e5   : > { %4258 = vmatprep.subr.bf16.mxu0 %v10346_v27  ;;  %v9500_v27 = vcombine.high %v4672_v25, %v4688_v26 }
 0x6e7   : > { %7582 = vmatprep.subr.bf16.mxu1 %v9500_v27  ;;  %v10392_v27 = vld [vmem:[#allocation18 + $0x1c0] ss:$8 sps:$4 sm:$0xff]  }
 0x6e8   : > { %4259 = vmatpush1.bf16.msra.mxu0 %v10344_v30  ;;  %v9499_v30 = vcombine.low %v4672_v25, %v4688_v26  ;;  %v10389_v25 = vld [vmem:[#allocation18 + $0x1b0] ss:$8 sps:$4 sm:$0xff]   ;;  %v10394_v26 = vld [vmem:[#allocation18 + $0x1c4] ss:$8 sps:$4 sm:$0xff]  }
 0x6e9   : > { %4260 = vmatprep.subr.bf16.mxu0 %v10349_v31  ;;  %v4704_v31 = vld [vmem:[#allocation21 + $0xc00] sm:$0xff] }
 0x6ea   : > { %7583 = vmatpush1.bf16.msra.mxu1 %v9499_v30  ;;  %v10397_v30 = vld [vmem:[#allocation18 + $0x1d4] ss:$8 sps:$4 sm:$0xff]  }
 0x6ec   : > { %4261 = vmatpush1.bf16.msra.mxu0 %v10347_v32  ;;  %v4720_v32 = vld [vmem:[#allocation21 + $0xc80] sm:$0xff] }
 0x6ed   : > { %4262 = vmatprep.subr.bf16.mxu0 %v10352_v33  ;;  %v9532_v33 = vcombine.high %v4704_v31, %v4720_v32 }
 0x6ef   : > { %7584 = vmatprep.subr.bf16.mxu1 %v9532_v33  ;;  %v10400_v33 = vld [vmem:[#allocation18 + $0x1e4] ss:$8 sps:$4 sm:$0xff]  }
 0x6f0   : > { %4263 = vmatpush1.bf16.msra.mxu0 %v10350_v34  ;;  %v9531_v34 = vcombine.low %v4704_v31, %v4720_v32  ;;  %v10395_v31 = vld [vmem:[#allocation18 + $0x1d0] ss:$8 sps:$4 sm:$0xff]  }
 0x6f1   : > { %4264 = vmatprep.subr.bf16.mxu0 %v10355_v35  ;;  %v12178_v35 = vld [vmem:[#allocation17] sm:$0xf] }
 0x6f2   : > { %v3485_v39 = vrot.slane %v12178_v35, %v11535_v60  ;;  %7585 = vmatpush1.bf16.msra.mxu1 %v9531_v34  ;;  %v3489_v42 = vrot.slane %v12178_v35, %v11538_v63  ;;  %v3497_v44 = vrot.slane %v12178_v35, %v11573_v19  ;;  %v3493_v32 = vrot.slane %v12178_v35, %v11764_v28  ;;  %v10398_v34 = vld [vmem:[#allocation18 + $0x1e0] ss:$8 sps:$4 sm:$0xff]  }
 0x6f4   : > { %4265 = vmatpush1.bf16.msra.mxu0 %v10353_v36  ;;  %v4736_v36 = vld [vmem:[#allocation21 + $0xd00] sm:$0xff] }
 0x6f5   : > { %4275 = vmatprep.subr.bf16.mxu0 %v10358_v37  ;;  %v4752_v37 = vld [vmem:[#allocation21 + $0xd80] sm:$0xff] }
 0x6f6   : > { %v9564_v38 = vcombine.high %v4736_v36, %v4752_v37  ;;  %v9563_v40 = vcombine.low %v4736_v36, %v4752_v37  ;;  %v10403_v37 = vld [vmem:[#allocation18 + $0x1f4] ss:$8 sps:$4 sm:$0xff]  }
 0x6f8   : > { %7586 = vmatprep.subr.bf16.mxu1 %v9564_v38  ;;  %v4322_v38 = vld [vmem:[#allocation21 + $0x10] sm:$0xff] }
 0x6f9   : > { %7587 = vmatpush1.bf16.msra.mxu1 %v9563_v40  ;;  %v10401_v40 = vld [vmem:[#allocation18 + $0x1f0] ss:$8 sps:$4 sm:$0xff]  }
 0x78a   : > { %v3659_v45 = vpop.f32.mrb[16].mxu0 }
 0x78b   : > { %v9714_v46 = vadd.f32 %v3659_v45, %v3485_v39  ;;  %v12186_v47 = vpop.f32.mrb[16].mxu1  ;;  %v3661_v48 = vpop.f32.mrb[17].mxu0  ;;  %v4338_v39 = vld [vmem:[#allocation21 + $0x90] sm:$0xff] }
 0x78c   : > { %v9715_v49 = vadd.f32 %v3661_v48, %v3489_v42  ;;  %v3825_v50 = vpop.f32.mrb[17].mxu1  ;;  %v3663_v51 = vpop.f32.mrb[18].mxu0  ;;  %v9716_v36 = vadd.f32 %v12186_v47, %v3493_v32  ;;  %v4354_v45 = vld [vmem:[#allocation21 + $0x110] sm:$0xff]  ;;  %v9151_v48 = vcombine.low %v4322_v38, %v4338_v39 }
 0x78d   : > { %v3830_v52 = vmax.f32 %v9714_v46, 0.0  ;;  %v9717_v53 = vadd.f32 %v3825_v50, %v3497_v44  ;;  %v3827_v54 = vpop.f32.mrb[18].mxu1  ;;  %v3664_v55 = vpop.f32.mrb[19].mxu0  ;;  %v9152_v44 = vcombine.high %v4322_v38, %v4338_v39  ;;  %v4370_v46 = vld [vmem:[#allocation21 + $0x190] sm:$0xff] }
 0x78e   : > { %v3831_v56 = vmax.f32 %v9715_v49, 0.0  ;;  %v3828_v62 = vpop.f32.mrb[19].mxu1  ;;  %v3832_v42 = vmax.f32 %v9716_v36, 0.0  ;;  %v9184_v49 = vcombine.high %v4354_v45, %v4370_v46  ;;  %v4386_v50 = vld [vmem:[#allocation21 + $0x210] sm:$0xff]  ;;  %v9183_v47 = vcombine.low %v4354_v45, %v4370_v46  ;;  %v4784_v45 = vld [vmem:[#allocation21 + $0xe80] sm:$0xff] }
 0x78f   : > { %v3833_v0 = vmax.f32 %v9717_v53, 0.0  ;;  %v3834_v2 = vpack.c.bf16 %v3830_v52, %v3830_v52  ;;  %v4402_v51 = vld [vmem:[#allocation21 + $0x290] sm:$0xff] }
 0x790   : > { %v3835_v1 = vpack.c.bf16 %v3831_v56, %v3831_v56  ;;  %v3836_v35 = vpack.c.bf16 %v3832_v42, %v3832_v42  ;;  %v9216_v52 = vcombine.high %v4386_v50, %v4402_v51  ;;  %v4418_v53 = vld [vmem:[#allocation21 + $0x310] sm:$0xff]  ;;  %v9215_v55 = vcombine.low %v4386_v50, %v4402_v51 }
 0x791   : > { %v3837_v4 = vpack.c.bf16 %v3833_v0, %v3833_v0  ;;  %v4434_v54 = vld [vmem:[#allocation21 + $0x390] sm:$0xff] }
 0x792   : > { %4266 = vmatprep.mubr.bf16.mxu0 %v3835_v1  ;;  %v9248_v56 = vcombine.high %v4418_v53, %v4434_v54  ;;  %v4450_v62 = vld [vmem:[#allocation21 + $0x410] sm:$0xff]  ;;  %v9247_v1 = vcombine.low %v4418_v53, %v4434_v54 }
 0x793   : > { %4267 = vmatmul.mubr.bf16.vlgmr.msra.gmra.mrb[20].mxu0 %v3834_v2  ;;  %v4466_v0 = vld [vmem:[#allocation21 + $0x490] sm:$0xff] }
 0x794   : > { %4276 = vmatpush1.bf16.msra.mxu0 %v10356_v59  ;;  %4307 = vmatprep.mubr.bf16.mxu0 %v3837_v4  ;;  %v9280_v59 = vcombine.high %v4450_v62, %v4466_v0  ;;  %v4482_v2 = vld [vmem:[#allocation21 + $0x510] sm:$0xff]  ;;  %v9279_v4 = vcombine.low %v4450_v62, %v4466_v0 }
 0x795   : > { %4277 = vmatprep.subr.bf16.mxu0 %v10361_v3  ;;  %v4498_v3 = vld [vmem:[#allocation21 + $0x590] sm:$0xff] }
 0x796   : > { %v4706_v32 = vld [vmem:[#allocation21 + $0xc10] sm:$0xff] }
 0x797   : > { %v4754_v38 = vld [vmem:[#allocation21 + $0xd90] sm:$0xff] }
 0x798   : > { %4278 = vmatpush1.bf16.msra.mxu0 %v10359_v5  ;;  %v9312_v5 = vcombine.high %v4482_v2, %v4498_v3  ;;  %v4770_v46 = vld [vmem:[#allocation21 + $0xe10] sm:$0xff] }
 0x799   : > { %4279 = vmatprep.subr.bf16.mxu0 %v10364_v6  ;;  %v4514_v6 = vld [vmem:[#allocation21 + $0x610] sm:$0xff] }
 0x79a   : > { %v4802_v53 = vld [vmem:[#allocation21 + $0xf10] sm:$0xff] }
 0x79c   : > { %4280 = vmatpush1.bf16.msra.mxu0 %v10362_v7  ;;  %v4530_v7 = vld [vmem:[#allocation21 + $0x690] sm:$0xff] }
 0x79d   : > { %4281 = vmatprep.subr.bf16.mxu0 %v10367_v8  ;;  %v9311_v8 = vcombine.low %v4482_v2, %v4498_v3  ;;  %v4324_v2 = vld [vmem:[#allocation21 + $0x20] sm:$0xff] }
 0x7a0   : > { %4282 = vmatpush1.bf16.msra.mxu0 %v10365_v9  ;;  %v9344_v9 = vcombine.high %v4514_v6, %v4530_v7 }
 0x7a1   : > { %4283 = vmatprep.subr.bf16.mxu0 %v10370_v20  ;;  %v4546_v20 = vld [vmem:[#allocation21 + $0x710] sm:$0xff] }
 0x7a4   : > { %4284 = vmatpush1.bf16.msra.mxu0 %v10368_v11  ;;  %v4562_v11 = vld [vmem:[#allocation21 + $0x790] sm:$0xff] }
 0x7a5   : > { %4285 = vmatprep.subr.bf16.mxu0 %v10373_v12  ;;  %v9343_v12 = vcombine.low %v4514_v6, %v4530_v7 }
 0x7a8   : > { %4286 = vmatpush1.bf16.msra.mxu0 %v10371_v13  ;;  %v9376_v13 = vcombine.high %v4546_v20, %v4562_v11 }
 0x7a9   : > { %4287 = vmatprep.subr.bf16.mxu0 %v10376_v14  ;;  %v4578_v14 = vld [vmem:[#allocation21 + $0x810] sm:$0xff] }
 0x7ac   : > { %4288 = vmatpush1.bf16.msra.mxu0 %v10374_v15  ;;  %v4594_v15 = vld [vmem:[#allocation21 + $0x890] sm:$0xff] }
 0x7ad   : > { %4289 = vmatprep.subr.bf16.mxu0 %v10379_v16  ;;  %v9375_v16 = vcombine.low %v4546_v20, %v4562_v11 }
 0x7b0   : > { %4290 = vmatpush1.bf16.msra.mxu0 %v10377_v58  ;;  %v9408_v58 = vcombine.high %v4578_v14, %v4594_v15 }
 0x7b1   : > { %4291 = vmatprep.subr.bf16.mxu0 %v10382_v17  ;;  %v4610_v17 = vld [vmem:[#allocation21 + $0x910] sm:$0xff] }
 0x7b4   : > { %4292 = vmatpush1.bf16.msra.mxu0 %v10380_v18  ;;  %v4626_v18 = vld [vmem:[#allocation21 + $0x990] sm:$0xff] }
 0x7b5   : > { %4293 = vmatprep.subr.bf16.mxu0 %v10385_v21  ;;  %v9407_v21 = vcombine.low %v4578_v14, %v4594_v15 }
 0x7b8   : > { %4294 = vmatpush1.bf16.msra.mxu0 %v10383_v22  ;;  %v9440_v22 = vcombine.high %v4610_v17, %v4626_v18 }
 0x7b9   : > { %4295 = vmatprep.subr.bf16.mxu0 %v10388_v23  ;;  %v4642_v23 = vld [vmem:[#allocation21 + $0xa10] sm:$0xff] }
 0x7bc   : > { %4296 = vmatpush1.bf16.msra.mxu0 %v10386_v24  ;;  %v4658_v24 = vld [vmem:[#allocation21 + $0xa90] sm:$0xff] }
 0x7bd   : > { %4297 = vmatprep.subr.bf16.mxu0 %v10391_v10  ;;  %v9439_v10 = vcombine.low %v4610_v17, %v4626_v18  ;;  %v4353_v18 = vld [vmem:[#allocation21 + $0x108] sm:$0xff] }
 0x7c0   : > { %4298 = vmatpush1.bf16.msra.mxu0 %v10389_v25  ;;  %v9472_v25 = vcombine.high %v4642_v23, %v4658_v24 }
 0x7c1   : > { %4299 = vmatprep.subr.bf16.mxu0 %v10394_v26  ;;  %v4674_v26 = vld [vmem:[#allocation21 + $0xb10] sm:$0xff] }
 0x7c4   : > { %4300 = vmatpush1.bf16.msra.mxu0 %v10392_v27  ;;  %v4690_v27 = vld [vmem:[#allocation21 + $0xb90] sm:$0xff] }
 0x7c5   : > { %4301 = vmatprep.subr.bf16.mxu0 %v10397_v30  ;;  %v9471_v30 = vcombine.low %v4642_v23, %v4658_v24  ;;  %v4372_v23 = vld [vmem:[#allocation21 + $0x1a0] sm:$0xff] }
 0x7c8   : > { %4302 = vmatpush1.bf16.msra.mxu0 %v10395_v31  ;;  %v9504_v31 = vcombine.high %v4674_v26, %v4690_v27 }
 0x7c9   : > { %4303 = vmatprep.subr.bf16.mxu0 %v10400_v33  ;;  %v4722_v33 = vld [vmem:[#allocation21 + $0xc90] sm:$0xff] }
 0x7ca   : > { %v9536_v36 = vcombine.high %v4706_v32, %v4722_v33  ;;  %v9535_v39 = vcombine.low %v4706_v32, %v4722_v33  ;;  %v4404_v32 = vld [vmem:[#allocation21 + $0x2a0] sm:$0xff] }
 0x7cc   : > { %4304 = vmatpush1.bf16.msra.mxu0 %v10398_v34  ;;  %v9503_v34 = vcombine.low %v4674_v26, %v4690_v27 }
 0x7cd   : > { %4305 = vmatprep.subr.bf16.mxu0 %v10403_v37  ;;  %v4738_v37 = vld [vmem:[#allocation21 + $0xd10] sm:$0xff] }
 0x7ce   : > { %v9567_v42 = vcombine.low %v4738_v37, %v4754_v38 }
 0x7d0   : > { %4306 = vmatpush1.bf16.msra.mxu0 %v10401_v40  ;;  %v9568_v40 = vcombine.high %v4738_v37, %v4754_v38  ;;  %v4417_v38 = vld [vmem:[#allocation21 + $0x308] sm:$0xff] }
 0x7d1   : > { %7642 = vmatprep.subr.bf16.mxu0 %v9152_v44  ;;  %v4768_v44 = vld [vmem:[#allocation21 + $0xe00] sm:$0xff] }
 0x7d3   : > { %4308 = vmatmul.mubr.bf16.vlgmr.msra.gmra.mrb[20].mxu0 %v3836_v35  ;;  %v4786_v35 = vld [vmem:[#allocation21 + $0xe90] sm:$0xff] }
 0x7d4   : > { %7643 = vmatpush1.bf16.msra.mxu0 %v9151_v48  ;;  %v9596_v48 = vcombine.high %v4768_v44, %v4784_v45  ;;  %v9599_v50 = vcombine.low %v4770_v46, %v4786_v35  ;;  %v9600_v51 = vcombine.high %v4770_v46, %v4786_v35  ;;  %v4449_v35 = vld [vmem:[#allocation21 + $0x408] sm:$0xff] }
 0x7d5   : > { %7644 = vmatprep.subr.bf16.mxu0 %v9184_v49  ;;  %v9595_v49 = vcombine.low %v4768_v44, %v4784_v45 }
 0x7d6   : > { %7588 = vmatprep.subr.bf16.mxu1 %v9596_v48 }
 0x7d7   : > { %7589 = vmatpush1.bf16.msra.mxu1 %v9595_v49  ;;  %v4465_v49 = vld [vmem:[#allocation21 + $0x488] sm:$0xff] }
 0x7d8   : > { %7645 = vmatpush1.bf16.msra.mxu0 %v9183_v47  ;;  %v4800_v47 = vld [vmem:[#allocation21 + $0xf00] sm:$0xff] }
 0x7d9   : > { %7646 = vmatprep.subr.bf16.mxu0 %v9216_v52  ;;  %v4816_v52 = vld [vmem:[#allocation21 + $0xf80] sm:$0xff] }
 0x7da   : > { %v9628_v54 = vcombine.high %v4800_v47, %v4816_v52 }
 0x7dc   : > { %7647 = vmatpush1.bf16.msra.mxu0 %v9215_v55  ;;  %v4818_v55 = vld [vmem:[#allocation21 + $0xf90] sm:$0xff]  ;;  %7590 = vmatprep.subr.bf16.mxu1 %v9628_v54 }
 0x7dd   : > { %7648 = vmatprep.subr.bf16.mxu0 %v9248_v56  ;;  %v9627_v56 = vcombine.low %v4800_v47, %v4816_v52  ;;  %v9631_v62 = vcombine.low %v4802_v53, %v4818_v55  ;;  %v9632_v0 = vcombine.high %v4802_v53, %v4818_v55  ;;  %v9278_v53 = vcombine.high %v4449_v35, %v4465_v49  ;;  %v4481_v55 = vld [vmem:[#allocation21 + $0x508] sm:$0xff] }
 0x7df   : > { %7591 = vmatpush1.bf16.msra.mxu1 %v9627_v56  ;;  %v4497_v56 = vld [vmem:[#allocation21 + $0x588] sm:$0xff] }
 0x7e0   : > { %7649 = vmatpush1.bf16.msra.mxu0 %v9247_v1  ;;  %v4321_v1 = vld [vmem:[#allocation21 + $0x8] sm:$0xff] }
 0x7e1   : > { %7650 = vmatprep.subr.bf16.mxu0 %v9280_v59  ;;  %v4337_v59 = vld [vmem:[#allocation21 + $0x88] sm:$0xff] }
 0x7e2   : > { %v9150_v3 = vcombine.high %v4321_v1, %v4337_v59 }
 0x7e4   : > { %7651 = vmatpush1.bf16.msra.mxu0 %v9279_v4  ;;  %v4340_v4 = vld [vmem:[#allocation21 + $0xa0] sm:$0xff]  ;;  %7601 = vmatprep.subr.bf16.mxu1 %v9150_v3 }
 0x7e5   : > { %7652 = vmatprep.subr.bf16.mxu0 %v9312_v5  ;;  %v9149_v5 = vcombine.low %v4321_v1, %v4337_v59  ;;  %v9155_v6 = vcombine.low %v4324_v2, %v4340_v4  ;;  %v9156_v7 = vcombine.high %v4324_v2, %v4340_v4  ;;  %v9277_v1 = vcombine.low %v4449_v35, %v4465_v49  ;;  %v4513_v4 = vld [vmem:[#allocation21 + $0x608] sm:$0xff] }
 0x7e6   : > { %v9310_v2 = vcombine.high %v4481_v55, %v4497_v56 }
 0x7e8   : > { %7653 = vmatpush1.bf16.msra.mxu0 %v9311_v8  ;;  %v3902_v8 = vld [vmem:[#allocation20] sm:$0x3] }
 0x7e9   : > { %7654 = vmatprep.subr.bf16.mxu0 %v9344_v9  ;;  %v4227_v9 = vrot.slane %v3902_v8, %v11535_v60  ;;  %v4231_v20 = vrot.slane %v3902_v8, %v11538_v63  ;;  %v9309_v8 = vcombine.low %v4481_v55, %v4497_v56 }
 0x7ec   : > { %7655 = vmatpush1.bf16.msra.mxu0 %v9343_v12 }
 0x7ed   : > { %7656 = vmatprep.subr.bf16.mxu0 %v9376_v13 }
 0x7f0   : > { %7657 = vmatpush1.bf16.msra.mxu0 %v9375_v16 }
 0x7f1   : > { %7658 = vmatprep.subr.bf16.mxu0 %v9408_v58 }
 0x7f4   : > { %7659 = vmatpush1.bf16.msra.mxu0 %v9407_v21  ;;  %v4369_v21 = vld [vmem:[#allocation21 + $0x188] sm:$0xff] }
 0x7f5   : > { %7660 = vmatprep.subr.bf16.mxu0 %v9440_v22  ;;  %v4356_v22 = vld [vmem:[#allocation21 + $0x120] sm:$0xff]  ;;  %v9182_v26 = vcombine.high %v4353_v18, %v4369_v21  ;;  %v9181_v33 = vcombine.low %v4353_v18, %v4369_v21  ;;  %v4577_v21 = vld [vmem:[#allocation21 + $0x808] sm:$0xff] }
 0x7f6   : > { %v9188_v27 = vcombine.high %v4356_v22, %v4372_v23 }
 0x7f8   : > { %7661 = vmatpush1.bf16.msra.mxu0 %v9439_v10 }
 0x7f9   : > { %7662 = vmatprep.subr.bf16.mxu0 %v9472_v25  ;;  %v4385_v25 = vld [vmem:[#allocation21 + $0x208] sm:$0xff] }
 0x7fc   : > { %7663 = vmatpush1.bf16.msra.mxu0 %v9471_v30  ;;  %v4401_v30 = vld [vmem:[#allocation21 + $0x288] sm:$0xff] }
 0x7fd   : > { %7664 = vmatprep.subr.bf16.mxu0 %v9504_v31  ;;  %v4388_v31 = vld [vmem:[#allocation21 + $0x220] sm:$0xff]  ;;  %v9213_v44 = vcombine.low %v4385_v25, %v4401_v30 }
 0x7fe   : > { %v9220_v37 = vcombine.high %v4388_v31, %v4404_v32  ;;  %v9219_v45 = vcombine.low %v4388_v31, %v4404_v32  ;;  %v4609_v32 = vld [vmem:[#allocation21 + $0x908] sm:$0xff] }
 0x800   : > { %7665 = vmatpush1.bf16.msra.mxu0 %v9503_v34  ;;  %v9187_v34 = vcombine.low %v4356_v22, %v4372_v23  ;;  %v4593_v22 = vld [vmem:[#allocation21 + $0x888] sm:$0xff]  ;;  %v4580_v23 = vld [vmem:[#allocation21 + $0x820] sm:$0xff] }
 0x801   : > { %7666 = vmatprep.subr.bf16.mxu0 %v9536_v36  ;;  %v9214_v36 = vcombine.high %v4385_v25, %v4401_v30  ;;  %v4596_v25 = vld [vmem:[#allocation21 + $0x8a0] sm:$0xff]  ;;  %v9406_v30 = vcombine.high %v4577_v21, %v4593_v22 }
 0x802   : > { %v9412_v31 = vcombine.high %v4580_v23, %v4596_v25 }
 0x804   : > { %7667 = vmatpush1.bf16.msra.mxu0 %v9535_v39  ;;  %v4433_v39 = vld [vmem:[#allocation21 + $0x388] sm:$0xff] }
 0x805   : > { %7668 = vmatprep.subr.bf16.mxu0 %v9568_v40  ;;  %v4420_v40 = vld [vmem:[#allocation21 + $0x320] sm:$0xff]  ;;  %v9246_v46 = vcombine.high %v4417_v38, %v4433_v39  ;;  %v9245_v47 = vcombine.low %v4417_v38, %v4433_v39  ;;  %v9411_v38 = vcombine.low %v4580_v23, %v4596_v25  ;;  %v4801_v25 = vld [vmem:[#allocation21 + $0xf08] sm:$0xff] }
 0x808   : > { %7669 = vmatpush1.bf16.msra.mxu0 %v9567_v42  ;;  %v4436_v42 = vld [vmem:[#allocation21 + $0x3a0] sm:$0xff] }
 0x809   : > { %7670 = vmatprep.subr.bf16.mxu0 %v9600_v51  ;;  %v9252_v48 = vcombine.high %v4420_v40, %v4436_v42  ;;  %v4468_v51 = vld [vmem:[#allocation21 + $0x4a0] sm:$0xff]  ;;  %v9251_v52 = vcombine.low %v4420_v40, %v4436_v42  ;;  %v4641_v42 = vld [vmem:[#allocation21 + $0xa08] sm:$0xff] }
 0x80c   : > { %7671 = vmatpush1.bf16.msra.mxu0 %v9599_v50  ;;  %v4452_v50 = vld [vmem:[#allocation21 + $0x420] sm:$0xff] }
 0x80d   : > { %7672 = vmatprep.subr.bf16.mxu0 %v9632_v0  ;;  %v9284_v54 = vcombine.high %v4452_v50, %v4468_v51  ;;  %v4500_v0 = vld [vmem:[#allocation21 + $0x5a0] sm:$0xff]  ;;  %v9283_v59 = vcombine.low %v4452_v50, %v4468_v51  ;;  %v4673_v51 = vld [vmem:[#allocation21 + $0xb08] sm:$0xff] }
 0x810   : > { %7673 = vmatpush1.bf16.msra.mxu0 %v9631_v62  ;;  %v4484_v62 = vld [vmem:[#allocation21 + $0x520] sm:$0xff] }
 0x811   : > { %7724 = vmatprep.subr.bf16.mxu0 %v9156_v7  ;;  %v9316_v3 = vcombine.high %v4484_v62, %v4500_v0  ;;  %v4532_v7 = vld [vmem:[#allocation21 + $0x6a0] sm:$0xff] }
 0x8a6   : > { %v4309_v11 = vpop.f32.mrb[20].mxu0 }
 0x8a7   : > { %v9718_v12 = vadd.f32 %v4309_v11, %v4227_v9  ;;  %v4311_v13 = vpop.f32.mrb[21].mxu0  ;;  %v9315_v9 = vcombine.low %v4484_v62, %v4500_v0  ;;  %v4705_v0 = vld [vmem:[#allocation21 + $0xc08] sm:$0xff] }
 0x8a8   : > { %v9719_v14 = vadd.f32 %v4311_v13, %v4231_v20  ;;  %v4313_v15 = vpop.f32.mrb[22].mxu0  ;;  %v4561_v13 = vld [vmem:[#allocation21 + $0x788] sm:$0xff] }
 0x8a9   : > { %v4316_v16 = vmax.f32 %v9718_v12, 0.0  ;;  %v4314_v58 = vpop.f32.mrb[23].mxu0  ;;  %v4545_v12 = vld [vmem:[#allocation21 + $0x708] sm:$0xff]  ;;  %v4564_v15 = vld [vmem:[#allocation21 + $0x7a0] sm:$0xff] }
 0x8aa   : > { %v4317_v17 = vmax.f32 %v9719_v14, 0.0  ;;  %v4548_v14 = vld [vmem:[#allocation21 + $0x720] sm:$0xff] }
 0x8ab   : > { %v12195_v10 = vpack.c.bf16 %v4316_v16, %v4316_v16  ;;  %v9380_v18 = vcombine.high %v4548_v14, %v4564_v15 }
 0x8ac   : > { %v12193_v24 = vpack.c.bf16 %v4317_v17, %v4317_v17  ;;  %v9374_v17 = vcombine.high %v4545_v12, %v4561_v13 }
 0x8ae   : > { %7592 = vmatprep.mubr.bf16.mxu1 %v12193_v24  ;;  %7674 = vmatprep.mubr.bf16.mxu0 %v12193_v24 }
 0x8af   : > { %7593 = vmatmul.mubr.bf16.vlgmr.msra.gmra.mrb[20].mxu1 %v12195_v10  ;;  %7675 = vmatmul.mubr.bf16.vlgmr.msra.gmra.mrb[24].mxu0 %v12195_v10 }
 0x8b0   : > { %7602 = vmatpush1.bf16.msra.mxu1 %v9149_v5  ;;  %7725 = vmatpush1.bf16.msra.mxu0 %v9155_v6  ;;  %v4529_v5 = vld [vmem:[#allocation21 + $0x688] sm:$0xff]  ;;  %v4516_v6 = vld [vmem:[#allocation21 + $0x620] sm:$0xff] }
 0x8b1   : > { %7633 = vmatprep.mubr.bf16.mxu1 %v12193_v24  ;;  %7756 = vmatprep.mubr.bf16.mxu0 %v12193_v24  ;;  %v9342_v20 = vcombine.high %v4513_v4, %v4529_v5  ;;  %v9348_v11 = vcombine.high %v4516_v6, %v4532_v7  ;;  %v9341_v16 = vcombine.low %v4513_v4, %v4529_v5 }
 0x8b2   : > { %7603 = vmatprep.subr.bf16.mxu1 %v9182_v26  ;;  %7726 = vmatprep.subr.bf16.mxu0 %v9188_v27  ;;  %v9347_v58 = vcombine.low %v4516_v6, %v4532_v7  ;;  %v9373_v26 = vcombine.low %v4545_v12, %v4561_v13  ;;  %v9379_v27 = vcombine.low %v4548_v14, %v4564_v15  ;;  %v4737_v7 = vld [vmem:[#allocation21 + $0xd08] sm:$0xff] }
 0x8b3   : > { %v4769_v15 = vld [vmem:[#allocation21 + $0xe08] sm:$0xff] }
 0x8b4   : > { %7604 = vmatpush1.bf16.msra.mxu1 %v9181_v33  ;;  %7727 = vmatpush1.bf16.msra.mxu0 %v9187_v34  ;;  %v4625_v33 = vld [vmem:[#allocation21 + $0x988] sm:$0xff]  ;;  %v4612_v34 = vld [vmem:[#allocation21 + $0x920] sm:$0xff] }
 0x8b5   : > { %7605 = vmatprep.subr.bf16.mxu1 %v9214_v36  ;;  %7728 = vmatprep.subr.bf16.mxu0 %v9220_v37  ;;  %v4628_v36 = vld [vmem:[#allocation21 + $0x9a0] sm:$0xff]  ;;  %v9405_v37 = vcombine.low %v4577_v21, %v4593_v22  ;;  %v9438_v39 = vcombine.high %v4609_v32, %v4625_v33 }
 0x8b6   : > { %v9444_v40 = vcombine.high %v4612_v34, %v4628_v36  ;;  %v9443_v35 = vcombine.low %v4612_v34, %v4628_v36  ;;  %v4323_v36 = vld [vmem:[#allocation21 + $0x18] sm:$0xff] }
 0x8b8   : > { %7606 = vmatpush1.bf16.msra.mxu1 %v9213_v44  ;;  %7729 = vmatpush1.bf16.msra.mxu0 %v9219_v45  ;;  %v4657_v44 = vld [vmem:[#allocation21 + $0xa88] sm:$0xff]  ;;  %v4644_v45 = vld [vmem:[#allocation21 + $0xa20] sm:$0xff] }
 0x8b9   : > { %7607 = vmatprep.subr.bf16.mxu1 %v9246_v46  ;;  %7730 = vmatprep.subr.bf16.mxu0 %v9252_v48  ;;  %v4660_v46 = vld [vmem:[#allocation21 + $0xaa0] sm:$0xff]  ;;  %v9437_v48 = vcombine.low %v4609_v32, %v4625_v33  ;;  %v9470_v49 = vcombine.high %v4641_v42, %v4657_v44 }
 0x8ba   : > { %v9476_v50 = vcombine.high %v4644_v45, %v4660_v46  ;;  %v9475_v55 = vcombine.low %v4644_v45, %v4660_v46  ;;  %v4355_v46 = vld [vmem:[#allocation21 + $0x118] sm:$0xff] }
 0x8bc   : > { %7608 = vmatpush1.bf16.msra.mxu1 %v9245_v47  ;;  %7731 = vmatpush1.bf16.msra.mxu0 %v9251_v52  ;;  %v4689_v47 = vld [vmem:[#allocation21 + $0xb88] sm:$0xff]  ;;  %v4676_v52 = vld [vmem:[#allocation21 + $0xb20] sm:$0xff] }
 0x8bd   : > { %7609 = vmatprep.subr.bf16.mxu1 %v9278_v53  ;;  %7732 = vmatprep.subr.bf16.mxu0 %v9284_v54  ;;  %v4692_v53 = vld [vmem:[#allocation21 + $0xba0] sm:$0xff]  ;;  %v9469_v54 = vcombine.low %v4641_v42, %v4657_v44  ;;  %v9502_v56 = vcombine.high %v4673_v51, %v4689_v47 }
 0x8be   : > { %v9508_v62 = vcombine.high %v4676_v52, %v4692_v53  ;;  %v9507_v4 = vcombine.low %v4676_v52, %v4692_v53  ;;  %v4387_v53 = vld [vmem:[#allocation21 + $0x218] sm:$0xff] }
 0x8c0   : > { %7610 = vmatpush1.bf16.msra.mxu1 %v9277_v1  ;;  %7733 = vmatpush1.bf16.msra.mxu0 %v9283_v59  ;;  %v4721_v1 = vld [vmem:[#allocation21 + $0xc88] sm:$0xff]  ;;  %v4708_v59 = vld [vmem:[#allocation21 + $0xc20] sm:$0xff] }
 0x8c1   : > { %7611 = vmatprep.subr.bf16.mxu1 %v9310_v2  ;;  %7734 = vmatprep.subr.bf16.mxu0 %v9316_v3  ;;  %v4724_v2 = vld [vmem:[#allocation21 + $0xca0] sm:$0xff]  ;;  %v9501_v3 = vcombine.low %v4673_v51, %v4689_v47  ;;  %v9534_v5 = vcombine.high %v4705_v0, %v4721_v1 }
 0x8c2   : > { %v9540_v6 = vcombine.high %v4708_v59, %v4724_v2  ;;  %v9539_v12 = vcombine.low %v4708_v59, %v4724_v2  ;;  %v4419_v2 = vld [vmem:[#allocation21 + $0x318] sm:$0xff] }
 0x8c4   : > { %7612 = vmatpush1.bf16.msra.mxu1 %v9309_v8  ;;  %7735 = vmatpush1.bf16.msra.mxu0 %v9315_v9  ;;  %v4753_v8 = vld [vmem:[#allocation21 + $0xd88] sm:$0xff]  ;;  %v4740_v9 = vld [vmem:[#allocation21 + $0xd20] sm:$0xff] }
 0x8c5   : > { %7613 = vmatprep.subr.bf16.mxu1 %v9342_v20  ;;  %7736 = vmatprep.subr.bf16.mxu0 %v9348_v11  ;;  %v4756_v20 = vld [vmem:[#allocation21 + $0xda0] sm:$0xff]  ;;  %v9533_v11 = vcombine.low %v4705_v0, %v4721_v1  ;;  %v9566_v13 = vcombine.high %v4737_v7, %v4753_v8 }
 0x8c6   : > { %v9572_v14 = vcombine.high %v4740_v9, %v4756_v20  ;;  %v9571_v21 = vcombine.low %v4740_v9, %v4756_v20  ;;  %v4451_v20 = vld [vmem:[#allocation21 + $0x418] sm:$0xff] }
 0x8c8   : > { %7614 = vmatpush1.bf16.msra.mxu1 %v9341_v16  ;;  %7737 = vmatpush1.bf16.msra.mxu0 %v9347_v58  ;;  %v4785_v16 = vld [vmem:[#allocation21 + $0xe88] sm:$0xff]  ;;  %v4772_v58 = vld [vmem:[#allocation21 + $0xe20] sm:$0xff] }
 0x8c9   : > { %7615 = vmatprep.subr.bf16.mxu1 %v9374_v17  ;;  %7738 = vmatprep.subr.bf16.mxu0 %v9380_v18  ;;  %v4788_v17 = vld [vmem:[#allocation21 + $0xea0] sm:$0xff]  ;;  %v9565_v18 = vcombine.low %v4737_v7, %v4753_v8  ;;  %v9598_v22 = vcombine.high %v4769_v15, %v4785_v16 }
 0x8ca   : > { %v9604_v23 = vcombine.high %v4772_v58, %v4788_v17  ;;  %v9603_v32 = vcombine.low %v4772_v58, %v4788_v17  ;;  %v4483_v17 = vld [vmem:[#allocation21 + $0x518] sm:$0xff] }
 0x8cc   : > { %7616 = vmatpush1.bf16.msra.mxu1 %v9373_v26  ;;  %7739 = vmatpush1.bf16.msra.mxu0 %v9379_v27  ;;  %v4817_v26 = vld [vmem:[#allocation21 + $0xf88] sm:$0xff]  ;;  %v4804_v27 = vld [vmem:[#allocation21 + $0xf20] sm:$0xff] }
 0x8cd   : > { %7617 = vmatprep.subr.bf16.mxu1 %v9406_v30  ;;  %7740 = vmatprep.subr.bf16.mxu0 %v9412_v31  ;;  %v4820_v30 = vld [vmem:[#allocation21 + $0xfa0] sm:$0xff]  ;;  %v9597_v31 = vcombine.low %v4769_v15, %v4785_v16  ;;  %v9630_v33 = vcombine.high %v4801_v25, %v4817_v26 }
 0x8ce   : > { %v9636_v34 = vcombine.high %v4804_v27, %v4820_v30  ;;  %v9635_v42 = vcombine.low %v4804_v27, %v4820_v30  ;;  %v4515_v30 = vld [vmem:[#allocation21 + $0x618] sm:$0xff] }
 0x8d0   : > { %7618 = vmatpush1.bf16.msra.mxu1 %v9405_v37  ;;  %7741 = vmatpush1.bf16.msra.mxu0 %v9411_v38  ;;  %v4339_v37 = vld [vmem:[#allocation21 + $0x98] sm:$0xff]  ;;  %v4326_v38 = vld [vmem:[#allocation21 + $0x30] sm:$0xff] }
 0x8d1   : > { %7619 = vmatprep.subr.bf16.mxu1 %v9438_v39  ;;  %7742 = vmatprep.subr.bf16.mxu0 %v9444_v40  ;;  %v4342_v39 = vld [vmem:[#allocation21 + $0xb0] sm:$0xff]  ;;  %v9629_v40 = vcombine.low %v4801_v25, %v4817_v26  ;;  %v9154_v44 = vcombine.high %v4323_v36, %v4339_v37 }
 0x8d2   : > { %v9160_v45 = vcombine.high %v4326_v38, %v4342_v39  ;;  %v9159_v51 = vcombine.low %v4326_v38, %v4342_v39  ;;  %v4547_v39 = vld [vmem:[#allocation21 + $0x718] sm:$0xff] }
 0x8d4   : > { %7620 = vmatpush1.bf16.msra.mxu1 %v9437_v48  ;;  %7743 = vmatpush1.bf16.msra.mxu0 %v9443_v35  ;;  %v4371_v48 = vld [vmem:[#allocation21 + $0x198] sm:$0xff]  ;;  %v4358_v35 = vld [vmem:[#allocation21 + $0x130] sm:$0xff] }
 0x8d5   : > { %7621 = vmatprep.subr.bf16.mxu1 %v9470_v49  ;;  %7744 = vmatprep.subr.bf16.mxu0 %v9476_v50  ;;  %v4374_v49 = vld [vmem:[#allocation21 + $0x1b0] sm:$0xff]  ;;  %v9153_v50 = vcombine.low %v4323_v36, %v4339_v37  ;;  %v9186_v47 = vcombine.high %v4355_v46, %v4371_v48 }
 0x8d6   : > { %v9192_v52 = vcombine.high %v4358_v35, %v4374_v49  ;;  %v9191_v0 = vcombine.low %v4358_v35, %v4374_v49  ;;  %v4579_v49 = vld [vmem:[#allocation21 + $0x818] sm:$0xff] }
 0x8d8   : > { %7622 = vmatpush1.bf16.msra.mxu1 %v9469_v54  ;;  %7745 = vmatpush1.bf16.msra.mxu0 %v9475_v55  ;;  %v4403_v54 = vld [vmem:[#allocation21 + $0x298] sm:$0xff]  ;;  %v4390_v55 = vld [vmem:[#allocation21 + $0x230] sm:$0xff] }
 0x8d9   : > { %7623 = vmatprep.subr.bf16.mxu1 %v9502_v56  ;;  %7746 = vmatprep.subr.bf16.mxu0 %v9508_v62  ;;  %v4406_v56 = vld [vmem:[#allocation21 + $0x2b0] sm:$0xff]  ;;  %v9185_v62 = vcombine.low %v4355_v46, %v4371_v48  ;;  %v9218_v1 = vcombine.high %v4387_v53, %v4403_v54 }
 0x8da   : > { %v9224_v59 = vcombine.high %v4390_v55, %v4406_v56  ;;  %v9223_v7 = vcombine.low %v4390_v55, %v4406_v56  ;;  %v4611_v56 = vld [vmem:[#allocation21 + $0x918] sm:$0xff] }
 0x8dc   : > { %7624 = vmatpush1.bf16.msra.mxu1 %v9501_v3  ;;  %7747 = vmatpush1.bf16.msra.mxu0 %v9507_v4  ;;  %v4435_v3 = vld [vmem:[#allocation21 + $0x398] sm:$0xff]  ;;  %v4422_v4 = vld [vmem:[#allocation21 + $0x330] sm:$0xff] }
 0x8dd   : > { %7625 = vmatprep.subr.bf16.mxu1 %v9534_v5  ;;  %7748 = vmatprep.subr.bf16.mxu0 %v9540_v6  ;;  %v4438_v5 = vld [vmem:[#allocation21 + $0x3b0] sm:$0xff]  ;;  %v9217_v6 = vcombine.low %v4387_v53, %v4403_v54  ;;  %v9250_v8 = vcombine.high %v4419_v2, %v4435_v3 }
 0x8de   : > { %v9256_v9 = vcombine.high %v4422_v4, %v4438_v5  ;;  %v9255_v15 = vcombine.low %v4422_v4, %v4438_v5  ;;  %v4643_v5 = vld [vmem:[#allocation21 + $0xa18] sm:$0xff] }
 0x8e0   : > { %7626 = vmatpush1.bf16.msra.mxu1 %v9533_v11  ;;  %7749 = vmatpush1.bf16.msra.mxu0 %v9539_v12  ;;  %v4467_v11 = vld [vmem:[#allocation21 + $0x498] sm:$0xff]  ;;  %v4454_v12 = vld [vmem:[#allocation21 + $0x430] sm:$0xff] }
 0x8e1   : > { %7627 = vmatprep.subr.bf16.mxu1 %v9566_v13  ;;  %7750 = vmatprep.subr.bf16.mxu0 %v9572_v14  ;;  %v4470_v13 = vld [vmem:[#allocation21 + $0x4b0] sm:$0xff]  ;;  %v9249_v14 = vcombine.low %v4419_v2, %v4435_v3  ;;  %v9282_v16 = vcombine.high %v4451_v20, %v4467_v11 }
 0x8e2   : > { %v9288_v58 = vcombine.high %v4454_v12, %v4470_v13  ;;  %v9287_v25 = vcombine.low %v4454_v12, %v4470_v13  ;;  %v4675_v13 = vld [vmem:[#allocation21 + $0xb18] sm:$0xff] }
 0x8e4   : > { %7628 = vmatpush1.bf16.msra.mxu1 %v9565_v18  ;;  %7751 = vmatpush1.bf16.msra.mxu0 %v9571_v21  ;;  %v4499_v18 = vld [vmem:[#allocation21 + $0x598] sm:$0xff]  ;;  %v4486_v21 = vld [vmem:[#allocation21 + $0x530] sm:$0xff] }
 0x8e5   : > { %7629 = vmatprep.subr.bf16.mxu1 %v9598_v22  ;;  %7752 = vmatprep.subr.bf16.mxu0 %v9604_v23  ;;  %v4502_v22 = vld [vmem:[#allocation21 + $0x5b0] sm:$0xff]  ;;  %v9281_v23 = vcombine.low %v4451_v20, %v4467_v11  ;;  %v9314_v26 = vcombine.high %v4483_v17, %v4499_v18 }
 0x8e6   : > { %v9320_v27 = vcombine.high %v4486_v21, %v4502_v22  ;;  %v9319_v36 = vcombine.low %v4486_v21, %v4502_v22  ;;  %v4707_v22 = vld [vmem:[#allocation21 + $0xc18] sm:$0xff] }
 0x8e8   : > { %7630 = vmatpush1.bf16.msra.mxu1 %v9597_v31  ;;  %7753 = vmatpush1.bf16.msra.mxu0 %v9603_v32  ;;  %v4531_v31 = vld [vmem:[#allocation21 + $0x698] sm:$0xff]  ;;  %v4518_v32 = vld [vmem:[#allocation21 + $0x630] sm:$0xff] }
 0x8e9   : > { %7631 = vmatprep.subr.bf16.mxu1 %v9630_v33  ;;  %7754 = vmatprep.subr.bf16.mxu0 %v9636_v34  ;;  %v4534_v33 = vld [vmem:[#allocation21 + $0x6b0] sm:$0xff]  ;;  %v9313_v34 = vcombine.low %v4483_v17, %v4499_v18  ;;  %v9346_v37 = vcombine.high %v4515_v30, %v4531_v31 }
 0x8ea   : > { %v9352_v38 = vcombine.high %v4518_v32, %v4534_v33  ;;  %v9351_v46 = vcombine.low %v4518_v32, %v4534_v33  ;;  %v4739_v33 = vld [vmem:[#allocation21 + $0xd18] sm:$0xff] }
 0x8ec   : > { %7632 = vmatpush1.bf16.msra.mxu1 %v9629_v40  ;;  %7755 = vmatpush1.bf16.msra.mxu0 %v9635_v42  ;;  %v4563_v40 = vld [vmem:[#allocation21 + $0x798] sm:$0xff]  ;;  %v4550_v42 = vld [vmem:[#allocation21 + $0x730] sm:$0xff] }
 0x8ed   : > { %7683 = vmatprep.subr.bf16.mxu1 %v9154_v44  ;;  %7806 = vmatprep.subr.bf16.mxu0 %v9160_v45  ;;  %v4566_v44 = vld [vmem:[#allocation21 + $0x7b0] sm:$0xff]  ;;  %v9345_v45 = vcombine.low %v4515_v30, %v4531_v31  ;;  %v9378_v48 = vcombine.high %v4547_v39, %v4563_v40 }
 0x8ee   : > { %v9384_v35 = vcombine.high %v4550_v42, %v4566_v44  ;;  %v9383_v53 = vcombine.low %v4550_v42, %v4566_v44  ;;  %v4771_v44 = vld [vmem:[#allocation21 + $0xe18] sm:$0xff] }
 0x8ef   : > { %7634 = vmatmul.mubr.bf16.vlgmr.msra.gmra.mrb[24].mxu1 %v12195_v10  ;;  %7757 = vmatmul.mubr.bf16.vlgmr.msra.gmra.mrb[28].mxu0 %v12195_v10 }
 0x8f0   : > { %7684 = vmatpush1.bf16.msra.mxu1 %v9153_v50  ;;  %7715 = vmatprep.mubr.bf16.mxu1 %v12193_v24  ;;  %v4595_v50 = vld [vmem:[#allocation21 + $0x898] sm:$0xff] }
 0x8f1   : > { %7807 = vmatpush1.bf16.msra.mxu0 %v9159_v51  ;;  %7838 = vmatprep.mubr.bf16.mxu0 %v12193_v24  ;;  %v4582_v51 = vld [vmem:[#allocation21 + $0x830] sm:$0xff]  ;;  %v9410_v54 = vcombine.high %v4579_v49, %v4595_v50 }
 0x8f2   : > { %7685 = vmatprep.subr.bf16.mxu1 %v9186_v47  ;;  %7808 = vmatprep.subr.bf16.mxu0 %v9192_v52  ;;  %v4598_v47 = vld [vmem:[#allocation21 + $0x8b0] sm:$0xff]  ;;  %v9377_v52 = vcombine.low %v4547_v39, %v4563_v40 }
 0x8f3   : > { %v9416_v55 = vcombine.high %v4582_v51, %v4598_v47  ;;  %v9415_v2 = vcombine.low %v4582_v51, %v4598_v47  ;;  %v4803_v47 = vld [vmem:[#allocation21 + $0xf18] sm:$0xff] }
 0x8f4   : > { %7686 = vmatpush1.bf16.msra.mxu1 %v9185_v62  ;;  %v4627_v62 = vld [vmem:[#allocation21 + $0x998] sm:$0xff] }
 0x8f5   : > { %7809 = vmatpush1.bf16.msra.mxu0 %v9191_v0  ;;  %7687 = vmatprep.subr.bf16.mxu1 %v9218_v1  ;;  %v4614_v0 = vld [vmem:[#allocation21 + $0x930] sm:$0xff]  ;;  %v9442_v3 = vcombine.high %v4611_v56, %v4627_v62 }
 0x8f6   : > { %7810 = vmatprep.subr.bf16.mxu0 %v9224_v59  ;;  %v4630_v1 = vld [vmem:[#allocation21 + $0x9b0] sm:$0xff]  ;;  %v9409_v59 = vcombine.low %v4579_v49, %v4595_v50 }
 0x8f7   : > { %v9448_v4 = vcombine.high %v4614_v0, %v4630_v1  ;;  %v9447_v20 = vcombine.low %v4614_v0, %v4630_v1  ;;  %v4325_v1 = vld [vmem:[#allocation21 + $0x28] sm:$0xff] }
 0x8f8   : > { %7688 = vmatpush1.bf16.msra.mxu1 %v9217_v6  ;;  %v4659_v6 = vld [vmem:[#allocation21 + $0xa98] sm:$0xff] }
 0x8f9   : > { %7811 = vmatpush1.bf16.msra.mxu0 %v9223_v7  ;;  %7689 = vmatprep.subr.bf16.mxu1 %v9250_v8  ;;  %v4646_v7 = vld [vmem:[#allocation21 + $0xa30] sm:$0xff]  ;;  %v9474_v11 = vcombine.high %v4643_v5, %v4659_v6 }
 0x8fa   : > { %7812 = vmatprep.subr.bf16.mxu0 %v9256_v9  ;;  %v4662_v8 = vld [vmem:[#allocation21 + $0xab0] sm:$0xff]  ;;  %v9441_v9 = vcombine.low %v4611_v56, %v4627_v62 }
 0x8fb   : > { %v9480_v12 = vcombine.high %v4646_v7, %v4662_v8  ;;  %v9479_v17 = vcombine.low %v4646_v7, %v4662_v8  ;;  %v4357_v8 = vld [vmem:[#allocation21 + $0x128] sm:$0xff] }
 0x8fc   : > { %7690 = vmatpush1.bf16.msra.mxu1 %v9249_v14  ;;  %v4691_v14 = vld [vmem:[#allocation21 + $0xb98] sm:$0xff] }
 0x8fd   : > { %7813 = vmatpush1.bf16.msra.mxu0 %v9255_v15  ;;  %7691 = vmatprep.subr.bf16.mxu1 %v9282_v16  ;;  %v4678_v15 = vld [vmem:[#allocation21 + $0xb30] sm:$0xff]  ;;  %v9506_v18 = vcombine.high %v4675_v13, %v4691_v14 }
 0x8fe   : > { %7814 = vmatprep.subr.bf16.mxu0 %v9288_v58  ;;  %v4694_v16 = vld [vmem:[#allocation21 + $0xbb0] sm:$0xff]  ;;  %v9473_v58 = vcombine.low %v4643_v5, %v4659_v6 }
 0x8ff   : > { %v9512_v21 = vcombine.high %v4678_v15, %v4694_v16  ;;  %v9511_v30 = vcombine.low %v4678_v15, %v4694_v16  ;;  %v4389_v15 = vld [vmem:[#allocation21 + $0x228] sm:$0xff] }
 0x900   : > { %7692 = vmatpush1.bf16.msra.mxu1 %v9281_v23  ;;  %v4723_v23 = vld [vmem:[#allocation21 + $0xc98] sm:$0xff]  ;;  %v4405_v16 = vld [vmem:[#allocation21 + $0x2a8] sm:$0xff] }
 0x901   : > { %7815 = vmatpush1.bf16.msra.mxu0 %v9287_v25  ;;  %7693 = vmatprep.subr.bf16.mxu1 %v9314_v26  ;;  %v4710_v25 = vld [vmem:[#allocation21 + $0xc30] sm:$0xff]  ;;  %v9538_v31 = vcombine.high %v4707_v22, %v4723_v23 }
 0x902   : > { %7816 = vmatprep.subr.bf16.mxu0 %v9320_v27  ;;  %v4726_v26 = vld [vmem:[#allocation21 + $0xcb0] sm:$0xff]  ;;  %v9505_v27 = vcombine.low %v4675_v13, %v4691_v14 }
 0x903   : > { %v9544_v32 = vcombine.high %v4710_v25, %v4726_v26  ;;  %v9543_v39 = vcombine.low %v4710_v25, %v4726_v26  ;;  %v4421_v26 = vld [vmem:[#allocation21 + $0x328] sm:$0xff] }
 0x904   : > { %7694 = vmatpush1.bf16.msra.mxu1 %v9313_v34  ;;  %v4755_v34 = vld [vmem:[#allocation21 + $0xd98] sm:$0xff] }
 0x905   : > { %7817 = vmatpush1.bf16.msra.mxu0 %v9319_v36  ;;  %7695 = vmatprep.subr.bf16.mxu1 %v9346_v37  ;;  %v4742_v36 = vld [vmem:[#allocation21 + $0xd30] sm:$0xff]  ;;  %v9570_v40 = vcombine.high %v4739_v33, %v4755_v34 }
 0x906   : > { %7818 = vmatprep.subr.bf16.mxu0 %v9352_v38  ;;  %v4758_v37 = vld [vmem:[#allocation21 + $0xdb0] sm:$0xff]  ;;  %v9537_v38 = vcombine.low %v4707_v22, %v4723_v23  ;;  %v9222_v23 = vcombine.high %v4389_v15, %v4405_v16 }
 0x907   : > { %v9576_v42 = vcombine.high %v4742_v36, %v4758_v37  ;;  %v9575_v49 = vcombine.low %v4742_v36, %v4758_v37  ;;  %v4453_v37 = vld [vmem:[#allocation21 + $0x428] sm:$0xff] }
 0x908   : > { %7696 = vmatpush1.bf16.msra.mxu1 %v9345_v45  ;;  %v4787_v45 = vld [vmem:[#allocation21 + $0xe98] sm:$0xff] }
 0x909   : > { %7819 = vmatpush1.bf16.msra.mxu0 %v9351_v46  ;;  %7697 = vmatprep.subr.bf16.mxu1 %v9378_v48  ;;  %v4774_v46 = vld [vmem:[#allocation21 + $0xe30] sm:$0xff]  ;;  %v9602_v50 = vcombine.high %v4771_v44, %v4787_v45 }
 0x90a   : > { %7820 = vmatprep.subr.bf16.mxu0 %v9384_v35  ;;  %v4790_v48 = vld [vmem:[#allocation21 + $0xeb0] sm:$0xff]  ;;  %v9569_v35 = vcombine.low %v4739_v33, %v4755_v34 }
 0x90b   : > { %v9608_v51 = vcombine.high %v4774_v46, %v4790_v48  ;;  %v9607_v56 = vcombine.low %v4774_v46, %v4790_v48  ;;  %v4485_v48 = vld [vmem:[#allocation21 + $0x528] sm:$0xff] }
 0x90c   : > { %7698 = vmatpush1.bf16.msra.mxu1 %v9377_v52  ;;  %v4819_v52 = vld [vmem:[#allocation21 + $0xf98] sm:$0xff] }
 0x90d   : > { %7821 = vmatpush1.bf16.msra.mxu0 %v9383_v53  ;;  %7699 = vmatprep.subr.bf16.mxu1 %v9410_v54  ;;  %v4806_v53 = vld [vmem:[#allocation21 + $0xf30] sm:$0xff]  ;;  %v9634_v62 = vcombine.high %v4803_v47, %v4819_v52 }
 0x90e   : > { %7822 = vmatprep.subr.bf16.mxu0 %v9416_v55  ;;  %v4822_v54 = vld [vmem:[#allocation21 + $0xfb0] sm:$0xff]  ;;  %v9601_v55 = vcombine.low %v4771_v44, %v4787_v45 }
 0x90f   : > { %v9640_v0 = vcombine.high %v4806_v53, %v4822_v54  ;;  %v9639_v5 = vcombine.low %v4806_v53, %v4822_v54  ;;  %v4517_v54 = vld [vmem:[#allocation21 + $0x628] sm:$0xff] }
 0x910   : > { %7700 = vmatpush1.bf16.msra.mxu1 %v9409_v59  ;;  %v4341_v59 = vld [vmem:[#allocation21 + $0xa8] sm:$0xff] }
 0x911   : > { %7823 = vmatpush1.bf16.msra.mxu0 %v9415_v2  ;;  %7701 = vmatprep.subr.bf16.mxu1 %v9442_v3  ;;  %v4328_v2 = vld [vmem:[#allocation21 + $0x40] sm:$0xff]  ;;  %v9158_v6 = vcombine.high %v4325_v1, %v4341_v59 }
 0x912   : > { %7824 = vmatprep.subr.bf16.mxu0 %v9448_v4  ;;  %v4344_v3 = vld [vmem:[#allocation21 + $0xc0] sm:$0xff]  ;;  %v9633_v4 = vcombine.low %v4803_v47, %v4819_v52 }
 0x913   : > { %v9164_v7 = vcombine.high %v4328_v2, %v4344_v3  ;;  %v9163_v13 = vcombine.low %v4328_v2, %v4344_v3  ;;  %v4549_v3 = vld [vmem:[#allocation21 + $0x728] sm:$0xff] }
 0x914   : > { %7702 = vmatpush1.bf16.msra.mxu1 %v9441_v9  ;;  %v4373_v9 = vld [vmem:[#allocation21 + $0x1a8] sm:$0xff] }
 0x915   : > { %7825 = vmatpush1.bf16.msra.mxu0 %v9447_v20  ;;  %7703 = vmatprep.subr.bf16.mxu1 %v9474_v11  ;;  %v9157_v20 = vcombine.low %v4325_v1, %v4341_v59  ;;  %v4360_v11 = vld [vmem:[#allocation21 + $0x140] sm:$0xff]  ;;  %v9190_v14 = vcombine.high %v4357_v8, %v4373_v9 }
 0x916   : > { %7826 = vmatprep.subr.bf16.mxu0 %v9480_v12  ;;  %v4376_v12 = vld [vmem:[#allocation21 + $0x1c0] sm:$0xff] }
 0x917   : > { %v9195_v22 = vcombine.low %v4360_v11, %v4376_v12 }
 0x918   : > { %7704 = vmatpush1.bf16.msra.mxu1 %v9473_v58  ;;  %v9196_v58 = vcombine.high %v4360_v11, %v4376_v12  ;;  %v4581_v11 = vld [vmem:[#allocation21 + $0x828] sm:$0xff] }
 0x919   : > { %7827 = vmatpush1.bf16.msra.mxu0 %v9479_v17  ;;  %7705 = vmatprep.subr.bf16.mxu1 %v9506_v18  ;;  %v4392_v17 = vld [vmem:[#allocation21 + $0x240] sm:$0xff]  ;;  %v4597_v12 = vld [vmem:[#allocation21 + $0x8a8] sm:$0xff] }
 0x91a   : > { %7828 = vmatprep.subr.bf16.mxu0 %v9512_v21  ;;  %v4408_v18 = vld [vmem:[#allocation21 + $0x2c0] sm:$0xff]  ;;  %v9189_v21 = vcombine.low %v4357_v8, %v4373_v9 }
 0x91b   : > { %v9228_v25 = vcombine.high %v4392_v17, %v4408_v18  ;;  %v9227_v33 = vcombine.low %v4392_v17, %v4408_v18  ;;  %v4613_v18 = vld [vmem:[#allocation21 + $0x928] sm:$0xff] }
 0x91c   : > { %7706 = vmatpush1.bf16.msra.mxu1 %v9505_v27  ;;  %v4437_v27 = vld [vmem:[#allocation21 + $0x3a8] sm:$0xff] }
 0x91d   : > { %7829 = vmatpush1.bf16.msra.mxu0 %v9511_v30  ;;  %7707 = vmatprep.subr.bf16.mxu1 %v9538_v31  ;;  %v4424_v30 = vld [vmem:[#allocation21 + $0x340] sm:$0xff]  ;;  %v9254_v34 = vcombine.high %v4421_v26, %v4437_v27 }
 0x91e   : > { %7830 = vmatprep.subr.bf16.mxu0 %v9544_v32  ;;  %v4440_v31 = vld [vmem:[#allocation21 + $0x3c0] sm:$0xff]  ;;  %v9221_v32 = vcombine.low %v4389_v15, %v4405_v16 }
 0x91f   : > { %v9260_v36 = vcombine.high %v4424_v30, %v4440_v31  ;;  %v9259_v44 = vcombine.low %v4424_v30, %v4440_v31  ;;  %v4645_v31 = vld [vmem:[#allocation21 + $0xa28] sm:$0xff] }
 0x920   : > { %7708 = vmatpush1.bf16.msra.mxu1 %v9537_v38  ;;  %v4469_v38 = vld [vmem:[#allocation21 + $0x4a8] sm:$0xff] }
 0x921   : > { %7831 = vmatpush1.bf16.msra.mxu0 %v9543_v39  ;;  %7709 = vmatprep.subr.bf16.mxu1 %v9570_v40  ;;  %v4456_v39 = vld [vmem:[#allocation21 + $0x440] sm:$0xff]  ;;  %v9286_v45 = vcombine.high %v4453_v37, %v4469_v38 }
 0x922   : > { %7832 = vmatprep.subr.bf16.mxu0 %v9576_v42  ;;  %v4472_v40 = vld [vmem:[#allocation21 + $0x4c0] sm:$0xff]  ;;  %v9253_v42 = vcombine.low %v4421_v26, %v4437_v27 }
 0x923   : > { %v9292_v46 = vcombine.high %v4456_v39, %v4472_v40  ;;  %v9291_v47 = vcombine.low %v4456_v39, %v4472_v40  ;;  %v4677_v40 = vld [vmem:[#allocation21 + $0xb28] sm:$0xff] }
 0x924   : > { %7710 = vmatpush1.bf16.msra.mxu1 %v9569_v35  ;;  %v4501_v35 = vld [vmem:[#allocation21 + $0x5a8] sm:$0xff] }
 0x925   : > { %7833 = vmatpush1.bf16.msra.mxu0 %v9575_v49  ;;  %7711 = vmatprep.subr.bf16.mxu1 %v9602_v50  ;;  %v4488_v49 = vld [vmem:[#allocation21 + $0x540] sm:$0xff]  ;;  %v9318_v52 = vcombine.high %v4485_v48, %v4501_v35 }
 0x926   : > { %7834 = vmatprep.subr.bf16.mxu0 %v9608_v51  ;;  %v4504_v50 = vld [vmem:[#allocation21 + $0x5c0] sm:$0xff]  ;;  %v9285_v51 = vcombine.low %v4453_v37, %v4469_v38 }
 0x927   : > { %v9324_v53 = vcombine.high %v4488_v49, %v4504_v50  ;;  %v9323_v1 = vcombine.low %v4488_v49, %v4504_v50  ;;  %v4709_v50 = vld [vmem:[#allocation21 + $0xc28] sm:$0xff] }
 0x928   : > { %7712 = vmatpush1.bf16.msra.mxu1 %v9601_v55  ;;  %v4533_v55 = vld [vmem:[#allocation21 + $0x6a8] sm:$0xff] }
 0x929   : > { %7835 = vmatpush1.bf16.msra.mxu0 %v9607_v56  ;;  %7713 = vmatprep.subr.bf16.mxu1 %v9634_v62  ;;  %v4520_v56 = vld [vmem:[#allocation21 + $0x640] sm:$0xff]  ;;  %v9350_v59 = vcombine.high %v4517_v54, %v4533_v55 }
 0x92a   : > { %7836 = vmatprep.subr.bf16.mxu0 %v9640_v0  ;;  %v4536_v62 = vld [vmem:[#allocation21 + $0x6c0] sm:$0xff]  ;;  %v9317_v0 = vcombine.low %v4485_v48, %v4501_v35 }
 0x92b   : > { %v9356_v2 = vcombine.high %v4520_v56, %v4536_v62  ;;  %v9355_v8 = vcombine.low %v4520_v56, %v4536_v62  ;;  %v4741_v62 = vld [vmem:[#allocation21 + $0xd28] sm:$0xff] }
 0x92c   : > { %7714 = vmatpush1.bf16.msra.mxu1 %v9633_v4  ;;  %v4565_v4 = vld [vmem:[#allocation21 + $0x7a8] sm:$0xff] }
 0x92d   : > { %7837 = vmatpush1.bf16.msra.mxu0 %v9639_v5  ;;  %7765 = vmatprep.subr.bf16.mxu1 %v9158_v6  ;;  %v4552_v5 = vld [vmem:[#allocation21 + $0x740] sm:$0xff]  ;;  %v9382_v9 = vcombine.high %v4549_v3, %v4565_v4  ;;  %v9381_v15 = vcombine.low %v4549_v3, %v4565_v4 }
 0x92e   : > { %7888 = vmatprep.subr.bf16.mxu0 %v9164_v7  ;;  %v4568_v6 = vld [vmem:[#allocation21 + $0x7c0] sm:$0xff]  ;;  %v9349_v7 = vcombine.low %v4517_v54, %v4533_v55 }
 0x92f   : > { %7716 = vmatmul.mubr.bf16.vlgmr.msra.gmra.mrb[28].mxu1 %v12195_v10  ;;  %v9387_v16 = vcombine.low %v4552_v5, %v4568_v6 }
 0x930   : > { %7839 = vmatmul.mubr.bf16.vlgmr.msra.gmra.mrb[32].mxu0 %v12195_v10  ;;  %7766 = vmatpush1.bf16.msra.mxu1 %v9157_v20  ;;  %v9388_v20 = vcombine.high %v4552_v5, %v4568_v6  ;;  %v4773_v6 = vld [vmem:[#allocation21 + $0xe28] sm:$0xff] }
 0x931   : > { %7797 = vmatprep.mubr.bf16.mxu1 %v12193_v24  ;;  %7889 = vmatpush1.bf16.msra.mxu0 %v9163_v13  ;;  %v4584_v13 = vld [vmem:[#allocation21 + $0x840] sm:$0xff] }
 0x932   : > { %7920 = vmatprep.mubr.bf16.mxu0 %v12193_v24  ;;  %7767 = vmatprep.subr.bf16.mxu1 %v9190_v14  ;;  %v4600_v14 = vld [vmem:[#allocation21 + $0x8c0] sm:$0xff] }
 0x933   : > { %7890 = vmatprep.subr.bf16.mxu0 %v9196_v58  ;;  %v9414_v58 = vcombine.high %v4581_v11, %v4597_v12  ;;  %v9420_v17 = vcombine.high %v4584_v13, %v4600_v14  ;;  %v9419_v26 = vcombine.low %v4584_v13, %v4600_v14  ;;  %v4805_v14 = vld [vmem:[#allocation21 + $0xf28] sm:$0xff] }
 0x934   : > { %7768 = vmatpush1.bf16.msra.mxu1 %v9189_v21  ;;  %v4629_v21 = vld [vmem:[#allocation21 + $0x9a8] sm:$0xff] }
 0x935   : > { %7891 = vmatpush1.bf16.msra.mxu0 %v9195_v22  ;;  %7769 = vmatprep.subr.bf16.mxu1 %v9222_v23  ;;  %v4616_v22 = vld [vmem:[#allocation21 + $0x940] sm:$0xff]  ;;  %v9446_v27 = vcombine.high %v4613_v18, %v4629_v21 }
 0x936   : > { %7892 = vmatprep.subr.bf16.mxu0 %v9228_v25  ;;  %v4632_v23 = vld [vmem:[#allocation21 + $0x9c0] sm:$0xff]  ;;  %v9413_v25 = vcombine.low %v4581_v11, %v4597_v12 }
 0x937   : > { %v9452_v30 = vcombine.high %v4616_v22, %v4632_v23  ;;  %v9451_v37 = vcombine.low %v4616_v22, %v4632_v23  ;;  %v4327_v23 = vld [vmem:[#allocation21 + $0x38] sm:$0xff] }
 0x938   : > { %7770 = vmatpush1.bf16.msra.mxu1 %v9221_v32  ;;  %v4661_v32 = vld [vmem:[#allocation21 + $0xaa8] sm:$0xff] }
 0x939   : > { %7893 = vmatpush1.bf16.msra.mxu0 %v9227_v33  ;;  %7771 = vmatprep.subr.bf16.mxu1 %v9254_v34  ;;  %v4648_v33 = vld [vmem:[#allocation21 + $0xa40] sm:$0xff]  ;;  %v9478_v38 = vcombine.high %v4645_v31, %v4661_v32 }
 0x93a   : > { %7894 = vmatprep.subr.bf16.mxu0 %v9260_v36  ;;  %v4664_v34 = vld [vmem:[#allocation21 + $0xac0] sm:$0xff]  ;;  %v9445_v36 = vcombine.low %v4613_v18, %v4629_v21 }
 0x93b   : > { %v9484_v39 = vcombine.high %v4648_v33, %v4664_v34  ;;  %v9483_v48 = vcombine.low %v4648_v33, %v4664_v34  ;;  %v4359_v34 = vld [vmem:[#allocation21 + $0x138] sm:$0xff] }
 0x93c   : > { %7772 = vmatpush1.bf16.msra.mxu1 %v9253_v42  ;;  %v4693_v42 = vld [vmem:[#allocation21 + $0xba8] sm:$0xff] }
 0x93d   : > { %7895 = vmatpush1.bf16.msra.mxu0 %v9259_v44  ;;  %7773 = vmatprep.subr.bf16.mxu1 %v9286_v45  ;;  %v4680_v44 = vld [vmem:[#allocation21 + $0xb40] sm:$0xff]  ;;  %v9510_v35 = vcombine.high %v4677_v40, %v4693_v42 }
 0x93e   : > { %7896 = vmatprep.subr.bf16.mxu0 %v9292_v46  ;;  %v4696_v45 = vld [vmem:[#allocation21 + $0xbc0] sm:$0xff]  ;;  %v9477_v46 = vcombine.low %v4645_v31, %v4661_v32 }
 0x93f   : > { %v9516_v49 = vcombine.high %v4680_v44, %v4696_v45  ;;  %v9515_v54 = vcombine.low %v4680_v44, %v4696_v45  ;;  %v4391_v44 = vld [vmem:[#allocation21 + $0x238] sm:$0xff] }
 0x940   : > { %7774 = vmatpush1.bf16.msra.mxu1 %v9285_v51  ;;  %v4725_v51 = vld [vmem:[#allocation21 + $0xca8] sm:$0xff]  ;;  %v4407_v45 = vld [vmem:[#allocation21 + $0x2b8] sm:$0xff] }
 0x941   : > { %7897 = vmatpush1.bf16.msra.mxu0 %v9291_v47  ;;  %7775 = vmatprep.subr.bf16.mxu1 %v9318_v52  ;;  %v4712_v47 = vld [vmem:[#allocation21 + $0xc40] sm:$0xff]  ;;  %v9542_v55 = vcombine.high %v4709_v50, %v4725_v51 }
 0x942   : > { %7898 = vmatprep.subr.bf16.mxu0 %v9324_v53  ;;  %v4728_v52 = vld [vmem:[#allocation21 + $0xcc0] sm:$0xff]  ;;  %v9509_v53 = vcombine.low %v4677_v40, %v4693_v42 }
 0x943   : > { %v9548_v56 = vcombine.high %v4712_v47, %v4728_v52  ;;  %v9547_v3 = vcombine.low %v4712_v47, %v4728_v52  ;;  %v4423_v52 = vld [vmem:[#allocation21 + $0x338] sm:$0xff] }
 0x944   : > { %7776 = vmatpush1.bf16.msra.mxu1 %v9317_v0  ;;  %v4757_v0 = vld [vmem:[#allocation21 + $0xda8] sm:$0xff] }
 0x945   : > { %7899 = vmatpush1.bf16.msra.mxu0 %v9323_v1  ;;  %7777 = vmatprep.subr.bf16.mxu1 %v9350_v59  ;;  %v4744_v1 = vld [vmem:[#allocation21 + $0xd40] sm:$0xff]  ;;  %v9574_v4 = vcombine.high %v4741_v62, %v4757_v0 }
 0x946   : > { %7900 = vmatprep.subr.bf16.mxu0 %v9356_v2  ;;  %v4760_v59 = vld [vmem:[#allocation21 + $0xdc0] sm:$0xff]  ;;  %v9541_v2 = vcombine.low %v4709_v50, %v4725_v51  ;;  %v9226_v51 = vcombine.high %v4391_v44, %v4407_v45 }
 0x947   : > { %v9580_v5 = vcombine.high %v4744_v1, %v4760_v59  ;;  %v9579_v11 = vcombine.low %v4744_v1, %v4760_v59  ;;  %v4455_v59 = vld [vmem:[#allocation21 + $0x438] sm:$0xff] }
 0x948   : > { %7778 = vmatpush1.bf16.msra.mxu1 %v9349_v7  ;;  %v4789_v7 = vld [vmem:[#allocation21 + $0xea8] sm:$0xff] }
 0x949   : > { %7901 = vmatpush1.bf16.msra.mxu0 %v9355_v8  ;;  %7779 = vmatprep.subr.bf16.mxu1 %v9382_v9  ;;  %v4776_v8 = vld [vmem:[#allocation21 + $0xe40] sm:$0xff]  ;;  %v9606_v12 = vcombine.high %v4773_v6, %v4789_v7 }
 0x94a   : > { %7902 = vmatprep.subr.bf16.mxu0 %v9388_v20  ;;  %v4792_v9 = vld [vmem:[#allocation21 + $0xec0] sm:$0xff]  ;;  %v9573_v20 = vcombine.low %v4741_v62, %v4757_v0 }
 0x94b   : > { %v9612_v13 = vcombine.high %v4776_v8, %v4792_v9  ;;  %v9611_v18 = vcombine.low %v4776_v8, %v4792_v9  ;;  %v4487_v9 = vld [vmem:[#allocation21 + $0x538] sm:$0xff] }
 0x94c   : > { %7780 = vmatpush1.bf16.msra.mxu1 %v9381_v15  ;;  %v4821_v15 = vld [vmem:[#allocation21 + $0xfa8] sm:$0xff] }
 0x94d   : > { %7903 = vmatpush1.bf16.msra.mxu0 %v9387_v16  ;;  %7781 = vmatprep.subr.bf16.mxu1 %v9414_v58  ;;  %v4808_v16 = vld [vmem:[#allocation21 + $0xf40] sm:$0xff]  ;;  %v9638_v21 = vcombine.high %v4805_v14, %v4821_v15 }
 0x94e   : > { %7904 = vmatprep.subr.bf16.mxu0 %v9420_v17  ;;  %v4824_v58 = vld [vmem:[#allocation21 + $0xfc0] sm:$0xff]  ;;  %v9605_v17 = vcombine.low %v4773_v6, %v4789_v7 }
 0x94f   : > { %v9644_v22 = vcombine.high %v4808_v16, %v4824_v58  ;;  %v9643_v31 = vcombine.low %v4808_v16, %v4824_v58 }
 0x950   : > { %7782 = vmatpush1.bf16.msra.mxu1 %v9413_v25  ;;  %v4343_v25 = vld [vmem:[#allocation21 + $0xb8] sm:$0xff] }
 0x951   : > { %7905 = vmatpush1.bf16.msra.mxu0 %v9419_v26  ;;  %7783 = vmatprep.subr.bf16.mxu1 %v9446_v27  ;;  %v4330_v26 = vld [vmem:[#allocation21 + $0x50] sm:$0xff]  ;;  %v9162_v32 = vcombine.high %v4327_v23, %v4343_v25 }
 0x952   : > { %7906 = vmatprep.subr.bf16.mxu0 %v9452_v30  ;;  %v4346_v27 = vld [vmem:[#allocation21 + $0xd0] sm:$0xff]  ;;  %v9637_v30 = vcombine.low %v4805_v14, %v4821_v15  ;;  %v12215_v14 = vld [vmem:[#allocation23] sm:$0xff] }
 0x953   : > { %v9168_v33 = vcombine.high %v4330_v26, %v4346_v27  ;;  %v9167_v40 = vcombine.low %v4330_v26, %v4346_v27  ;;  %v7407_v27 = vrot.slane %v12215_v14, %v11538_v63 }
 0x954   : > { %7784 = vmatpush1.bf16.msra.mxu1 %v9445_v36  ;;  %v4375_v36 = vld [vmem:[#allocation21 + $0x1b8] sm:$0xff] }
 0x955   : > { %7907 = vmatpush1.bf16.msra.mxu0 %v9451_v37  ;;  %7785 = vmatprep.subr.bf16.mxu1 %v9478_v38  ;;  %v9161_v37 = vcombine.low %v4327_v23, %v4343_v25  ;;  %v4362_v38 = vld [vmem:[#allocation21 + $0x150] sm:$0xff]  ;;  %v9194_v42 = vcombine.high %v4359_v34, %v4375_v36 }
 0x956   : > { %7908 = vmatprep.subr.bf16.mxu0 %v9484_v39  ;;  %v4378_v39 = vld [vmem:[#allocation21 + $0x1d0] sm:$0xff] }
 0x957   : > { %v9199_v50 = vcombine.low %v4362_v38, %v4378_v39  ;;  %v4522_v23 = vld [vmem:[#allocation21 + $0x650] sm:$0xff] }
 0x958   : > { %7786 = vmatpush1.bf16.msra.mxu1 %v9477_v46  ;;  %v9200_v46 = vcombine.high %v4362_v38, %v4378_v39  ;;  %v4538_v25 = vld [vmem:[#allocation21 + $0x6d0] sm:$0xff]  ;;  %v4567_v38 = vld [vmem:[#allocation21 + $0x7b8] sm:$0xff] }
 0x959   : > { %7909 = vmatpush1.bf16.msra.mxu0 %v9483_v48  ;;  %7787 = vmatprep.subr.bf16.mxu1 %v9510_v35  ;;  %v4394_v48 = vld [vmem:[#allocation21 + $0x250] sm:$0xff] }
 0x95a   : > { %7910 = vmatprep.subr.bf16.mxu0 %v9516_v49  ;;  %v4410_v35 = vld [vmem:[#allocation21 + $0x2d0] sm:$0xff]  ;;  %v9193_v49 = vcombine.low %v4359_v34, %v4375_v36  ;;  %v9360_v36 = vcombine.high %v4522_v23, %v4538_v25 }
 0x95b   : > { %v9232_v47 = vcombine.high %v4394_v48, %v4410_v35  ;;  %v9231_v62 = vcombine.low %v4394_v48, %v4410_v35 }
 0x95c   : > { %7788 = vmatpush1.bf16.msra.mxu1 %v9509_v53  ;;  %v4439_v53 = vld [vmem:[#allocation21 + $0x3b8] sm:$0xff] }
 0x95d   : > { %7911 = vmatpush1.bf16.msra.mxu0 %v9515_v54  ;;  %7789 = vmatprep.subr.bf16.mxu1 %v9542_v55  ;;  %v4426_v54 = vld [vmem:[#allocation21 + $0x350] sm:$0xff]  ;;  %v9258_v0 = vcombine.high %v4423_v52, %v4439_v53 }
 0x95e   : > { %7912 = vmatprep.subr.bf16.mxu0 %v9548_v56  ;;  %v4442_v55 = vld [vmem:[#allocation21 + $0x3d0] sm:$0xff]  ;;  %v9225_v56 = vcombine.low %v4391_v44, %v4407_v45 }
 0x95f   : > { %v9264_v1 = vcombine.high %v4426_v54, %v4442_v55  ;;  %v9263_v6 = vcombine.low %v4426_v54, %v4442_v55  ;;  %v4554_v45 = vld [vmem:[#allocation21 + $0x750] sm:$0xff] }
 0x960   : > { %7790 = vmatpush1.bf16.msra.mxu1 %v9541_v2  ;;  %v4471_v2 = vld [vmem:[#allocation21 + $0x4b8] sm:$0xff] }
 0x961   : > { %7913 = vmatpush1.bf16.msra.mxu0 %v9547_v3  ;;  %7791 = vmatprep.subr.bf16.mxu1 %v9574_v4  ;;  %v4458_v3 = vld [vmem:[#allocation21 + $0x450] sm:$0xff]  ;;  %v9290_v7 = vcombine.high %v4455_v59, %v4471_v2 }
 0x962   : > { %7914 = vmatprep.subr.bf16.mxu0 %v9580_v5  ;;  %v4474_v4 = vld [vmem:[#allocation21 + $0x4d0] sm:$0xff]  ;;  %v9257_v5 = vcombine.low %v4423_v52, %v4439_v53  ;;  %v9359_v53 = vcombine.low %v4522_v23, %v4538_v25 }
 0x963   : > { %v9296_v8 = vcombine.high %v4458_v3, %v4474_v4  ;;  %v9295_v15 = vcombine.low %v4458_v3, %v4474_v4 }
 0x964   : > { %7792 = vmatpush1.bf16.msra.mxu1 %v9573_v20  ;;  %v4503_v20 = vld [vmem:[#allocation21 + $0x5b8] sm:$0xff] }
 0x965   : > { %7915 = vmatpush1.bf16.msra.mxu0 %v9579_v11  ;;  %7793 = vmatprep.subr.bf16.mxu1 %v9606_v12  ;;  %v4490_v11 = vld [vmem:[#allocation21 + $0x550] sm:$0xff]  ;;  %v9322_v16 = vcombine.high %v4487_v9, %v4503_v20  ;;  %v9321_v26 = vcombine.low %v4487_v9, %v4503_v20 }
 0x966   : > { %7916 = vmatprep.subr.bf16.mxu0 %v9612_v13  ;;  %v4506_v12 = vld [vmem:[#allocation21 + $0x5d0] sm:$0xff]  ;;  %v9289_v13 = vcombine.low %v4455_v59, %v4471_v2 }
 0x967   : > { %v9328_v58 = vcombine.high %v4490_v11, %v4506_v12  ;;  %v4586_v59 = vld [vmem:[#allocation21 + $0x850] sm:$0xff] }
 0x968   : > { %7794 = vmatpush1.bf16.msra.mxu1 %v9605_v17  ;;  %v4519_v17 = vld [vmem:[#allocation21 + $0x638] sm:$0xff]  ;;  %v4602_v2 = vld [vmem:[#allocation21 + $0x8d0] sm:$0xff] }
 0x969   : > { %7917 = vmatpush1.bf16.msra.mxu0 %v9611_v18  ;;  %7795 = vmatprep.subr.bf16.mxu1 %v9638_v21  ;;  %v4535_v18 = vld [vmem:[#allocation21 + $0x6b8] sm:$0xff]  ;;  %v7403_v21 = vrot.slane %v12215_v14, %v11535_v60  ;;  %v4618_v9 = vld [vmem:[#allocation21 + $0x950] sm:$0xff] }
 0x96a   : > { %7918 = vmatprep.subr.bf16.mxu0 %v9644_v22  ;;  %v7419_v22 = vrot.slane %v12215_v14, %v11963_v41  ;;  %v4634_v20 = vld [vmem:[#allocation21 + $0x9d0] sm:$0xff] }
 0x96c   : > { %7796 = vmatpush1.bf16.msra.mxu1 %v9637_v30  ;;  %v7423_v30 = vrot.slane %v12215_v14, %v11767_v29 }
 0x96d   : > { %7919 = vmatpush1.bf16.msra.mxu0 %v9643_v31  ;;  %7847 = vmatprep.subr.bf16.mxu1 %v9162_v32  ;;  %v9327_v31 = vcombine.low %v4490_v11, %v4506_v12  ;;  %v9354_v32 = vcombine.high %v4519_v17, %v4535_v18  ;;  %v9423_v12 = vcombine.low %v4586_v59, %v4602_v2 }
 0x96e   : > { %7970 = vmatprep.subr.bf16.mxu0 %v9168_v33 }
 0x96f   : > { %7798 = vmatmul.mubr.bf16.vlgmr.msra.gmra.mrb[32].mxu1 %v12195_v10 }
 0x970   : > { %7921 = vmatmul.mubr.bf16.vlgmr.msra.gmra.mrb[36].mxu0 %v12195_v10  ;;  %7848 = vmatpush1.bf16.msra.mxu1 %v9161_v37  ;;  %v4551_v37 = vld [vmem:[#allocation21 + $0x738] sm:$0xff] }
 0x971   : > { %7879 = vmatprep.mubr.bf16.mxu1 %v12193_v24  ;;  %7971 = vmatpush1.bf16.msra.mxu0 %v9167_v40  ;;  %v9386_v54 = vcombine.high %v4551_v37, %v4567_v38  ;;  %v9385_v3 = vcombine.low %v4551_v37, %v4567_v38  ;;  %v4711_v37 = vld [vmem:[#allocation21 + $0xc38] sm:$0xff] }
 0x972   : > { %8002 = vmatprep.mubr.bf16.mxu0 %v12193_v24  ;;  %7849 = vmatprep.subr.bf16.mxu1 %v9194_v42  ;;  %v4727_v38 = vld [vmem:[#allocation21 + $0xcb8] sm:$0xff] }
 0x973   : > { %7972 = vmatprep.subr.bf16.mxu0 %v9200_v46  ;;  %v4570_v46 = vld [vmem:[#allocation21 + $0x7d0] sm:$0xff] }
 0x974   : > { %7850 = vmatpush1.bf16.msra.mxu1 %v9193_v49  ;;  %v9391_v4 = vcombine.low %v4554_v45, %v4570_v46 }
 0x975   : > { %7973 = vmatpush1.bf16.msra.mxu0 %v9199_v50  ;;  %7851 = vmatprep.subr.bf16.mxu1 %v9226_v51  ;;  %v9353_v51 = vcombine.low %v4519_v17, %v4535_v18  ;;  %v4650_v17 = vld [vmem:[#allocation21 + $0xa50] sm:$0xff] }
 0x976   : > { %7974 = vmatprep.subr.bf16.mxu0 %v9232_v47  ;;  %v4666_v18 = vld [vmem:[#allocation21 + $0xad0] sm:$0xff] }
 0x977   : > { %v9488_v25 = vcombine.high %v4650_v17, %v4666_v18 }
 0x978   : > { %7852 = vmatpush1.bf16.msra.mxu1 %v9225_v56 }
 0x979   : > { %7975 = vmatpush1.bf16.msra.mxu0 %v9231_v62  ;;  %7853 = vmatprep.subr.bf16.mxu1 %v9258_v0  ;;  %v9392_v62 = vcombine.high %v4554_v45, %v4570_v46  ;;  %v4583_v0 = vld [vmem:[#allocation21 + $0x838] sm:$0xff] }
 0x97a   : > { %7976 = vmatprep.subr.bf16.mxu0 %v9264_v1  ;;  %v4599_v1 = vld [vmem:[#allocation21 + $0x8b8] sm:$0xff] }
 0x97b   : > { %v9417_v11 = vcombine.low %v4583_v0, %v4599_v1 }
 0x97c   : > { %7854 = vmatpush1.bf16.msra.mxu1 %v9257_v5  ;;  %v9418_v5 = vcombine.high %v4583_v0, %v4599_v1 }
 0x97d   : > { %7977 = vmatpush1.bf16.msra.mxu0 %v9263_v6  ;;  %7855 = vmatprep.subr.bf16.mxu1 %v9290_v7  ;;  %v9424_v6 = vcombine.high %v4586_v59, %v4602_v2  ;;  %v4615_v7 = vld [vmem:[#allocation21 + $0x938] sm:$0xff] }
 0x97e   : > { %7978 = vmatprep.subr.bf16.mxu0 %v9296_v8  ;;  %v4631_v8 = vld [vmem:[#allocation21 + $0x9b8] sm:$0xff] }
 0x97f   : > { %v4775_v59 = vld [vmem:[#allocation21 + $0xe38] sm:$0xff] }
 0x980   : > { %7856 = vmatpush1.bf16.msra.mxu1 %v9289_v13  ;;  %v9450_v13 = vcombine.high %v4615_v7, %v4631_v8  ;;  %v4791_v2 = vld [vmem:[#allocation21 + $0xeb8] sm:$0xff] }
 0x981   : > { %7979 = vmatpush1.bf16.msra.mxu0 %v9295_v15  ;;  %7857 = vmatprep.subr.bf16.mxu1 %v9322_v16  ;;  %v9456_v15 = vcombine.high %v4618_v9, %v4634_v20  ;;  %v4647_v16 = vld [vmem:[#allocation21 + $0xa38] sm:$0xff] }
 0x982   : > { %v7594_v33 = vpop.f32.mrb[20].mxu1  ;;  %v7676_v34 = vpop.f32.mrb[24].mxu0  ;;  %7980 = vmatprep.subr.bf16.mxu0 %v9328_v58  ;;  %v4663_v58 = vld [vmem:[#allocation21 + $0xab8] sm:$0xff] }
 0x983   : > { %v12225_v39 = vadd.f32 %v7594_v33, %v7403_v21  ;;  %v12227_v40 = vadd.f32 %v7676_v34, %v7419_v22  ;;  %v7596_v42 = vpop.f32.mrb[21].mxu1  ;;  %v7678_v44 = vpop.f32.mrb[25].mxu0  ;;  %v9449_v21 = vcombine.low %v4615_v7, %v4631_v8  ;;  %v9455_v22 = vcombine.low %v4618_v9, %v4634_v20  ;;  %v4807_v9 = vld [vmem:[#allocation21 + $0xf38] sm:$0xff] }
 0x984   : > { %v12229_v48 = vadd.f32 %v7596_v42, %v7407_v27  ;;  %v12231_v35 = vadd.f32 %v7678_v44, %v7423_v30  ;;  %7858 = vmatpush1.bf16.msra.mxu1 %v9321_v26  ;;  %v7598_v49 = vpop.f32.mrb[22].mxu1  ;;  %v7680_v50 = vpop.f32.mrb[26].mxu0  ;;  %v9482_v23 = vcombine.high %v4647_v16, %v4663_v58  ;;  %v4679_v26 = vld [vmem:[#allocation21 + $0xb38] sm:$0xff]  ;;  %v4682_v30 = vld [vmem:[#allocation21 + $0xb50] sm:$0xff]  ;;  %v9487_v33 = vcombine.low %v4650_v17, %v4666_v18  ;;  %v4329_v17 = vld [vmem:[#allocation21 + $0x48] sm:$0xff] }
 0x985   : > { %7981 = vmatpush1.bf16.msra.mxu0 %v9327_v31  ;;  %v7599_v47 = vpop.f32.mrb[23].mxu1  ;;  %v7681_v52 = vpop.f32.mrb[27].mxu0  ;;  %7859 = vmatprep.subr.bf16.mxu1 %v9354_v32  ;;  %v4695_v27 = vld [vmem:[#allocation21 + $0xbb8] sm:$0xff]  ;;  %v4698_v31 = vld [vmem:[#allocation21 + $0xbd0] sm:$0xff]  ;;  %v9481_v32 = vcombine.low %v4647_v16, %v4663_v58  ;;  %v9546_v49 = vcombine.high %v4711_v37, %v4727_v38  ;;  %v9610_v7 = vcombine.high %v4775_v59, %v4791_v2  ;;  %v4345_v18 = vld [vmem:[#allocation21 + $0xc8] sm:$0xff] }
 0x986   : > { %v8248_v55 = vcombine.low %v12225_v39, %v12229_v48  ;;  %v8250_v56 = vcombine.low %v12227_v40, %v12231_v35  ;;  %7982 = vmatprep.subr.bf16.mxu0 %v9360_v36  ;;  %v9514_v34 = vcombine.high %v4679_v26, %v4695_v27  ;;  %v9520_v36 = vcombine.high %v4682_v30, %v4698_v31  ;;  %v4714_v42 = vld [vmem:[#allocation21 + $0xc50] sm:$0xff]  ;;  %v4759_v47 = vld [vmem:[#allocation21 + $0xdb8] sm:$0xff]  ;;  %v4636_v39 = vld [vmem:[#allocation21 + $0x9e0] sm:$0xff] }
 0x987   : > { %v4730_v44 = vld [vmem:[#allocation21 + $0xcd0] sm:$0xff]  ;;  %v9513_v45 = vcombine.low %v4679_v26, %v4695_v27  ;;  %v9519_v46 = vcombine.low %v4682_v30, %v4698_v31  ;;  %v4823_v20 = vld [vmem:[#allocation21 + $0xfb8] sm:$0xff]  ;;  %v9166_v26 = vcombine.high %v4329_v17, %v4345_v18  ;;  %v4361_v30 = vld [vmem:[#allocation21 + $0x148] sm:$0xff] }
 0x988   : > { %7860 = vmatpush1.bf16.msra.mxu1 %v9353_v51  ;;  %v9552_v50 = vcombine.high %v4714_v42, %v4730_v44  ;;  %v4743_v51 = vld [vmem:[#allocation21 + $0xd38] sm:$0xff]  ;;  %v4746_v52 = vld [vmem:[#allocation21 + $0xd50] sm:$0xff]  ;;  %v9642_v16 = vcombine.high %v4807_v9, %v4823_v20  ;;  %v4377_v31 = vld [vmem:[#allocation21 + $0x1c8] sm:$0xff] }
 0x989   : > { %7983 = vmatpush1.bf16.msra.mxu0 %v9359_v53  ;;  %7861 = vmatprep.subr.bf16.mxu1 %v9386_v54  ;;  %v4762_v53 = vld [vmem:[#allocation21 + $0xdd0] sm:$0xff]  ;;  %v9545_v54 = vcombine.low %v4711_v37, %v4727_v38  ;;  %v9578_v0 = vcombine.high %v4743_v51, %v4759_v47  ;;  %v9198_v37 = vcombine.high %v4361_v30, %v4377_v31  ;;  %v4393_v38 = vld [vmem:[#allocation21 + $0x248] sm:$0xff] }
 0x98a   : > { %7984 = vmatprep.subr.bf16.mxu0 %v9392_v62  ;;  %v9551_v62 = vcombine.low %v4714_v42, %v4730_v44  ;;  %v9584_v1 = vcombine.high %v4746_v52, %v4762_v53  ;;  %v4409_v42 = vld [vmem:[#allocation21 + $0x2c8] sm:$0xff] }
 0x98c   : > { %7862 = vmatpush1.bf16.msra.mxu1 %v9385_v3  ;;  %v4778_v3 = vld [vmem:[#allocation21 + $0xe50] sm:$0xff] }
 0x98d   : > { %7985 = vmatpush1.bf16.msra.mxu0 %v9391_v4  ;;  %7863 = vmatprep.subr.bf16.mxu1 %v9418_v5  ;;  %v4794_v4 = vld [vmem:[#allocation21 + $0xed0] sm:$0xff]  ;;  %v9577_v5 = vcombine.low %v4743_v51, %v4759_v47  ;;  %v9230_v51 = vcombine.high %v4393_v38, %v4409_v42 }
 0x98e   : > { %7986 = vmatprep.subr.bf16.mxu0 %v9424_v6  ;;  %v9583_v6 = vcombine.low %v4746_v52, %v4762_v53  ;;  %v9616_v8 = vcombine.high %v4778_v3, %v4794_v4  ;;  %v4425_v52 = vld [vmem:[#allocation21 + $0x348] sm:$0xff] }
 0x98f   : > { %v4441_v53 = vld [vmem:[#allocation21 + $0x3c8] sm:$0xff] }
 0x990   : > { %7864 = vmatpush1.bf16.msra.mxu1 %v9417_v11  ;;  %v4810_v11 = vld [vmem:[#allocation21 + $0xf50] sm:$0xff] }
 0x991   : > { %7987 = vmatpush1.bf16.msra.mxu0 %v9423_v12  ;;  %7865 = vmatprep.subr.bf16.mxu1 %v9450_v13  ;;  %v4826_v12 = vld [vmem:[#allocation21 + $0xfd0] sm:$0xff]  ;;  %v9609_v13 = vcombine.low %v4775_v59, %v4791_v2  ;;  %v9262_v59 = vcombine.high %v4425_v52, %v4441_v53 }
 0x992   : > { %7988 = vmatprep.subr.bf16.mxu0 %v9456_v15  ;;  %v9615_v15 = vcombine.low %v4778_v3, %v4794_v4  ;;  %v9648_v58 = vcombine.high %v4810_v11, %v4826_v12  ;;  %v4457_v3 = vld [vmem:[#allocation21 + $0x448] sm:$0xff] }
 0x993   : > { %v4473_v4 = vld [vmem:[#allocation21 + $0x4c8] sm:$0xff] }
 0x994   : > { %7866 = vmatpush1.bf16.msra.mxu1 %v9449_v21  ;;  %v4332_v21 = vld [vmem:[#allocation21 + $0x60] sm:$0xff] }
 0x995   : > { %7989 = vmatpush1.bf16.msra.mxu0 %v9455_v22  ;;  %7867 = vmatprep.subr.bf16.mxu1 %v9482_v23  ;;  %v4348_v22 = vld [vmem:[#allocation21 + $0xe0] sm:$0xff]  ;;  %v9641_v23 = vcombine.low %v4807_v9, %v4823_v20  ;;  %v9294_v9 = vcombine.high %v4457_v3, %v4473_v4 }
 0x996   : > { %7990 = vmatprep.subr.bf16.mxu0 %v9488_v25  ;;  %v9647_v25 = vcombine.low %v4810_v11, %v4826_v12  ;;  %v9172_v27 = vcombine.high %v4332_v21, %v4348_v22  ;;  %v4489_v11 = vld [vmem:[#allocation21 + $0x548] sm:$0xff] }
 0x997   : > { %v4505_v12 = vld [vmem:[#allocation21 + $0x5c8] sm:$0xff] }
 0x998   : > { %7868 = vmatpush1.bf16.msra.mxu1 %v9481_v32  ;;  %v9165_v32 = vcombine.low %v4329_v17, %v4345_v18  ;;  %v9326_v18 = vcombine.high %v4489_v11, %v4505_v12 }
 0x999   : > { %7991 = vmatpush1.bf16.msra.mxu0 %v9487_v33  ;;  %7869 = vmatprep.subr.bf16.mxu1 %v9514_v34  ;;  %v4364_v33 = vld [vmem:[#allocation21 + $0x160] sm:$0xff] }
 0x99a   : > { %7992 = vmatprep.subr.bf16.mxu0 %v9520_v36  ;;  %v4380_v34 = vld [vmem:[#allocation21 + $0x1e0] sm:$0xff]  ;;  %v9171_v36 = vcombine.low %v4332_v21, %v4348_v22  ;;  %v4521_v22 = vld [vmem:[#allocation21 + $0x648] sm:$0xff] }
 0x99b   : > { %v9204_v44 = vcombine.high %v4364_v33, %v4380_v34 }
 0x99c   : > { %7870 = vmatpush1.bf16.msra.mxu1 %v9513_v45  ;;  %v4396_v45 = vld [vmem:[#allocation21 + $0x260] sm:$0xff] }
 0x99d   : > { %7993 = vmatpush1.bf16.msra.mxu0 %v9519_v46  ;;  %7871 = vmatprep.subr.bf16.mxu1 %v9546_v49  ;;  %v4412_v46 = vld [vmem:[#allocation21 + $0x2e0] sm:$0xff]  ;;  %v9197_v49 = vcombine.low %v4361_v30, %v4377_v31  ;;  %v7415_v31 = vrot.slane %v12215_v14, %v11573_v19 }
 0x99e   : > { %7994 = vmatprep.subr.bf16.mxu0 %v9552_v50  ;;  %v9203_v50 = vcombine.low %v4364_v33, %v4380_v34  ;;  %v9236_v47 = vcombine.high %v4396_v45, %v4412_v46  ;;  %v4540_v30 = vld [vmem:[#allocation21 + $0x6e0] sm:$0xff]  ;;  %v9325_v33 = vcombine.low %v4489_v11, %v4505_v12  ;;  %v12261_v12 = vrot.slane %v8248_v55, %v11545_v57 }
 0x99f   : > { %v4604_v11 = vld [vmem:[#allocation21 + $0x8e0] sm:$0xff] }
 0x9a0   : > { %7872 = vmatpush1.bf16.msra.mxu1 %v9545_v54  ;;  %v4428_v54 = vld [vmem:[#allocation21 + $0x360] sm:$0xff] }
 0x9a1   : > { %7995 = vmatpush1.bf16.msra.mxu0 %v9551_v62  ;;  %7873 = vmatprep.subr.bf16.mxu1 %v9578_v0  ;;  %v4444_v62 = vld [vmem:[#allocation21 + $0x3e0] sm:$0xff]  ;;  %v9229_v0 = vcombine.low %v4393_v38, %v4409_v42 }
 0x9a2   : > { %7996 = vmatprep.subr.bf16.mxu0 %v9584_v1  ;;  %v9235_v1 = vcombine.low %v4396_v45, %v4412_v46  ;;  %v9268_v2 = vcombine.high %v4428_v54, %v4444_v62  ;;  %v4569_v45 = vld [vmem:[#allocation21 + $0x7c8] sm:$0xff] }
 0x9a4   : > { %7874 = vmatpush1.bf16.msra.mxu1 %v9577_v5  ;;  %v4460_v5 = vld [vmem:[#allocation21 + $0x460] sm:$0xff] }
 0x9a5   : > { %7997 = vmatpush1.bf16.msra.mxu0 %v9583_v6  ;;  %7875 = vmatprep.subr.bf16.mxu1 %v9610_v7  ;;  %v4476_v6 = vld [vmem:[#allocation21 + $0x4e0] sm:$0xff]  ;;  %v9261_v7 = vcombine.low %v4425_v52, %v4441_v53 }
 0x9a6   : > { %7998 = vmatprep.subr.bf16.mxu0 %v9616_v8  ;;  %v9267_v8 = vcombine.low %v4428_v54, %v4444_v62  ;;  %v9300_v20 = vcombine.high %v4460_v5, %v4476_v6  ;;  %v9299_v17 = vcombine.low %v4460_v5, %v4476_v6  ;;  %v4572_v52 = vld [vmem:[#allocation21 + $0x7e0] sm:$0xff] }
 0x9a8   : > { %7876 = vmatpush1.bf16.msra.mxu1 %v9609_v13  ;;  %v4492_v13 = vld [vmem:[#allocation21 + $0x560] sm:$0xff] }
 0x9a9   : > { %7999 = vmatpush1.bf16.msra.mxu0 %v9615_v15  ;;  %7877 = vmatprep.subr.bf16.mxu1 %v9642_v16  ;;  %v4508_v15 = vld [vmem:[#allocation21 + $0x5e0] sm:$0xff]  ;;  %v9293_v16 = vcombine.low %v4457_v3, %v4473_v4 }
 0x9aa   : > { %8000 = vmatprep.subr.bf16.mxu0 %v9648_v58  ;;  %v12241_v58 = vld [vmem:[#allocation23 + $0x8] sm:$0xff]  ;;  %v9332_v21 = vcombine.high %v4492_v13, %v4508_v15  ;;  %v9331_v34 = vcombine.low %v4492_v13, %v4508_v15 }
 0x9ac   : > { %7878 = vmatpush1.bf16.msra.mxu1 %v9641_v23  ;;  %v4537_v23 = vld [vmem:[#allocation21 + $0x6c8] sm:$0xff] }
 0x9ad   : > { %8001 = vmatpush1.bf16.msra.mxu0 %v9647_v25  ;;  %7929 = vmatprep.subr.bf16.mxu1 %v9166_v26  ;;  %v7411_v25 = vrot.slane %v12215_v14, %v11764_v28  ;;  %v7435_v26 = vrot.slane %v12241_v58, %v11535_v60 }
 0x9ae   : > { %8052 = vmatprep.subr.bf16.mxu0 %v9172_v27  ;;  %v4524_v27 = vld [vmem:[#allocation21 + $0x660] sm:$0xff] }
 0x9af   : > { %7880 = vmatmul.mubr.bf16.vlgmr.msra.gmra.mrb[36].mxu1 %v12195_v10  ;;  %v9364_v42 = vcombine.high %v4524_v27, %v4540_v30  ;;  %v9363_v3 = vcombine.low %v4524_v27, %v4540_v30  ;;  %v4649_v30 = vld [vmem:[#allocation21 + $0xa48] sm:$0xff] }
 0x9b0   : > { %8003 = vmatmul.mubr.bf16.vlgmr.msra.gmra.mrb[40].mxu0 %v12195_v10  ;;  %7930 = vmatpush1.bf16.msra.mxu1 %v9165_v32  ;;  %v7439_v32 = vrot.slane %v12241_v58, %v11538_v63 }
 0x9b1   : > { %7961 = vmatprep.mubr.bf16.mxu1 %v12193_v24  ;;  %8053 = vmatpush1.bf16.msra.mxu0 %v9171_v36  ;;  %v9358_v36 = vcombine.high %v4521_v22, %v4537_v23 }
 0x9b2   : > { %8084 = vmatprep.mubr.bf16.mxu0 %v12193_v24  ;;  %7931 = vmatprep.subr.bf16.mxu1 %v9198_v37 }
 0x9b3   : > { %8054 = vmatprep.subr.bf16.mxu0 %v9204_v44  ;;  %v4553_v44 = vld [vmem:[#allocation21 + $0x748] sm:$0xff] }
 0x9b4   : > { %7932 = vmatpush1.bf16.msra.mxu1 %v9197_v49  ;;  %v9390_v4 = vcombine.high %v4553_v44, %v4569_v45  ;;  %v9389_v15 = vcombine.low %v4553_v44, %v4569_v45  ;;  %v4697_v44 = vld [vmem:[#allocation21 + $0xbc8] sm:$0xff]  ;;  %v4684_v45 = vld [vmem:[#allocation21 + $0xb60] sm:$0xff] }
 0x9b5   : > { %8055 = vmatpush1.bf16.msra.mxu0 %v9203_v50  ;;  %7933 = vmatprep.subr.bf16.mxu1 %v9230_v51 }
 0x9b6   : > { %8056 = vmatprep.subr.bf16.mxu0 %v9236_v47  ;;  %v4556_v47 = vld [vmem:[#allocation21 + $0x760] sm:$0xff] }
 0x9b8   : > { %7934 = vmatpush1.bf16.msra.mxu1 %v9229_v0 }
 0x9b9   : > { %8057 = vmatpush1.bf16.msra.mxu0 %v9235_v1  ;;  %7935 = vmatprep.subr.bf16.mxu1 %v9262_v59  ;;  %v9357_v1 = vcombine.low %v4521_v22, %v4537_v23  ;;  %v4617_v22 = vld [vmem:[#allocation21 + $0x948] sm:$0xff] }
 0x9ba   : > { %8058 = vmatprep.subr.bf16.mxu0 %v9268_v2  ;;  %v4633_v23 = vld [vmem:[#allocation21 + $0x9c8] sm:$0xff] }
 0x9bc   : > { %7936 = vmatpush1.bf16.msra.mxu1 %v9261_v7  ;;  %v9396_v7 = vcombine.high %v4556_v47, %v4572_v52 }
 0x9bd   : > { %8059 = vmatpush1.bf16.msra.mxu0 %v9267_v8  ;;  %7937 = vmatprep.subr.bf16.mxu1 %v9294_v9  ;;  %v4585_v8 = vld [vmem:[#allocation21 + $0x848] sm:$0xff] }
 0x9be   : > { %8060 = vmatprep.subr.bf16.mxu0 %v9300_v20  ;;  %v4601_v9 = vld [vmem:[#allocation21 + $0x8c8] sm:$0xff]  ;;  %v4588_v20 = vld [vmem:[#allocation21 + $0x860] sm:$0xff] }
 0x9bf   : > { %v9421_v48 = vcombine.low %v4585_v8, %v4601_v9  ;;  %v9427_v55 = vcombine.low %v4588_v20, %v4604_v11 }
 0x9c0   : > { %7938 = vmatpush1.bf16.msra.mxu1 %v9293_v16  ;;  %v9395_v16 = vcombine.low %v4556_v47, %v4572_v52 }
 0x9c1   : > { %8061 = vmatpush1.bf16.msra.mxu0 %v9299_v17  ;;  %7939 = vmatprep.subr.bf16.mxu1 %v9326_v18  ;;  %v9422_v17 = vcombine.high %v4585_v8, %v4601_v9  ;;  %v4748_v8 = vld [vmem:[#allocation21 + $0xd60] sm:$0xff] }
 0x9c2   : > { %v7635_v37 = vpop.f32.mrb[24].mxu1  ;;  %v7758_v38 = vpop.f32.mrb[28].mxu0  ;;  %8062 = vmatprep.subr.bf16.mxu0 %v9332_v21  ;;  %v9428_v21 = vcombine.high %v4588_v20, %v4604_v11  ;;  %v4764_v9 = vld [vmem:[#allocation21 + $0xde0] sm:$0xff] }
 0x9c3   : > { %v7636_v46 = vadd.f32 %v7635_v37, %v7411_v25  ;;  %v12251_v49 = vadd.f32 %v7758_v38, %v7435_v26  ;;  %v7637_v50 = vpop.f32.mrb[25].mxu1  ;;  %v7760_v51 = vpop.f32.mrb[29].mxu0  ;;  %v4620_v25 = vld [vmem:[#allocation21 + $0x960] sm:$0xff]  ;;  %v9454_v26 = vcombine.high %v4617_v22, %v4633_v23 }
 0x9c4   : > { %v7638_v53 = vadd.f32 %v7637_v50, %v7415_v31  ;;  %v12253_v54 = vadd.f32 %v7760_v51, %v7439_v32  ;;  %v7639_v62 = vpop.f32.mrb[26].mxu1  ;;  %v7762_v0 = vpop.f32.mrb[30].mxu0  ;;  %7940 = vmatpush1.bf16.msra.mxu1 %v9325_v33  ;;  %v9460_v27 = vcombine.high %v4620_v25, %v4636_v39  ;;  %v4665_v31 = vld [vmem:[#allocation21 + $0xac8] sm:$0xff]  ;;  %v4652_v32 = vld [vmem:[#allocation21 + $0xa60] sm:$0xff] }
 0x9c5   : > { %8063 = vmatpush1.bf16.msra.mxu0 %v9331_v34  ;;  %v7640_v59 = vpop.f32.mrb[27].mxu1  ;;  %v7763_v2 = vpop.f32.mrb[31].mxu0  ;;  %7941 = vmatprep.subr.bf16.mxu1 %v9358_v36  ;;  %v4668_v33 = vld [vmem:[#allocation21 + $0xae0] sm:$0xff]  ;;  %v9453_v34 = vcombine.low %v4617_v22, %v4633_v23  ;;  %v9459_v36 = vcombine.low %v4620_v25, %v4636_v39  ;;  %v9486_v37 = vcombine.high %v4649_v30, %v4665_v31  ;;  %v4729_v62 = vld [vmem:[#allocation21 + $0xcc8] sm:$0xff] }
 0x9c6   : > { %v8249_v5 = vcombine.low %v7636_v46, %v7638_v53  ;;  %v8297_v6 = vcombine.low %v12251_v49, %v12253_v54  ;;  %8064 = vmatprep.subr.bf16.mxu0 %v9364_v42  ;;  %v9492_v38 = vcombine.high %v4652_v32, %v4668_v33  ;;  %v4681_v42 = vld [vmem:[#allocation21 + $0xb48] sm:$0xff]  ;;  %v4700_v46 = vld [vmem:[#allocation21 + $0xbe0] sm:$0xff]  ;;  %v9485_v50 = vcombine.low %v4649_v30, %v4665_v31 }
 0x9c7   : > { %v9491_v51 = vcombine.low %v4652_v32, %v4668_v33  ;;  %v9518_v47 = vcombine.high %v4681_v42, %v4697_v44  ;;  %v9524_v52 = vcombine.high %v4684_v45, %v4700_v46  ;;  %v4713_v53 = vld [vmem:[#allocation21 + $0xc48] sm:$0xff]  ;;  %v4716_v0 = vld [vmem:[#allocation21 + $0xc60] sm:$0xff]  ;;  %v9517_v59 = vcombine.low %v4681_v42, %v4697_v44  ;;  %v4334_v42 = vld [vmem:[#allocation21 + $0x70] sm:$0xff] }
 0x9c8   : > { %v12264_v13 = vrot.slane %v8249_v5, %v11545_v57  ;;  %7942 = vmatpush1.bf16.msra.mxu1 %v9357_v1  ;;  %v4732_v1 = vld [vmem:[#allocation21 + $0xce0] sm:$0xff]  ;;  %v9523_v2 = vcombine.low %v4684_v45, %v4700_v46  ;;  %v4745_v5 = vld [vmem:[#allocation21 + $0xd48] sm:$0xff]  ;;  %v9549_v20 = vcombine.low %v4713_v53, %v4729_v62  ;;  %v9587_v39 = vcombine.low %v4748_v8, %v4764_v9  ;;  %v4350_v44 = vld [vmem:[#allocation21 + $0xf0] sm:$0xff] }
 0x9c9   : > { %8065 = vmatpush1.bf16.msra.mxu0 %v9363_v3  ;;  %7943 = vmatprep.subr.bf16.mxu1 %v9390_v4  ;;  %v9550_v3 = vcombine.high %v4713_v53, %v4729_v62  ;;  %v9556_v4 = vcombine.high %v4716_v0, %v4732_v1  ;;  %v9555_v11 = vcombine.low %v4716_v0, %v4732_v1  ;;  %v4780_v22 = vld [vmem:[#allocation21 + $0xe60] sm:$0xff]  ;;  %v4366_v62 = vld [vmem:[#allocation21 + $0x170] sm:$0xff]  ;;  %v4669_v49 = vld [vmem:[#allocation21 + $0xae8] sm:$0xff] }
 0x9ca   : > { %v8280_v18 = vcombine.low %v12261_v12, %v12264_v13  ;;  %8066 = vmatprep.subr.bf16.mxu0 %v9396_v7  ;;  %v4761_v7 = vld [vmem:[#allocation21 + $0xdc8] sm:$0xff]  ;;  %v4796_v23 = vld [vmem:[#allocation21 + $0xee0] sm:$0xff]  ;;  %v4382_v0 = vld [vmem:[#allocation21 + $0x1f0] sm:$0xff]  ;;  %v9175_v1 = vcombine.low %v4334_v42, %v4350_v44 }
 0x9cb   : > { %v9581_v25 = vcombine.low %v4745_v5, %v4761_v7  ;;  %v4812_v30 = vld [vmem:[#allocation21 + $0xf60] sm:$0xff]  ;;  %v9619_v33 = vcombine.low %v4780_v22, %v4796_v23  ;;  %v4667_v12 = vld [vmem:[#allocation21 + $0xad8] sm:$0xff]  ;;  %v4654_v13 = vld [vmem:[#allocation21 + $0xa70] sm:$0xff] }
 0x9cc   : > { %7944 = vmatpush1.bf16.msra.mxu1 %v9389_v15  ;;  %v9582_v15 = vcombine.high %v4745_v5, %v4761_v7  ;;  %v4828_v31 = vld [vmem:[#allocation21 + $0xfe0] sm:$0xff]  ;;  %v4398_v5 = vld [vmem:[#allocation21 + $0x270] sm:$0xff]  ;;  %v8288_v40 = vrot.slane %v8280_v18, %v11545_v57 }
 0x9cd   : > { %8067 = vmatpush1.bf16.msra.mxu0 %v9395_v16  ;;  %7945 = vmatprep.subr.bf16.mxu1 %v9422_v17  ;;  %v9588_v16 = vcombine.high %v4748_v8, %v4764_v9  ;;  %v4777_v17 = vld [vmem:[#allocation21 + $0xe48] sm:$0xff]  ;;  %v9651_v46 = vcombine.low %v4812_v30, %v4828_v31  ;;  %v4414_v7 = vld [vmem:[#allocation21 + $0x2f0] sm:$0xff]  ;;  %v9207_v9 = vcombine.low %v4366_v62, %v4382_v0 }
 0x9ce   : > { %8068 = vmatprep.subr.bf16.mxu0 %v9428_v21  ;;  %v4793_v21 = vld [vmem:[#allocation21 + $0xec8] sm:$0xff]  ;;  %v4670_v18 = vld [vmem:[#allocation21 + $0xaf0] sm:$0xff] }
 0x9cf   : > { %v9613_v32 = vcombine.low %v4777_v17, %v4793_v21 }
 0x9d0   : > { %7946 = vmatpush1.bf16.msra.mxu1 %v9421_v48  ;;  %v9614_v48 = vcombine.high %v4777_v17, %v4793_v21  ;;  %v4430_v17 = vld [vmem:[#allocation21 + $0x370] sm:$0xff] }
 0x9d1   : > { %8069 = vmatpush1.bf16.msra.mxu0 %v9427_v55  ;;  %7947 = vmatprep.subr.bf16.mxu1 %v9454_v26  ;;  %v9620_v55 = vcombine.high %v4780_v22, %v4796_v23  ;;  %v4809_v26 = vld [vmem:[#allocation21 + $0xf48] sm:$0xff]  ;;  %v4446_v21 = vld [vmem:[#allocation21 + $0x3f0] sm:$0xff]  ;;  %v9239_v23 = vcombine.low %v4398_v5, %v4414_v7 }
 0x9d2   : > { %8070 = vmatprep.subr.bf16.mxu0 %v9460_v27  ;;  %v4825_v27 = vld [vmem:[#allocation21 + $0xfc8] sm:$0xff] }
 0x9d3   : > { %v9645_v45 = vcombine.low %v4809_v26, %v4825_v27 }
 0x9d4   : > { %7948 = vmatpush1.bf16.msra.mxu1 %v9453_v34  ;;  %v9646_v34 = vcombine.high %v4809_v26, %v4825_v27  ;;  %v4462_v26 = vld [vmem:[#allocation21 + $0x470] sm:$0xff] }
 0x9d5   : > { %8071 = vmatpush1.bf16.msra.mxu0 %v9459_v36  ;;  %7949 = vmatprep.subr.bf16.mxu1 %v9486_v37  ;;  %v9652_v36 = vcombine.high %v4812_v30, %v4828_v31  ;;  %v4331_v37 = vld [vmem:[#allocation21 + $0x58] sm:$0xff]  ;;  %v4478_v27 = vld [vmem:[#allocation21 + $0x4f0] sm:$0xff]  ;;  %v9271_v31 = vcombine.low %v4430_v17, %v4446_v21 }
 0x9d6   : > { %8072 = vmatprep.subr.bf16.mxu0 %v9492_v38  ;;  %v4347_v38 = vld [vmem:[#allocation21 + $0xd8] sm:$0xff] }
 0x9d7   : > { %v9169_v53 = vcombine.low %v4331_v37, %v4347_v38 }
 0x9d8   : > { %7950 = vmatpush1.bf16.msra.mxu1 %v9485_v50  ;;  %v9170_v50 = vcombine.high %v4331_v37, %v4347_v38  ;;  %v4494_v37 = vld [vmem:[#allocation21 + $0x570] sm:$0xff] }
 0x9d9   : > { %8073 = vmatpush1.bf16.msra.mxu0 %v9491_v51  ;;  %7951 = vmatprep.subr.bf16.mxu1 %v9518_v47  ;;  %v9176_v51 = vcombine.high %v4334_v42, %v4350_v44  ;;  %v4363_v47 = vld [vmem:[#allocation21 + $0x158] sm:$0xff]  ;;  %v4510_v38 = vld [vmem:[#allocation21 + $0x5f0] sm:$0xff]  ;;  %v9303_v44 = vcombine.low %v4462_v26, %v4478_v27 }
 0x9da   : > { %8074 = vmatprep.subr.bf16.mxu0 %v9524_v52  ;;  %v4379_v52 = vld [vmem:[#allocation21 + $0x1d8] sm:$0xff] }
 0x9db   : > { %v9201_v8 = vcombine.low %v4363_v47, %v4379_v52 }
 0x9dc   : > { %7952 = vmatpush1.bf16.msra.mxu1 %v9517_v59  ;;  %v9202_v59 = vcombine.high %v4363_v47, %v4379_v52  ;;  %v7427_v47 = vrot.slane %v12215_v14, %v12165_v61  ;;  %v4526_v52 = vld [vmem:[#allocation21 + $0x670] sm:$0xff] }
 0x9dd   : > { %8075 = vmatpush1.bf16.msra.mxu0 %v9523_v2  ;;  %7953 = vmatprep.subr.bf16.mxu1 %v9550_v3  ;;  %v4395_v2 = vld [vmem:[#allocation21 + $0x258] sm:$0xff] }
 0x9de   : > { %8076 = vmatprep.subr.bf16.mxu0 %v9556_v4  ;;  %v4411_v3 = vld [vmem:[#allocation21 + $0x2d8] sm:$0xff]  ;;  %v9208_v4 = vcombine.high %v4366_v62, %v4382_v0  ;;  %v7451_v62 = vrot.slane %v12241_v58, %v11963_v41  ;;  %v7431_v0 = vrot.slane %v12215_v14, %v11969_v43 }
 0x9df   : > { %v9233_v22 = vcombine.low %v4395_v2, %v4411_v3 }
 0x9e0   : > { %7954 = vmatpush1.bf16.msra.mxu1 %v9549_v20  ;;  %v9234_v20 = vcombine.high %v4395_v2, %v4411_v3  ;;  %v9335_v2 = vcombine.low %v4494_v37, %v4510_v38 }
 0x9e1   : > { %8077 = vmatpush1.bf16.msra.mxu0 %v9555_v11  ;;  %7955 = vmatprep.subr.bf16.mxu1 %v9582_v15  ;;  %v9240_v11 = vcombine.high %v4398_v5, %v4414_v7  ;;  %v4427_v15 = vld [vmem:[#allocation21 + $0x358] sm:$0xff] }
 0x9e2   : > { %8078 = vmatprep.subr.bf16.mxu0 %v9588_v16  ;;  %v4443_v16 = vld [vmem:[#allocation21 + $0x3d8] sm:$0xff] }
 0x9e3   : > { %v9265_v30 = vcombine.low %v4427_v15, %v4443_v16  ;;  %v4555_v7 = vld [vmem:[#allocation21 + $0x758] sm:$0xff] }
 0x9e4   : > { %7956 = vmatpush1.bf16.msra.mxu1 %v9581_v25  ;;  %v9266_v25 = vcombine.high %v4427_v15, %v4443_v16  ;;  %v4558_v15 = vld [vmem:[#allocation21 + $0x770] sm:$0xff] }
 0x9e5   : > { %8079 = vmatpush1.bf16.msra.mxu0 %v9587_v39  ;;  %7957 = vmatprep.subr.bf16.mxu1 %v9614_v48  ;;  %v9272_v39 = vcombine.high %v4430_v17, %v4446_v21  ;;  %v4459_v48 = vld [vmem:[#allocation21 + $0x458] sm:$0xff]  ;;  %v4574_v16 = vld [vmem:[#allocation21 + $0x7f0] sm:$0xff] }
 0x9e6   : > { %8080 = vmatprep.subr.bf16.mxu0 %v9620_v55  ;;  %v4475_v55 = vld [vmem:[#allocation21 + $0x4d8] sm:$0xff] }
 0x9e7   : > { %v9297_v42 = vcombine.low %v4459_v48, %v4475_v55 }
 0x9e8   : > { %7958 = vmatpush1.bf16.msra.mxu1 %v9613_v32  ;;  %v9298_v32 = vcombine.high %v4459_v48, %v4475_v55 }
 0x9e9   : > { %8081 = vmatpush1.bf16.msra.mxu0 %v9619_v33  ;;  %7959 = vmatprep.subr.bf16.mxu1 %v9646_v34  ;;  %v9304_v33 = vcombine.high %v4462_v26, %v4478_v27  ;;  %v4491_v34 = vld [vmem:[#allocation21 + $0x558] sm:$0xff] }
 0x9ea   : > { %8082 = vmatprep.subr.bf16.mxu0 %v9652_v36  ;;  %v4507_v36 = vld [vmem:[#allocation21 + $0x5d8] sm:$0xff] }
 0x9ec   : > { %7960 = vmatpush1.bf16.msra.mxu1 %v9645_v45  ;;  %v9330_v45 = vcombine.high %v4491_v34, %v4507_v36 }
 0x9ed   : > { %8083 = vmatpush1.bf16.msra.mxu0 %v9651_v46  ;;  %8011 = vmatprep.subr.bf16.mxu1 %v9170_v50  ;;  %v9336_v46 = vcombine.high %v4494_v37, %v4510_v38  ;;  %v4523_v50 = vld [vmem:[#allocation21 + $0x658] sm:$0xff]  ;;  %v4606_v37 = vld [vmem:[#allocation21 + $0x8f0] sm:$0xff]  ;;  %v8272_v38 = vrot.slane %v8250_v56, %v11545_v57 }
 0x9ee   : > { %8134 = vmatprep.subr.bf16.mxu0 %v9176_v51  ;;  %v4539_v51 = vld [vmem:[#allocation21 + $0x6d8] sm:$0xff] }
 0x9ef   : > { %7962 = vmatmul.mubr.bf16.vlgmr.msra.gmra.mrb[40].mxu1 %v12195_v10  ;;  %v9362_v3 = vcombine.high %v4523_v50, %v4539_v51 }
 0x9f0   : > { %8085 = vmatmul.mubr.bf16.vlgmr.msra.gmra.mrb[44].mxu0 %v12195_v10  ;;  %8012 = vmatpush1.bf16.msra.mxu1 %v9169_v53  ;;  %v4542_v53 = vld [vmem:[#allocation21 + $0x6f0] sm:$0xff] }
 0x9f1   : > { %8043 = vmatprep.mubr.bf16.mxu1 %v12193_v24  ;;  %8135 = vmatpush1.bf16.msra.mxu0 %v9175_v1  ;;  %v9329_v1 = vcombine.low %v4491_v34, %v4507_v36  ;;  %v9368_v5 = vcombine.high %v4526_v52, %v4542_v53  ;;  %v9367_v55 = vcombine.low %v4526_v52, %v4542_v53  ;;  %v4590_v36 = vld [vmem:[#allocation21 + $0x870] sm:$0xff]  ;;  %v4635_v52 = vld [vmem:[#allocation21 + $0x9d8] sm:$0xff] }
 0x9f2   : > { %8166 = vmatprep.mubr.bf16.mxu0 %v12193_v24  ;;  %8013 = vmatprep.subr.bf16.mxu1 %v9202_v59  ;;  %v7455_v59 = vrot.slane %v12241_v58, %v11767_v29  ;;  %v4622_v53 = vld [vmem:[#allocation21 + $0x970] sm:$0xff] }
 0x9f3   : > { %8136 = vmatprep.subr.bf16.mxu0 %v9208_v4 }
 0x9f4   : > { %8014 = vmatpush1.bf16.msra.mxu1 %v9201_v8  ;;  %v4571_v8 = vld [vmem:[#allocation21 + $0x7d8] sm:$0xff] }
 0x9f5   : > { %8137 = vmatpush1.bf16.msra.mxu0 %v9207_v9  ;;  %8015 = vmatprep.subr.bf16.mxu1 %v9234_v20  ;;  %v9394_v26 = vcombine.high %v4555_v7, %v4571_v8 }
 0x9f6   : > { %8138 = vmatprep.subr.bf16.mxu0 %v9240_v11 }
 0x9f8   : > { %8016 = vmatpush1.bf16.msra.mxu1 %v9233_v22 }
 0x9f9   : > { %8139 = vmatpush1.bf16.msra.mxu0 %v9239_v23  ;;  %8017 = vmatprep.subr.bf16.mxu1 %v9266_v25  ;;  %v9361_v23 = vcombine.low %v4523_v50, %v4539_v51  ;;  %v9432_v51 = vcombine.high %v4590_v36, %v4606_v37 }
 0x9fa   : > { %8140 = vmatprep.subr.bf16.mxu0 %v9272_v39 }
 0x9fc   : > { %8018 = vmatpush1.bf16.msra.mxu1 %v9265_v30 }
 0x9fd   : > { %8141 = vmatpush1.bf16.msra.mxu0 %v9271_v31  ;;  %8019 = vmatprep.subr.bf16.mxu1 %v9298_v32  ;;  %v9400_v31 = vcombine.high %v4558_v15, %v4574_v16  ;;  %v4587_v32 = vld [vmem:[#allocation21 + $0x858] sm:$0xff] }
 0x9fe   : > { %8142 = vmatprep.subr.bf16.mxu0 %v9304_v33  ;;  %v4603_v33 = vld [vmem:[#allocation21 + $0x8d8] sm:$0xff] }
 0x9ff   : > { %v9425_v56 = vcombine.low %v4587_v32, %v4603_v33 }
 0xa00   : > { %8020 = vmatpush1.bf16.msra.mxu1 %v9297_v42 }
 0xa01   : > { %8143 = vmatpush1.bf16.msra.mxu0 %v9303_v44  ;;  %8021 = vmatprep.subr.bf16.mxu1 %v9330_v45  ;;  %v9393_v44 = vcombine.low %v4555_v7, %v4571_v8  ;;  %v9399_v45 = vcombine.low %v4558_v15, %v4574_v16  ;;  %v9496_v8 = vcombine.high %v4654_v13, %v4670_v18  ;;  %v4702_v15 = vld [vmem:[#allocation21 + $0xbf0] sm:$0xff] }
 0xa02   : > { %v7717_v4 = vpop.f32.mrb[28].mxu1  ;;  %8144 = vmatprep.subr.bf16.mxu0 %v9336_v46  ;;  %v9426_v46 = vcombine.high %v4587_v32, %v4603_v33  ;;  %v4747_v32 = vld [vmem:[#allocation21 + $0xd58] sm:$0xff] }
 0xa03   : > { %v7718_v9 = vadd.f32 %v7717_v4, %v7427_v47  ;;  %v7840_v20 = vpop.f32.mrb[32].mxu0  ;;  %v7719_v11 = vpop.f32.mrb[29].mxu1  ;;  %v4619_v47 = vld [vmem:[#allocation21 + $0x958] sm:$0xff] }
 0xa04   : > { %v12280_v17 = vadd.f32 %v7840_v20, %v7451_v62  ;;  %v7720_v14 = vadd.f32 %v7719_v11, %v7431_v0  ;;  %v7842_v21 = vpop.f32.mrb[33].mxu0  ;;  %v7721_v22 = vpop.f32.mrb[30].mxu1  ;;  %8022 = vmatpush1.bf16.msra.mxu1 %v9329_v1  ;;  %v4638_v62 = vld [vmem:[#allocation21 + $0x9f0] sm:$0xff]  ;;  %v9431_v0 = vcombine.low %v4590_v36, %v4606_v37  ;;  %v9458_v1 = vcombine.high %v4619_v47, %v4635_v52  ;;  %v4699_v20 = vld [vmem:[#allocation21 + $0xbd8] sm:$0xff] }
 0xa05   : > { %v12282_v25 = vadd.f32 %v7842_v21, %v7455_v59  ;;  %v7844_v39 = vpop.f32.mrb[34].mxu0  ;;  %8145 = vmatpush1.bf16.msra.mxu0 %v9335_v2  ;;  %v7722_v48 = vpop.f32.mrb[31].mxu1  ;;  %8023 = vmatprep.subr.bf16.mxu1 %v9362_v3  ;;  %v9464_v2 = vcombine.high %v4622_v53, %v4638_v62  ;;  %v4651_v3 = vld [vmem:[#allocation21 + $0xa58] sm:$0xff]  ;;  %v9457_v4 = vcombine.low %v4619_v47, %v4635_v52  ;;  %v4686_v11 = vld [vmem:[#allocation21 + $0xb70] sm:$0xff] }
 0xa06   : > { %v8251_v27 = vcombine.low %v7718_v9, %v7720_v14  ;;  %v7845_v30 = vpop.f32.mrb[35].mxu0  ;;  %8146 = vmatprep.subr.bf16.mxu0 %v9368_v5  ;;  %v9463_v5 = vcombine.low %v4622_v53, %v4638_v62  ;;  %v9490_v7 = vcombine.high %v4651_v3, %v4667_v12  ;;  %v4683_v9 = vld [vmem:[#allocation21 + $0xb58] sm:$0xff]  ;;  %v9489_v16 = vcombine.low %v4651_v3, %v4667_v12  ;;  %v4718_v48 = vld [vmem:[#allocation21 + $0xc70] sm:$0xff] }
 0xa07   : > { %v8299_v34 = vcombine.low %v12280_v17, %v12282_v25  ;;  %v9495_v14 = vcombine.low %v4654_v13, %v4670_v18  ;;  %v9522_v21 = vcombine.high %v4683_v9, %v4699_v20  ;;  %v9528_v22 = vcombine.high %v4686_v11, %v4702_v15  ;;  %v4731_v39 = vld [vmem:[#allocation21 + $0xcd8] sm:$0xff]  ;;  %v4750_v36 = vld [vmem:[#allocation21 + $0xd70] sm:$0xff]  ;;  %v4333_v13 = vld [vmem:[#allocation21 + $0x68] sm:$0xff] }
 0xa08   : > { %v8279_v42 = vrot.slane %v8251_v27, %v11545_v57  ;;  %8024 = vmatpush1.bf16.msra.mxu1 %v9361_v23  ;;  %v4715_v23 = vld [vmem:[#allocation21 + $0xc58] sm:$0xff]  ;;  %v9527_v27 = vcombine.low %v4686_v11, %v4702_v15  ;;  %v4766_v37 = vld [vmem:[#allocation21 + $0xdf0] sm:$0xff]  ;;  %v4349_v18 = vld [vmem:[#allocation21 + $0xe8] sm:$0xff] }
 0xa09   : > { %8147 = vmatpush1.bf16.msra.mxu0 %v9367_v55  ;;  %8025 = vmatprep.subr.bf16.mxu1 %v9394_v26  ;;  %v4734_v55 = vld [vmem:[#allocation21 + $0xcf0] sm:$0xff]  ;;  %v9521_v26 = vcombine.low %v4683_v9, %v4699_v20  ;;  %v9554_v30 = vcombine.high %v4715_v23, %v4731_v39  ;;  %v4763_v33 = vld [vmem:[#allocation21 + $0xdd8] sm:$0xff]  ;;  %v9591_v53 = vcombine.low %v4750_v36, %v4766_v37  ;;  %v4381_v9 = vld [vmem:[#allocation21 + $0x1e8] sm:$0xff] }
 0xa0a   : > { %v8281_v50 = vcombine.low %v8272_v38, %v8279_v42  ;;  %8148 = vmatprep.subr.bf16.mxu0 %v9400_v31  ;;  %v9560_v31 = vcombine.high %v4718_v48, %v4734_v55  ;;  %v9553_v38 = vcombine.low %v4715_v23, %v4731_v39  ;;  %v9559_v42 = vcombine.low %v4718_v48, %v4734_v55  ;;  %v4798_v47 = vld [vmem:[#allocation21 + $0xef0] sm:$0xff]  ;;  %v4397_v15 = vld [vmem:[#allocation21 + $0x268] sm:$0xff] }
 0xa0b   : > { %v9585_v52 = vcombine.low %v4747_v32, %v4763_v33  ;;  %v9173_v20 = vcombine.low %v4333_v13, %v4349_v18  ;;  %v4445_v23 = vld [vmem:[#allocation21 + $0x3e8] sm:$0xff] }
 0xa0c   : > { %v8295_v35 = vrot.slane %v8281_v50, %v11545_v57  ;;  %8026 = vmatpush1.bf16.msra.mxu1 %v9393_v44  ;;  %v9586_v44 = vcombine.high %v4747_v32, %v4763_v33  ;;  %v4795_v50 = vld [vmem:[#allocation21 + $0xed8] sm:$0xff]  ;;  %v4461_v55 = vld [vmem:[#allocation21 + $0x468] sm:$0xff] }
 0xa0d   : > { %8149 = vmatpush1.bf16.msra.mxu0 %v9399_v45  ;;  %8027 = vmatprep.subr.bf16.mxu1 %v9426_v46  ;;  %v9592_v45 = vcombine.high %v4750_v36, %v4766_v37  ;;  %v4779_v46 = vld [vmem:[#allocation21 + $0xe58] sm:$0xff]  ;;  %v4509_v32 = vld [vmem:[#allocation21 + $0x5e8] sm:$0xff]  ;;  %v12306_v36 = vld [vmem:[#allocation23 + $0x10] sm:$0xff] }
 0xa0e   : > { %v8296_v59 = vcombine.low %v8288_v40, %v8295_v35  ;;  %8150 = vmatprep.subr.bf16.mxu0 %v9432_v51  ;;  %v4782_v51 = vld [vmem:[#allocation21 + $0xe70] sm:$0xff]  ;;  %v9618_v62 = vcombine.high %v4779_v46, %v4795_v50  ;;  %v4811_v35 = vld [vmem:[#allocation21 + $0xf58] sm:$0xff] }
 0xa0f   : > { %v9624_v40 = vcombine.high %v4782_v51, %v4798_v47 }
 0xa10   : > { %8448 = vst [vmem:[%s12300_s30] sm:$0xff] %v8296_v59  ;;  %8028 = vmatpush1.bf16.msra.mxu1 %v9425_v56  ;;  %v4827_v56 = vld [vmem:[#allocation21 + $0xfd8] sm:$0xff]  ;;  %v9617_v59 = vcombine.low %v4779_v46, %v4795_v50  ;;  %v7447_v46 = vrot.slane %v12241_v58, %v11573_v19 }
 0xa11   : > { %8151 = vmatpush1.bf16.msra.mxu0 %v9431_v0  ;;  %8029 = vmatprep.subr.bf16.mxu1 %v9458_v1  ;;  %v4814_v0 = vld [vmem:[#allocation21 + $0xf70] sm:$0xff]  ;;  %v9650_v3 = vcombine.high %v4811_v35, %v4827_v56 }
 0xa12   : > { %8152 = vmatprep.subr.bf16.mxu0 %v9464_v2  ;;  %v4830_v1 = vld [vmem:[#allocation21 + $0xff0] sm:$0xff]  ;;  %v9623_v2 = vcombine.low %v4782_v51, %v4798_v47  ;;  %v7471_v51 = vrot.slane %v12306_v36, %v11538_v63 }
 0xa13   : > { %v9656_v12 = vcombine.high %v4814_v0, %v4830_v1 }
 0xa14   : > { %8030 = vmatpush1.bf16.msra.mxu1 %v9457_v4  ;;  %v9649_v4 = vcombine.low %v4811_v35, %v4827_v56 }
 0xa15   : > { %8153 = vmatpush1.bf16.msra.mxu0 %v9463_v5  ;;  %8031 = vmatprep.subr.bf16.mxu1 %v9490_v7  ;;  %v9655_v5 = vcombine.low %v4814_v0, %v4830_v1  ;;  %v9174_v7 = vcombine.high %v4333_v13, %v4349_v18 }
 0xa16   : > { %8154 = vmatprep.subr.bf16.mxu0 %v9496_v8  ;;  %v4365_v8 = vld [vmem:[#allocation21 + $0x168] sm:$0xff] }
 0xa17   : > { %v9206_v11 = vcombine.high %v4365_v8, %v4381_v9 }
 0xa18   : > { %8032 = vmatpush1.bf16.msra.mxu1 %v9489_v16  ;;  %v4413_v16 = vld [vmem:[#allocation21 + $0x2e8] sm:$0xff] }
 0xa19   : > { %8155 = vmatpush1.bf16.msra.mxu0 %v9495_v14  ;;  %8033 = vmatprep.subr.bf16.mxu1 %v9522_v21  ;;  %v9205_v14 = vcombine.low %v4365_v8, %v4381_v9  ;;  %v9238_v21 = vcombine.high %v4397_v15, %v4413_v16  ;;  %v9237_v39 = vcombine.low %v4397_v15, %v4413_v16  ;;  %v4605_v8 = vld [vmem:[#allocation21 + $0x8e8] sm:$0xff] }
 0xa1a   : > { %8156 = vmatprep.subr.bf16.mxu0 %v9528_v22  ;;  %v4429_v22 = vld [vmem:[#allocation21 + $0x368] sm:$0xff] }
 0xa1b   : > { %v9270_v48 = vcombine.high %v4429_v22, %v4445_v23 }
 0xa1c   : > { %8034 = vmatpush1.bf16.msra.mxu1 %v9521_v26  ;;  %v4477_v26 = vld [vmem:[#allocation21 + $0x4e8] sm:$0xff] }
 0xa1d   : > { %8157 = vmatpush1.bf16.msra.mxu0 %v9527_v27  ;;  %8035 = vmatprep.subr.bf16.mxu1 %v9554_v30  ;;  %v9269_v27 = vcombine.low %v4429_v22, %v4445_v23  ;;  %v9302_v30 = vcombine.high %v4461_v55, %v4477_v26  ;;  %v9301_v33 = vcombine.low %v4461_v55, %v4477_v26  ;;  %v4637_v22 = vld [vmem:[#allocation21 + $0x9e8] sm:$0xff] }
 0xa1e   : > { %8158 = vmatprep.subr.bf16.mxu0 %v9560_v31  ;;  %v4493_v31 = vld [vmem:[#allocation21 + $0x568] sm:$0xff] }
 0xa1f   : > { %v9334_v37 = vcombine.high %v4493_v31, %v4509_v32  ;;  %v9333_v50 = vcombine.low %v4493_v31, %v4509_v32  ;;  %v4685_v55 = vld [vmem:[#allocation21 + $0xb68] sm:$0xff] }
 0xa20   : > { %8036 = vmatpush1.bf16.msra.mxu1 %v9553_v38  ;;  %v4525_v38 = vld [vmem:[#allocation21 + $0x668] sm:$0xff] }
 0xa21   : > { %8159 = vmatpush1.bf16.msra.mxu0 %v9559_v42  ;;  %8037 = vmatprep.subr.bf16.mxu1 %v9586_v44  ;;  %v4541_v42 = vld [vmem:[#allocation21 + $0x6e8] sm:$0xff]  ;;  %v7443_v44 = vrot.slane %v12241_v58, %v11764_v28 }
 0xa22   : > { %8160 = vmatprep.subr.bf16.mxu0 %v9592_v45  ;;  %v7467_v45 = vrot.slane %v12306_v36, %v11535_v60  ;;  %v9366_v47 = vcombine.high %v4525_v38, %v4541_v42  ;;  %v4701_v26 = vld [vmem:[#allocation21 + $0xbe8] sm:$0xff] }
 0xa23   : > { %v4717_v31 = vld [vmem:[#allocation21 + $0xc68] sm:$0xff] }
 0xa24   : > { %8038 = vmatpush1.bf16.msra.mxu1 %v9585_v52  ;;  %v4733_v32 = vld [vmem:[#allocation21 + $0xce8] sm:$0xff] }
 0xa25   : > { %8161 = vmatpush1.bf16.msra.mxu0 %v9591_v53  ;;  %8039 = vmatprep.subr.bf16.mxu1 %v9618_v62  ;;  %v4557_v53 = vld [vmem:[#allocation21 + $0x768] sm:$0xff] }
 0xa26   : > { %8162 = vmatprep.subr.bf16.mxu0 %v9624_v40  ;;  %v4573_v62 = vld [vmem:[#allocation21 + $0x7e8] sm:$0xff] }
 0xa27   : > { %v9398_v18 = vcombine.high %v4557_v53, %v4573_v62  ;;  %v9397_v15 = vcombine.low %v4557_v53, %v4573_v62  ;;  %v4829_v53 = vld [vmem:[#allocation21 + $0xfe8] sm:$0xff] }
 0xa28   : > { %8040 = vmatpush1.bf16.msra.mxu1 %v9617_v59 }
 0xa29   : > { %8163 = vmatpush1.bf16.msra.mxu0 %v9623_v2  ;;  %8041 = vmatprep.subr.bf16.mxu1 %v9650_v3  ;;  %v9365_v3 = vcombine.low %v4525_v38, %v4541_v42  ;;  %v4749_v38 = vld [vmem:[#allocation21 + $0xd68] sm:$0xff] }
 0xa2a   : > { %8164 = vmatprep.subr.bf16.mxu0 %v9656_v12  ;;  %v4765_v42 = vld [vmem:[#allocation21 + $0xde8] sm:$0xff] }
 0xa2c   : > { %8042 = vmatpush1.bf16.msra.mxu1 %v9649_v4 }
 0xa2d   : > { %8165 = vmatpush1.bf16.msra.mxu0 %v9655_v5  ;;  %8093 = vmatprep.subr.bf16.mxu1 %v9174_v7  ;;  %v4589_v7 = vld [vmem:[#allocation21 + $0x868] sm:$0xff] }
 0xa2e   : > { %v9430_v16 = vcombine.high %v4589_v7, %v4605_v8  ;;  %v9429_v23 = vcombine.low %v4589_v7, %v4605_v8  ;;  %v4431_v8 = vld [vmem:[#allocation21 + $0x378] sm:$0xff] }
 0xa2f   : > { %8044 = vmatmul.mubr.bf16.vlgmr.msra.gmra.mrb[44].mxu1 %v12195_v10 }
 0xa30   : > { %8167 = vmatmul.mubr.bf16.vlgmr.msra.gmra.mrb[48].mxu0 %v12195_v10  ;;  %8094 = vmatpush1.bf16.msra.mxu1 %v9173_v20  ;;  %v12326_v20 = vrot.slane %v8297_v6, %v11545_v57 }
 0xa31   : > { %8125 = vmatprep.mubr.bf16.mxu1 %v12193_v24  ;;  %8095 = vmatprep.subr.bf16.mxu1 %v9206_v11 }
 0xa34   : > { %8096 = vmatpush1.bf16.msra.mxu1 %v9205_v14 }
 0xa35   : > { %8097 = vmatprep.subr.bf16.mxu1 %v9238_v21  ;;  %v4621_v21 = vld [vmem:[#allocation21 + $0x968] sm:$0xff] }
 0xa36   : > { %v9461_v54 = vcombine.low %v4621_v21, %v4637_v22 }
 0xa38   : > { %8098 = vmatpush1.bf16.msra.mxu1 %v9237_v39  ;;  %v9462_v39 = vcombine.high %v4621_v21, %v4637_v22  ;;  %v4463_v22 = vld [vmem:[#allocation21 + $0x478] sm:$0xff] }
 0xa39   : > { %8099 = vmatprep.subr.bf16.mxu1 %v9270_v48  ;;  %v4653_v48 = vld [vmem:[#allocation21 + $0xa68] sm:$0xff] }
 0xa3a   : > { %v9494_v6 = vcombine.high %v4653_v48, %v4669_v49 }
 0xa3c   : > { %8100 = vmatpush1.bf16.msra.mxu1 %v9269_v27  ;;  %v9493_v27 = vcombine.low %v4653_v48, %v4669_v49  ;;  %v4495_v49 = vld [vmem:[#allocation21 + $0x578] sm:$0xff] }
 0xa3d   : > { %8101 = vmatprep.subr.bf16.mxu1 %v9302_v30  ;;  %v9526_v30 = vcombine.high %v4685_v55, %v4701_v26 }
 0xa40   : > { %8102 = vmatpush1.bf16.msra.mxu1 %v9301_v33  ;;  %v9525_v33 = vcombine.low %v4685_v55, %v4701_v26  ;;  %v4527_v55 = vld [vmem:[#allocation21 + $0x678] sm:$0xff] }
 0xa41   : > { %8103 = vmatprep.subr.bf16.mxu1 %v9334_v37  ;;  %v9558_v37 = vcombine.high %v4717_v31, %v4733_v32  ;;  %v4543_v26 = vld [vmem:[#allocation21 + $0x6f8] sm:$0xff] }
 0xa42   : > { %v7799_v52 = vpop.f32.mrb[32].mxu1 }
 0xa43   : > { %v7800_v40 = vadd.f32 %v7799_v52, %v7443_v44  ;;  %v7922_v35 = vpop.f32.mrb[36].mxu0  ;;  %v7801_v56 = vpop.f32.mrb[33].mxu1  ;;  %v9557_v44 = vcombine.low %v4717_v31, %v4733_v32  ;;  %v4813_v52 = vld [vmem:[#allocation21 + $0xf68] sm:$0xff]  ;;  %v7483_v31 = vrot.slane %v12306_v36, %v11963_v41 }
 0xa44   : > { %v12316_v0 = vadd.f32 %v7922_v35, %v7467_v45  ;;  %v7802_v1 = vadd.f32 %v7801_v56, %v7447_v46  ;;  %v7924_v59 = vpop.f32.mrb[37].mxu0  ;;  %v7803_v2 = vpop.f32.mrb[34].mxu1  ;;  %8104 = vmatpush1.bf16.msra.mxu1 %v9333_v50  ;;  %v9590_v45 = vcombine.high %v4749_v38, %v4765_v42  ;;  %v4781_v46 = vld [vmem:[#allocation21 + $0xe68] sm:$0xff]  ;;  %v4335_v35 = vld [vmem:[#allocation21 + $0x78] sm:$0xff] }
 0xa45   : > { %v12318_v58 = vadd.f32 %v7924_v59, %v7471_v51  ;;  %v7926_v12 = vpop.f32.mrb[38].mxu0  ;;  %v7804_v13 = vpop.f32.mrb[35].mxu1  ;;  %8105 = vmatprep.subr.bf16.mxu1 %v9366_v47  ;;  %v4797_v50 = vld [vmem:[#allocation21 + $0xee8] sm:$0xff]  ;;  %v9589_v51 = vcombine.low %v4749_v38, %v4765_v42  ;;  %v4351_v56 = vld [vmem:[#allocation21 + $0xf8] sm:$0xff]  ;;  %v9370_v38 = vcombine.high %v4527_v55, %v4543_v26 }
 0xa46   : > { %v8298_v4 = vcombine.low %v7800_v40, %v7802_v1  ;;  %v7927_v5 = vpop.f32.mrb[39].mxu0  ;;  %v9622_v47 = vcombine.high %v4781_v46, %v4797_v50  ;;  %v9621_v62 = vcombine.low %v4781_v46, %v4797_v50  ;;  %v9654_v40 = vcombine.high %v4813_v52, %v4829_v53  ;;  %v4367_v2 = vld [vmem:[#allocation21 + $0x178] sm:$0xff] }
 0xa47   : > { %v8346_v9 = vcombine.low %v12316_v0, %v12318_v58  ;;  %v9653_v1 = vcombine.low %v4813_v52, %v4829_v53  ;;  %v9178_v59 = vcombine.high %v4335_v35, %v4351_v56  ;;  %v9177_v12 = vcombine.low %v4335_v35, %v4351_v56 }
 0xa48   : > { %v12329_v11 = vrot.slane %v8298_v4, %v11545_v57  ;;  %8106 = vmatpush1.bf16.msra.mxu1 %v9365_v3  ;;  %v4383_v3 = vld [vmem:[#allocation21 + $0x1f8] sm:$0xff] }
 0xa49   : > { %8107 = vmatprep.subr.bf16.mxu1 %v9398_v18  ;;  %v9210_v13 = vcombine.high %v4367_v2, %v4383_v3  ;;  %v4399_v18 = vld [vmem:[#allocation21 + $0x278] sm:$0xff]  ;;  %v9209_v5 = vcombine.low %v4367_v2, %v4383_v3 }
 0xa4a   : > { %v8329_v14 = vcombine.low %v12326_v20, %v12329_v11  ;;  %v4415_v4 = vld [vmem:[#allocation21 + $0x2f8] sm:$0xff] }
 0xa4b   : > { %v9242_v7 = vcombine.high %v4399_v18, %v4415_v4  ;;  %v4719_v11 = vld [vmem:[#allocation21 + $0xc78] sm:$0xff] }
 0xa4c   : > { %8108 = vmatpush1.bf16.msra.mxu1 %v9397_v15  ;;  %v4447_v15 = vld [vmem:[#allocation21 + $0x3f8] sm:$0xff] }
 0xa4d   : > { %8109 = vmatprep.subr.bf16.mxu1 %v9430_v16  ;;  %v9241_v16 = vcombine.low %v4399_v18, %v4415_v4  ;;  %v9274_v21 = vcombine.high %v4431_v8, %v4447_v15  ;;  %v8321_v4 = vrot.slane %v8299_v34, %v11545_v57 }
 0xa50   : > { %8110 = vmatpush1.bf16.msra.mxu1 %v9429_v23  ;;  %v4479_v23 = vld [vmem:[#allocation21 + $0x4f8] sm:$0xff] }
 0xa51   : > { %8111 = vmatprep.subr.bf16.mxu1 %v9462_v39  ;;  %v9273_v39 = vcombine.low %v4431_v8, %v4447_v15  ;;  %v9306_v48 = vcombine.high %v4463_v22, %v4479_v23 }
 0xa54   : > { %8112 = vmatpush1.bf16.msra.mxu1 %v9461_v54  ;;  %v4511_v54 = vld [vmem:[#allocation21 + $0x5f8] sm:$0xff] }
 0xa55   : > { %8113 = vmatprep.subr.bf16.mxu1 %v9494_v6  ;;  %v9305_v6 = vcombine.low %v4463_v22, %v4479_v23  ;;  %v8337_v22 = vrot.slane %v8329_v14, %v11545_v57  ;;  %v4735_v14 = vld [vmem:[#allocation21 + $0xcf8] sm:$0xff] }
 0xa58   : > { %8114 = vmatpush1.bf16.msra.mxu1 %v9493_v27  ;;  %v10404_v27 = vld [vmem:[#allocation23 + $0x8] sm:$0xff] }
 0xa59   : > { %8115 = vmatprep.subr.bf16.mxu1 %v9526_v30  ;;  %v7459_v30 = vrot.slane %v10404_v27, %v12165_v61  ;;  %v7463_v32 = vrot.slane %v10404_v27, %v11969_v43  ;;  %v9562_v27 = vcombine.high %v4719_v11, %v4735_v14 }
 0xa5c   : > { %8116 = vmatpush1.bf16.msra.mxu1 %v9525_v33  ;;  %v9337_v33 = vcombine.low %v4495_v49, %v4511_v54 }
 0xa5d   : > { %8117 = vmatprep.subr.bf16.mxu1 %v9558_v37  ;;  %v7487_v37 = vrot.slane %v12306_v36, %v11767_v29 }
 0xa60   : > { %8118 = vmatpush1.bf16.msra.mxu1 %v9557_v44  ;;  %v4559_v44 = vld [vmem:[#allocation21 + $0x778] sm:$0xff] }
 0xa61   : > { %8119 = vmatprep.subr.bf16.mxu1 %v9590_v45  ;;  %v4575_v45 = vld [vmem:[#allocation21 + $0x7f8] sm:$0xff] }
 0xa64   : > { %8120 = vmatpush1.bf16.msra.mxu1 %v9589_v51 }
 0xa65   : > { %8121 = vmatprep.subr.bf16.mxu1 %v9622_v47 }
 0xa68   : > { %8122 = vmatpush1.bf16.msra.mxu1 %v9621_v62 }
 0xa69   : > { %8123 = vmatprep.subr.bf16.mxu1 %v9654_v40  ;;  %v9369_v40 = vcombine.low %v4527_v55, %v4543_v26 }
 0xa6c   : > { %8124 = vmatpush1.bf16.msra.mxu1 %v9653_v1 }
 0xa6d   : > { %8175 = vmatprep.subr.bf16.mxu1 %v9178_v59  ;;  %v9402_v59 = vcombine.high %v4559_v44, %v4575_v45 }
 0xa6f   : > { %8126 = vmatmul.mubr.bf16.vlgmr.msra.gmra.mrb[48].mxu1 %v12195_v10 }
 0xa70   : > { %8176 = vmatpush1.bf16.msra.mxu1 %v9177_v12  ;;  %8207 = vmatprep.mubr.bf16.mxu1 %v12193_v24  ;;  %v9338_v24 = vcombine.high %v4495_v49, %v4511_v54  ;;  %v4591_v12 = vld [vmem:[#allocation21 + $0x878] sm:$0xff] }
 0xa71   : > { %8177 = vmatprep.subr.bf16.mxu1 %v9210_v13  ;;  %v4607_v13 = vld [vmem:[#allocation21 + $0x8f8] sm:$0xff] }
 0xa72   : > { %v9434_v8 = vcombine.high %v4591_v12, %v4607_v13  ;;  %v9433_v17 = vcombine.low %v4591_v12, %v4607_v13 }
 0xa74   : > { %8178 = vmatpush1.bf16.msra.mxu1 %v9209_v5 }
 0xa75   : > { %8179 = vmatprep.subr.bf16.mxu1 %v9242_v7  ;;  %v9401_v7 = vcombine.low %v4559_v44, %v4575_v45  ;;  %v4815_v45 = vld [vmem:[#allocation21 + $0xf78] sm:$0xff] }
 0xa78   : > { %8180 = vmatpush1.bf16.msra.mxu1 %v9241_v16  ;;  %v4623_v16 = vld [vmem:[#allocation21 + $0x978] sm:$0xff] }
 0xa79   : > { %8181 = vmatprep.subr.bf16.mxu1 %v9274_v21  ;;  %v4639_v21 = vld [vmem:[#allocation21 + $0x9f8] sm:$0xff] }
 0xa7a   : > { %v9466_v25 = vcombine.high %v4623_v16, %v4639_v21  ;;  %v9465_v49 = vcombine.low %v4623_v16, %v4639_v21 }
 0xa7c   : > { %8182 = vmatpush1.bf16.msra.mxu1 %v9273_v39  ;;  %v4655_v39 = vld [vmem:[#allocation21 + $0xa78] sm:$0xff] }
 0xa7d   : > { %8183 = vmatprep.subr.bf16.mxu1 %v9306_v48  ;;  %v4671_v48 = vld [vmem:[#allocation21 + $0xaf8] sm:$0xff] }
 0xa7e   : > { %v9498_v54 = vcombine.high %v4655_v39, %v4671_v48  ;;  %v9497_v55 = vcombine.low %v4655_v39, %v4671_v48 }
 0xa80   : > { %8184 = vmatpush1.bf16.msra.mxu1 %v9305_v6  ;;  %v4687_v6 = vld [vmem:[#allocation21 + $0xb78] sm:$0xff] }
 0xa81   : > { %8185 = vmatprep.subr.bf16.mxu1 %v9338_v24  ;;  %v4703_v24 = vld [vmem:[#allocation21 + $0xbf8] sm:$0xff] }
 0xa82   : > { %v7881_v42 = vpop.f32.mrb[36].mxu1  ;;  %v9530_v20 = vcombine.high %v4687_v6, %v4703_v24  ;;  %v9529_v26 = vcombine.low %v4687_v6, %v4703_v24 }
 0xa83   : > { %v7882_v46 = vadd.f32 %v7881_v42, %v7459_v30  ;;  %v8004_v50 = vpop.f32.mrb[40].mxu0  ;;  %v7883_v51 = vpop.f32.mrb[37].mxu1  ;;  %v4751_v30 = vld [vmem:[#allocation21 + $0xd78] sm:$0xff] }
 0xa84   : > { %v12341_v47 = vadd.f32 %v8004_v50, %v7483_v31  ;;  %v7884_v52 = vadd.f32 %v7883_v51, %v7463_v32  ;;  %v8006_v53 = vpop.f32.mrb[41].mxu0  ;;  %v7885_v62 = vpop.f32.mrb[38].mxu1  ;;  %8186 = vmatpush1.bf16.msra.mxu1 %v9337_v33  ;;  %v4767_v31 = vld [vmem:[#allocation21 + $0xdf8] sm:$0xff]  ;;  %v9561_v32 = vcombine.low %v4719_v11, %v4735_v14 }
 0xa85   : > { %v12343_v35 = vadd.f32 %v8006_v53, %v7487_v37  ;;  %v8008_v56 = vpop.f32.mrb[42].mxu0  ;;  %v7886_v1 = vpop.f32.mrb[39].mxu1  ;;  %8187 = vmatprep.subr.bf16.mxu1 %v9370_v38  ;;  %v9594_v33 = vcombine.high %v4751_v30, %v4767_v31  ;;  %v4783_v37 = vld [vmem:[#allocation21 + $0xe78] sm:$0xff]  ;;  %v9593_v42 = vcombine.low %v4751_v30, %v4767_v31  ;;  %v7475_v62 = vrot.slane %v12306_v36, %v11764_v28 }
 0xa86   : > { %v8300_v2 = vcombine.low %v7882_v46, %v7884_v52  ;;  %v8009_v3 = vpop.f32.mrb[43].mxu0  ;;  %v4799_v38 = vld [vmem:[#allocation21 + $0xef8] sm:$0xff]  ;;  %v7479_v56 = vrot.slane %v12306_v36, %v11573_v19 }
 0xa87   : > { %v8348_v18 = vcombine.low %v12341_v47, %v12343_v35  ;;  %v9626_v44 = vcombine.high %v4783_v37, %v4799_v38  ;;  %v4831_v46 = vld [vmem:[#allocation21 + $0xff8] sm:$0xff]  ;;  %v9625_v50 = vcombine.low %v4783_v37, %v4799_v38 }
 0xa88   : > { %v8328_v5 = vrot.slane %v8300_v2, %v11545_v57  ;;  %8188 = vmatpush1.bf16.msra.mxu1 %v9369_v40  ;;  %v9658_v51 = vcombine.high %v4815_v45, %v4831_v46  ;;  %v9657_v52 = vcombine.low %v4815_v45, %v4831_v46  ;;  %v12359_v53 = vld [vmem:[#allocation23 + $0x18] sm:$0xff] }
 0xa89   : > { %8189 = vmatprep.subr.bf16.mxu1 %v9402_v59  ;;  %v7499_v40 = vrot.slane %v12359_v53, %v11535_v60  ;;  %v7503_v1 = vrot.slane %v12359_v53, %v11538_v63  ;;  %v7519_v39 = vrot.slane %v12359_v53, %v11767_v29  ;;  %v8370_v29 = vrot.slane %v8348_v18, %v11545_v57 }
 0xa8a   : > { %v8330_v15 = vcombine.low %v8321_v4, %v8328_v5  ;;  %v7511_v37 = vrot.slane %v12359_v53, %v11573_v19 }
 0xa8c   : > { %v8344_v23 = vrot.slane %v8330_v15, %v11545_v57  ;;  %8190 = vmatpush1.bf16.msra.mxu1 %v9401_v7 }
 0xa8d   : > { %8191 = vmatprep.subr.bf16.mxu1 %v9434_v8 }
 0xa8e   : > { %v8345_v34 = vcombine.low %v8337_v22, %v8344_v23  ;;  %v8356_v22 = vrot.slane %v8346_v9, %v11545_v57 }
 0xa90   : > { %8449 = vst [vmem:[%s12300_s30 + $0x8] sm:$0xff] %v8345_v34  ;;  %8192 = vmatpush1.bf16.msra.mxu1 %v9433_v17  ;;  %v7491_v17 = vrot.slane %v12306_v36, %v12165_v61  ;;  %v7495_v34 = vrot.slane %v12306_v36, %v11969_v43 }
 0xa91   : > { %8193 = vmatprep.subr.bf16.mxu1 %v9466_v25  ;;  %v7515_v25 = vrot.slane %v12359_v53, %v11963_v41 }
 0xa94   : > { %8194 = vmatpush1.bf16.msra.mxu1 %v9465_v49 }
 0xa95   : > { %8195 = vmatprep.subr.bf16.mxu1 %v9498_v54 }
 0xa98   : > { %8196 = vmatpush1.bf16.msra.mxu1 %v9497_v55 }
 0xa99   : > { %8197 = vmatprep.subr.bf16.mxu1 %v9530_v20 }
 0xa9c   : > { %8198 = vmatpush1.bf16.msra.mxu1 %v9529_v26 }
 0xa9d   : > { %8199 = vmatprep.subr.bf16.mxu1 %v9562_v27 }
 0xaa0   : > { %8200 = vmatpush1.bf16.msra.mxu1 %v9561_v32 }
 0xaa1   : > { %8201 = vmatprep.subr.bf16.mxu1 %v9594_v33  ;;  %v7507_v33 = vrot.slane %v12359_v53, %v11764_v28  ;;  %v7527_v28 = vrot.slane %v12359_v53, %v11969_v43 }
 0xaa4   : > { %8202 = vmatpush1.bf16.msra.mxu1 %v9593_v42 }
 0xaa5   : > { %8203 = vmatprep.subr.bf16.mxu1 %v9626_v44 }
 0xaa8   : > { %8204 = vmatpush1.bf16.msra.mxu1 %v9625_v50 }
 0xaa9   : > { %8205 = vmatprep.subr.bf16.mxu1 %v9658_v51 }
 0xaac   : > { %8206 = vmatpush1.bf16.msra.mxu1 %v9657_v52  ;;  %v7523_v52 = vrot.slane %v12359_v53, %v12165_v61 }
 0xaaf   : > { %8208 = vmatmul.mubr.bf16.vlgmr.msra.gmra.mrb[52].mxu1 %v12195_v10 }
 0xac2   : > { %v7963_v59 = vpop.f32.mrb[40].mxu1 }
 0xac3   : > { %v7964_v2 = vadd.f32 %v7963_v59, %v7475_v62  ;;  %v8086_v3 = vpop.f32.mrb[44].mxu0  ;;  %v7965_v12 = vpop.f32.mrb[41].mxu1 }
 0xac4   : > { %v8087_v13 = vadd.f32 %v8086_v3, %v7499_v40  ;;  %v7966_v10 = vadd.f32 %v7965_v12, %v7479_v56  ;;  %v8088_v4 = vpop.f32.mrb[45].mxu0  ;;  %v7967_v5 = vpop.f32.mrb[42].mxu1 }
 0xac5   : > { %v8089_v7 = vadd.f32 %v8088_v4, %v7503_v1  ;;  %v8090_v8 = vpop.f32.mrb[46].mxu0  ;;  %v7968_v15 = vpop.f32.mrb[43].mxu1 }
 0xac6   : > { %v8347_v16 = vcombine.low %v7964_v2, %v7966_v10  ;;  %v8091_v21 = vpop.f32.mrb[47].mxu0 }
 0xac7   : > { %v8395_v60 = vcombine.low %v8087_v13, %v8089_v7 }
 0xac8   : > { %v8363_v63 = vrot.slane %v8347_v16, %v11545_v57 }
 0xac9   : > { %v8405_v46 = vrot.slane %v8395_v60, %v11545_v57 }
 0xaca   : > { %v8378_v23 = vcombine.low %v8356_v22, %v8363_v63 }
 0xacc   : > { %v8386_v30 = vrot.slane %v8378_v23, %v11545_v57 }
 0xb02   : > { %v8045_v48 = vpop.f32.mrb[44].mxu1 }
 0xb03   : > { %v8046_v49 = vadd.f32 %v8045_v48, %v7491_v17  ;;  %v8168_v54 = vpop.f32.mrb[48].mxu0  ;;  %v8047_v0 = vpop.f32.mrb[45].mxu1 }
 0xb04   : > { %v8169_v58 = vadd.f32 %v8168_v54, %v7515_v25  ;;  %v8048_v9 = vadd.f32 %v8047_v0, %v7495_v34  ;;  %v8170_v6 = vpop.f32.mrb[49].mxu0  ;;  %v8049_v24 = vpop.f32.mrb[46].mxu1 }
 0xb05   : > { %v8171_v55 = vadd.f32 %v8170_v6, %v7519_v39  ;;  %v8172_v20 = vpop.f32.mrb[50].mxu0  ;;  %v8050_v11 = vpop.f32.mrb[47].mxu1 }
 0xb06   : > { %v8349_v14 = vcombine.low %v8046_v49, %v8048_v9  ;;  %v8173_v41 = vpop.f32.mrb[51].mxu0 }
 0xb07   : > { %v8397_v26 = vcombine.low %v8169_v58, %v8171_v55 }
 0xb08   : > { %v8377_v36 = vrot.slane %v8349_v14, %v11545_v57 }
 0xb09   : > { %v8419_v3 = vrot.slane %v8397_v26, %v11545_v57 }
 0xb0a   : > { %v8379_v27 = vcombine.low %v8370_v29, %v8377_v36 }
 0xb0c   : > { %v8393_v31 = vrot.slane %v8379_v27, %v11545_v57 }
 0xb0e   : > { %v8394_v32 = vcombine.low %v8386_v30, %v8393_v31 }
 0xb10   : > { %8450 = vst [vmem:[%s12300_s30 + $0x10] sm:$0xff] %v8394_v32 }
 0xb42   : > { %v8127_v38 = vpop.f32.mrb[48].mxu1 }
 0xb43   : > { %v8128_v42 = vadd.f32 %v8127_v38, %v7507_v33  ;;  %v8129_v44 = vpop.f32.mrb[49].mxu1 }
 0xb44   : > { %v8130_v47 = vadd.f32 %v8129_v44, %v7511_v37  ;;  %v8131_v35 = vpop.f32.mrb[50].mxu1 }
 0xb45   : > { %v8132_v18 = vpop.f32.mrb[51].mxu1 }
 0xb46   : > { %v8396_v45 = vcombine.low %v8128_v42, %v8130_v47 }
 0xb48   : > { %v8412_v50 = vrot.slane %v8396_v45, %v11545_v57 }
 0xb4a   : > { %v8427_v51 = vcombine.low %v8405_v46, %v8412_v50 }
 0xb4c   : > { %v8435_v10 = vrot.slane %v8427_v51, %v11545_v57 }
 0xb82   : > { %v8209_v19 = vpop.f32.mrb[52].mxu1 }
 0xb83   : > { %v8210_v62 = vadd.f32 %v8209_v19, %v7523_v52  ;;  %v8211_v40 = vpop.f32.mrb[53].mxu1 }
 0xb84   : > { %v8212_v56 = vadd.f32 %v8211_v40, %v7527_v28  ;;  %v8213_v1 = vpop.f32.mrb[54].mxu1 }
 0xb85   : > { %v8214_v59 = vpop.f32.mrb[55].mxu1 }
 0xb86   : > { %v8398_v2 = vcombine.low %v8210_v62, %v8212_v56 }
 0xb88   : > { %v8426_v12 = vrot.slane %v8398_v2, %v11545_v57 }
 0xb8a   : > { %v8428_v13 = vcombine.low %v8419_v3, %v8426_v12 }
 0xb8c   : > { %v8442_v4 = vrot.slane %v8428_v13, %v11545_v57 }
 0xb8e   : > { %v8443_v61 = vcombine.low %v8435_v10, %v8442_v4 }
 0xb90   : > { %8451 = vst [vmem:[%s12300_s30 + $0x18] sm:$0xff] %v8443_v61 }
 0xb91 PF: > { %s12463_s24 = sld [smem:[#allocation32_spill]] }
 0xb97   : > { %s35_s26 = sadd.s32 1, %s12463_s24   ;;  %s12464_s24 = smov %s10815_s25 }
 0xb98   : > { %p32_p7 = scmp.ge.s32.totalorder %s35_s26, 4   ;;  %s12465_s25 = smov %s12467_s3 }
 0xb9a   :  { %34 = sbr.rel (!%p32_p7) target bundleno = 16 (0x10), region = 190 }
 0xba1   :  { %8496 = vsyncpa [#allocation5], 1 }
 0xba2   :  { %8498 = vsyncpa [#allocation5 + $0x1], 1 }
 0xba3   :  { %8499 = vsyncpa [#allocation7], 1 }
 0xba4   :  { %8500 = vsyncpa [#allocation10], 1 }
 0xba5   :  { %8501 = vsyncpa [#allocation13], 1 }
 0xba6   :  { %8502 = vsyncpa [#allocation16], 1 }
 0xba7   :  { %8503 = vsyncpa [#allocation19], 1 }
 0xba8   :  { %8504 = vsyncpa [#allocation22], 1 }

</bundles_post_ra>
